<compile_context>
chip_gen: v7x
topology: tpu7x:2x2x1
jax: 0.10.0
libtpu: 0.0.40
codegen_flags: <defaults>
</compile_context>

<pallas_src>
import math
import functools

import jax
import jax.numpy as jnp
from jax import lax
from jax.experimental import pallas as pl
from jax.experimental.pallas import tpu as pltpu  # noqa: F401  (TPU backend / memory spaces)

F32 = jnp.float32


def _silu(x):
    return x * (1.0 / (1.0 + jnp.exp(-x)))


# ----------------------------- constant 3x3 shift operators -----------------------------

def _shift_matrices(H, W):
    """S[k] is the (L, L) operator with (S[k] @ v)[h*W+w] = v[(h+dh)*W + (w+dw)] for the
    k-th kernel tap (dh, dw) in row-major order, and 0 where the neighbour is outside the
    image (exact zero-padded 3x3 conv taps)."""
    L = H * W
    idx = jnp.arange(L, dtype=jnp.int32)
    hh = idx // W
    ww = idx % W
    cols = jnp.arange(L, dtype=jnp.int32)[None, :]
    mats = []
    for dh in (-1, 0, 1):
        for dw in (-1, 0, 1):
            src = (hh + dh) * W + (ww + dw)
            valid = (hh + dh >= 0) & (hh + dh < H) & (ww + dw >= 0) & (ww + dw < W)
            mats.append(((src[:, None] == cols) & valid[:, None]).astype(F32))
    return jnp.stack(mats, axis=0)                      # (9, L, L)


def make_stacked_shift(B, H, W):
    """Horizontally stacked, batch-block-diagonal shift operator S_h of shape
    (B*L, 9*B*L):  S_h[:, k*B*L:(k+1)*B*L] applies tap k independently per image, so
    sum_k S_k @ z_k == S_h @ vstack(z_0..z_8)  (one MXU dot for all 9 taps)."""
    L = H * W
    S = _shift_matrices(H, W)                           # (9, L, L)
    eye = jnp.eye(B, dtype=F32)
    Sb = jnp.einsum("bc,kij->kbicj", eye, S).reshape(9, B * L, B * L)
    return jnp.transpose(Sb, (1, 0, 2)).reshape(B * L, 9 * B * L)


# ----------------------------- parameters (raw, inference-style) -----------------------------

def init_params(key, dim=32, num_heads=2):
    sd = dim // 4
    dims = [sd // 2 ** i for i in range(3)]
    dims.reverse()                                      # [sd/4, sd/2, sd]
    sum_dims = sum(dims)
    c2 = 2 * dim

    keys = iter(jax.random.split(key, 64))

    def nrm(shape, s=0.1):
        return (s * jax.random.normal(next(keys), shape)).astype(F32)

    p = {}
    # block: BatchNorm2d(2*dim) (eval, folded to affine) + ReLU + Conv2d(2*dim -> dim, 1x1)
    gamma = 1.0 + nrm((c2,)); beta = nrm((c2,))
    rmean = nrm((c2,)); rvar = 1.0 + 0.1 * jnp.abs(nrm((c2,)))
    scale = gamma / jnp.sqrt(rvar + 1e-5)
    p["blk_scale"] = scale.reshape(1, c2)
    p["blk_shift"] = (beta - rmean * scale).reshape(1, c2)
    p["blk_w"] = nrm((c2, dim)); p["blk_b"] = nrm((1, dim))

    # MGA
    p["sq_in_w"] = nrm((dim, sd));      p["sq_in_b"] = nrm((1, sd))
    p["proj_in_w"] = nrm((sd, 2 * sd)); p["proj_in_b"] = nrm((1, 2 * sd))
    p["dw_w"] = nrm((9, sum_dims));     p["dw_b"] = nrm((1, sum_dims))
    p["proj0_w"] = nrm((dims[0], dims[1])); p["proj0_b"] = nrm((1, dims[1]))
    p["proj1_w"] = nrm((dims[1], dims[2])); p["proj1_b"] = nrm((1, dims[2]))

    # RepConv(sd, sd): conv3x3+BN + conv1x1+BN, SiLU.  BN folded (eval) and the 1x1
    # branch merged into the 3x3 centre tap -> one equivalent 3x3 conv + bias.
    w3 = nrm((3, 3, sd, sd))
    w1 = nrm((1, 1, sd, sd))
    g3 = 1.0 + nrm((sd,)); b3 = nrm((sd,)); m3 = nrm((sd,)); v3 = 1.0 + 0.1 * jnp.abs(nrm((sd,)))
    g1 = 1.0 + nrm((sd,)); b1 = nrm((sd,)); m1 = nrm((sd,)); v1 = 1.0 + 0.1 * jnp.abs(nrm((sd,)))
    s3 = g3 / jnp.sqrt(v3 + 1e-5); sh3 = b3 - m3 * s3
    s1 = g1 / jnp.sqrt(v1 + 1e-5); sh1 = b1 - m1 * s1
    w3f = w3 * s3[None, None, None, :]
    w1f = w1 * s1[None, None, None, :]
    w_eq = w3f.at[1, 1].add(w1f[0, 0])
    p["rep_w"] = w_eq.reshape(9 * sd, sd)               # rows [k*sd:(k+1)*sd] = tap k
    p["rep_b"] = (sh3 + sh1).reshape(1, sd)

    p["sq_out_w"] = nrm((sd, dim)); p["sq_out_b"] = nrm((1, dim))

    # transformer part
    p["ln_g"] = (1.0 + nrm((dim,))).reshape(1, dim)
    p["ln_b"] = nrm((dim,)).reshape(1, dim)
    q_w = nrm((dim, dim)); q_b = nrm((1, dim))
    k_w = nrm((dim, dim)); k_b = nrm((1, dim))
    v_w = nrm((dim, dim)); v_b = nrm((1, dim))
    inv = 1.0 / math.sqrt(dim // num_heads)
    # fused qkv, with the 1/sqrt(Dh) attention scale folded into the q slice
    p["qkv_w"] = jnp.concatenate([q_w * inv, k_w, v_w], axis=1)    # (dim, 3*dim)
    p["qkv_b"] = jnp.concatenate([q_b * inv, k_b, v_b], axis=1)    # (1, 3*dim)

    p["ffn_w"] = nrm((dim, dim)); p["ffn_b"] = nrm((1, dim))
    p["out_w"] = nrm((dim, 2 * dim)); p["out_b"] = nrm((1, 2 * dim))
    return p


# ----------------------------- offline folding + weight packing -----------------------------

def fold_and_pack(p):
    """Fold the purely-linear chains offline and pack all weights/biases into ONE
    (rows, 128) f32 buffer (8-row-aligned segments).  Returns (buffer, offsets)."""
    # (1) block 1x1 conv -> squeeze_in -> proj_in (no nonlinearity between them)
    w_sx = p["blk_w"] @ p["sq_in_w"]                        # (2*dim, sd)
    b_sx = p["blk_b"] @ p["sq_in_w"] + p["sq_in_b"]         # (1, sd)
    w_pj = w_sx @ p["proj_in_w"]                            # (2*dim, 2*sd)
    b_pj = b_sx @ p["proj_in_w"] + p["proj_in_b"]           # (1, 2*sd)
    w_in = jnp.concatenate([w_sx, w_pj], axis=1)            # (2*dim, 3*sd)
    b_in = jnp.concatenate([b_sx, b_pj], axis=1)

    # (2) FFN (pure Linear) residual folded into conv_out
    w_out = p["out_w"] + p["ffn_w"] @ p["out_w"]            # (dim, 2*dim)
    b_out = p["ffn_b"] @ p["out_w"] + p["out_b"]            # (1, 2*dim)

    entries = [
        ("blk_scale", p["blk_scale"]), ("blk_shift", p["blk_shift"]),
        ("w_in", w_in), ("b_in", b_in),
        ("dw_w", p["dw_w"]), ("dw_b", p["dw_b"]),
        ("proj0_w", p["proj0_w"]), ("proj0_b", p["proj0_b"]),
        ("proj1_w", p["proj1_w"]), ("proj1_b", p["proj1_b"]),
        ("rep_w", p["rep_w"]), ("rep_b", p["rep_b"]),
        ("sq_out_w", p["sq_out_w"]), ("sq_out_b", p["sq_out_b"]),
        ("ln_g", p["ln_g"]), ("ln_b", p["ln_b"]),
        ("qkv_w", p["qkv_w"]), ("qkv_b", p["qkv_b"]),
        ("out_w", w_out), ("out_b", b_out),
    ]
    LANES = 128
    blocks, offsets, off = [], {}, 0
    for name, a in entries:
        a = jnp.asarray(a, F32)
        r, c = a.shape
        assert c <= LANES
        rp = -(-r // 8) * 8                                # sublane-align every segment
        blocks.append(jnp.zeros((rp, LANES), F32).at[:r, :c].set(a))
        offsets[name] = (off, r, c)
        off += rp
    return jnp.concatenate(blocks, axis=0), offsets


# ----------------------------- fused forward (one pallas_call, no grid) -----------------------------

def ddt_block_forward(feats_nchw, w_packed, shift_h, offsets, *, dim=32, num_heads=2):
    B, C2, H, W = feats_nchw.shape
    assert C2 == 2 * dim
    sd = dim // 4
    d0, d1, d2 = sd // 4, sd // 2, sd
    L = H * W
    BL = B * L
    Dh = dim // num_heads

    # channels-last, batch folded into rows; all heavy work happens inside the kernel
    x2d = jnp.transpose(feats_nchw, (0, 2, 3, 1)).reshape(BL, C2).astype(F32)

    def kernel(x_ref, s_ref, w_ref, o_ref):
        def wv(name):
            o, r, c = offsets[name]
            return w_ref[o:o + r, 0:c]                  # static slice of the packed buffer

        xv = x_ref[...]                                  # (BL, 2*dim)
        S = s_ref[...]                                   # (BL, 9*BL) stacked shift operator

        # ---- block: folded BN affine -> ReLU -> fused [1x1 conv . squeeze_in . proj_in] ----
        h = jnp.maximum(xv * wv("blk_scale") + wv("blk_shift"), 0.0)
        sp = jnp.dot(h, wv("w_in"), preferred_element_type=F32) + wv("b_in")   # (BL, 3*sd)
        sx = sp[:, :sd]                                  # squeeze_in(x)
        p0 = sp[:, sd:sd + d0]                           # projection_0
        p1 = sp[:, sd + d0:]                             # projection_1 (sum_dims cols)

        # ---- depthwise 3x3 (zero pad): per-tap channel scale (VPU) + ONE stacked MXU dot ----
        dw_w = wv("dw_w")                                # (9, sum_dims)
        z = jnp.concatenate([p1 * dw_w[k:k + 1, :] for k in range(9)], axis=0)  # (9*BL, sum_dims)
        pj_split = jnp.dot(S, z, preferred_element_type=F32) + wv("dw_b")       # MGA scale s = 1.0

        pj0 = pj_split[:, :d0]
        pj1 = pj_split[:, d0:d0 + d1]
        pj2 = pj_split[:, d0 + d1:]

        px = p0 * pj0
        px = (jnp.dot(px, wv("proj0_w"), preferred_element_type=F32) + wv("proj0_b")) * pj1
        px = (jnp.dot(px, wv("proj1_w"), preferred_element_type=F32) + wv("proj1_b")) * pj2

        # ---- per-image channel gate: GAP -> SiLU -> softmax(channels) -> scale ----
        row = lax.broadcasted_iota(jnp.int32, (BL, 1), 0)
        th_rows = None
        for b in range(B):
            m_b = jnp.mean(pj2[b * L:(b + 1) * L, :], axis=0, keepdims=True)   # (1, sd)
            m_b = _silu(m_b)
            m_b = m_b - jnp.max(m_b, axis=-1, keepdims=True)
            e_b = jnp.exp(m_b)
            th_b = e_b / jnp.sum(e_b, axis=-1, keepdims=True)
            th_full = jnp.broadcast_to(th_b, (BL, sd))
            th_rows = th_full if th_rows is None else jnp.where(row >= b * L, th_full, th_rows)
        y = th_rows * pj2

        sx2 = _silu(px * y) + sx                          # (BL, sd)

        # ---- RepConv (folded 3x3+1x1+BN) + SiLU: 9 tiny channel-mix dots + ONE stacked MXU dot ----
        rep_w = wv("rep_w")                               # (9*sd, sd)
        zr = jnp.concatenate(
            [jnp.dot(sx2, rep_w[k * sd:(k + 1) * sd, :], preferred_element_type=F32)
             for k in range(9)], axis=0)                  # (9*BL, sd)
        rep = _silu(jnp.dot(S, zr, preferred_element_type=F32) + wv("rep_b"))

        xm = jnp.dot(rep, wv("sq_out_w"), preferred_element_type=F32) + wv("sq_out_b")  # (BL, dim)

        # ---- transformer: LayerNorm -> fused qkv -> per-image 2-head attention ----
        mu = jnp.mean(xm, axis=-1, keepdims=True)
        var = jnp.mean((xm - mu) ** 2, axis=-1, keepdims=True)
        xn = (xm - mu) * lax.rsqrt(var + 1e-5) * wv("ln_g") + wv("ln_b")

        qkv = jnp.dot(xn, wv("qkv_w"), preferred_element_type=F32) + wv("qkv_b")  # (BL, 3*dim)

        ctx_rows = []
        for b in range(B):
            r0 = b * L
            heads = []
            for hd in range(num_heads):
                q_h = qkv[r0:r0 + L, hd * Dh:(hd + 1) * Dh]          # 1/sqrt(Dh) folded in
                k_h = qkv[r0:r0 + L, dim + hd * Dh:dim + (hd + 1) * Dh]
                v_h = qkv[r0:r0 + L, 2 * dim + hd * Dh:2 * dim + (hd + 1) * Dh]
                sc = lax.dot_general(q_h, k_h, (((1,), (1,)), ((), ())),
                                     preferred_element_type=F32)     # (L, L) = q @ k^T
                sc = sc - jnp.max(sc, axis=-1, keepdims=True)
                es = jnp.exp(sc)
                pr = es / jnp.sum(es, axis=-1, keepdims=True)
                heads.append(jnp.dot(pr, v_h, preferred_element_type=F32))
            ctx_rows.append(jnp.concatenate(heads, axis=-1))
        ctx = jnp.concatenate(ctx_rows, axis=0)           # (BL, dim)

        x1 = xm + ctx                                     # DropPath = identity (eval)
        # FFN (pure Linear) residual folded into conv_out -> single GEMM epilogue
        o_ref[...] = jnp.dot(x1, wv("out_w"), preferred_element_type=F32) + wv("out_b")

    out = pl.pallas_call(
        kernel,
        out_shape=jax.ShapeDtypeStruct((BL, C2), F32),
    )(x2d, shift_h, w_packed)

    return out.reshape(B, H, W, C2).transpose(0, 3, 1, 2)            # back to NCHW


if __name__ == "__main__":
    dim = 32            # DDTBlock(dim=32): input has 2*dim = 64 channels
    B, H, W = 2, 8, 8

    key = jax.random.PRNGKey(0)
    kp, kx = jax.random.split(key)
    params = init_params(kp, dim=dim, num_heads=2)
    feats = jax.random.normal(kx, (B, 2 * dim, H, W), dtype=F32)     # NCHW like PyTorch

    # offline folding / packing / constant operator construction (done once, outside jit)
    w_packed, offsets = fold_and_pack(params)
    shift_h = make_stacked_shift(B, H, W)

    fwd = jax.jit(functools.partial(ddt_block_forward, offsets=offsets, dim=dim, num_heads=2))
    out = jax.block_until_ready(fwd(feats, w_packed, shift_h))

    assert out.shape == (B, 2 * dim, H, W), out.shape
    assert bool(jnp.all(jnp.isfinite(out)))
    print("KERNEL_OK")
</pallas_src>

<mosaic_0001>
module attributes {stable_mosaic.version = 11 : i64} {
  func.func @kernel(%arg0: memref<128x64xf32, #tpu.memory_space<vmem>>, %arg1: memref<128x1152xf32, #tpu.memory_space<vmem>>, %arg2: memref<336x128xf32, #tpu.memory_space<vmem>>, %arg3: memref<128x64xf32, #tpu.memory_space<vmem>>) attributes {dimension_semantics = [], scalar_prefetch = 0 : i64, scratch_operands = 0 : i64, tpu.core_type = #tpu.core_type<tc>} {
    %c0 = arith.constant 0 : index
    %c0_0 = arith.constant 0 : index
    %0 = vector.load %arg0[%c0, %c0_0] : memref<128x64xf32, #tpu.memory_space<vmem>>, vector<128x64xf32>
    %c0_1 = arith.constant 0 : index
    %c0_2 = arith.constant 0 : index
    %1 = vector.load %arg1[%c0_1, %c0_2] : memref<128x1152xf32, #tpu.memory_space<vmem>>, vector<128x1152xf32>
    %c0_3 = arith.constant 0 : index
    %c0_4 = arith.constant 0 : index
    %2 = vector.load %arg2[%c0_3, %c0_4] : memref<336x128xf32, #tpu.memory_space<vmem>>, vector<1x64xf32>
    %3 = vector.broadcast %2 : vector<1x64xf32> to vector<128x64xf32>
    %4 = arith.mulf %0, %3 : vector<128x64xf32>
    %c8 = arith.constant 8 : index
    %c0_5 = arith.constant 0 : index
    %5 = vector.load %arg2[%c8, %c0_5] : memref<336x128xf32, #tpu.memory_space<vmem>>, vector<1x64xf32>
    %6 = vector.broadcast %5 : vector<1x64xf32> to vector<128x64xf32>
    %7 = arith.addf %4, %6 : vector<128x64xf32>
    %cst = arith.constant 0.000000e+00 : f32
    %8 = vector.broadcast %cst : f32 to vector<128x64xf32>
    %9 = arith.maximumf %7, %8 : vector<128x64xf32>
    %c16 = arith.constant 16 : index
    %c0_6 = arith.constant 0 : index
    %10 = vector.load %arg2[%c16, %c0_6] : memref<336x128xf32, #tpu.memory_space<vmem>>, vector<64x24xf32>
    %cst_7 = arith.constant dense<0.000000e+00> : vector<128x24xf32>
    %11 = tpu.matmul %9, %10, %cst_7 {dimension_numbers = #tpu.dot_dimension_numbers<[1], [0], [0], [1], [0, 0, 1, 1], [], []>} : vector<128x64xf32>, vector<64x24xf32>, vector<128x24xf32> -> vector<128x24xf32>
    %c80 = arith.constant 80 : index
    %c0_8 = arith.constant 0 : index
    %12 = vector.load %arg2[%c80, %c0_8] : memref<336x128xf32, #tpu.memory_space<vmem>>, vector<1x24xf32>
    %13 = vector.broadcast %12 : vector<1x24xf32> to vector<128x24xf32>
    %14 = arith.addf %11, %13 : vector<128x24xf32>
    %15 = vector.extract_strided_slice %14 {offsets = [0, 0], sizes = [128, 8], strides = [1, 1]} : vector<128x24xf32> to vector<128x8xf32>
    %16 = vector.extract_strided_slice %14 {offsets = [0, 8], sizes = [128, 2], strides = [1, 1]} : vector<128x24xf32> to vector<128x2xf32>
    %17 = vector.extract_strided_slice %14 {offsets = [0, 10], sizes = [128, 14], strides = [1, 1]} : vector<128x24xf32> to vector<128x14xf32>
    %c88 = arith.constant 88 : index
    %c0_9 = arith.constant 0 : index
    %18 = vector.load %arg2[%c88, %c0_9] : memref<336x128xf32, #tpu.memory_space<vmem>>, vector<9x14xf32>
    %19 = vector.extract_strided_slice %18 {offsets = [0, 0], sizes = [1, 14], strides = [1, 1]} : vector<9x14xf32> to vector<1x14xf32>
    %20 = vector.broadcast %19 : vector<1x14xf32> to vector<128x14xf32>
    %21 = arith.mulf %17, %20 : vector<128x14xf32>
    %22 = vector.extract_strided_slice %18 {offsets = [1, 0], sizes = [1, 14], strides = [1, 1]} : vector<9x14xf32> to vector<1x14xf32>
    %23 = vector.broadcast %22 : vector<1x14xf32> to vector<128x14xf32>
    %24 = arith.mulf %17, %23 : vector<128x14xf32>
    %25 = vector.extract_strided_slice %18 {offsets = [2, 0], sizes = [1, 14], strides = [1, 1]} : vector<9x14xf32> to vector<1x14xf32>
    %26 = vector.broadcast %25 : vector<1x14xf32> to vector<128x14xf32>
    %27 = arith.mulf %17, %26 : vector<128x14xf32>
    %28 = vector.extract_strided_slice %18 {offsets = [3, 0], sizes = [1, 14], strides = [1, 1]} : vector<9x14xf32> to vector<1x14xf32>
    %29 = vector.broadcast %28 : vector<1x14xf32> to vector<128x14xf32>
    %30 = arith.mulf %17, %29 : vector<128x14xf32>
    %31 = vector.extract_strided_slice %18 {offsets = [4, 0], sizes = [1, 14], strides = [1, 1]} : vector<9x14xf32> to vector<1x14xf32>
    %32 = vector.broadcast %31 : vector<1x14xf32> to vector<128x14xf32>
    %33 = arith.mulf %17, %32 : vector<128x14xf32>
    %34 = vector.extract_strided_slice %18 {offsets = [5, 0], sizes = [1, 14], strides = [1, 1]} : vector<9x14xf32> to vector<1x14xf32>
    %35 = vector.broadcast %34 : vector<1x14xf32> to vector<128x14xf32>
    %36 = arith.mulf %17, %35 : vector<128x14xf32>
    %37 = vector.extract_strided_slice %18 {offsets = [6, 0], sizes = [1, 14], strides = [1, 1]} : vector<9x14xf32> to vector<1x14xf32>
    %38 = vector.broadcast %37 : vector<1x14xf32> to vector<128x14xf32>
    %39 = arith.mulf %17, %38 : vector<128x14xf32>
    %40 = vector.extract_strided_slice %18 {offsets = [7, 0], sizes = [1, 14], strides = [1, 1]} : vector<9x14xf32> to vector<1x14xf32>
    %41 = vector.broadcast %40 : vector<1x14xf32> to vector<128x14xf32>
    %42 = arith.mulf %17, %41 : vector<128x14xf32>
    %43 = vector.extract_strided_slice %18 {offsets = [8, 0], sizes = [1, 14], strides = [1, 1]} : vector<9x14xf32> to vector<1x14xf32>
    %44 = vector.broadcast %43 : vector<1x14xf32> to vector<128x14xf32>
    %45 = arith.mulf %17, %44 : vector<128x14xf32>
    %46 = tpu.concatenate %21, %24, %27, %30, %33, %36, %39, %42, %45 in 0 : vector<128x14xf32>, vector<128x14xf32>, vector<128x14xf32>, vector<128x14xf32>, vector<128x14xf32>, vector<128x14xf32>, vector<128x14xf32>, vector<128x14xf32>, vector<128x14xf32> -> vector<1152x14xf32>
    %cst_10 = arith.constant dense<0.000000e+00> : vector<128x14xf32>
    %47 = tpu.matmul %1, %46, %cst_10 {dimension_numbers = #tpu.dot_dimension_numbers<[1], [0], [0], [1], [0, 0, 1, 1], [], []>} : vector<128x1152xf32>, vector<1152x14xf32>, vector<128x14xf32> -> vector<128x14xf32>
    %c104 = arith.constant 104 : index
    %c0_11 = arith.constant 0 : index
    %48 = vector.load %arg2[%c104, %c0_11] : memref<336x128xf32, #tpu.memory_space<vmem>>, vector<1x14xf32>
    %49 = vector.broadcast %48 : vector<1x14xf32> to vector<128x14xf32>
    %50 = arith.addf %47, %49 : vector<128x14xf32>
    %51 = vector.extract_strided_slice %50 {offsets = [0, 0], sizes = [128, 2], strides = [1, 1]} : vector<128x14xf32> to vector<128x2xf32>
    %52 = vector.extract_strided_slice %50 {offsets = [0, 2], sizes = [128, 4], strides = [1, 1]} : vector<128x14xf32> to vector<128x4xf32>
    %53 = vector.extract_strided_slice %50 {offsets = [0, 6], sizes = [128, 8], strides = [1, 1]} : vector<128x14xf32> to vector<128x8xf32>
    %54 = arith.mulf %16, %51 : vector<128x2xf32>
    %c112 = arith.constant 112 : index
    %c0_12 = arith.constant 0 : index
    %55 = vector.load %arg2[%c112, %c0_12] : memref<336x128xf32, #tpu.memory_space<vmem>>, vector<2x4xf32>
    %cst_13 = arith.constant dense<0.000000e+00> : vector<128x4xf32>
    %56 = tpu.matmul %54, %55, %cst_13 {dimension_numbers = #tpu.dot_dimension_numbers<[1], [0], [0], [1], [0, 0, 1, 1], [], []>} : vector<128x2xf32>, vector<2x4xf32>, vector<128x4xf32> -> vector<128x4xf32>
    %c120 = arith.constant 120 : index
    %c0_14 = arith.constant 0 : index
    %57 = vector.load %arg2[%c120, %c0_14] : memref<336x128xf32, #tpu.memory_space<vmem>>, vector<1x4xf32>
    %58 = vector.broadcast %57 : vector<1x4xf32> to vector<128x4xf32>
    %59 = arith.addf %56, %58 : vector<128x4xf32>
    %60 = arith.mulf %59, %52 : vector<128x4xf32>
    %c128 = arith.constant 128 : index
    %c0_15 = arith.constant 0 : index
    %61 = vector.load %arg2[%c128, %c0_15] : memref<336x128xf32, #tpu.memory_space<vmem>>, vector<4x8xf32>
    %cst_16 = arith.constant dense<0.000000e+00> : vector<128x8xf32>
    %62 = tpu.matmul %60, %61, %cst_16 {dimension_numbers = #tpu.dot_dimension_numbers<[1], [0], [0], [1], [0, 0, 1, 1], [], []>} : vector<128x4xf32>, vector<4x8xf32>, vector<128x8xf32> -> vector<128x8xf32>
    %c136 = arith.constant 136 : index
    %c0_17 = arith.constant 0 : index
    %63 = vector.load %arg2[%c136, %c0_17] : memref<336x128xf32, #tpu.memory_space<vmem>>, vector<1x8xf32>
    %64 = vector.broadcast %63 : vector<1x8xf32> to vector<128x8xf32>
    %65 = arith.addf %62, %64 : vector<128x8xf32>
    %66 = arith.mulf %65, %53 : vector<128x8xf32>
    %67 = tpu.iota {dimensions = array<i32: 0>} : vector<128x1xi32>
    %68 = vector.extract_strided_slice %53 {offsets = [0, 0], sizes = [64, 8], strides = [1, 1]} : vector<128x8xf32> to vector<64x8xf32>
    %cst_18 = arith.constant dense<0.000000e+00> : vector<8xf32>
    %69 = vector.multi_reduction <add>, %68, %cst_18 [0] : vector<64x8xf32> to vector<8xf32>
    %70 = vector.shape_cast %69 : vector<8xf32> to vector<1x8xf32>
    %cst_19 = arith.constant 6.400000e+01 : f32
    %71 = vector.broadcast %cst_19 : f32 to vector<1x8xf32>
    %72 = arith.divf %70, %71 : vector<1x8xf32>
    %cst_20 = arith.constant 0.000000e+00 : f32
    %73 = vector.broadcast %cst_20 : f32 to vector<1x8xf32>
    %74 = arith.subf %73, %72 : vector<1x8xf32>
    %75 = math.exp %74 : vector<1x8xf32>
    %cst_21 = arith.constant 1.000000e+00 : f32
    %76 = vector.broadcast %cst_21 : f32 to vector<1x8xf32>
    %77 = arith.addf %76, %75 : vector<1x8xf32>
    %cst_22 = arith.constant 1.000000e+00 : f32
    %78 = vector.broadcast %cst_22 : f32 to vector<1x8xf32>
    %79 = arith.divf %78, %77 : vector<1x8xf32>
    %80 = arith.mulf %72, %79 : vector<1x8xf32>
    %cst_23 = arith.constant dense<0xFF800000> : vector<1xf32>
    %81 = vector.multi_reduction <maximumf>, %80, %cst_23 [1] : vector<1x8xf32> to vector<1xf32>
    %82 = vector.shape_cast %81 : vector<1xf32> to vector<1x1xf32>
    %83 = vector.broadcast %82 : vector<1x1xf32> to vector<1x8xf32>
    %84 = arith.subf %80, %83 : vector<1x8xf32>
    %85 = math.exp %84 : vector<1x8xf32>
    %cst_24 = arith.constant dense<0.000000e+00> : vector<1xf32>
    %86 = vector.multi_reduction <add>, %85, %cst_24 [1] : vector<1x8xf32> to vector<1xf32>
    %87 = vector.shape_cast %86 : vector<1xf32> to vector<1x1xf32>
    %88 = vector.broadcast %87 : vector<1x1xf32> to vector<1x8xf32>
    %89 = arith.divf %85, %88 : vector<1x8xf32>
    %90 = vector.shape_cast %89 : vector<1x8xf32> to vector<1x8xf32>
    %91 = vector.broadcast %90 : vector<1x8xf32> to vector<128x8xf32>
    %92 = vector.extract_strided_slice %53 {offsets = [64, 0], sizes = [64, 8], strides = [1, 1]} : vector<128x8xf32> to vector<64x8xf32>
    %cst_25 = arith.constant dense<0.000000e+00> : vector<8xf32>
    %93 = vector.multi_reduction <add>, %92, %cst_25 [0] : vector<64x8xf32> to vector<8xf32>
    %94 = vector.shape_cast %93 : vector<8xf32> to vector<1x8xf32>
    %cst_26 = arith.constant 6.400000e+01 : f32
    %95 = vector.broadcast %cst_26 : f32 to vector<1x8xf32>
    %96 = arith.divf %94, %95 : vector<1x8xf32>
    %cst_27 = arith.constant 0.000000e+00 : f32
    %97 = vector.broadcast %cst_27 : f32 to vector<1x8xf32>
    %98 = arith.subf %97, %96 : vector<1x8xf32>
    %99 = math.exp %98 : vector<1x8xf32>
    %cst_28 = arith.constant 1.000000e+00 : f32
    %100 = vector.broadcast %cst_28 : f32 to vector<1x8xf32>
    %101 = arith.addf %100, %99 : vector<1x8xf32>
    %cst_29 = arith.constant 1.000000e+00 : f32
    %102 = vector.broadcast %cst_29 : f32 to vector<1x8xf32>
    %103 = arith.divf %102, %101 : vector<1x8xf32>
    %104 = arith.mulf %96, %103 : vector<1x8xf32>
    %cst_30 = arith.constant dense<0xFF800000> : vector<1xf32>
    %105 = vector.multi_reduction <maximumf>, %104, %cst_30 [1] : vector<1x8xf32> to vector<1xf32>
    %106 = vector.shape_cast %105 : vector<1xf32> to vector<1x1xf32>
    %107 = vector.broadcast %106 : vector<1x1xf32> to vector<1x8xf32>
    %108 = arith.subf %104, %107 : vector<1x8xf32>
    %109 = math.exp %108 : vector<1x8xf32>
    %cst_31 = arith.constant dense<0.000000e+00> : vector<1xf32>
    %110 = vector.multi_reduction <add>, %109, %cst_31 [1] : vector<1x8xf32> to vector<1xf32>
    %111 = vector.shape_cast %110 : vector<1xf32> to vector<1x1xf32>
    %112 = vector.broadcast %111 : vector<1x1xf32> to vector<1x8xf32>
    %113 = arith.divf %109, %112 : vector<1x8xf32>
    %114 = vector.shape_cast %113 : vector<1x8xf32> to vector<1x8xf32>
    %115 = vector.broadcast %114 : vector<1x8xf32> to vector<128x8xf32>
    %c64_i32 = arith.constant 64 : i32
    %116 = vector.broadcast %c64_i32 : i32 to vector<128x1xi32>
    %117 = arith.cmpi sge, %67, %116 : vector<128x1xi32>
    %118 = vector.shape_cast %117 : vector<128x1xi1> to vector<128x1xi1>
    %119 = vector.broadcast %118 : vector<128x1xi1> to vector<128x8xi1>
    %120 = arith.select %119, %115, %91 : vector<128x8xi1>, vector<128x8xf32>
    %121 = arith.mulf %120, %53 : vector<128x8xf32>
    %122 = arith.mulf %66, %121 : vector<128x8xf32>
    %cst_32 = arith.constant 0.000000e+00 : f32
    %123 = vector.broadcast %cst_32 : f32 to vector<128x8xf32>
    %124 = arith.subf %123, %122 : vector<128x8xf32>
    %125 = math.exp %124 : vector<128x8xf32>
    %cst_33 = arith.constant 1.000000e+00 : f32
    %126 = vector.broadcast %cst_33 : f32 to vector<128x8xf32>
    %127 = arith.addf %126, %125 : vector<128x8xf32>
    %cst_34 = arith.constant 1.000000e+00 : f32
    %128 = vector.broadcast %cst_34 : f32 to vector<128x8xf32>
    %129 = arith.divf %128, %127 : vector<128x8xf32>
    %130 = arith.mulf %122, %129 : vector<128x8xf32>
    %131 = arith.addf %130, %15 : vector<128x8xf32>
    %c144 = arith.constant 144 : index
    %c0_35 = arith.constant 0 : index
    %132 = vector.load %arg2[%c144, %c0_35] : memref<336x128xf32, #tpu.memory_space<vmem>>, vector<72x8xf32>
    %133 = vector.extract_strided_slice %132 {offsets = [0, 0], sizes = [8, 8], strides = [1, 1]} : vector<72x8xf32> to vector<8x8xf32>
    %cst_36 = arith.constant dense<0.000000e+00> : vector<128x8xf32>
    %134 = tpu.matmul %131, %133, %cst_36 {dimension_numbers = #tpu.dot_dimension_numbers<[1], [0], [0], [1], [0, 0, 1, 1], [], []>} : vector<128x8xf32>, vector<8x8xf32>, vector<128x8xf32> -> vector<128x8xf32>
    %135 = vector.extract_strided_slice %132 {offsets = [8, 0], sizes = [8, 8], strides = [1, 1]} : vector<72x8xf32> to vector<8x8xf32>
    %cst_37 = arith.constant dense<0.000000e+00> : vector<128x8xf32>
    %136 = tpu.matmul %131, %135, %cst_37 {dimension_numbers = #tpu.dot_dimension_numbers<[1], [0], [0], [1], [0, 0, 1, 1], [], []>} : vector<128x8xf32>, vector<8x8xf32>, vector<128x8xf32> -> vector<128x8xf32>
    %137 = vector.extract_strided_slice %132 {offsets = [16, 0], sizes = [8, 8], strides = [1, 1]} : vector<72x8xf32> to vector<8x8xf32>
    %cst_38 = arith.constant dense<0.000000e+00> : vector<128x8xf32>
    %138 = tpu.matmul %131, %137, %cst_38 {dimension_numbers = #tpu.dot_dimension_numbers<[1], [0], [0], [1], [0, 0, 1, 1], [], []>} : vector<128x8xf32>, vector<8x8xf32>, vector<128x8xf32> -> vector<128x8xf32>
    %139 = vector.extract_strided_slice %132 {offsets = [24, 0], sizes = [8, 8], strides = [1, 1]} : vector<72x8xf32> to vector<8x8xf32>
    %cst_39 = arith.constant dense<0.000000e+00> : vector<128x8xf32>
    %140 = tpu.matmul %131, %139, %cst_39 {dimension_numbers = #tpu.dot_dimension_numbers<[1], [0], [0], [1], [0, 0, 1, 1], [], []>} : vector<128x8xf32>, vector<8x8xf32>, vector<128x8xf32> -> vector<128x8xf32>
    %141 = vector.extract_strided_slice %132 {offsets = [32, 0], sizes = [8, 8], strides = [1, 1]} : vector<72x8xf32> to vector<8x8xf32>
    %cst_40 = arith.constant dense<0.000000e+00> : vector<128x8xf32>
    %142 = tpu.matmul %131, %141, %cst_40 {dimension_numbers = #tpu.dot_dimension_numbers<[1], [0], [0], [1], [0, 0, 1, 1], [], []>} : vector<128x8xf32>, vector<8x8xf32>, vector<128x8xf32> -> vector<128x8xf32>
    %143 = vector.extract_strided_slice %132 {offsets = [40, 0], sizes = [8, 8], strides = [1, 1]} : vector<72x8xf32> to vector<8x8xf32>
    %cst_41 = arith.constant dense<0.000000e+00> : vector<128x8xf32>
    %144 = tpu.matmul %131, %143, %cst_41 {dimension_numbers = #tpu.dot_dimension_numbers<[1], [0], [0], [1], [0, 0, 1, 1], [], []>} : vector<128x8xf32>, vector<8x8xf32>, vector<128x8xf32> -> vector<128x8xf32>
    %145 = vector.extract_strided_slice %132 {offsets = [48, 0], sizes = [8, 8], strides = [1, 1]} : vector<72x8xf32> to vector<8x8xf32>
    %cst_42 = arith.constant dense<0.000000e+00> : vector<128x8xf32>
    %146 = tpu.matmul %131, %145, %cst_42 {dimension_numbers = #tpu.dot_dimension_numbers<[1], [0], [0], [1], [0, 0, 1, 1], [], []>} : vector<128x8xf32>, vector<8x8xf32>, vector<128x8xf32> -> vector<128x8xf32>
    %147 = vector.extract_strided_slice %132 {offsets = [56, 0], sizes = [8, 8], strides = [1, 1]} : vector<72x8xf32> to vector<8x8xf32>
    %cst_43 = arith.constant dense<0.000000e+00> : vector<128x8xf32>
    %148 = tpu.matmul %131, %147, %cst_43 {dimension_numbers = #tpu.dot_dimension_numbers<[1], [0], [0], [1], [0, 0, 1, 1], [], []>} : vector<128x8xf32>, vector<8x8xf32>, vector<128x8xf32> -> vector<128x8xf32>
    %149 = vector.extract_strided_slice %132 {offsets = [64, 0], sizes = [8, 8], strides = [1, 1]} : vector<72x8xf32> to vector<8x8xf32>
    %cst_44 = arith.constant dense<0.000000e+00> : vector<128x8xf32>
    %150 = tpu.matmul %131, %149, %cst_44 {dimension_numbers = #tpu.dot_dimension_numbers<[1], [0], [0], [1], [0, 0, 1, 1], [], []>} : vector<128x8xf32>, vector<8x8xf32>, vector<128x8xf32> -> vector<128x8xf32>
    %151 = tpu.concatenate %134, %136, %138, %140, %142, %144, %146, %148, %150 in 0 : vector<128x8xf32>, vector<128x8xf32>, vector<128x8xf32>, vector<128x8xf32>, vector<128x8xf32>, vector<128x8xf32>, vector<128x8xf32>, vector<128x8xf32>, vector<128x8xf32> -> vector<1152x8xf32>
    %cst_45 = arith.constant dense<0.000000e+00> : vector<128x8xf32>
    %152 = tpu.matmul %1, %151, %cst_45 {dimension_numbers = #tpu.dot_dimension_numbers<[1], [0], [0], [1], [0, 0, 1, 1], [], []>} : vector<128x1152xf32>, vector<1152x8xf32>, vector<128x8xf32> -> vector<128x8xf32>
    %c216 = arith.constant 216 : index
    %c0_46 = arith.constant 0 : index
    %153 = vector.load %arg2[%c216, %c0_46] : memref<336x128xf32, #tpu.memory_space<vmem>>, vector<1x8xf32>
    %154 = vector.broadcast %153 : vector<1x8xf32> to vector<128x8xf32>
    %155 = arith.addf %152, %154 : vector<128x8xf32>
    %cst_47 = arith.constant 0.000000e+00 : f32
    %156 = vector.broadcast %cst_47 : f32 to vector<128x8xf32>
    %157 = arith.subf %156, %155 : vector<128x8xf32>
    %158 = math.exp %157 : vector<128x8xf32>
    %cst_48 = arith.constant 1.000000e+00 : f32
    %159 = vector.broadcast %cst_48 : f32 to vector<128x8xf32>
    %160 = arith.addf %159, %158 : vector<128x8xf32>
    %cst_49 = arith.constant 1.000000e+00 : f32
    %161 = vector.broadcast %cst_49 : f32 to vector<128x8xf32>
    %162 = arith.divf %161, %160 : vector<128x8xf32>
    %163 = arith.mulf %155, %162 : vector<128x8xf32>
    %c224 = arith.constant 224 : index
    %c0_50 = arith.constant 0 : index
    %164 = vector.load %arg2[%c224, %c0_50] : memref<336x128xf32, #tpu.memory_space<vmem>>, vector<8x32xf32>
    %cst_51 = arith.constant dense<0.000000e+00> : vector<128x32xf32>
    %165 = tpu.matmul %163, %164, %cst_51 {dimension_numbers = #tpu.dot_dimension_numbers<[1], [0], [0], [1], [0, 0, 1, 1], [], []>} : vector<128x8xf32>, vector<8x32xf32>, vector<128x32xf32> -> vector<128x32xf32>
    %c232 = arith.constant 232 : index
    %c0_52 = arith.constant 0 : index
    %166 = vector.load %arg2[%c232, %c0_52] : memref<336x128xf32, #tpu.memory_space<vmem>>, vector<1x32xf32>
    %167 = vector.broadcast %166 : vector<1x32xf32> to vector<128x32xf32>
    %168 = arith.addf %165, %167 : vector<128x32xf32>
    %cst_53 = arith.constant dense<0.000000e+00> : vector<128xf32>
    %169 = vector.multi_reduction <add>, %168, %cst_53 [1] : vector<128x32xf32> to vector<128xf32>
    %170 = vector.shape_cast %169 : vector<128xf32> to vector<128x1xf32>
    %cst_54 = arith.constant 3.200000e+01 : f32
    %171 = vector.broadcast %cst_54 : f32 to vector<128x1xf32>
    %172 = arith.divf %170, %171 : vector<128x1xf32>
    %173 = vector.broadcast %172 : vector<128x1xf32> to vector<128x32xf32>
    %174 = arith.subf %168, %173 : vector<128x32xf32>
    %175 = arith.mulf %174, %174 : vector<128x32xf32>
    %cst_55 = arith.constant dense<0.000000e+00> : vector<128xf32>
    %176 = vector.multi_reduction <add>, %175, %cst_55 [1] : vector<128x32xf32> to vector<128xf32>
    %177 = vector.shape_cast %176 : vector<128xf32> to vector<128x1xf32>
    %cst_56 = arith.constant 3.200000e+01 : f32
    %178 = vector.broadcast %cst_56 : f32 to vector<128x1xf32>
    %179 = arith.divf %177, %178 : vector<128x1xf32>
    %180 = vector.broadcast %172 : vector<128x1xf32> to vector<128x32xf32>
    %181 = arith.subf %168, %180 : vector<128x32xf32>
    %cst_57 = arith.constant 9.99999974E-6 : f32
    %182 = vector.broadcast %cst_57 : f32 to vector<128x1xf32>
    %183 = arith.addf %179, %182 : vector<128x1xf32>
    %184 = math.rsqrt %183 : vector<128x1xf32>
    %185 = vector.broadcast %184 : vector<128x1xf32> to vector<128x32xf32>
    %186 = arith.mulf %181, %185 : vector<128x32xf32>
    %c240 = arith.constant 240 : index
    %c0_58 = arith.constant 0 : index
    %187 = vector.load %arg2[%c240, %c0_58] : memref<336x128xf32, #tpu.memory_space<vmem>>, vector<1x32xf32>
    %188 = vector.broadcast %187 : vector<1x32xf32> to vector<128x32xf32>
    %189 = arith.mulf %186, %188 : vector<128x32xf32>
    %c248 = arith.constant 248 : index
    %c0_59 = arith.constant 0 : index
    %190 = vector.load %arg2[%c248, %c0_59] : memref<336x128xf32, #tpu.memory_space<vmem>>, vector<1x32xf32>
    %191 = vector.broadcast %190 : vector<1x32xf32> to vector<128x32xf32>
    %192 = arith.addf %189, %191 : vector<128x32xf32>
    %c256 = arith.constant 256 : index
    %c0_60 = arith.constant 0 : index
    %193 = vector.load %arg2[%c256, %c0_60] : memref<336x128xf32, #tpu.memory_space<vmem>>, vector<32x96xf32>
    %cst_61 = arith.constant dense<0.000000e+00> : vector<128x96xf32>
    %194 = tpu.matmul %192, %193, %cst_61 {dimension_numbers = #tpu.dot_dimension_numbers<[1], [0], [0], [1], [0, 0, 1, 1], [], []>} : vector<128x32xf32>, vector<32x96xf32>, vector<128x96xf32> -> vector<128x96xf32>
    %c288 = arith.constant 288 : index
    %c0_62 = arith.constant 0 : index
    %195 = vector.load %arg2[%c288, %c0_62] : memref<336x128xf32, #tpu.memory_space<vmem>>, vector<1x96xf32>
    %196 = vector.broadcast %195 : vector<1x96xf32> to vector<128x96xf32>
    %197 = arith.addf %194, %196 : vector<128x96xf32>
    %198 = vector.extract_strided_slice %197 {offsets = [0, 0], sizes = [64, 16], strides = [1, 1]} : vector<128x96xf32> to vector<64x16xf32>
    %199 = vector.extract_strided_slice %197 {offsets = [0, 32], sizes = [64, 16], strides = [1, 1]} : vector<128x96xf32> to vector<64x16xf32>
    %200 = vector.extract_strided_slice %197 {offsets = [0, 64], sizes = [64, 16], strides = [1, 1]} : vector<128x96xf32> to vector<64x16xf32>
    %cst_63 = arith.constant dense<0.000000e+00> : vector<64x64xf32>
    %201 = tpu.matmul %198, %199, %cst_63 {dimension_numbers = #tpu.dot_dimension_numbers<[1], [1], [0], [0], [0, 0, 1, 0], [], []>} : vector<64x16xf32>, vector<64x16xf32>, vector<64x64xf32> -> vector<64x64xf32>
    %cst_64 = arith.constant dense<0xFF800000> : vector<64xf32>
    %202 = vector.multi_reduction <maximumf>, %201, %cst_64 [1] : vector<64x64xf32> to vector<64xf32>
    %203 = vector.shape_cast %202 : vector<64xf32> to vector<64x1xf32>
    %204 = vector.broadcast %203 : vector<64x1xf32> to vector<64x64xf32>
    %205 = arith.subf %201, %204 : vector<64x64xf32>
    %206 = math.exp %205 : vector<64x64xf32>
    %cst_65 = arith.constant dense<0.000000e+00> : vector<64xf32>
    %207 = vector.multi_reduction <add>, %206, %cst_65 [1] : vector<64x64xf32> to vector<64xf32>
    %208 = vector.shape_cast %207 : vector<64xf32> to vector<64x1xf32>
    %209 = vector.broadcast %208 : vector<64x1xf32> to vector<64x64xf32>
    %210 = arith.divf %206, %209 : vector<64x64xf32>
    %cst_66 = arith.constant dense<0.000000e+00> : vector<64x16xf32>
    %211 = tpu.matmul %210, %200, %cst_66 {dimension_numbers = #tpu.dot_dimension_numbers<[1], [0], [0], [1], [0, 0, 1, 1], [], []>} : vector<64x64xf32>, vector<64x16xf32>, vector<64x16xf32> -> vector<64x16xf32>
    %212 = vector.extract_strided_slice %197 {offsets = [0, 16], sizes = [64, 16], strides = [1, 1]} : vector<128x96xf32> to vector<64x16xf32>
    %213 = vector.extract_strided_slice %197 {offsets = [0, 48], sizes = [64, 16], strides = [1, 1]} : vector<128x96xf32> to vector<64x16xf32>
    %214 = vector.extract_strided_slice %197 {offsets = [0, 80], sizes = [64, 16], strides = [1, 1]} : vector<128x96xf32> to vector<64x16xf32>
    %cst_67 = arith.constant dense<0.000000e+00> : vector<64x64xf32>
    %215 = tpu.matmul %212, %213, %cst_67 {dimension_numbers = #tpu.dot_dimension_numbers<[1], [1], [0], [0], [0, 0, 1, 0], [], []>} : vector<64x16xf32>, vector<64x16xf32>, vector<64x64xf32> -> vector<64x64xf32>
    %cst_68 = arith.constant dense<0xFF800000> : vector<64xf32>
    %216 = vector.multi_reduction <maximumf>, %215, %cst_68 [1] : vector<64x64xf32> to vector<64xf32>
    %217 = vector.shape_cast %216 : vector<64xf32> to vector<64x1xf32>
    %218 = vector.broadcast %217 : vector<64x1xf32> to vector<64x64xf32>
    %219 = arith.subf %215, %218 : vector<64x64xf32>
    %220 = math.exp %219 : vector<64x64xf32>
    %cst_69 = arith.constant dense<0.000000e+00> : vector<64xf32>
    %221 = vector.multi_reduction <add>, %220, %cst_69 [1] : vector<64x64xf32> to vector<64xf32>
    %222 = vector.shape_cast %221 : vector<64xf32> to vector<64x1xf32>
    %223 = vector.broadcast %222 : vector<64x1xf32> to vector<64x64xf32>
    %224 = arith.divf %220, %223 : vector<64x64xf32>
    %cst_70 = arith.constant dense<0.000000e+00> : vector<64x16xf32>
    %225 = tpu.matmul %224, %214, %cst_70 {dimension_numbers = #tpu.dot_dimension_numbers<[1], [0], [0], [1], [0, 0, 1, 1], [], []>} : vector<64x64xf32>, vector<64x16xf32>, vector<64x16xf32> -> vector<64x16xf32>
    %226 = tpu.concatenate %211, %225 in 1 : vector<64x16xf32>, vector<64x16xf32> -> vector<64x32xf32>
    %227 = vector.extract_strided_slice %197 {offsets = [64, 0], sizes = [64, 16], strides = [1, 1]} : vector<128x96xf32> to vector<64x16xf32>
    %228 = vector.extract_strided_slice %197 {offsets = [64, 32], sizes = [64, 16], strides = [1, 1]} : vector<128x96xf32> to vector<64x16xf32>
    %229 = vector.extract_strided_slice %197 {offsets = [64, 64], sizes = [64, 16], strides = [1, 1]} : vector<128x96xf32> to vector<64x16xf32>
    %cst_71 = arith.constant dense<0.000000e+00> : vector<64x64xf32>
    %230 = tpu.matmul %227, %228, %cst_71 {dimension_numbers = #tpu.dot_dimension_numbers<[1], [1], [0], [0], [0, 0, 1, 0], [], []>} : vector<64x16xf32>, vector<64x16xf32>, vector<64x64xf32> -> vector<64x64xf32>
    %cst_72 = arith.constant dense<0xFF800000> : vector<64xf32>
    %231 = vector.multi_reduction <maximumf>, %230, %cst_72 [1] : vector<64x64xf32> to vector<64xf32>
    %232 = vector.shape_cast %231 : vector<64xf32> to vector<64x1xf32>
    %233 = vector.broadcast %232 : vector<64x1xf32> to vector<64x64xf32>
    %234 = arith.subf %230, %233 : vector<64x64xf32>
    %235 = math.exp %234 : vector<64x64xf32>
    %cst_73 = arith.constant dense<0.000000e+00> : vector<64xf32>
    %236 = vector.multi_reduction <add>, %235, %cst_73 [1] : vector<64x64xf32> to vector<64xf32>
    %237 = vector.shape_cast %236 : vector<64xf32> to vector<64x1xf32>
    %238 = vector.broadcast %237 : vector<64x1xf32> to vector<64x64xf32>
    %239 = arith.divf %235, %238 : vector<64x64xf32>
    %cst_74 = arith.constant dense<0.000000e+00> : vector<64x16xf32>
    %240 = tpu.matmul %239, %229, %cst_74 {dimension_numbers = #tpu.dot_dimension_numbers<[1], [0], [0], [1], [0, 0, 1, 1], [], []>} : vector<64x64xf32>, vector<64x16xf32>, vector<64x16xf32> -> vector<64x16xf32>
    %241 = vector.extract_strided_slice %197 {offsets = [64, 16], sizes = [64, 16], strides = [1, 1]} : vector<128x96xf32> to vector<64x16xf32>
    %242 = vector.extract_strided_slice %197 {offsets = [64, 48], sizes = [64, 16], strides = [1, 1]} : vector<128x96xf32> to vector<64x16xf32>
    %243 = vector.extract_strided_slice %197 {offsets = [64, 80], sizes = [64, 16], strides = [1, 1]} : vector<128x96xf32> to vector<64x16xf32>
    %cst_75 = arith.constant dense<0.000000e+00> : vector<64x64xf32>
    %244 = tpu.matmul %241, %242, %cst_75 {dimension_numbers = #tpu.dot_dimension_numbers<[1], [1], [0], [0], [0, 0, 1, 0], [], []>} : vector<64x16xf32>, vector<64x16xf32>, vector<64x64xf32> -> vector<64x64xf32>
    %cst_76 = arith.constant dense<0xFF800000> : vector<64xf32>
    %245 = vector.multi_reduction <maximumf>, %244, %cst_76 [1] : vector<64x64xf32> to vector<64xf32>
    %246 = vector.shape_cast %245 : vector<64xf32> to vector<64x1xf32>
    %247 = vector.broadcast %246 : vector<64x1xf32> to vector<64x64xf32>
    %248 = arith.subf %244, %247 : vector<64x64xf32>
    %249 = math.exp %248 : vector<64x64xf32>
    %cst_77 = arith.constant dense<0.000000e+00> : vector<64xf32>
    %250 = vector.multi_reduction <add>, %249, %cst_77 [1] : vector<64x64xf32> to vector<64xf32>
    %251 = vector.shape_cast %250 : vector<64xf32> to vector<64x1xf32>
    %252 = vector.broadcast %251 : vector<64x1xf32> to vector<64x64xf32>
    %253 = arith.divf %249, %252 : vector<64x64xf32>
    %cst_78 = arith.constant dense<0.000000e+00> : vector<64x16xf32>
    %254 = tpu.matmul %253, %243, %cst_78 {dimension_numbers = #tpu.dot_dimension_numbers<[1], [0], [0], [1], [0, 0, 1, 1], [], []>} : vector<64x64xf32>, vector<64x16xf32>, vector<64x16xf32> -> vector<64x16xf32>
    %255 = tpu.concatenate %240, %254 in 1 : vector<64x16xf32>, vector<64x16xf32> -> vector<64x32xf32>
    %256 = tpu.concatenate %226, %255 in 0 : vector<64x32xf32>, vector<64x32xf32> -> vector<128x32xf32>
    %257 = arith.addf %168, %256 : vector<128x32xf32>
    %c296 = arith.constant 296 : index
    %c0_79 = arith.constant 0 : index
    %258 = vector.load %arg2[%c296, %c0_79] : memref<336x128xf32, #tpu.memory_space<vmem>>, vector<32x64xf32>
    %cst_80 = arith.constant dense<0.000000e+00> : vector<128x64xf32>
    %259 = tpu.matmul %257, %258, %cst_80 {dimension_numbers = #tpu.dot_dimension_numbers<[1], [0], [0], [1], [0, 0, 1, 1], [], []>} : vector<128x32xf32>, vector<32x64xf32>, vector<128x64xf32> -> vector<128x64xf32>
    %c328 = arith.constant 328 : index
    %c0_81 = arith.constant 0 : index
    %260 = vector.load %arg2[%c328, %c0_81] : memref<336x128xf32, #tpu.memory_space<vmem>>, vector<1x64xf32>
    %261 = vector.broadcast %260 : vector<1x64xf32> to vector<128x64xf32>
    %262 = arith.addf %259, %261 : vector<128x64xf32>
    %c0_82 = arith.constant 0 : index
    %c0_83 = arith.constant 0 : index
    %263 = vector.load %arg3[%c0_82, %c0_83] : memref<128x64xf32, #tpu.memory_space<vmem>>, vector<128x64xf32>
    tpu.vector_store %arg3[%c0_82, %c0_83], %262 {strides = array<i32>} : memref<128x64xf32, #tpu.memory_space<vmem>>, vector<128x64xf32>,
    return
  }
}

</mosaic_0001>

<bundles_post_ra>
// kernel: ddt_block_forward.1
= control target key start
LH: loop header
LB: loop body
LE: loop exit
PB: predicated region body
PF: predicated region fallthrough
CT: control target
= control target key end

     0   :  { %8 = vsyncpa [#allocation3], 0  ;;  %s14365_s0 = inlined_call_operand.hbm [shape: f32[128,64], index: 0, kind: input, shape index: {}]   ;;  %s14366_s1 = inlined_call_operand.hbm [shape: f32[128,1152], index: 1, kind: input, shape index: {}]   ;;  %s14367_s2 = inlined_call_operand.hbm [shape: f32[336,128], index: 2, kind: input, shape index: {}]   ;;  %s14368_s3 = inlined_call_operand.hbm [shape: f32[128,64], index: 3, kind: output, shape index: {}]  }
   0x1   :  { %9 = vsyncpa [#allocation6], 0 }
   0x2   :  { %10 = vsyncpa [#allocation4], 0  ;;  %s11675_s12 = smov [#allocation5]   ;;  %s11581_s16 = scalar_lea.hbm %s14366_s1, 18432 }
   0x3   :  { %s28_s13 = sshll.u32 %s11675_s12, 4  ;;  %p11582_p0 = scmp.ne.s32.totalorder %s14366_s1, %s11581_s16  ;;  %s29_s13 = int_to_ptr.vmem [resolvable:$true] %s28_s13 }
   0x4   :  { %p11585_p1 = scmp.lt.u32.totalorder %s11581_s16, %s14366_s1 }
   0x6   :  { %p11587_p2 = pnand %p11585_p1, %p11582_p0 }
   0x8   :  { %11590 = shalt.err (!%p11587_p2)
}
   0x9   :  { %s11591_s21 = scalar_lea.vmem %s29_s13, 18432  ;;  %p11596_p4 = scmp.lt.s32.totalorder %s29_s13, %s29_s13 }
   0xa   :  { %p11592_p3 = scmp.ne.s32.totalorder %s29_s13, %s11591_s21  ;;  %p11597_p5 = scmp.lt.s32.totalorder %s11591_s21, %s11591_s21 }
   0xc   :  { %p11598_p6 = por %p11597_p5, %p11596_p4 }
   0xe   :  { %p11599_p7 = pnand %p11598_p6, %p11592_p3 }
  0x10   :  { %11602 = shalt.err (!%p11599_p7)
}
  0x11   :  { %s11676_s22 = smov 1152   ;;  %s11677_s23 = smov 72  }
  0x12   :  { %34 = dma.hbm_to_vmem [thread:$0]  %s14366_s1, 18432, %s29_s13, [#allocation6], %s11676_s22, %s11676_s22, %s11677_s23  }
  0x13   :  { %s11678_s26 = smov [#allocation2]   ;;  %s11603_s30 = scalar_lea.hbm %s14365_s0, 2048 }
  0x14   :  { %s16_s27 = sshll.u32 %s11678_s26, 4  ;;  %p11604_p8 = scmp.ne.s32.totalorder %s14365_s0, %s11603_s30  ;;  %s17_s27 = int_to_ptr.vmem [resolvable:$true] %s16_s27 }
  0x15   :  { %p11607_p9 = scmp.lt.u32.totalorder %s11603_s30, %s14365_s0 }
  0x17   :  { %p11609_p10 = pnand %p11607_p9, %p11604_p8 }
  0x19   :  { %11612 = shalt.err (!%p11609_p10)
}
  0x1a   :  { %s11613_s8 = scalar_lea.vmem %s17_s27, 2048  ;;  %p11618_p12 = scmp.lt.s32.totalorder %s17_s27, %s17_s27 }
  0x1b   :  { %p11614_p11 = scmp.ne.s32.totalorder %s17_s27, %s11613_s8  ;;  %p11619_p13 = scmp.lt.s32.totalorder %s11613_s8, %s11613_s8 }
  0x1d   :  { %p11620_p0 = por %p11619_p13, %p11618_p12 }
  0x1f   :  { %p11621_p1 = pnand %p11620_p0, %p11614_p11 }
  0x21   :  { %11624 = shalt.err (!%p11621_p1)
}
  0x22   :  { %s11679_s1 = smov 128   ;;  %s11680_s9 = smov 8  }
  0x23   :  { %22 = dma.hbm_to_vmem [thread:$0]  %s14365_s0, 2048, %s17_s27, [#allocation3], %s11679_s1, %s11679_s1, %s11680_s9  }
  0x24   :  { %s11681_s12 = smov [#allocation7]   ;;  %s11625_s16 = scalar_lea.hbm %s14367_s2, 5376 }
  0x25   :  { %s40_s13 = sshll.u32 %s11681_s12, 4  ;;  %p11626_p2 = scmp.ne.s32.totalorder %s14367_s2, %s11625_s16  ;;  %s41_s13 = int_to_ptr.vmem [resolvable:$true] %s40_s13 }
  0x26   :  { %p11629_p3 = scmp.lt.u32.totalorder %s11625_s16, %s14367_s2 }
  0x28   :  { %p11631_p4 = pnand %p11629_p3, %p11626_p2 }
  0x2a   :  { %11634 = shalt.err (!%p11631_p4)
}
  0x2b   :  { %s11635_s21 = scalar_lea.vmem %s41_s13, 5376  ;;  %p11640_p6 = scmp.lt.s32.totalorder %s41_s13, %s41_s13 }
  0x2c   :  { %p11636_p5 = scmp.ne.s32.totalorder %s41_s13, %s11635_s21  ;;  %p11641_p7 = scmp.lt.s32.totalorder %s11635_s21, %s11635_s21 }
  0x2e   :  { %p11642_p8 = por %p11641_p7, %p11640_p6 }
  0x30   :  { %p11643_p9 = pnand %p11642_p8, %p11636_p5 }
  0x32   :  { %11646 = shalt.err (!%p11643_p9)
}
  0x33   :  { %46 = dma.hbm_to_vmem [thread:$0]  %s14367_s2, 5376, %s41_s13, [#allocation6], %s11679_s1, %s11679_s1, %s11680_s9  }
  0x34   :  { %11669 = dma.done.wait [#allocation3], 2048  }
  0x35   :  { %11670 = vsyncadd [#allocation3], 4294965248 }
  0x36   :  { %11671 = dma.done.wait [#allocation6], 23808  }
  0x37   :  { %11672 = vsyncadd [#allocation6], 4294943488  ;;  %v274_v0 = vld [vmem:[#allocation7 + $0x10] sm:$0xff]  ;;  %v275_v1 = vld [vmem:[#allocation7 + $0x18] sm:$0xff]  ;;  %v483_v13 = vlaneseq  ;;  %vm287_vm0 = vcmask 523264   ;;  %s11682_s2 = smov 10  }
  0x38   :  { %v276_v2 = vld [vmem:[#allocation7 + $0x20] sm:$0xff]  ;;  %v10066_v3 = vpack.c.bf16 %v275_v1, %v274_v0  ;;  %v277_v4 = vld [vmem:[#allocation7 + $0x28] sm:$0xff]  ;;  %v278_v6 = vld [vmem:[#allocation7 + $0x30] sm:$0xff]  ;;  %s11683_s23 = smov 118   ;;  %vm2670_vm1 = vcmask 113712   ;;  %vm2172_vm2 = vcmask 1041408  }
  0x39   :  { %v10070_v5 = vpack.c.bf16 %v277_v4, %v276_v2  ;;  %v279_v7 = vld [vmem:[#allocation7 + $0x38] sm:$0xff]  ;;  %v56_v8 = vld [vmem:[#allocation2] sm:$0xff]  ;;  %v11758_v10 = vld [vmem:[#allocation7 + $0x8] ss:$0 sm:$0xff]  ;;  %v11764_v23 = vshrl.u32 %v483_v13, 7  ;;  %s11684_s24 = smov 120  }
  0x3a   :  { %10067 = vmatprep.subr.bf16.mxu0 %v10066_v3  ;;  %v11756_v9 = vld [vmem:[#allocation7] ss:$0 sm:$0xff]  ;;  %v57_v12 = vld [vmem:[#allocation2 + $0x8] sm:$0xff]  ;;  %v10074_v14 = vpack.c.bf16 %v279_v7, %v278_v6  ;;  %v58_v15 = vld [vmem:[#allocation2 + $0x10] sm:$0xff]  ;;  %s11685_s25 = smov 126   ;;  %vm2139_vm3 = vcmask 15360  }
  0x3b   :  { %10069 = vmatpush3.bf16.msra.mxu0 %v10066_v3  ;;  %v221_v11 = vmul.f32 %v11756_v9, %v56_v8  ;;  %v280_v16 = vld [vmem:[#allocation7 + $0x40] sm:$0xff]  ;;  %v281_v17 = vld [vmem:[#allocation7 + $0x48] sm:$0xff]  ;;  %v222_v19 = vmul.f32 %v11756_v9, %v57_v12  ;;  %v223_v21 = vmul.f32 %v11756_v9, %v58_v15  ;;  %v59_v22 = vld [vmem:[#allocation2 + $0x18] sm:$0xff]  ;;  %v557_v31 = vsub.s32 3, %v11764_v23  ;;  %s11686_s26 = smov 122   ;;  %s11687_s27 = smov 80  }
  0x3c   :  { %10071 = vmatprep.subr.bf16.mxu0 %v10070_v5  ;;  %v10078_v24 = vpack.c.bf16 %v281_v17, %v280_v16  ;;  %v60_v25 = vld [vmem:[#allocation2 + $0x20] sm:$0xff]  ;;  %v224_v27 = vmul.f32 %v11756_v9, %v59_v22  ;;  %v61_v30 = vld [vmem:[#allocation2 + $0x28] sm:$0xff]  ;;  %v62_v32 = vld [vmem:[#allocation2 + $0x30] sm:$0xff]  ;;  %v509_v34 = vsub.s32 1, %v11764_v23  ;;  %v533_v35 = vsub.s32 2, %v11764_v23  ;;  %s11688_s28 = smov 96  }
  0x3d   :  { %v242_v18 = vadd.f32 %v11758_v10, %v221_v11  ;;  %v243_v26 = vadd.f32 %v11758_v10, %v222_v19  ;;  %v244_v28 = vadd.f32 %v11758_v10, %v223_v21  ;;  %v225_v29 = vmul.f32 %v11756_v9, %v60_v25  ;;  %v481_v33 = vld [vmem:[#allocation7 + $0x58] sm:$0xff]  ;;  %v64_v45 = vld [vmem:[#allocation2 + $0x40] sm:$0xff]  ;;  %v65_v57 = vld [vmem:[#allocation2 + $0x48] sm:$0xff]  ;;  %s11689_s29 = smov 112   ;;  %s11690_s30 = smov 64  }
  0x3e   :  { %v245_v37 = vadd.f32 %v11758_v10, %v224_v27  ;;  %v226_v38 = vmul.f32 %v11756_v9, %v61_v30  ;;  %v485_v39 = vsub.s32 0, %v11764_v23  ;;  %v227_v42 = vmul.f32 %v11756_v9, %v62_v32  ;;  %v63_v43 = vld [vmem:[#allocation2 + $0x38] sm:$0xff]  ;;  %v66_v58 = vld [vmem:[#allocation2 + $0x50] sm:$0xff]  ;;  %v69_v16 = vld [vmem:[#allocation2 + $0x68] sm:$0xff]  ;;  %s11691_s4 = smov 48   ;;  %s11692_s5 = smov 16  }
  0x3f   :  { %10073 = vmatpush3.bf16.msra.mxu0 %v10070_v5  ;;  %v258_v20 = vmax.f32 %v242_v18, 0.0  ;;  %v259_v36 = vmax.f32 %v243_v26, 0.0  ;;  %v260_v40 = vmax.f32 %v244_v28, 0.0  ;;  %v246_v41 = vadd.f32 %v11758_v10, %v225_v29  ;;  %v67_v4 = vld [vmem:[#allocation2 + $0x58] sm:$0xff]  ;;  %v68_v5 = vld [vmem:[#allocation2 + $0x60] sm:$0xff]  ;;  %v70_v17 = vld [vmem:[#allocation2 + $0x70] sm:$0xff] }
  0x40   :  { %10075 = vmatprep.subr.bf16.mxu0 %v10074_v14  ;;  %v558_v44 = vrot.slane %v481_v33, %v557_v31  ;;  %v510_v46 = vrot.slane %v481_v33, %v509_v34  ;;  %v534_v47 = vrot.slane %v481_v33, %v533_v35  ;;  %v653_v48 = vsub.s32 7, %v11764_v23  ;;  %v71_v25 = vld [vmem:[#allocation2 + $0x78] sm:$0xff]  ;;  %v11828_v35 = vld [vmem:[#allocation7 + $0x50] ss:$0 sm:$0xff]  ;;  %s11693_s6 = smov [#allocation8]  }
  0x41   :  { %9330 = vmatprep.mubr.msk.f32.mxu0 %vm287_vm0, %v258_v20  ;;  %v581_v49 = vsub.s32 4, %v11764_v23  ;;  %v261_v50 = vmax.f32 %v245_v37, 0.0  ;;  %v247_v51 = vadd.f32 %v11758_v10, %v226_v38  ;;  %v228_v52 = vmul.f32 %v11756_v9, %v63_v43  ;;  %s7850_s7 = sshll.u32 %s11693_s6, 4  ;;  %s7851_s7 = int_to_ptr.vmem [resolvable:$true] %s7850_s7 }
  0x42   :  { %560 = vrot.lane.b32.xlu0 %v558_v44, %s11682_s2  ;;  %512 = vrot.lane.b32.xlu1 %v510_v46, %s11682_s2  ;;  %v486_v53 = vrot.slane %v481_v33, %v485_v39  ;;  %v262_v54 = vmax.f32 %v246_v41, 0.0  ;;  %v248_v55 = vadd.f32 %v11758_v10, %v227_v42  ;;  %v229_v56 = vmul.f32 %v11756_v9, %v64_v45  ;;  %s11647_s8 = scalar_lea.vmem %s7851_s7, 2048  ;;  %p11652_p11 = scmp.lt.s32.totalorder %s7851_s7, %s7851_s7 }
  0x43   :  { %10077 = vmatpush3.bf16.msra.mxu0 %v10074_v14  ;;  %v654_v59 = vrot.slane %v481_v33, %v653_v48  ;;  %v629_v60 = vsub.s32 6, %v11764_v23  ;;  %v263_v61 = vmax.f32 %v247_v51, 0.0  ;;  %v249_v62 = vadd.f32 %v11758_v10, %v228_v52  ;;  %p11648_p10 = scmp.ne.s32.totalorder %s7851_s7, %s11647_s8  ;;  %p11653_p12 = scmp.lt.s32.totalorder %s11647_s8, %s11647_s8 }
  0x44   :  { %10079 = vmatprep.subr.bf16.mxu0 %v10078_v24  ;;  %v230_v63 = vmul.f32 %v11756_v9, %v65_v57  ;;  %v582_v0 = vrot.slane %v481_v33, %v581_v49  ;;  %v264_v1 = vmax.f32 %v248_v55, 0.0  ;;  %v250_v2 = vadd.f32 %v11758_v10, %v229_v56 }
  0x45   :  { %v231_v3 = vmul.f32 %v11756_v9, %v66_v58  ;;  %v630_v6 = vrot.slane %v481_v33, %v629_v60  ;;  %v605_v7 = vsub.s32 5, %v11764_v23  ;;  %v265_v8 = vmax.f32 %v249_v62, 0.0  ;;  %p11654_p13 = por %p11653_p12, %p11652_p11 }
  0x46   :  { %536 = vrot.lane.b32.xlu0 %v534_v47, %s11682_s2  ;;  %488 = vrot.lane.b32.xlu1 %v486_v53, %s11682_s2  ;;  %v251_v11 = vadd.f32 %v11758_v10, %v230_v63  ;;  %v232_v12 = vmul.f32 %v11756_v9, %v67_v4  ;;  %v266_v13 = vmax.f32 %v250_v2, 0.0  ;;  %v233_v15 = vmul.f32 %v11756_v9, %v68_v5 }
  0x47   :  { %10081 = vmatpush3.bf16.msra.mxu0 %v10078_v24  ;;  %v252_v14 = vadd.f32 %v11758_v10, %v231_v3  ;;  %v606_v18 = vrot.slane %v481_v33, %v605_v7  ;;  %v234_v21 = vmul.f32 %v11756_v9, %v69_v16  ;;  %v235_v24 = vmul.f32 %v11756_v9, %v70_v17  ;;  %p11655_p0 = pnand %p11654_p13, %p11648_p10 }
  0x48   :  { %v267_v19 = vmax.f32 %v251_v11, 0.0  ;;  %v253_v20 = vadd.f32 %v11758_v10, %v232_v12  ;;  %v254_v23 = vadd.f32 %v11758_v10, %v233_v15  ;;  %v236_v28 = vmul.f32 %v11756_v9, %v71_v25 }
  0x49   :  { %v268_v22 = vmax.f32 %v252_v14, 0.0  ;;  %v255_v27 = vadd.f32 %v11758_v10, %v234_v21  ;;  %v256_v30 = vadd.f32 %v11758_v10, %v235_v24  ;;  %vm2440_vm4 = vcmask 1043456  }
  0x4a   :  { %9331 = vmatmul.mubr.msk.f32.vlgmr.msra.gmra.mrb[0].mxu0 %vm287_vm0, %v259_v36  ;;  %656 = vrot.lane.b32.xlu0 %v654_v59, %s11682_s2  ;;  %v269_v26 = vmax.f32 %v253_v20, 0.0  ;;  %v270_v29 = vmax.f32 %v254_v23, 0.0  ;;  %v257_v32 = vadd.f32 %v11758_v10, %v236_v28  ;;  %vm2391_vm5 = vcmask 31744  }
  0x4b   :  { %9333 = vmatprep.mubr.msk.f32.mxu0 %vm287_vm0, %v260_v40  ;;  %584 = vrot.lane.b32.xlu1 %v582_v0, %s11682_s2  ;;  %v271_v31 = vmax.f32 %v255_v27, 0.0  ;;  %v272_v33 = vmax.f32 %v256_v30, 0.0  ;;  %vm2711_vm6 = vcmask 64512   ;;  %vm5452_vm7 = vcmask 261120  }
  0x4c   :  { %v273_v34 = vmax.f32 %v257_v32, 0.0  ;;  %vm5930_vm8 = vcmask 130048  }
  0x4d   :  { %vm13673_vm9 = vmpackc.low %vm5930_vm8, %vm5930_vm8 }
  0x4e   :  { %9334 = vmatmul.mubr.msk.f32.gmra.mrb[2].mxu0 %vm287_vm0, %v261_v50  ;;  %632 = vrot.lane.b32.xlu0 %v630_v6, %s11682_s2 }
  0x4f   :  { %9336 = vmatprep.mubr.msk.f32.mxu0 %vm287_vm0, %v262_v54 }
  0x52   :  { %9337 = vmatmul.mubr.msk.f32.gmra.mrb[4].mxu0 %vm287_vm0, %v263_v61  ;;  %608 = vrot.lane.b32.xlu0 %v606_v18, %s11682_s2 }
  0x53   :  { %9339 = vmatprep.mubr.msk.f32.mxu0 %vm287_vm0, %v264_v1 }
  0x56   :  { %9340 = vmatmul.mubr.msk.f32.gmra.mrb[6].mxu0 %vm287_vm0, %v265_v8 }
  0x57   :  { %9342 = vmatprep.mubr.msk.f32.mxu0 %vm287_vm0, %v266_v13 }
  0x5a   :  { %9343 = vmatmul.mubr.msk.f32.gmra.mrb[8].mxu0 %vm287_vm0, %v267_v19 }
  0x5b   :  { %9345 = vmatprep.mubr.msk.f32.mxu0 %vm287_vm0, %v268_v22 }
  0x5e   :  { %9346 = vmatmul.mubr.msk.f32.gmra.mrb[10].mxu0 %vm287_vm0, %v269_v26 }
  0x5f   :  { %9348 = vmatprep.mubr.msk.f32.mxu0 %vm287_vm0, %v270_v29 }
  0x62   :  { %9349 = vmatmul.mubr.msk.f32.gmra.mrb[12].mxu0 %vm287_vm0, %v271_v31 }
  0x63   :  { %9351 = vmatprep.mubr.msk.f32.mxu0 %vm287_vm0, %v272_v33 }
  0x66   :  { %9352 = vmatmul.mubr.msk.f32.gmra.mrb[14].mxu0 %vm287_vm0, %v273_v34 }
  0xb4   :  { %v11826_v9 = vpop.permute.xlu0 %560  ;;  %v11838_v40 = vpop.permute.xlu1 %512 }
  0xb8   :  { %v11833_v10 = vpop.permute.xlu0 %536  ;;  %v11868_v58 = vpop.permute.xlu1 %488 }
 0x11d   :  { %v9332_v36 = vpop.f32.mrb[0].mxu0 }
 0x11e   :  { %v11831_v37 = vadd.f32 %v9332_v36, %v11828_v35  ;;  %v402_v38 = vpop.f32.mrb[1].mxu0 }
 0x11f   :  { %v11836_v39 = vadd.f32 %v11828_v35, %v402_v38 }
 0x120   :  { %v564_v41 = vmul.f32 %v11826_v9, %v11831_v37  ;;  %v540_v42 = vmul.f32 %v11833_v10, %v11831_v37  ;;  %v516_v48 = vmul.f32 %v11838_v40, %v11831_v37  ;;  %v492_v63 = vmul.f32 %v11868_v58, %v11831_v37 }
 0x121   :  { %v9335_v43 = vpop.f32.mrb[2].mxu0  ;;  %v563_v44 = vmul.f32 %v11826_v9, %v11836_v39  ;;  %v539_v45 = vmul.f32 %v11833_v10, %v11836_v39  ;;  %v515_v52 = vmul.f32 %v11838_v40, %v11836_v39  ;;  %v491_v62 = vmul.f32 %v11868_v58, %v11836_v39 }
 0x122   :  { %v11849_v46 = vadd.f32 %v9335_v43, %v11828_v35  ;;  %v412_v47 = vpop.f32.mrb[3].mxu0 }
 0x123   :  { %v11854_v49 = vadd.f32 %v11828_v35, %v412_v47  ;;  %v10613_v50 = vpack.i.bf16 %v564_v41, %v563_v44  ;;  %v10618_v51 = vpack.i.bf16 %v540_v42, %v539_v45  ;;  %v10623_v61 = vpack.i.bf16 %v516_v48, %v515_v52 }
 0x124   :  { %v566_v53 = vmul.f32 %v11826_v9, %v11849_v46  ;;  %v542_v57 = vmul.f32 %v11833_v10, %v11849_v46  ;;  %v518_v4 = vmul.f32 %v11838_v40, %v11849_v46  ;;  %v494_v6 = vmul.f32 %v11868_v58, %v11849_v46 }
 0x125   :  { %v9338_v54 = vpop.f32.mrb[4].mxu0  ;;  %10614 = vrot.lane.b32.xlu0 %v10613_v50, %s11683_s23  ;;  %10619 = vrot.lane.b32.xlu1 %v10618_v51, %s11683_s23  ;;  %v565_v55 = vmul.f32 %v11826_v9, %v11854_v49  ;;  %v541_v56 = vmul.f32 %v11833_v10, %v11854_v49  ;;  %v517_v3 = vmul.f32 %v11838_v40, %v11854_v49 }
 0x126   :  { %v422_v59 = vpop.f32.mrb[5].mxu0  ;;  %v493_v5 = vmul.f32 %v11868_v58, %v11854_v49  ;;  %v11885_v7 = vadd.f32 %v9338_v54, %v11828_v35  ;;  %v10628_v11 = vpack.i.bf16 %v492_v63, %v491_v62 }
 0x127   :  { %v10633_v60 = vpack.i.bf16 %v566_v53, %v565_v55  ;;  %v10638_v1 = vpack.i.bf16 %v542_v57, %v541_v56  ;;  %v11888_v8 = vadd.f32 %v11828_v35, %v422_v59  ;;  %v10643_v14 = vpack.i.bf16 %v518_v4, %v517_v3 }
 0x128   :  { %v10648_v15 = vpack.i.bf16 %v494_v6, %v493_v5  ;;  %v568_v17 = vmul.f32 %v11826_v9, %v11885_v7  ;;  %v520_v19 = vmul.f32 %v11838_v40, %v11885_v7  ;;  %v544_v23 = vmul.f32 %v11833_v10, %v11885_v7 }
 0x129   :  { %v9341_v0 = vpop.f32.mrb[6].mxu0  ;;  %10634 = vrot.lane.b32.xlu1 %v10633_v60, %s11683_s23  ;;  %10624 = vrot.lane.b32.xlu0 %v10623_v61, %s11683_s23  ;;  %v567_v16 = vmul.f32 %v11826_v9, %v11888_v8  ;;  %v519_v18 = vmul.f32 %v11838_v40, %v11888_v8  ;;  %v543_v22 = vmul.f32 %v11833_v10, %v11888_v8 }
 0x12a   :  { %v432_v2 = vpop.f32.mrb[7].mxu0  ;;  %v495_v24 = vmul.f32 %v11868_v58, %v11888_v8  ;;  %v496_v25 = vmul.f32 %v11868_v58, %v11885_v7  ;;  %v11911_v26 = vadd.f32 %v9341_v0, %v11828_v35 }
 0x12b   :  { %v11914_v27 = vadd.f32 %v11828_v35, %v432_v2  ;;  %v10653_v28 = vpack.i.bf16 %v568_v17, %v567_v16  ;;  %v10663_v29 = vpack.i.bf16 %v520_v19, %v519_v18  ;;  %v10658_v34 = vpack.i.bf16 %v544_v23, %v543_v22 }
 0x12c   :  { %v546_v32 = vmul.f32 %v11833_v10, %v11911_v26  ;;  %v10668_v36 = vpack.i.bf16 %v496_v25, %v495_v24  ;;  %v570_v43 = vmul.f32 %v11826_v9, %v11911_v26  ;;  %v522_v50 = vmul.f32 %v11838_v40, %v11911_v26 }
 0x12d   :  { %v9344_v12 = vpop.f32.mrb[8].mxu0  ;;  %10639 = vrot.lane.b32.xlu1 %v10638_v1, %s11683_s23  ;;  %10629 = vrot.lane.b32.xlu0 %v10628_v11, %s11683_s23  ;;  %v545_v31 = vmul.f32 %v11833_v10, %v11914_v27  ;;  %v569_v42 = vmul.f32 %v11826_v9, %v11914_v27  ;;  %v521_v48 = vmul.f32 %v11838_v40, %v11914_v27 }
 0x12e   :  { %v442_v13 = vpop.f32.mrb[9].mxu0  ;;  %v11923_v38 = vadd.f32 %v9344_v12, %v11828_v35  ;;  %v497_v56 = vmul.f32 %v11868_v58, %v11914_v27  ;;  %v498_v57 = vmul.f32 %v11868_v58, %v11911_v26 }
 0x12f   :  { %v11926_v41 = vadd.f32 %v11828_v35, %v442_v13  ;;  %v10678_v45 = vpack.i.bf16 %v546_v32, %v545_v31  ;;  %v10673_v51 = vpack.i.bf16 %v570_v43, %v569_v42  ;;  %v10683_v54 = vpack.i.bf16 %v522_v50, %v521_v48 }
 0x130   :  { %v572_v53 = vmul.f32 %v11826_v9, %v11923_v38  ;;  %v548_v55 = vmul.f32 %v11833_v10, %v11923_v38  ;;  %v524_v0 = vmul.f32 %v11838_v40, %v11923_v38  ;;  %v10688_v2 = vpack.i.bf16 %v498_v57, %v497_v56  ;;  %v73_v57 = vld [vmem:[#allocation5 + $0x8] sm:$0xff] }
 0x131   :  { %v9347_v20 = vpop.f32.mrb[10].mxu0  ;;  %10644 = vrot.lane.b32.xlu1 %v10643_v14, %s11683_s23  ;;  %10649 = vrot.lane.b32.xlu0 %v10648_v15, %s11683_s23  ;;  %v571_v52 = vmul.f32 %v11826_v9, %v11926_v41  ;;  %v547_v62 = vmul.f32 %v11833_v10, %v11926_v41  ;;  %v523_v63 = vmul.f32 %v11838_v40, %v11926_v41 }
 0x132   :  { %v452_v21 = vpop.f32.mrb[11].mxu0  ;;  %v11951_v59 = vadd.f32 %v9347_v20, %v11828_v35  ;;  %v499_v11 = vmul.f32 %v11868_v58, %v11926_v41  ;;  %v500_v12 = vmul.f32 %v11868_v58, %v11923_v38  ;;  %1344 = vmatprep.mubr.f32.mxu1 %v73_v57 }
 0x133   :  { %v11954_v60 = vadd.f32 %v11828_v35, %v452_v21  ;;  %v10693_v61 = vpack.i.bf16 %v572_v53, %v571_v52  ;;  %v10698_v1 = vpack.i.bf16 %v548_v55, %v547_v62  ;;  %v10703_v5 = vpack.i.bf16 %v524_v0, %v523_v63  ;;  %v12030_v52 = vpop.permute.xlu0 %656 }
 0x134   :  { %v574_v4 = vmul.f32 %v11826_v9, %v11951_v59  ;;  %v550_v6 = vmul.f32 %v11833_v10, %v11951_v59  ;;  %v526_v18 = vmul.f32 %v11838_v40, %v11951_v59  ;;  %v10708_v20 = vpack.i.bf16 %v500_v12, %v499_v11 }
 0x135   :  { %v9350_v30 = vpop.f32.mrb[12].mxu0  ;;  %10654 = vrot.lane.b32.xlu1 %v10653_v28, %s11683_s23  ;;  %10664 = vrot.lane.b32.xlu0 %v10663_v29, %s11683_s23  ;;  %v573_v3 = vmul.f32 %v11826_v9, %v11954_v60  ;;  %v549_v16 = vmul.f32 %v11833_v10, %v11954_v60  ;;  %v525_v17 = vmul.f32 %v11838_v40, %v11954_v60 }
 0x136   :  { %v462_v33 = vpop.f32.mrb[13].mxu0  ;;  %v11977_v13 = vadd.f32 %v9350_v30, %v11828_v35  ;;  %v501_v25 = vmul.f32 %v11868_v58, %v11954_v60  ;;  %v502_v28 = vmul.f32 %v11868_v58, %v11951_v59  ;;  %v660_v53 = vmul.f32 %v12030_v52, %v11831_v37 }
 0x137   :  { %v11980_v14 = vadd.f32 %v11828_v35, %v462_v33  ;;  %v10713_v15 = vpack.i.bf16 %v574_v4, %v573_v3  ;;  %v10718_v19 = vpack.i.bf16 %v550_v6, %v549_v16  ;;  %v10723_v23 = vpack.i.bf16 %v526_v18, %v525_v17 }
 0x138   :  { %v576_v22 = vmul.f32 %v11826_v9, %v11977_v13  ;;  %v552_v24 = vmul.f32 %v11833_v10, %v11977_v13  ;;  %v10728_v42 = vpack.i.bf16 %v502_v28, %v501_v25  ;;  %v661_v11 = vmul.f32 %v12030_v52, %v11854_v49 }
 0x139   :  { %v9353_v44 = vpop.f32.mrb[14].mxu0  ;;  %10659 = vrot.lane.b32.xlu1 %v10658_v34, %s11683_s23  ;;  %10669 = vrot.lane.b32.xlu0 %v10668_v36, %s11683_s23  ;;  %v575_v21 = vmul.f32 %v11826_v9, %v11980_v14  ;;  %v551_v32 = vmul.f32 %v11833_v10, %v11980_v14  ;;  %v527_v33 = vmul.f32 %v11838_v40, %v11980_v14 }
 0x13a   :  { %v472_v47 = vpop.f32.mrb[15].mxu0  ;;  %v12003_v29 = vadd.f32 %v9353_v44, %v11828_v35  ;;  %v528_v34 = vmul.f32 %v11838_v40, %v11977_v13  ;;  %v503_v55 = vmul.f32 %v11868_v58, %v11980_v14  ;;  %v662_v12 = vmul.f32 %v12030_v52, %v11849_v46 }
 0x13b   :  { %v12006_v30 = vadd.f32 %v11828_v35, %v472_v47  ;;  %v10733_v31 = vpack.i.bf16 %v576_v22, %v575_v21  ;;  %v10738_v36 = vpack.i.bf16 %v552_v24, %v551_v32  ;;  %v663_v18 = vmul.f32 %v12030_v52, %v11888_v8  ;;  %v12076_v22 = vpop.permute.xlu1 %584 }
 0x13c   :  { %v578_v43 = vmul.f32 %v11826_v9, %v12003_v29  ;;  %v10743_v44 = vpack.i.bf16 %v528_v34, %v527_v33  ;;  %v506_v0 = vmul.f32 %v11868_v58, %v12003_v29  ;;  %v588_v32 = vmul.f32 %v12076_v22, %v11831_v37 }
 0x13d   :  { %10679 = vrot.lane.b32.xlu1 %v10678_v45, %s11683_s23  ;;  %10674 = vrot.lane.b32.xlu0 %v10673_v51, %s11683_s23  ;;  %v577_v35 = vmul.f32 %v11826_v9, %v12006_v30  ;;  %v554_v45 = vmul.f32 %v11833_v10, %v12003_v29  ;;  %v553_v48 = vmul.f32 %v11833_v10, %v12006_v30 }
 0x13e   :  { %v529_v50 = vmul.f32 %v11838_v40, %v12006_v30  ;;  %v530_v51 = vmul.f32 %v11838_v40, %v12003_v29  ;;  %v659_v9 = vmul.f32 %v12030_v52, %v11836_v39  ;;  %v504_v40 = vmul.f32 %v11868_v58, %v11977_v13 }
 0x13f   :  { %v10748_v47 = vpack.i.bf16 %v578_v43, %v577_v35  ;;  %v505_v63 = vmul.f32 %v11868_v58, %v12006_v30 }
 0x140   :  { %v10763_v10 = vpack.i.bf16 %v530_v51, %v529_v50  ;;  %v10768_v56 = vpack.i.bf16 %v660_v53, %v659_v9  ;;  %v10758_v62 = vpack.i.bf16 %v504_v40, %v503_v55  ;;  %v589_v50 = vmul.f32 %v12076_v22, %v11854_v49 }
 0x141   :  { %10694 = vrot.lane.b32.xlu1 %v10693_v61, %s11683_s23  ;;  %10684 = vrot.lane.b32.xlu0 %v10683_v54, %s11683_s23  ;;  %v10753_v54 = vpack.i.bf16 %v554_v45, %v553_v48  ;;  %v75_v61 = vld [vmem:[#allocation5 + $0x18] sm:$0xff]  ;;  %v10773_v4 = vpack.i.bf16 %v506_v0, %v505_v63  ;;  %v590_v51 = vmul.f32 %v12076_v22, %v11849_v46 }
 0x142   :  { %1489 = vmatprep.mubr.f32.mxu0 %v75_v61  ;;  %v591_v63 = vmul.f32 %v12076_v22, %v11888_v8  ;;  %v592_v0 = vmul.f32 %v12076_v22, %v11885_v7 }
 0x143   :  { %v10823_v55 = vpack.i.bf16 %v590_v51, %v589_v50 }
 0x145   :  { %10699 = vrot.lane.b32.xlu1 %v10698_v1, %s11683_s23  ;;  %10689 = vrot.lane.b32.xlu0 %v10688_v2, %s11683_s23  ;;  %v12048_v1 = vpop.permute.xlu0 %632  ;;  %v7882_v2 = vld [vmem:[#allocation7 + $0x60] ss:$0 sm:$0xff] }
 0x146   :  { %v635_v3 = vmul.f32 %v12048_v1, %v11836_v39  ;;  %v637_v6 = vmul.f32 %v12048_v1, %v11854_v49  ;;  %v638_v58 = vmul.f32 %v12048_v1, %v11849_v46  ;;  %v639_v25 = vmul.f32 %v12048_v1, %v11888_v8 }
 0x147   :  { %v640_v28 = vmul.f32 %v12048_v1, %v11885_v7  ;;  %v642_v48 = vmul.f32 %v12048_v1, %v11911_v26  ;;  %v643_v61 = vmul.f32 %v12048_v1, %v11926_v41 }
 0x148   :  { %v10788_v17 = vpack.i.bf16 %v638_v58, %v637_v6 }
 0x149   :  { %10714 = vrot.lane.b32.xlu1 %v10713_v15, %s11683_s23  ;;  %10704 = vrot.lane.b32.xlu0 %v10703_v5, %s11683_s23  ;;  %v636_v5 = vmul.f32 %v12048_v1, %v11831_v37  ;;  %v12066_v15 = vpop.permute.xlu0 %608  ;;  %v10808_v34 = vpack.i.bf16 %v640_v28, %v639_v25 }
 0x14a   :  { %v611_v21 = vmul.f32 %v12066_v15, %v11836_v39  ;;  %v612_v24 = vmul.f32 %v12066_v15, %v11831_v37  ;;  %v613_v43 = vmul.f32 %v12066_v15, %v11854_v49  ;;  %v614_v45 = vmul.f32 %v12066_v15, %v11849_v46 }
 0x14b   :  { %v10778_v16 = vpack.i.bf16 %v636_v5, %v635_v3  ;;  %v615_v40 = vmul.f32 %v12066_v15, %v11888_v8  ;;  %v616_v57 = vmul.f32 %v12066_v15, %v11885_v7  ;;  %v670_v5 = vmul.f32 %v12030_v52, %v11951_v59 }
 0x14c   :  { %v10793_v33 = vpack.i.bf16 %v612_v24, %v611_v21  ;;  %v10813_v9 = vpack.i.bf16 %v614_v45, %v613_v43  ;;  %v617_v6 = vmul.f32 %v12066_v15, %v11914_v27  ;;  %v618_v58 = vmul.f32 %v12066_v15, %v11911_v26 }
 0x14d   :  { %10719 = vrot.lane.b32.xlu1 %v10718_v19, %s11683_s23  ;;  %10709 = vrot.lane.b32.xlu0 %v10708_v20, %s11683_s23  ;;  %v664_v19 = vmul.f32 %v12030_v52, %v11885_v7  ;;  %v10783_v20 = vpack.i.bf16 %v662_v12, %v661_v11  ;;  %v10843_v11 = vpack.i.bf16 %v592_v0, %v591_v63 }
 0x14e   :  { %v594_v21 = vmul.f32 %v12076_v22, %v11911_v26  ;;  %v672_v24 = vmul.f32 %v12030_v52, %v11977_v13  ;;  %v619_v25 = vmul.f32 %v12066_v15, %v11926_v41  ;;  %v620_v28 = vmul.f32 %v12066_v15, %v11923_v38 }
 0x14f   :  { %v596_v43 = vmul.f32 %v12076_v22, %v11923_v38  ;;  %v674_v45 = vmul.f32 %v12030_v52, %v12003_v29 }
 0x151   :  { %10734 = vrot.lane.b32.xlu1 %v10733_v31, %s11683_s23  ;;  %10724 = vrot.lane.b32.xlu0 %v10723_v23, %s11683_s23  ;;  %v10798_v23 = vpack.i.bf16 %v664_v19, %v663_v18  ;;  %v587_v31 = vmul.f32 %v12076_v22, %v11836_v39  ;;  %v10853_v18 = vpack.i.bf16 %v618_v58, %v617_v6 }
 0x152   :  { %v593_v19 = vmul.f32 %v12076_v22, %v11914_v27 }
 0x153   :  { %v10803_v35 = vpack.i.bf16 %v588_v32, %v587_v31 }
 0x154   :  { %v10863_v31 = vpack.i.bf16 %v594_v21, %v593_v19 }
 0x155   :  { %10739 = vrot.lane.b32.xlu1 %v10738_v36, %s11683_s23  ;;  %10729 = vrot.lane.b32.xlu0 %v10728_v42, %s11683_s23  ;;  %v665_v36 = vmul.f32 %v12030_v52, %v11914_v27  ;;  %v666_v42 = vmul.f32 %v12030_v52, %v11911_v26 }
 0x159   :  { %10749 = vrot.lane.b32.xlu1 %v10748_v47, %s11683_s23  ;;  %10744 = vrot.lane.b32.xlu0 %v10743_v44, %s11683_s23  ;;  %v10818_v44 = vpack.i.bf16 %v666_v42, %v665_v36  ;;  %v641_v47 = vmul.f32 %v12048_v1, %v11914_v27  ;;  %v10873_v36 = vpack.i.bf16 %v620_v28, %v619_v25 }
 0x15a   :  { %v595_v42 = vmul.f32 %v12076_v22, %v11926_v41 }
 0x15b   :  { %v10828_v53 = vpack.i.bf16 %v642_v48, %v641_v47  ;;  %v621_v47 = vmul.f32 %v12066_v15, %v11954_v60  ;;  %v622_v48 = vmul.f32 %v12066_v15, %v11951_v59 }
 0x15c   :  { %v10883_v50 = vpack.i.bf16 %v596_v43, %v595_v42 }
 0x15d   :  { %10754 = vrot.lane.b32.xlu1 %v10753_v54, %s11683_s23  ;;  %10764 = vrot.lane.b32.xlu0 %v10763_v10, %s11683_s23  ;;  %v667_v54 = vmul.f32 %v12030_v52, %v11926_v41  ;;  %v668_v10 = vmul.f32 %v12030_v52, %v11923_v38 }
 0x161   :  { %10759 = vrot.lane.b32.xlu1 %v10758_v62, %s11683_s23  ;;  %10769 = vrot.lane.b32.xlu0 %v10768_v56, %s11683_s23  ;;  %v10838_v56 = vpack.i.bf16 %v668_v10, %v667_v54  ;;  %v644_v62 = vmul.f32 %v12048_v1, %v11923_v38  ;;  %v598_v54 = vmul.f32 %v12076_v22, %v11951_v59 }
 0x163   :  { %v10848_v3 = vpack.i.bf16 %v644_v62, %v643_v61 }
 0x165   :  { %10774 = vrot.lane.b32.xlu1 %v10773_v4, %s11683_s23  ;;  %680 = vrot.lane.b32.xlu0 %v7882_v2, %s11682_s2  ;;  %v10833_v2 = vpack.i.bf16 %v616_v57, %v615_v40  ;;  %v669_v4 = vmul.f32 %v12030_v52, %v11954_v60  ;;  %v10893_v40 = vpack.i.bf16 %v622_v48, %v621_v47 }
 0x166   :  { %v599_v57 = vmul.f32 %v12076_v22, %v11980_v14 }
 0x167   :  { %v10858_v12 = vpack.i.bf16 %v670_v5, %v669_v4  ;;  %v623_v5 = vmul.f32 %v12066_v15, %v11980_v14 }
 0x169   :  { %10779 = vrot.lane.b32.xlu1 %v10778_v16, %s11683_s23  ;;  %10789 = vrot.lane.b32.xlu0 %v10788_v17, %s11683_s23  ;;  %v645_v16 = vmul.f32 %v12048_v1, %v11954_v60  ;;  %v646_v17 = vmul.f32 %v12048_v1, %v11951_v59 }
 0x16d   :  { %10784 = vrot.lane.b32.xlu1 %v10783_v20, %s11683_s23  ;;  %10799 = vrot.lane.b32.xlu0 %v10798_v23, %s11683_s23  ;;  %v10868_v20 = vpack.i.bf16 %v646_v17, %v645_v16  ;;  %v671_v23 = vmul.f32 %v12030_v52, %v11980_v14  ;;  %v601_v16 = vmul.f32 %v12076_v22, %v12006_v30 }
 0x16e   :  { %v602_v17 = vmul.f32 %v12076_v22, %v12003_v29 }
 0x16f   :  { %v10878_v32 = vpack.i.bf16 %v672_v24, %v671_v23 }
 0x171   :  { %10794 = vrot.lane.b32.xlu1 %v10793_v33, %s11683_s23  ;;  %10809 = vrot.lane.b32.xlu0 %v10808_v34, %s11683_s23  ;;  %v647_v33 = vmul.f32 %v12048_v1, %v11980_v14  ;;  %v648_v34 = vmul.f32 %v12048_v1, %v11977_v13 }
 0x175   :  { %10804 = vrot.lane.b32.xlu1 %v10803_v35, %s11683_s23  ;;  %10819 = vrot.lane.b32.xlu0 %v10818_v44, %s11683_s23  ;;  %v10888_v35 = vpack.i.bf16 %v648_v34, %v647_v33  ;;  %v673_v44 = vmul.f32 %v12030_v52, %v12006_v30  ;;  %v597_v52 = vmul.f32 %v12076_v22, %v11954_v60 }
 0x176   :  { %v625_v33 = vmul.f32 %v12066_v15, %v12006_v30 }
 0x177   :  { %v10908_v51 = vpack.i.bf16 %v674_v45, %v673_v44  ;;  %v10898_v4 = vpack.i.bf16 %v598_v54, %v597_v52 }
 0x179   :  { %10814 = vrot.lane.b32.xlu1 %v10813_v9, %s11683_s23  ;;  %10829 = vrot.lane.b32.xlu0 %v10828_v53, %s11683_s23  ;;  %v649_v9 = vmul.f32 %v12048_v1, %v12006_v30  ;;  %v650_v53 = vmul.f32 %v12048_v1, %v12003_v29  ;;  %v600_v1 = vmul.f32 %v12076_v22, %v11977_v13 }
 0x17a   :  { %v626_v22 = vmul.f32 %v12066_v15, %v12003_v29 }
 0x17c   :  { %v10923_v48 = vpack.i.bf16 %v626_v22, %v625_v33 }
 0x17d   :  { %10824 = vrot.lane.b32.xlu1 %v10823_v55, %s11683_s23  ;;  %10839 = vrot.lane.b32.xlu0 %v10838_v56, %s11683_s23  ;;  %v10913_v56 = vpack.i.bf16 %v650_v53, %v649_v9 }
 0x181   :  { %10834 = vrot.lane.b32.xlu1 %v10833_v2, %s11683_s23  ;;  %10849 = vrot.lane.b32.xlu0 %v10848_v3, %s11683_s23 }
 0x185   :  { %10844 = vrot.lane.b32.xlu1 %v10843_v11, %s11683_s23  ;;  %10859 = vrot.lane.b32.xlu0 %v10858_v12, %s11683_s23  ;;  %v10918_v11 = vpack.i.bf16 %v600_v1, %v599_v57  ;;  %v624_v12 = vmul.f32 %v12066_v15, %v11977_v13 }
 0x189   :  { %10854 = vrot.lane.b32.xlu1 %v10853_v18, %s11683_s23  ;;  %10869 = vrot.lane.b32.xlu0 %v10868_v20, %s11683_s23 }
 0x18d   :  { %10864 = vrot.lane.b32.xlu1 %v10863_v31, %s11683_s23  ;;  %10879 = vrot.lane.b32.xlu0 %v10878_v32, %s11683_s23  ;;  %v10903_v31 = vpack.i.bf16 %v624_v12, %v623_v5  ;;  %v10928_v32 = vpack.i.bf16 %v602_v17, %v601_v16 }
 0x191   :  { %10874 = vrot.lane.b32.xlu1 %v10873_v36, %s11683_s23  ;;  %10889 = vrot.lane.b32.xlu0 %v10888_v35, %s11683_s23 }
 0x195   :  { %10884 = vrot.lane.b32.xlu1 %v10883_v50, %s11683_s23  ;;  %10909 = vrot.lane.b32.xlu0 %v10908_v51, %s11683_s23 }
 0x197   :  { %v10615_v10 = vpop.permute.xlu0 %10614  ;;  %v10620_v55 = vpop.permute.xlu1 %10619 }
 0x198   :  { %v10617_v61 = vunpack.i.h.bf16 %v10615_v10  ;;  %v10616_v62 = vunpack.i.l.bf16 %v10615_v10  ;;  %v10622_v63 = vunpack.i.h.bf16 %v10620_v55  ;;  %v10621_v0 = vunpack.i.l.bf16 %v10620_v55 }
 0x199   :  { %10894 = vrot.lane.b32.xlu1 %v10893_v40, %s11683_s23  ;;  %10914 = vrot.lane.b32.xlu0 %v10913_v56, %s11683_s23 }
 0x19a   :  { %v10116_v2 = vpack.c.bf16 %v10622_v63, %v10621_v0  ;;  %v10114_v3 = vpack.c.bf16 %v10617_v61, %v10616_v62 }
 0x19b   :  { %v10635_v6 = vpop.permute.xlu1 %10634  ;;  %v10625_v58 = vpop.permute.xlu0 %10624 }
 0x19c   :  { %v10637_v18 = vunpack.i.h.bf16 %v10635_v6  ;;  %v10636_v19 = vunpack.i.l.bf16 %v10635_v6  ;;  %10115 = vmatprep.subr.bf16.mxu0 %v10114_v3  ;;  %v10627_v20 = vunpack.i.h.bf16 %v10625_v58  ;;  %v10626_v21 = vunpack.i.l.bf16 %v10625_v58 }
 0x19d   :  { %10899 = vrot.lane.b32.xlu1 %v10898_v4, %s11683_s23  ;;  %10117 = vmatpush3.bf16.msra.mxu0 %v10116_v2 }
 0x19e   :  { %10919 = vrot.lane.b32.xlu0 %v10918_v11, %s11683_s23  ;;  %v10082_v23 = vpack.c.bf16 %v10627_v20, %v10626_v21  ;;  %v10118_v24 = vpack.c.bf16 %v10637_v18, %v10636_v19 }
 0x19f   :  { %v10640_v25 = vpop.permute.xlu1 %10639  ;;  %v10630_v28 = vpop.permute.xlu0 %10629 }
 0x1a0   :  { %v10642_v34 = vunpack.i.h.bf16 %v10640_v25  ;;  %v10641_v36 = vunpack.i.l.bf16 %v10640_v25  ;;  %10083 = vmatprep.subr.bf16.mxu1 %v10082_v23  ;;  %10119 = vmatprep.subr.bf16.mxu0 %v10118_v24  ;;  %v10632_v42 = vunpack.i.h.bf16 %v10630_v28  ;;  %v10631_v35 = vunpack.i.l.bf16 %v10630_v28 }
 0x1a1   :  { %10904 = vrot.lane.b32.xlu1 %v10903_v31, %s11683_s23 }
 0x1a2   :  { %v10120_v43 = vpack.c.bf16 %v10642_v34, %v10641_v36  ;;  %10929 = vrot.lane.b32.xlu0 %v10928_v32, %s11683_s23  ;;  %v10084_v44 = vpack.c.bf16 %v10632_v42, %v10631_v35 }
 0x1a3   :  { %v10645_v45 = vpop.permute.xlu1 %10644  ;;  %v10650_v47 = vpop.permute.xlu0 %10649 }
 0x1a4   :  { %v10647_v50 = vunpack.i.h.bf16 %v10645_v45  ;;  %v10646_v51 = vunpack.i.l.bf16 %v10645_v45  ;;  %v10652_v9 = vunpack.i.h.bf16 %v10650_v47  ;;  %v10651_v53 = vunpack.i.l.bf16 %v10650_v47  ;;  %10085 = vmatpush3.bf16.msra.mxu1 %v10084_v44  ;;  %10121 = vmatpush3.bf16.msra.mxu0 %v10120_v43 }
 0x1a5   :  { %10924 = vrot.lane.b32.xlu1 %v10923_v48, %s11683_s23 }
 0x1a6   :  { %v10086_v15 = vpack.c.bf16 %v10647_v50, %v10646_v51  ;;  %v10088_v52 = vpack.c.bf16 %v10652_v9, %v10651_v53 }
 0x1a7   :  { %v10655_v54 = vpop.permute.xlu1 %10654  ;;  %v10665_v10 = vpop.permute.xlu0 %10664 }
 0x1a8   :  { %v10657_v55 = vunpack.i.h.bf16 %v10655_v54  ;;  %v10656_v40 = vunpack.i.l.bf16 %v10655_v54  ;;  %v10667_v56 = vunpack.i.h.bf16 %v10665_v10  ;;  %v10666_v57 = vunpack.i.l.bf16 %v10665_v10  ;;  %10087 = vmatprep.subr.bf16.mxu1 %v10086_v15 }
 0x1a9   :  { %10089 = vmatpush3.bf16.msra.mxu1 %v10088_v52 }
 0x1aa   :  { %v10090_v1 = vpack.c.bf16 %v10667_v56, %v10666_v57  ;;  %v10122_v61 = vpack.c.bf16 %v10657_v55, %v10656_v40 }
 0x1ab   :  { %v10660_v62 = vpop.permute.xlu1 %10659  ;;  %v10670_v63 = vpop.permute.xlu0 %10669 }
 0x1ac   :  { %v10662_v0 = vunpack.i.h.bf16 %v10660_v62  ;;  %v10661_v2 = vunpack.i.l.bf16 %v10660_v62  ;;  %v10672_v3 = vunpack.i.h.bf16 %v10670_v63  ;;  %v10671_v4 = vunpack.i.l.bf16 %v10670_v63  ;;  %10091 = vmatprep.subr.bf16.mxu1 %v10090_v1  ;;  %10123 = vmatprep.subr.bf16.mxu0 %v10122_v61 }
 0x1ae   :  { %v10124_v5 = vpack.c.bf16 %v10662_v0, %v10661_v2  ;;  %v10092_v6 = vpack.c.bf16 %v10672_v3, %v10671_v4 }
 0x1af   :  { %v10680_v58 = vpop.permute.xlu1 %10679  ;;  %v10675_v11 = vpop.permute.xlu0 %10674 }
 0x1b0   :  { %v10682_v12 = vunpack.i.h.bf16 %v10680_v58  ;;  %v10681_v16 = vunpack.i.l.bf16 %v10680_v58  ;;  %v10677_v17 = vunpack.i.h.bf16 %v10675_v11  ;;  %v10676_v18 = vunpack.i.l.bf16 %v10675_v11  ;;  %10093 = vmatpush3.bf16.msra.mxu1 %v10092_v6  ;;  %10125 = vmatpush3.bf16.msra.mxu0 %v10124_v5 }
 0x1b2   :  { %v10128_v19 = vpack.c.bf16 %v10682_v12, %v10681_v16  ;;  %v10126_v20 = vpack.c.bf16 %v10677_v17, %v10676_v18 }
 0x1b3   :  { %v10695_v21 = vpop.permute.xlu1 %10694  ;;  %v10685_v23 = vpop.permute.xlu0 %10684 }
 0x1b4   :  { %v10697_v24 = vunpack.i.h.bf16 %v10695_v21  ;;  %v10696_v25 = vunpack.i.l.bf16 %v10695_v21  ;;  %v10687_v28 = vunpack.i.h.bf16 %v10685_v23  ;;  %v10686_v31 = vunpack.i.l.bf16 %v10685_v23  ;;  %10127 = vmatprep.subr.bf16.mxu0 %v10126_v20 }
 0x1b5   :  { %10129 = vmatpush3.bf16.msra.mxu0 %v10128_v19 }
 0x1b6   :  { %v10094_v32 = vpack.c.bf16 %v10687_v28, %v10686_v31  ;;  %v10130_v33 = vpack.c.bf16 %v10697_v24, %v10696_v25 }
 0x1b7   :  { %v10700_v22 = vpop.permute.xlu1 %10699  ;;  %v10690_v34 = vpop.permute.xlu0 %10689 }
 0x1b8   :  { %v10702_v36 = vunpack.i.h.bf16 %v10700_v22  ;;  %v10701_v42 = vunpack.i.l.bf16 %v10700_v22  ;;  %v10692_v35 = vunpack.i.h.bf16 %v10690_v34  ;;  %v10691_v43 = vunpack.i.l.bf16 %v10690_v34  ;;  %10095 = vmatprep.subr.bf16.mxu1 %v10094_v32  ;;  %10131 = vmatprep.subr.bf16.mxu0 %v10130_v33 }
 0x1ba   :  { %v10132_v44 = vpack.c.bf16 %v10702_v36, %v10701_v42  ;;  %v10096_v45 = vpack.c.bf16 %v10692_v35, %v10691_v43 }
 0x1bb   :  { %v10715_v47 = vpop.permute.xlu1 %10714  ;;  %v10705_v48 = vpop.permute.xlu0 %10704 }
 0x1bc   :  { %v10717_v50 = vunpack.i.h.bf16 %v10715_v47  ;;  %v10716_v51 = vunpack.i.l.bf16 %v10715_v47  ;;  %v10707_v9 = vunpack.i.h.bf16 %v10705_v48  ;;  %v10706_v53 = vunpack.i.l.bf16 %v10705_v48  ;;  %10097 = vmatpush3.bf16.msra.mxu1 %v10096_v45  ;;  %10133 = vmatpush3.bf16.msra.mxu0 %v10132_v44 }
 0x1be   :  { %v10098_v15 = vpack.c.bf16 %v10707_v9, %v10706_v53  ;;  %v10134_v52 = vpack.c.bf16 %v10717_v50, %v10716_v51  ;;  %v74_v53 = vld [vmem:[#allocation5 + $0x10] sm:$0xff] }
 0x1bf   :  { %v10720_v54 = vpop.permute.xlu1 %10719  ;;  %v10710_v10 = vpop.permute.xlu0 %10709 }
 0x1c0   :  { %v10722_v55 = vunpack.i.h.bf16 %v10720_v54  ;;  %v10721_v40 = vunpack.i.l.bf16 %v10720_v54  ;;  %v10712_v56 = vunpack.i.h.bf16 %v10710_v10  ;;  %v10711_v57 = vunpack.i.l.bf16 %v10710_v10  ;;  %10099 = vmatprep.subr.bf16.mxu1 %v10098_v15  ;;  %10135 = vmatprep.subr.bf16.mxu0 %v10134_v52 }
 0x1c2   :  { %v10136_v1 = vpack.c.bf16 %v10722_v55, %v10721_v40  ;;  %v10100_v61 = vpack.c.bf16 %v10712_v56, %v10711_v57  ;;  %v84_v40 = vld [vmem:[#allocation5 + $0x60] sm:$0xff] }
 0x1c3   :  { %v10735_v62 = vpop.permute.xlu1 %10734  ;;  %v10725_v63 = vpop.permute.xlu0 %10724 }
 0x1c4   :  { %v10737_v0 = vunpack.i.h.bf16 %v10735_v62  ;;  %v10736_v2 = vunpack.i.l.bf16 %v10735_v62  ;;  %v10727_v3 = vunpack.i.h.bf16 %v10725_v63  ;;  %v10726_v4 = vunpack.i.l.bf16 %v10725_v63  ;;  %10101 = vmatpush3.bf16.msra.mxu1 %v10100_v61  ;;  %10137 = vmatpush3.bf16.msra.mxu0 %v10136_v1  ;;  %v83_v62 = vld [vmem:[#allocation5 + $0x58] sm:$0xff] }
 0x1c6   :  { %v10102_v5 = vpack.c.bf16 %v10727_v3, %v10726_v4  ;;  %v10138_v6 = vpack.c.bf16 %v10737_v0, %v10736_v2 }
 0x1c7   :  { %v10740_v58 = vpop.permute.xlu1 %10739  ;;  %v10730_v11 = vpop.permute.xlu0 %10729 }
 0x1c8   :  { %v10742_v12 = vunpack.i.h.bf16 %v10740_v58  ;;  %v10741_v16 = vunpack.i.l.bf16 %v10740_v58  ;;  %v10732_v17 = vunpack.i.h.bf16 %v10730_v11  ;;  %v10731_v18 = vunpack.i.l.bf16 %v10730_v11  ;;  %10103 = vmatprep.subr.bf16.mxu1 %v10102_v5  ;;  %10139 = vmatprep.subr.bf16.mxu0 %v10138_v6 }
 0x1ca   :  { %v10140_v19 = vpack.c.bf16 %v10742_v12, %v10741_v16  ;;  %v10104_v20 = vpack.c.bf16 %v10732_v17, %v10731_v18  ;;  %v93_v17 = vld [vmem:[#allocation5 + $0xa8] sm:$0xff] }
 0x1cb   :  { %v10750_v21 = vpop.permute.xlu1 %10749  ;;  %v10745_v23 = vpop.permute.xlu0 %10744 }
 0x1cc   :  { %v10752_v24 = vunpack.i.h.bf16 %v10750_v21  ;;  %v10751_v25 = vunpack.i.l.bf16 %v10750_v21  ;;  %v10747_v28 = vunpack.i.h.bf16 %v10745_v23  ;;  %v10746_v31 = vunpack.i.l.bf16 %v10745_v23  ;;  %10105 = vmatpush3.bf16.msra.mxu1 %v10104_v20  ;;  %10141 = vmatpush3.bf16.msra.mxu0 %v10140_v19  ;;  %v72_v20 = vld [vmem:[#allocation5] sm:$0xff] }
 0x1cd   :  { %v92_v21 = vld [vmem:[#allocation5 + $0xa0] sm:$0xff] }
 0x1ce   :  { %v10106_v32 = vpack.c.bf16 %v10747_v28, %v10746_v31  ;;  %v10142_v33 = vpack.c.bf16 %v10752_v24, %v10751_v25 }
 0x1cf   :  { %v10755_v22 = vpop.permute.xlu1 %10754  ;;  %v10765_v34 = vpop.permute.xlu0 %10764 }
 0x1d0   :  { %v10757_v36 = vunpack.i.h.bf16 %v10755_v22  ;;  %v10756_v42 = vunpack.i.l.bf16 %v10755_v22  ;;  %10107 = vmatprep.subr.bf16.mxu1 %v10106_v32  ;;  %10143 = vmatprep.subr.bf16.mxu0 %v10142_v33  ;;  %v10767_v43 = vunpack.i.h.bf16 %v10765_v34  ;;  %v10766_v44 = vunpack.i.l.bf16 %v10765_v34  ;;  %v82_v33 = vld [vmem:[#allocation5 + $0x50] sm:$0xff] }
 0x1d2   :  { %v10144_v35 = vpack.c.bf16 %v10757_v36, %v10756_v42  ;;  %v10110_v55 = vpack.c.bf16 %v10767_v43, %v10766_v44  ;;  %v102_v43 = vld [vmem:[#allocation5 + $0xf0] sm:$0xff] }
 0x1d3   :  { %v10760_v45 = vpop.permute.xlu1 %10759  ;;  %v10770_v47 = vpop.permute.xlu0 %10769 }
 0x1d4   :  { %v10762_v48 = vunpack.i.h.bf16 %v10760_v45  ;;  %v10761_v50 = vunpack.i.l.bf16 %v10760_v45  ;;  %v10772_v51 = vunpack.i.h.bf16 %v10770_v47  ;;  %v10771_v9 = vunpack.i.l.bf16 %v10770_v47  ;;  %10145 = vmatpush3.bf16.msra.mxu0 %v10144_v35 }
 0x1d6   :  { %v10108_v15 = vpack.c.bf16 %v10762_v48, %v10761_v50  ;;  %v10178_v52 = vpack.c.bf16 %v10772_v51, %v10771_v9  ;;  %v81_v50 = vld [vmem:[#allocation5 + $0x48] sm:$0xff] }
 0x1d7   :  { %v10775_v54 = vpop.permute.xlu1 %10774  ;;  %v12213_v10 = vpop.permute.xlu0 %680  ;;  %1490 = vmatmul.mubr.f32.vlgmr.msra.gmra.mrb[16].mxu0 %v74_v53  ;;  %v101_v51 = vld [vmem:[#allocation5 + $0xe8] sm:$0xff] }
 0x1d8   :  { %v10777_v56 = vunpack.i.h.bf16 %v10775_v54  ;;  %v10776_v57 = vunpack.i.l.bf16 %v10775_v54  ;;  %10109 = vmatpush3.bf16.msra.mxu1 %v10108_v15  ;;  %10179 = vmatprep.subr.bf16.mxu0 %v10178_v52  ;;  %v685_v1 = vmul.f32 %v12213_v10, %v11854_v49  ;;  %v686_v61 = vmul.f32 %v12213_v10, %v11849_v46 }
 0x1d9   :  { %10111 = vmatprep.subr.bf16.mxu1 %v10110_v55  ;;  %v683_v63 = vmul.f32 %v12213_v10, %v11836_v39  ;;  %v684_v0 = vmul.f32 %v12213_v10, %v11831_v37  ;;  %v689_v4 = vmul.f32 %v12213_v10, %v11914_v27  ;;  %v690_v5 = vmul.f32 %v12213_v10, %v11911_v26 }
 0x1da   :  { %v10938_v2 = vpack.i.bf16 %v686_v61, %v685_v1  ;;  %v10112_v3 = vpack.c.bf16 %v10777_v56, %v10776_v57  ;;  %1494 = vmatprep.mubr.f32.mxu0 %v84_v40  ;;  %v687_v12 = vmul.f32 %v12213_v10, %v11888_v8  ;;  %v688_v16 = vmul.f32 %v12213_v10, %v11885_v7  ;;  %v91_v1 = vld [vmem:[#allocation5 + $0x98] sm:$0xff] }
 0x1db   :  { %v10780_v6 = vpop.permute.xlu1 %10779  ;;  %v10790_v58 = vpop.permute.xlu0 %10789  ;;  %v10933_v11 = vpack.i.bf16 %v684_v0, %v683_v63  ;;  %1495 = vmatmul.mubr.f32.gmra.mrb[18].mxu0 %v83_v62  ;;  %v693_v25 = vmul.f32 %v12213_v10, %v11954_v60  ;;  %v694_v28 = vmul.f32 %v12213_v10, %v11951_v59  ;;  %v10948_v32 = vpack.i.bf16 %v690_v5, %v689_v4  ;;  %v90_v4 = vld [vmem:[#allocation5 + $0x90] sm:$0xff]  ;;  %v111_v5 = vld [vmem:[#allocation5 + $0x138] sm:$0xff] }
 0x1dc   :  { %v10782_v18 = vunpack.i.h.bf16 %v10780_v6  ;;  %v10781_v19 = vunpack.i.l.bf16 %v10780_v6  ;;  %10939 = vrot.lane.b32.xlu0 %v10938_v2, %s11683_s23  ;;  %10113 = vmatpush3.bf16.msra.mxu1 %v10112_v3  ;;  %v10792_v23 = vunpack.i.h.bf16 %v10790_v58  ;;  %v10791_v24 = vunpack.i.l.bf16 %v10790_v58 }
 0x1dd   :  { %10934 = vrot.lane.b32.xlu1 %v10933_v11, %s11683_s23  ;;  %v691_v22 = vmul.f32 %v12213_v10, %v11926_v41  ;;  %v692_v34 = vmul.f32 %v12213_v10, %v11923_v38  ;;  %1499 = vmatprep.mubr.f32.mxu0 %v93_v17  ;;  %v10943_v35 = vpack.i.bf16 %v688_v16, %v687_v12  ;;  %v100_v17 = vld [vmem:[#allocation5 + $0xe0] sm:$0xff] }
 0x1de   :  { %v10180_v31 = vpack.c.bf16 %v10782_v18, %v10781_v19  ;;  %v10184_v9 = vpack.c.bf16 %v10792_v23, %v10791_v24  ;;  %v10958_v53 = vpack.i.bf16 %v694_v28, %v693_v25  ;;  %v697_v54 = vmul.f32 %v12213_v10, %v12006_v30  ;;  %v110_v18 = vld [vmem:[#allocation5 + $0x130] sm:$0xff]  ;;  %v99_v24 = vld [vmem:[#allocation5 + $0xd8] sm:$0xff]  ;;  %v120_v25 = vld [vmem:[#allocation5 + $0x180] sm:$0xff] }
 0x1df   :  { %v10785_v36 = vpop.permute.xlu1 %10784  ;;  %v10800_v42 = vpop.permute.xlu0 %10799  ;;  %1345 = vmatmul.mubr.f32.vlgmr.msra.gmra.mrb[0].mxu1 %v72_v20  ;;  %1500 = vmatmul.mubr.f32.gmra.mrb[20].mxu0 %v92_v21  ;;  %v10953_v15 = vpack.i.bf16 %v692_v34, %v691_v22  ;;  %v698_v55 = vmul.f32 %v12213_v10, %v12003_v29  ;;  %v695_v61 = vmul.f32 %v12213_v10, %v11980_v14  ;;  %v119_v34 = vld [vmem:[#allocation5 + $0x178] sm:$0xff] }
 0x1e0   :  { %v10787_v44 = vunpack.i.h.bf16 %v10785_v36  ;;  %v10786_v45 = vunpack.i.l.bf16 %v10785_v36  ;;  %v10802_v47 = vunpack.i.h.bf16 %v10800_v42  ;;  %v10801_v48 = vunpack.i.l.bf16 %v10800_v42  ;;  %10949 = vrot.lane.b32.xlu0 %v10948_v32, %s11683_s23  ;;  %10181 = vmatpush3.bf16.msra.mxu0 %v10180_v31  ;;  %v109_v32 = vld [vmem:[#allocation5 + $0x128] sm:$0xff] }
 0x1e1   :  { %10944 = vrot.lane.b32.xlu1 %v10943_v35, %s11683_s23  ;;  %1349 = vmatprep.mubr.f32.mxu1 %v82_v33  ;;  %v696_v62 = vmul.f32 %v12213_v10, %v11977_v13  ;;  %v10968_v58 = vpack.i.bf16 %v698_v55, %v697_v54 }
 0x1e2   :  { %v10182_v52 = vpack.c.bf16 %v10787_v44, %v10786_v45  ;;  %1504 = vmatprep.mubr.f32.mxu0 %v102_v43  ;;  %v10186_v57 = vpack.c.bf16 %v10802_v47, %v10801_v48  ;;  %v108_v44 = vld [vmem:[#allocation5 + $0x120] sm:$0xff]  ;;  %v129_v45 = vld [vmem:[#allocation5 + $0x1c8] sm:$0xff] }
 0x1e3   :  { %v10795_v40 = vpop.permute.xlu1 %10794  ;;  %v10810_v56 = vpop.permute.xlu0 %10809  ;;  %1350 = vmatmul.mubr.f32.gmra.mrb[2].mxu1 %v81_v50  ;;  %1505 = vmatmul.mubr.f32.gmra.mrb[22].mxu0 %v101_v51  ;;  %v10963_v16 = vpack.i.bf16 %v696_v62, %v695_v61  ;;  %v118_v50 = vld [vmem:[#allocation5 + $0x170] sm:$0xff]  ;;  %v127_v61 = vld [vmem:[#allocation5 + $0x1b8] sm:$0xff] }
 0x1e4   :  { %v10797_v63 = vunpack.i.h.bf16 %v10795_v40  ;;  %v10796_v0 = vunpack.i.l.bf16 %v10795_v40  ;;  %v10812_v2 = vunpack.i.h.bf16 %v10810_v56  ;;  %v10811_v3 = vunpack.i.l.bf16 %v10810_v56  ;;  %10959 = vrot.lane.b32.xlu0 %v10958_v53, %s11683_s23  ;;  %10183 = vmatprep.subr.bf16.mxu0 %v10182_v52  ;;  %v128_v53 = vld [vmem:[#allocation5 + $0x1c0] sm:$0xff]  ;;  %v117_v40 = vld [vmem:[#allocation5 + $0x168] sm:$0xff]  ;;  %v138_v56 = vld [vmem:[#allocation5 + $0x210] sm:$0xff] }
 0x1e5   :  { %10954 = vrot.lane.b32.xlu1 %v10953_v15, %s11683_s23  ;;  %10185 = vmatpush3.bf16.msra.mxu0 %v10184_v9 }
 0x1e6   :  { %v10188_v6 = vpack.c.bf16 %v10812_v2, %v10811_v3  ;;  %10187 = vmatprep.subr.bf16.mxu0 %v10186_v57  ;;  %1354 = vmatprep.mubr.f32.mxu1 %v91_v1  ;;  %v10146_v11 = vpack.c.bf16 %v10797_v63, %v10796_v0  ;;  %v137_v0 = vld [vmem:[#allocation5 + $0x208] sm:$0xff] }
 0x1e7   :  { %v10805_v12 = vpop.permute.xlu1 %10804  ;;  %v10820_v10 = vpop.permute.xlu0 %10819  ;;  %1355 = vmatmul.mubr.f32.gmra.mrb[4].mxu1 %v90_v4  ;;  %1509 = vmatprep.mubr.f32.mxu0 %v111_v5 }
 0x1e8   :  { %v10807_v19 = vunpack.i.h.bf16 %v10805_v12  ;;  %v10806_v20 = vunpack.i.l.bf16 %v10805_v12  ;;  %v10822_v21 = vunpack.i.h.bf16 %v10820_v10  ;;  %v10821_v23 = vunpack.i.l.bf16 %v10820_v10  ;;  %10969 = vrot.lane.b32.xlu0 %v10968_v58, %s11683_s23  ;;  %10147 = vmatprep.subr.bf16.mxu1 %v10146_v11  ;;  %v147_v58 = vld [vmem:[#allocation5 + $0x258] sm:$0xff]  ;;  %v136_v10 = vld [vmem:[#allocation5 + $0x200] sm:$0xff] }
 0x1e9   :  { %10964 = vrot.lane.b32.xlu1 %v10963_v16, %s11683_s23  ;;  %10189 = vmatpush3.bf16.msra.mxu0 %v10188_v6  ;;  %v126_v6 = vld [vmem:[#allocation5 + $0x1b0] sm:$0xff] }
 0x1ea   :  { %v10148_v28 = vpack.c.bf16 %v10807_v19, %v10806_v20  ;;  %1359 = vmatprep.mubr.f32.mxu1 %v100_v17  ;;  %v10190_v31 = vpack.c.bf16 %v10822_v21, %v10821_v23  ;;  %1510 = vmatmul.mubr.f32.gmra.mrb[24].mxu0 %v110_v18  ;;  %v146_v18 = vld [vmem:[#allocation5 + $0x250] sm:$0xff] }
 0x1eb   :  { %v10815_v33 = vpop.permute.xlu1 %10814  ;;  %v10830_v22 = vpop.permute.xlu0 %10829  ;;  %1360 = vmatmul.mubr.f32.gmra.mrb[6].mxu1 %v99_v24  ;;  %1514 = vmatprep.mubr.f32.mxu0 %v120_v25  ;;  %v135_v24 = vld [vmem:[#allocation5 + $0x1f8] sm:$0xff]  ;;  %v156_v25 = vld [vmem:[#allocation5 + $0x2a0] sm:$0xff] }
 0x1ec   :  { %v10817_v36 = vunpack.i.h.bf16 %v10815_v33  ;;  %v10816_v42 = vunpack.i.l.bf16 %v10815_v33  ;;  %v10832_v35 = vunpack.i.h.bf16 %v10830_v22  ;;  %v10831_v43 = vunpack.i.l.bf16 %v10830_v22  ;;  %10149 = vmatpush3.bf16.msra.mxu1 %v10148_v28  ;;  %10191 = vmatprep.subr.bf16.mxu0 %v10190_v31 }
 0x1ed   :  { %1364 = vmatprep.mubr.f32.mxu1 %v109_v32  ;;  %v145_v32 = vld [vmem:[#allocation5 + $0x248] sm:$0xff] }
 0x1ee   :  { %v10192_v47 = vpack.c.bf16 %v10832_v35, %v10831_v43  ;;  %v10150_v48 = vpack.c.bf16 %v10817_v36, %v10816_v42  ;;  %1515 = vmatmul.mubr.f32.gmra.mrb[26].mxu0 %v119_v34  ;;  %v155_v34 = vld [vmem:[#allocation5 + $0x298] sm:$0xff] }
 0x1ef   :  { %v10825_v51 = vpop.permute.xlu1 %10824  ;;  %v10840_v9 = vpop.permute.xlu0 %10839  ;;  %1365 = vmatmul.mubr.f32.gmra.mrb[8].mxu1 %v108_v44  ;;  %1519 = vmatprep.mubr.f32.mxu0 %v129_v45  ;;  %v144_v44 = vld [vmem:[#allocation5 + $0x240] sm:$0xff]  ;;  %v165_v45 = vld [vmem:[#allocation5 + $0x2e8] sm:$0xff] }
 0x1f0   :  { %v10827_v15 = vunpack.i.h.bf16 %v10825_v51  ;;  %v10826_v52 = vunpack.i.l.bf16 %v10825_v51  ;;  %v10842_v54 = vunpack.i.h.bf16 %v10840_v9  ;;  %v10841_v55 = vunpack.i.l.bf16 %v10840_v9  ;;  %10151 = vmatprep.subr.bf16.mxu1 %v10150_v48  ;;  %10193 = vmatpush3.bf16.msra.mxu0 %v10192_v47 }
 0x1f1   :  { %1369 = vmatprep.mubr.f32.mxu1 %v118_v50  ;;  %v154_v50 = vld [vmem:[#allocation5 + $0x290] sm:$0xff] }
 0x1f2   :  { %v10152_v57 = vpack.c.bf16 %v10827_v15, %v10826_v52  ;;  %v10194_v1 = vpack.c.bf16 %v10842_v54, %v10841_v55  ;;  %1520 = vmatmul.mubr.f32.gmra.mrb[28].mxu0 %v128_v53  ;;  %v164_v53 = vld [vmem:[#allocation5 + $0x2e0] sm:$0xff] }
 0x1f3   :  { %v10835_v62 = vpop.permute.xlu1 %10834  ;;  %v10850_v63 = vpop.permute.xlu0 %10849  ;;  %1370 = vmatmul.mubr.f32.gmra.mrb[10].mxu1 %v117_v40  ;;  %1524 = vmatprep.mubr.f32.mxu0 %v138_v56  ;;  %v153_v40 = vld [vmem:[#allocation5 + $0x288] sm:$0xff]  ;;  %v174_v56 = vld [vmem:[#allocation5 + $0x330] sm:$0xff] }
 0x1f4   :  { %v10837_v2 = vunpack.i.h.bf16 %v10835_v62  ;;  %v10836_v3 = vunpack.i.l.bf16 %v10835_v62  ;;  %v10852_v4 = vunpack.i.h.bf16 %v10850_v63  ;;  %v10851_v5 = vunpack.i.l.bf16 %v10850_v63  ;;  %10153 = vmatpush3.bf16.msra.mxu1 %v10152_v57  ;;  %10195 = vmatprep.subr.bf16.mxu0 %v10194_v1 }
 0x1f5   :  { %1374 = vmatprep.mubr.f32.mxu1 %v127_v61  ;;  %v163_v61 = vld [vmem:[#allocation5 + $0x2d8] sm:$0xff] }
 0x1f6   :  { %v10196_v11 = vpack.c.bf16 %v10852_v4, %v10851_v5  ;;  %v10154_v12 = vpack.c.bf16 %v10837_v2, %v10836_v3  ;;  %1525 = vmatmul.mubr.f32.gmra.mrb[30].mxu0 %v137_v0  ;;  %v173_v0 = vld [vmem:[#allocation5 + $0x328] sm:$0xff] }
 0x1f7   :  { %v10845_v16 = vpop.permute.xlu1 %10844  ;;  %v10860_v17 = vpop.permute.xlu0 %10859  ;;  %1375 = vmatmul.mubr.f32.gmra.mrb[12].mxu1 %v126_v6  ;;  %1529 = vmatprep.mubr.f32.mxu0 %v147_v58  ;;  %v162_v6 = vld [vmem:[#allocation5 + $0x2d0] sm:$0xff]  ;;  %v183_v58 = vld [vmem:[#allocation5 + $0x378] sm:$0xff] }
 0x1f8   :  { %v10847_v19 = vunpack.i.h.bf16 %v10845_v16  ;;  %v10846_v20 = vunpack.i.l.bf16 %v10845_v16  ;;  %v10862_v21 = vunpack.i.h.bf16 %v10860_v17  ;;  %v10861_v23 = vunpack.i.l.bf16 %v10860_v17  ;;  %10155 = vmatprep.subr.bf16.mxu1 %v10154_v12  ;;  %10197 = vmatpush3.bf16.msra.mxu0 %v10196_v11 }
 0x1f9   :  { %1379 = vmatprep.mubr.f32.mxu1 %v136_v10  ;;  %v172_v10 = vld [vmem:[#allocation5 + $0x320] sm:$0xff] }
 0x1fa   :  { %v10156_v28 = vpack.c.bf16 %v10847_v19, %v10846_v20  ;;  %v10198_v31 = vpack.c.bf16 %v10862_v21, %v10861_v23  ;;  %1530 = vmatmul.mubr.f32.gmra.mrb[32].mxu0 %v146_v18  ;;  %v182_v18 = vld [vmem:[#allocation5 + $0x370] sm:$0xff] }
 0x1fb   :  { %v10855_v33 = vpop.permute.xlu1 %10854  ;;  %v10870_v22 = vpop.permute.xlu0 %10869  ;;  %1380 = vmatmul.mubr.f32.gmra.mrb[14].mxu1 %v135_v24  ;;  %1534 = vmatprep.mubr.f32.mxu0 %v156_v25  ;;  %v171_v24 = vld [vmem:[#allocation5 + $0x318] sm:$0xff]  ;;  %v192_v25 = vld [vmem:[#allocation5 + $0x3c0] sm:$0xff] }
 0x1fc   :  { %v10857_v36 = vunpack.i.h.bf16 %v10855_v33  ;;  %v10856_v42 = vunpack.i.l.bf16 %v10855_v33  ;;  %v10872_v35 = vunpack.i.h.bf16 %v10870_v22  ;;  %v10871_v43 = vunpack.i.l.bf16 %v10870_v22  ;;  %10157 = vmatpush3.bf16.msra.mxu1 %v10156_v28  ;;  %10199 = vmatprep.subr.bf16.mxu0 %v10198_v31 }
 0x1fd   :  { %1384 = vmatprep.mubr.f32.mxu1 %v145_v32  ;;  %v181_v32 = vld [vmem:[#allocation5 + $0x368] sm:$0xff] }
 0x1fe   :  { %v10200_v47 = vpack.c.bf16 %v10872_v35, %v10871_v43  ;;  %v10158_v48 = vpack.c.bf16 %v10857_v36, %v10856_v42  ;;  %1535 = vmatmul.mubr.f32.gmra.mrb[34].mxu0 %v155_v34  ;;  %v191_v34 = vld [vmem:[#allocation5 + $0x3b8] sm:$0xff] }
 0x1ff   :  { %v10865_v51 = vpop.permute.xlu1 %10864  ;;  %v10880_v9 = vpop.permute.xlu0 %10879  ;;  %1385 = vmatmul.mubr.f32.gmra.mrb[16].mxu1 %v144_v44  ;;  %1539 = vmatprep.mubr.f32.mxu0 %v165_v45  ;;  %v180_v44 = vld [vmem:[#allocation5 + $0x360] sm:$0xff]  ;;  %v201_v45 = vld [vmem:[#allocation5 + $0x408] sm:$0xff] }
 0x200   :  { %v10867_v15 = vunpack.i.h.bf16 %v10865_v51  ;;  %v10866_v52 = vunpack.i.l.bf16 %v10865_v51  ;;  %v10882_v54 = vunpack.i.h.bf16 %v10880_v9  ;;  %v10881_v55 = vunpack.i.l.bf16 %v10880_v9  ;;  %10159 = vmatprep.subr.bf16.mxu1 %v10158_v48  ;;  %10201 = vmatpush3.bf16.msra.mxu0 %v10200_v47  ;;  %v200_v9 = vld [vmem:[#allocation5 + $0x400] sm:$0xff] }
 0x201   :  { %1389 = vmatprep.mubr.f32.mxu1 %v154_v50  ;;  %v190_v50 = vld [vmem:[#allocation5 + $0x3b0] sm:$0xff] }
 0x202   :  { %v10160_v57 = vpack.c.bf16 %v10867_v15, %v10866_v52  ;;  %v10202_v1 = vpack.c.bf16 %v10882_v54, %v10881_v55  ;;  %1540 = vmatmul.mubr.f32.gmra.mrb[36].mxu0 %v164_v53  ;;  %v189_v54 = vld [vmem:[#allocation5 + $0x3a8] sm:$0xff]  ;;  %v210_v55 = vld [vmem:[#allocation5 + $0x450] sm:$0xff] }
 0x203   :  { %v10875_v62 = vpop.permute.xlu1 %10874  ;;  %v10890_v63 = vpop.permute.xlu0 %10889  ;;  %1390 = vmatmul.mubr.f32.gmra.mrb[18].mxu1 %v153_v40  ;;  %1544 = vmatprep.mubr.f32.mxu0 %v174_v56  ;;  %v199_v40 = vld [vmem:[#allocation5 + $0x3f8] sm:$0xff] }
 0x204   :  { %v10877_v2 = vunpack.i.h.bf16 %v10875_v62  ;;  %v10876_v3 = vunpack.i.l.bf16 %v10875_v62  ;;  %v10892_v4 = vunpack.i.h.bf16 %v10890_v63  ;;  %v10891_v5 = vunpack.i.l.bf16 %v10890_v63  ;;  %10161 = vmatpush3.bf16.msra.mxu1 %v10160_v57  ;;  %10203 = vmatprep.subr.bf16.mxu0 %v10202_v1  ;;  %v209_v62 = vld [vmem:[#allocation5 + $0x448] sm:$0xff] }
 0x205   :  { %1394 = vmatprep.mubr.f32.mxu1 %v163_v61 }
 0x206   :  { %v10204_v11 = vpack.c.bf16 %v10892_v4, %v10891_v5  ;;  %v10162_v12 = vpack.c.bf16 %v10877_v2, %v10876_v3  ;;  %1545 = vmatmul.mubr.f32.gmra.mrb[38].mxu0 %v173_v0  ;;  %v198_v3 = vld [vmem:[#allocation5 + $0x3f0] sm:$0xff]  ;;  %v79_v4 = vld [vmem:[#allocation5 + $0x38] sm:$0xff]  ;;  %v208_v5 = vld [vmem:[#allocation5 + $0x440] sm:$0xff] }
 0x207   :  { %v10885_v16 = vpop.permute.xlu1 %10884  ;;  %v10910_v17 = vpop.permute.xlu0 %10909  ;;  %1395 = vmatmul.mubr.f32.gmra.mrb[20].mxu1 %v162_v6  ;;  %1549 = vmatprep.mubr.f32.mxu0 %v183_v58 }
 0x208   :  { %v10887_v19 = vunpack.i.h.bf16 %v10885_v16  ;;  %v10886_v20 = vunpack.i.l.bf16 %v10885_v16  ;;  %v10912_v21 = vunpack.i.h.bf16 %v10910_v17  ;;  %v10911_v23 = vunpack.i.l.bf16 %v10910_v17  ;;  %10163 = vmatprep.subr.bf16.mxu1 %v10162_v12  ;;  %10205 = vmatpush3.bf16.msra.mxu0 %v10204_v11  ;;  %v78_v16 = vld [vmem:[#allocation5 + $0x30] sm:$0xff] }
 0x209   :  { %1399 = vmatprep.mubr.f32.mxu1 %v172_v10 }
 0x20a   :  { %v10164_v28 = vpack.c.bf16 %v10887_v19, %v10886_v20  ;;  %v10206_v31 = vpack.c.bf16 %v10912_v21, %v10911_v23  ;;  %1550 = vmatmul.mubr.f32.gmra.mrb[40].mxu0 %v182_v18  ;;  %v207_v19 = vld [vmem:[#allocation5 + $0x438] sm:$0xff]  ;;  %v88_v20 = vld [vmem:[#allocation5 + $0x80] sm:$0xff]  ;;  %v77_v21 = vld [vmem:[#allocation5 + $0x28] sm:$0xff] }
 0x20b   :  { %v10895_v33 = vpop.permute.xlu1 %10894  ;;  %v10915_v22 = vpop.permute.xlu0 %10914  ;;  %1400 = vmatmul.mubr.f32.gmra.mrb[22].mxu1 %v171_v24  ;;  %1554 = vmatprep.mubr.f32.mxu0 %v192_v25  ;;  %v87_v25 = vld [vmem:[#allocation5 + $0x78] sm:$0xff] }
 0x20c   :  { %v10897_v36 = vunpack.i.h.bf16 %v10895_v33  ;;  %v10896_v42 = vunpack.i.l.bf16 %v10895_v33  ;;  %v10917_v35 = vunpack.i.h.bf16 %v10915_v22  ;;  %v10916_v43 = vunpack.i.l.bf16 %v10915_v22  ;;  %10165 = vmatpush3.bf16.msra.mxu1 %v10164_v28  ;;  %10207 = vmatprep.subr.bf16.mxu0 %v10206_v31  ;;  %v97_v28 = vld [vmem:[#allocation5 + $0xc8] sm:$0xff]  ;;  %v76_v31 = vld [vmem:[#allocation5 + $0x20] sm:$0xff]  ;;  %v106_v22 = vld [vmem:[#allocation5 + $0x110] sm:$0xff] }
 0x20d   :  { %1404 = vmatprep.mubr.f32.mxu1 %v181_v32  ;;  %v86_v32 = vld [vmem:[#allocation5 + $0x70] sm:$0xff]  ;;  %v96_v33 = vld [vmem:[#allocation5 + $0xc0] sm:$0xff] }
 0x20e   :  { %v10208_v47 = vpack.c.bf16 %v10917_v35, %v10916_v43  ;;  %v10166_v48 = vpack.c.bf16 %v10897_v36, %v10896_v42  ;;  %1555 = vmatmul.mubr.f32.gmra.mrb[42].mxu0 %v191_v34  ;;  %v85_v34 = vld [vmem:[#allocation5 + $0x68] sm:$0xff]  ;;  %v95_v36 = vld [vmem:[#allocation5 + $0xb8] sm:$0xff]  ;;  %v94_v43 = vld [vmem:[#allocation5 + $0xb0] sm:$0xff] }
 0x20f   :  { %v10900_v51 = vpop.permute.xlu1 %10899  ;;  %1405 = vmatmul.mubr.f32.gmra.mrb[24].mxu1 %v180_v44  ;;  %1559 = vmatprep.mubr.f32.mxu0 %v201_v45  ;;  %v105_v42 = vld [vmem:[#allocation5 + $0x108] sm:$0xff]  ;;  %v115_v35 = vld [vmem:[#allocation5 + $0x158] sm:$0xff]  ;;  %v104_v44 = vld [vmem:[#allocation5 + $0x100] sm:$0xff] }
 0x210   :  { %v10902_v53 = vunpack.i.h.bf16 %v10900_v51  ;;  %v10901_v15 = vunpack.i.l.bf16 %v10900_v51  ;;  %v10920_v52 = vpop.permute.xlu0 %10919  ;;  %10167 = vmatprep.subr.bf16.mxu1 %v10166_v48  ;;  %10209 = vmatpush3.bf16.msra.mxu0 %v10208_v47  ;;  %v114_v45 = vld [vmem:[#allocation5 + $0x150] sm:$0xff]  ;;  %v124_v47 = vld [vmem:[#allocation5 + $0x1a0] sm:$0xff]  ;;  %v103_v48 = vld [vmem:[#allocation5 + $0xf8] sm:$0xff] }
 0x211   :  { %1409 = vmatprep.mubr.f32.mxu1 %v190_v50  ;;  %v10922_v57 = vunpack.i.h.bf16 %v10920_v52  ;;  %v10921_v1 = vunpack.i.l.bf16 %v10920_v52  ;;  %v113_v50 = vld [vmem:[#allocation5 + $0x148] sm:$0xff]  ;;  %v123_v51 = vld [vmem:[#allocation5 + $0x198] sm:$0xff]  ;;  %v132_v52 = vld [vmem:[#allocation5 + $0x1e0] sm:$0xff] }
 0x212   :  { %v10168_v56 = vpack.c.bf16 %v10902_v53, %v10901_v15  ;;  %1560 = vmatmul.mubr.f32.gmra.mrb[44].mxu0 %v200_v9  ;;  %v133_v9 = vld [vmem:[#allocation5 + $0x1e8] sm:$0xff]  ;;  %v112_v53 = vld [vmem:[#allocation5 + $0x140] sm:$0xff]  ;;  %v122_v15 = vld [vmem:[#allocation5 + $0x190] sm:$0xff] }
 0x213   :  { %v10905_v61 = vpop.permute.xlu1 %10904  ;;  %1410 = vmatmul.mubr.f32.gmra.mrb[26].mxu1 %v189_v54  ;;  %1564 = vmatprep.mubr.f32.mxu0 %v210_v55  ;;  %v10172_v58 = vpack.c.bf16 %v10922_v57, %v10921_v1  ;;  %v142_v54 = vld [vmem:[#allocation5 + $0x230] sm:$0xff]  ;;  %v121_v55 = vld [vmem:[#allocation5 + $0x188] sm:$0xff]  ;;  %v151_v57 = vld [vmem:[#allocation5 + $0x278] sm:$0xff] }
 0x214   :  { %v10907_v63 = vunpack.i.h.bf16 %v10905_v61  ;;  %v10906_v0 = vunpack.i.l.bf16 %v10905_v61  ;;  %v10930_v2 = vpop.permute.xlu0 %10929  ;;  %10169 = vmatpush3.bf16.msra.mxu1 %v10168_v56  ;;  %1414 = vmatprep.mubr.f32.mxu1 %v199_v40  ;;  %v131_v40 = vld [vmem:[#allocation5 + $0x1d8] sm:$0xff]  ;;  %v141_v56 = vld [vmem:[#allocation5 + $0x228] sm:$0xff]  ;;  %v130_v1 = vld [vmem:[#allocation5 + $0x1d0] sm:$0xff] }
 0x215   :  { %v10932_v11 = vunpack.i.h.bf16 %v10930_v2  ;;  %v10931_v12 = vunpack.i.l.bf16 %v10930_v2  ;;  %v140_v61 = vld [vmem:[#allocation5 + $0x220] sm:$0xff]  ;;  %v149_v2 = vld [vmem:[#allocation5 + $0x268] sm:$0xff] }
 0x216   :  { %v10170_v6 = vpack.c.bf16 %v10907_v63, %v10906_v0  ;;  %1565 = vmatmul.mubr.f32.gmra.mrb[46].mxu0 %v209_v62  ;;  %v150_v62 = vld [vmem:[#allocation5 + $0x270] sm:$0xff]  ;;  %v160_v63 = vld [vmem:[#allocation5 + $0x2c0] sm:$0xff]  ;;  %v139_v0 = vld [vmem:[#allocation5 + $0x218] sm:$0xff] }
 0x217   :  { %v10925_v10 = vpop.permute.xlu1 %10924  ;;  %1415 = vmatmul.mubr.f32.gmra.mrb[28].mxu1 %v198_v3  ;;  %1779 = vmatprep.mubr.f32.mxu0 %v79_v4  ;;  %v10176_v24 = vpack.c.bf16 %v10932_v11, %v10931_v12  ;;  %v159_v3 = vld [vmem:[#allocation5 + $0x2b8] sm:$0xff]  ;;  %v169_v4 = vld [vmem:[#allocation5 + $0x308] sm:$0xff]  ;;  %v178_v11 = vld [vmem:[#allocation5 + $0x350] sm:$0xff] }
 0x218   :  { %v10927_v17 = vunpack.i.h.bf16 %v10925_v10  ;;  %v10926_v18 = vunpack.i.l.bf16 %v10925_v10  ;;  %10171 = vmatprep.subr.bf16.mxu1 %v10170_v6  ;;  %1419 = vmatprep.mubr.f32.mxu1 %v208_v5  ;;  %v148_v5 = vld [vmem:[#allocation5 + $0x260] sm:$0xff]  ;;  %v158_v6 = vld [vmem:[#allocation5 + $0x2b0] sm:$0xff]  ;;  %v157_v12 = vld [vmem:[#allocation5 + $0x2a8] sm:$0xff] }
 0x219   :  { %10173 = vmatpush3.bf16.msra.mxu1 %v10172_v58  ;;  %v168_v58 = vld [vmem:[#allocation5 + $0x300] sm:$0xff]  ;;  %v167_v10 = vld [vmem:[#allocation5 + $0x2f8] sm:$0xff] }
 0x21a   :  { %v10174_v23 = vpack.c.bf16 %v10927_v17, %v10926_v18  ;;  %1780 = vmatmul.mubr.f32.vlgmr.msra.gmra.mrb[48].mxu0 %v78_v16  ;;  %v177_v16 = vld [vmem:[#allocation5 + $0x348] sm:$0xff]  ;;  %v187_v17 = vld [vmem:[#allocation5 + $0x398] sm:$0xff]  ;;  %v166_v18 = vld [vmem:[#allocation5 + $0x2f0] sm:$0xff] }
 0x21b   :  { %1420 = vmatmul.mubr.f32.gmra.mrb[30].mxu1 %v207_v19  ;;  %1784 = vmatprep.mubr.f32.mxu0 %v88_v20  ;;  %v176_v19 = vld [vmem:[#allocation5 + $0x340] sm:$0xff]  ;;  %v186_v20 = vld [vmem:[#allocation5 + $0x390] sm:$0xff] }
 0x21c   :  { %10175 = vmatprep.subr.bf16.mxu1 %v10174_v23  ;;  %1634 = vmatprep.mubr.f32.mxu1 %v77_v21  ;;  %v196_v21 = vld [vmem:[#allocation5 + $0x3e0] sm:$0xff]  ;;  %v175_v23 = vld [vmem:[#allocation5 + $0x338] sm:$0xff] }
 0x21d   :  { %10177 = vmatpush3.bf16.msra.mxu1 %v10176_v24  ;;  %v185_v24 = vld [vmem:[#allocation5 + $0x388] sm:$0xff] }
 0x21e   :  { %1785 = vmatmul.mubr.f32.gmra.mrb[50].mxu0 %v87_v25  ;;  %v195_v25 = vld [vmem:[#allocation5 + $0x3d8] sm:$0xff] }
 0x21f   :  { %1789 = vmatprep.mubr.f32.mxu0 %v97_v28  ;;  %v205_v28 = vld [vmem:[#allocation5 + $0x428] sm:$0xff] }
 0x220   :  { %1635 = vmatmul.mubr.f32.vlgmr.msra.gmra.mrb[32].mxu1 %v76_v31  ;;  %v184_v31 = vld [vmem:[#allocation5 + $0x380] sm:$0xff] }
 0x221   :  { %1639 = vmatprep.mubr.f32.mxu1 %v86_v32 }
 0x222   :  { %1790 = vmatmul.mubr.f32.gmra.mrb[52].mxu0 %v96_v33  ;;  %v194_v33 = vld [vmem:[#allocation5 + $0x3d0] sm:$0xff] }
 0x223   :  { %1794 = vmatprep.mubr.f32.mxu0 %v106_v22 }
 0x224   :  { %1640 = vmatmul.mubr.f32.gmra.mrb[34].mxu1 %v85_v34  ;;  %v204_v34 = vld [vmem:[#allocation5 + $0x420] sm:$0xff] }
 0x225   :  { %1644 = vmatprep.mubr.f32.mxu1 %v95_v36 }
 0x226   :  { %1795 = vmatmul.mubr.f32.gmra.mrb[54].mxu0 %v105_v42 }
 0x227   :  { %1799 = vmatprep.mubr.f32.mxu0 %v115_v35 }
 0x228   :  { %1645 = vmatmul.mubr.f32.gmra.mrb[36].mxu1 %v94_v43 }
 0x229   :  { %1649 = vmatprep.mubr.f32.mxu1 %v104_v44  ;;  %v214_v44 = vld [vmem:[#allocation5 + $0x470] sm:$0xff] }
 0x22a   :  { %1800 = vmatmul.mubr.f32.gmra.mrb[56].mxu0 %v114_v45 }
 0x22b   :  { %1804 = vmatprep.mubr.f32.mxu0 %v124_v47  ;;  %v193_v47 = vld [vmem:[#allocation5 + $0x3c8] sm:$0xff] }
 0x22c   :  { %1650 = vmatmul.mubr.f32.gmra.mrb[38].mxu1 %v103_v48 }
 0x22d   :  { %1654 = vmatprep.mubr.f32.mxu1 %v113_v50 }
 0x22e   :  { %1805 = vmatmul.mubr.f32.gmra.mrb[58].mxu0 %v123_v51 }
 0x22f   :  { %1809 = vmatprep.mubr.f32.mxu0 %v133_v9 }
 0x230   :  { %1655 = vmatmul.mubr.f32.gmra.mrb[40].mxu1 %v112_v53  ;;  %v203_v53 = vld [vmem:[#allocation5 + $0x418] sm:$0xff] }
 0x231   :  { %1659 = vmatprep.mubr.f32.mxu1 %v122_v15 }
 0x232   :  { %1810 = vmatmul.mubr.f32.gmra.mrb[60].mxu0 %v132_v52  ;;  %v213_v52 = vld [vmem:[#allocation5 + $0x468] sm:$0xff] }
 0x233   :  { %1814 = vmatprep.mubr.f32.mxu0 %v142_v54  ;;  %v202_v54 = vld [vmem:[#allocation5 + $0x410] sm:$0xff] }
 0x234   :  { %1660 = vmatmul.mubr.f32.gmra.mrb[42].mxu1 %v121_v55 }
 0x235   :  { %1664 = vmatprep.mubr.f32.mxu1 %v131_v40 }
 0x236   :  { %1815 = vmatmul.mubr.f32.gmra.mrb[62].mxu0 %v141_v56 }
 0x237   :  { %1819 = vmatprep.mubr.f32.mxu0 %v151_v57  ;;  %v212_v57 = vld [vmem:[#allocation5 + $0x460] sm:$0xff] }
 0x238   :  { %1665 = vmatmul.mubr.f32.gmra.mrb[44].mxu1 %v130_v1 }
 0x239   :  { %1669 = vmatprep.mubr.f32.mxu1 %v140_v61  ;;  %v80_v61 = vld [vmem:[#allocation5 + $0x40] sm:$0xff] }
 0x23a   :  { %1820 = vmatmul.mubr.f32.gmra.mrb[64].mxu0 %v150_v62  ;;  %v211_v62 = vld [vmem:[#allocation5 + $0x458] sm:$0xff] }
 0x23b   :  { %1824 = vmatprep.mubr.f32.mxu0 %v160_v63 }
 0x23c   :  { %1670 = vmatmul.mubr.f32.gmra.mrb[46].mxu1 %v139_v0 }
 0x23d   :  { %1674 = vmatprep.mubr.f32.mxu1 %v149_v2 }
 0x23e   :  { %1825 = vmatmul.mubr.f32.gmra.mrb[66].mxu0 %v159_v3  ;;  %v116_v3 = vld [vmem:[#allocation5 + $0x160] sm:$0xff] }
 0x23f   :  { %1829 = vmatprep.mubr.f32.mxu0 %v169_v4 }
 0x240   :  { %1675 = vmatmul.mubr.f32.gmra.mrb[48].mxu1 %v148_v5 }
 0x241   :  { %1679 = vmatprep.mubr.f32.mxu1 %v158_v6 }
 0x242   :  { %1830 = vmatmul.mubr.f32.gmra.mrb[68].mxu0 %v168_v58 }
 0x243   :  { %1834 = vmatprep.mubr.f32.mxu0 %v178_v11 }
 0x244   :  { %1680 = vmatmul.mubr.f32.gmra.mrb[50].mxu1 %v157_v12 }
 0x245   :  { %1684 = vmatprep.mubr.f32.mxu1 %v167_v10 }
 0x246   :  { %1835 = vmatmul.mubr.f32.gmra.mrb[70].mxu0 %v177_v16 }
 0x247   :  { %1839 = vmatprep.mubr.f32.mxu0 %v187_v17 }
 0x248   :  { %1685 = vmatmul.mubr.f32.gmra.mrb[52].mxu1 %v166_v18 }
 0x249   :  { %1689 = vmatprep.mubr.f32.mxu1 %v176_v19 }
 0x24a   :  { %1840 = vmatmul.mubr.f32.gmra.mrb[72].mxu0 %v186_v20 }
 0x24b   :  { %1844 = vmatprep.mubr.f32.mxu0 %v196_v21 }
 0x24c   :  { %1690 = vmatmul.mubr.f32.gmra.mrb[54].mxu1 %v175_v23  ;;  %v89_v23 = vld [vmem:[#allocation5 + $0x88] sm:$0xff] }
 0x24d   :  { %1694 = vmatprep.mubr.f32.mxu1 %v185_v24  ;;  %v125_v24 = vld [vmem:[#allocation5 + $0x1a8] sm:$0xff] }
 0x24e   :  { %v10940_v32 = vpop.permute.xlu0 %10939  ;;  %1845 = vmatmul.mubr.f32.gmra.mrb[74].mxu0 %v195_v25  ;;  %v98_v25 = vld [vmem:[#allocation5 + $0xd0] sm:$0xff] }
 0x24f   :  { %v10935_v22 = vpop.permute.xlu1 %10934  ;;  %1849 = vmatprep.mubr.f32.mxu0 %v205_v28  ;;  %v10942_v35 = vunpack.i.h.bf16 %v10940_v32  ;;  %v10941_v43 = vunpack.i.l.bf16 %v10940_v32  ;;  %v134_v28 = vld [vmem:[#allocation5 + $0x1f0] sm:$0xff]  ;;  %v143_v32 = vld [vmem:[#allocation5 + $0x238] sm:$0xff] }
 0x250   :  { %v10937_v36 = vunpack.i.h.bf16 %v10935_v22  ;;  %v10936_v42 = vunpack.i.l.bf16 %v10935_v22  ;;  %1695 = vmatmul.mubr.f32.gmra.mrb[56].mxu1 %v184_v31  ;;  %v107_v31 = vld [vmem:[#allocation5 + $0x118] sm:$0xff]  ;;  %v161_v22 = vld [vmem:[#allocation5 + $0x2c8] sm:$0xff] }
 0x251   :  { %1699 = vmatprep.mubr.f32.mxu1 %v194_v33  ;;  %v10214_v50 = vpack.c.bf16 %v10942_v35, %v10941_v43  ;;  %v152_v33 = vld [vmem:[#allocation5 + $0x280] sm:$0xff]  ;;  %v197_v35 = vld [vmem:[#allocation5 + $0x3e8] sm:$0xff]  ;;  %v206_v43 = vld [vmem:[#allocation5 + $0x430] sm:$0xff] }
 0x252   :  { %v10210_v45 = vpack.c.bf16 %v10937_v36, %v10936_v42  ;;  %1850 = vmatmul.mubr.f32.gmra.mrb[76].mxu0 %v204_v34  ;;  %v10950_v15 = vpop.permute.xlu0 %10949  ;;  %v170_v34 = vld [vmem:[#allocation5 + $0x310] sm:$0xff]  ;;  %v179_v36 = vld [vmem:[#allocation5 + $0x358] sm:$0xff]  ;;  %v188_v42 = vld [vmem:[#allocation5 + $0x3a0] sm:$0xff] }
 0x253   :  { %v10945_v48 = vpop.permute.xlu1 %10944  ;;  %1854 = vmatprep.mubr.f32.mxu0 %v214_v44  ;;  %v10952_v40 = vunpack.i.h.bf16 %v10950_v15  ;;  %v10951_v56 = vunpack.i.l.bf16 %v10950_v15  ;;  %v215_v44 = vld [vmem:[#allocation5 + $0x478] sm:$0xff] }
 0x254   :  { %v10947_v51 = vunpack.i.h.bf16 %v10945_v48  ;;  %v10946_v9 = vunpack.i.l.bf16 %v10945_v48  ;;  %10211 = vmatprep.subr.bf16.mxu0 %v10210_v45  ;;  %10578 = vmatprep.subr.bf16.mxu1 %v10210_v45 }
 0x255   :  { %1700 = vmatmul.mubr.f32.gmra.mrb[58].mxu1 %v193_v47  ;;  %10213 = vmatpush3.bf16.msra.mxu0 %v10210_v45  ;;  %v10222_v63 = vpack.c.bf16 %v10952_v40, %v10951_v56 }
 0x256   :  { %10586 = vmatpush3.bf16.msra.mxu1 %v10210_v45  ;;  %10215 = vmatprep.subr.bf16.mxu0 %v10214_v50  ;;  %v10218_v55 = vpack.c.bf16 %v10947_v51, %v10946_v9  ;;  %v10960_v4 = vpop.permute.xlu0 %10959 }
 0x257   :  { %10579 = vmatprep.subr.bf16.mxu1 %v10214_v50  ;;  %1704 = vmatprep.mubr.f32.mxu1 %v203_v53  ;;  %v10955_v1 = vpop.permute.xlu1 %10954  ;;  %v10962_v6 = vunpack.i.h.bf16 %v10960_v4  ;;  %v10961_v58 = vunpack.i.l.bf16 %v10960_v4 }
 0x258   :  { %1855 = vmatmul.mubr.f32.gmra.mrb[78].mxu0 %v213_v52  ;;  %v10957_v0 = vunpack.i.h.bf16 %v10955_v1  ;;  %v10956_v2 = vunpack.i.l.bf16 %v10955_v1  ;;  %v12255_v52 = vld [vmem:[#allocation7 + $0x68] ss:$0 sm:$0xff] }
 0x259   :  { %1705 = vmatmul.mubr.f32.gmra.mrb[60].mxu1 %v202_v54  ;;  %10217 = vmatpush3.bf16.msra.mxu0 %v10214_v50  ;;  %v10230_v12 = vpack.c.bf16 %v10962_v6, %v10961_v58 }
 0x25a   :  { %10587 = vmatpush3.bf16.msra.mxu1 %v10214_v50  ;;  %10219 = vmatprep.subr.bf16.mxu0 %v10218_v55  ;;  %v10226_v5 = vpack.c.bf16 %v10957_v0, %v10956_v2  ;;  %v10970_v17 = vpop.permute.xlu0 %10969 }
 0x25b   :  { %10580 = vmatprep.subr.bf16.mxu1 %v10218_v55  ;;  %1709 = vmatprep.mubr.f32.mxu1 %v212_v57  ;;  %v10965_v11 = vpop.permute.xlu1 %10964  ;;  %v10972_v19 = vunpack.i.h.bf16 %v10970_v17  ;;  %v10971_v20 = vunpack.i.l.bf16 %v10970_v17 }
 0x25c   :  { %9386 = vmatprep.mubr.f32.mxu0 %v80_v61  ;;  %v10967_v10 = vunpack.i.h.bf16 %v10965_v11  ;;  %v10966_v16 = vunpack.i.l.bf16 %v10965_v11 }
 0x25d   :  { %1710 = vmatmul.mubr.f32.gmra.mrb[62].mxu1 %v211_v62  ;;  %10221 = vmatpush3.bf16.msra.mxu0 %v10218_v55  ;;  %v10238_v21 = vpack.c.bf16 %v10972_v19, %v10971_v20 }
 0x25e   :  { %10588 = vmatpush3.bf16.msra.mxu1 %v10218_v55  ;;  %10223 = vmatprep.subr.bf16.mxu0 %v10222_v63  ;;  %v10234_v18 = vpack.c.bf16 %v10967_v10, %v10966_v16 }
 0x25f   :  { %10581 = vmatprep.subr.bf16.mxu1 %v10222_v63  ;;  %9392 = vmatprep.mubr.f32.mxu1 %v116_v3 }
 0x261   :  { %10225 = vmatpush3.bf16.msra.mxu0 %v10222_v63 }
 0x262   :  { %10589 = vmatpush3.bf16.msra.mxu1 %v10222_v63  ;;  %10227 = vmatprep.subr.bf16.mxu0 %v10226_v5 }
 0x263   :  { %10582 = vmatprep.subr.bf16.mxu1 %v10226_v5 }
 0x265   :  { %10229 = vmatpush3.bf16.msra.mxu0 %v10226_v5 }
 0x266   :  { %10590 = vmatpush3.bf16.msra.mxu1 %v10226_v5  ;;  %10231 = vmatprep.subr.bf16.mxu0 %v10230_v12 }
 0x267   :  { %10583 = vmatprep.subr.bf16.mxu1 %v10230_v12 }
 0x269   :  { %10233 = vmatpush3.bf16.msra.mxu0 %v10230_v12 }
 0x26a   :  { %10591 = vmatpush3.bf16.msra.mxu1 %v10230_v12  ;;  %10235 = vmatprep.subr.bf16.mxu0 %v10234_v18 }
 0x26b   :  { %10584 = vmatprep.subr.bf16.mxu1 %v10234_v18 }
 0x26d   :  { %10237 = vmatpush3.bf16.msra.mxu0 %v10234_v18 }
 0x26e   :  { %10592 = vmatpush3.bf16.msra.mxu1 %v10234_v18  ;;  %10239 = vmatprep.subr.bf16.mxu0 %v10238_v21 }
 0x26f   :  { %10585 = vmatprep.subr.bf16.mxu1 %v10238_v21 }
 0x271   :  { %10241 = vmatpush3.bf16.msra.mxu0 %v10238_v21 }
 0x272   :  { %10593 = vmatpush3.bf16.msra.mxu1 %v10238_v21 }
 0x274   :  { %9387 = vmatmul.mubr.f32.vlgmr.msra.gmra.mrb[80].mxu0 %v89_v23 }
 0x275   :  { %9393 = vmatmul.mubr.f32.vlgmr.msra.gmra.mrb[64].mxu1 %v125_v24  ;;  %9389 = vmatprep.mubr.f32.mxu0 %v98_v25 }
 0x276   :  { %9395 = vmatprep.mubr.f32.mxu1 %v134_v28 }
 0x278   :  { %9390 = vmatmul.mubr.f32.gmra.mrb[82].mxu0 %v107_v31 }
 0x279   :  { %9396 = vmatmul.mubr.f32.gmra.mrb[66].mxu1 %v143_v32 }
 0x27a   :  { %9398 = vmatprep.mubr.f32.mxu1 %v152_v33 }
 0x27d   :  { %9399 = vmatmul.mubr.f32.gmra.mrb[68].mxu1 %v161_v22 }
 0x27e   :  { %9401 = vmatprep.mubr.f32.mxu1 %v170_v34 }
 0x281   :  { %9402 = vmatmul.mubr.f32.gmra.mrb[70].mxu1 %v179_v36 }
 0x282   :  { %9404 = vmatprep.mubr.f32.mxu1 %v188_v42 }
 0x285   :  { %9405 = vmatmul.mubr.f32.gmra.mrb[72].mxu1 %v197_v35 }
 0x286   :  { %9407 = vmatprep.mubr.f32.mxu1 %v206_v43 }
 0x289   :  { %9408 = vmatmul.mubr.f32.gmra.mrb[74].mxu1 %v215_v44 }
 0x2aa   :  { %v8350_v45 = vpop.f32.mrb[16].mxu0 }
 0x2ab   :  { %v8351_v47 = vpop.f32.mrb[17].mxu0 }
 0x2ac   :  { %v8352_v48 = vadd.f32 %v8351_v47, %v8350_v45 }
 0x2ae   :  { %v8353_v50 = vpop.f32.mrb[18].mxu0 }
 0x2af   :  { %v8354_v51 = vpop.f32.mrb[19].mxu0 }
 0x2b0   :  { %v8355_v9 = vadd.f32 %v8354_v51, %v8353_v50 }
 0x2b2   :  { %v8270_v53 = vpop.f32.mrb[0].mxu1  ;;  %v8356_v15 = vpop.f32.mrb[20].mxu0 }
 0x2b3   :  { %v8271_v54 = vpop.f32.mrb[1].mxu1  ;;  %v8357_v55 = vpop.f32.mrb[21].mxu0 }
 0x2b4   :  { %v8272_v40 = vadd.f32 %v8271_v54, %v8270_v53  ;;  %v8358_v56 = vadd.f32 %v8357_v55, %v8356_v15 }
 0x2b6   :  { %v1347_v57 = vadd.f32 %v8272_v40, %v12255_v52  ;;  %v8273_v1 = vpop.f32.mrb[2].mxu1  ;;  %v8359_v61 = vpop.f32.mrb[22].mxu0 }
 0x2b7   :  { %v8274_v62 = vpop.f32.mrb[3].mxu1  ;;  %v8360_v63 = vpop.f32.mrb[23].mxu0 }
 0x2b8   :  { %v12258_v0 = vadd.f32 %v8352_v48, %v1347_v57  ;;  %v8275_v2 = vadd.f32 %v8274_v62, %v8273_v1  ;;  %v8361_v3 = vadd.f32 %v8360_v63, %v8359_v61 }
 0x2ba   :  { %v1352_v4 = vadd.f32 %v8275_v2, %v12255_v52  ;;  %v8276_v5 = vpop.f32.mrb[4].mxu1 }
 0x2bb   :  { %v8277_v6 = vpop.f32.mrb[5].mxu1 }
 0x2bc   :  { %v12261_v58 = vadd.f32 %v8355_v9, %v1352_v4  ;;  %v8278_v11 = vadd.f32 %v8277_v6, %v8276_v5 }
 0x2bd   :  { %v8362_v12 = vpop.f32.mrb[24].mxu0 }
 0x2be   :  { %v1357_v10 = vadd.f32 %v8278_v11, %v12255_v52  ;;  %v8279_v16 = vpop.f32.mrb[6].mxu1  ;;  %v8363_v17 = vpop.f32.mrb[25].mxu0 }
 0x2bf   :  { %v8280_v18 = vpop.f32.mrb[7].mxu1  ;;  %v8364_v19 = vadd.f32 %v8363_v17, %v8362_v12 }
 0x2c0   :  { %v8281_v20 = vadd.f32 %v8280_v18, %v8279_v16  ;;  %v12264_v21 = vadd.f32 %v8358_v56, %v1357_v10 }
 0x2c1   :  { %v8365_v23 = vpop.f32.mrb[26].mxu0 }
 0x2c2   :  { %v1362_v24 = vadd.f32 %v8281_v20, %v12255_v52  ;;  %v8282_v25 = vpop.f32.mrb[8].mxu1  ;;  %v8366_v28 = vpop.f32.mrb[27].mxu0 }
 0x2c3   :  { %v8283_v31 = vpop.f32.mrb[9].mxu1  ;;  %v8367_v32 = vadd.f32 %v8366_v28, %v8365_v23 }
 0x2c4   :  { %v8284_v33 = vadd.f32 %v8283_v31, %v8282_v25  ;;  %v12267_v22 = vadd.f32 %v8361_v3, %v1362_v24 }
 0x2c5   :  { %v8368_v34 = vpop.f32.mrb[28].mxu0 }
 0x2c6   :  { %v1367_v36 = vadd.f32 %v8284_v33, %v12255_v52  ;;  %v8285_v42 = vpop.f32.mrb[10].mxu1  ;;  %v8369_v35 = vpop.f32.mrb[29].mxu0 }
 0x2c7   :  { %v8286_v43 = vpop.f32.mrb[11].mxu1  ;;  %v8370_v44 = vadd.f32 %v8369_v35, %v8368_v34 }
 0x2c8   :  { %v8287_v45 = vadd.f32 %v8286_v43, %v8285_v42  ;;  %v12270_v47 = vadd.f32 %v8364_v19, %v1367_v36 }
 0x2c9   :  { %v8371_v48 = vpop.f32.mrb[30].mxu0 }
 0x2ca   :  { %v1372_v50 = vadd.f32 %v8287_v45, %v12255_v52  ;;  %v8288_v51 = vpop.f32.mrb[12].mxu1  ;;  %v8372_v9 = vpop.f32.mrb[31].mxu0 }
 0x2cb   :  { %v8289_v53 = vpop.f32.mrb[13].mxu1  ;;  %v8373_v15 = vadd.f32 %v8372_v9, %v8371_v48 }
 0x2cc   :  { %v8290_v54 = vadd.f32 %v8289_v53, %v8288_v51  ;;  %v12273_v55 = vadd.f32 %v8367_v32, %v1372_v50 }
 0x2cd   :  { %v8374_v40 = vpop.f32.mrb[32].mxu0 }
 0x2ce   :  { %v1377_v56 = vadd.f32 %v8290_v54, %v12255_v52  ;;  %v8291_v57 = vpop.f32.mrb[14].mxu1  ;;  %v8375_v1 = vpop.f32.mrb[33].mxu0 }
 0x2cf   :  { %v8292_v61 = vpop.f32.mrb[15].mxu1  ;;  %v8376_v62 = vadd.f32 %v8375_v1, %v8374_v40 }
 0x2d0   :  { %v8293_v63 = vadd.f32 %v8292_v61, %v8291_v57  ;;  %v12276_v2 = vadd.f32 %v8370_v44, %v1377_v56 }
 0x2d1   :  { %v8377_v3 = vpop.f32.mrb[34].mxu0 }
 0x2d2   :  { %v1382_v4 = vadd.f32 %v8293_v63, %v12255_v52  ;;  %v8294_v5 = vpop.f32.mrb[16].mxu1  ;;  %v8378_v6 = vpop.f32.mrb[35].mxu0 }
 0x2d3   :  { %v8295_v11 = vpop.f32.mrb[17].mxu1  ;;  %v8379_v12 = vadd.f32 %v8378_v6, %v8377_v3 }
 0x2d4   :  { %v8296_v10 = vadd.f32 %v8295_v11, %v8294_v5  ;;  %v12279_v16 = vadd.f32 %v8373_v15, %v1382_v4 }
 0x2d5   :  { %v8380_v17 = vpop.f32.mrb[36].mxu0 }
 0x2d6   :  { %v1387_v18 = vadd.f32 %v8296_v10, %v12255_v52  ;;  %v8297_v19 = vpop.f32.mrb[18].mxu1  ;;  %v8381_v20 = vpop.f32.mrb[37].mxu0 }
 0x2d7   :  { %v8298_v23 = vpop.f32.mrb[19].mxu1  ;;  %v8382_v24 = vadd.f32 %v8381_v20, %v8380_v17 }
 0x2d8   :  { %v8299_v25 = vadd.f32 %v8298_v23, %v8297_v19  ;;  %v12282_v28 = vadd.f32 %v8376_v62, %v1387_v18 }
 0x2d9   :  { %v8383_v31 = vpop.f32.mrb[38].mxu0 }
 0x2da   :  { %v1392_v32 = vadd.f32 %v8299_v25, %v12255_v52  ;;  %v8300_v33 = vpop.f32.mrb[20].mxu1  ;;  %v8384_v34 = vpop.f32.mrb[39].mxu0 }
 0x2db   :  { %v8301_v36 = vpop.f32.mrb[21].mxu1  ;;  %v8385_v42 = vadd.f32 %v8384_v34, %v8383_v31 }
 0x2dc   :  { %v8302_v35 = vadd.f32 %v8301_v36, %v8300_v33  ;;  %v12285_v43 = vadd.f32 %v8379_v12, %v1392_v32 }
 0x2dd   :  { %v8386_v44 = vpop.f32.mrb[40].mxu0 }
 0x2de   :  { %v1397_v45 = vadd.f32 %v8302_v35, %v12255_v52  ;;  %v8303_v48 = vpop.f32.mrb[22].mxu1  ;;  %v8387_v50 = vpop.f32.mrb[41].mxu0 }
 0x2df   :  { %v8304_v51 = vpop.f32.mrb[23].mxu1  ;;  %v8388_v9 = vadd.f32 %v8387_v50, %v8386_v44 }
 0x2e0   :  { %v8305_v53 = vadd.f32 %v8304_v51, %v8303_v48  ;;  %v12288_v15 = vadd.f32 %v8382_v24, %v1397_v45 }
 0x2e1   :  { %v8389_v54 = vpop.f32.mrb[42].mxu0 }
 0x2e2   :  { %v1402_v40 = vadd.f32 %v8305_v53, %v12255_v52  ;;  %v8306_v56 = vpop.f32.mrb[24].mxu1  ;;  %v8390_v57 = vpop.f32.mrb[43].mxu0 }
 0x2e3   :  { %v8307_v1 = vpop.f32.mrb[25].mxu1  ;;  %v8391_v61 = vadd.f32 %v8390_v57, %v8389_v54 }
 0x2e4   :  { %v8308_v62 = vadd.f32 %v8307_v1, %v8306_v56  ;;  %v12291_v63 = vadd.f32 %v8385_v42, %v1402_v40 }
 0x2e5   :  { %v8392_v3 = vpop.f32.mrb[44].mxu0 }
 0x2e6   :  { %v1407_v4 = vadd.f32 %v8308_v62, %v12255_v52  ;;  %v8309_v5 = vpop.f32.mrb[26].mxu1  ;;  %v8393_v6 = vpop.f32.mrb[45].mxu0 }
 0x2e7   :  { %v8310_v11 = vpop.f32.mrb[27].mxu1  ;;  %v8394_v12 = vadd.f32 %v8393_v6, %v8392_v3 }
 0x2e8   :  { %v8311_v10 = vadd.f32 %v8310_v11, %v8309_v5  ;;  %v12294_v17 = vadd.f32 %v8388_v9, %v1407_v4 }
 0x2e9   :  { %v8395_v18 = vpop.f32.mrb[46].mxu0 }
 0x2ea   :  { %v1412_v19 = vadd.f32 %v8311_v10, %v12255_v52  ;;  %v8312_v20 = vpop.f32.mrb[28].mxu1  ;;  %v8396_v23 = vpop.f32.mrb[47].mxu0 }
 0x2eb   :  { %v8313_v24 = vpop.f32.mrb[29].mxu1  ;;  %v8397_v25 = vadd.f32 %v8396_v23, %v8395_v18 }
 0x2ec   :  { %v8314_v31 = vadd.f32 %v8313_v24, %v8312_v20  ;;  %v12297_v32 = vadd.f32 %v8391_v61, %v1412_v19 }
 0x2ed   :  { %v8510_v33 = vpop.f32.mrb[48].mxu0 }
 0x2ee   :  { %v8315_v34 = vpop.f32.mrb[30].mxu1  ;;  %v1417_v36 = vadd.f32 %v8314_v31, %v12255_v52  ;;  %v8511_v42 = vpop.f32.mrb[49].mxu0 }
 0x2ef   :  { %v8316_v35 = vpop.f32.mrb[31].mxu1  ;;  %v8512_v44 = vadd.f32 %v8511_v42, %v8510_v33 }
 0x2f0   :  { %v8317_v45 = vadd.f32 %v8316_v35, %v8315_v34  ;;  %v12300_v48 = vadd.f32 %v8394_v12, %v1417_v36 }
 0x2f1   :  { %v8513_v50 = vpop.f32.mrb[50].mxu0 }
 0x2f2   :  { %v1422_v51 = vadd.f32 %v8317_v45, %v12255_v52  ;;  %v8514_v9 = vpop.f32.mrb[51].mxu0 }
 0x2f3   :  { %v8430_v53 = vpop.f32.mrb[32].mxu1  ;;  %v8515_v54 = vadd.f32 %v8514_v9, %v8513_v50 }
 0x2f4   :  { %v12303_v40 = vadd.f32 %v8397_v25, %v1422_v51  ;;  %v8431_v56 = vpop.f32.mrb[33].mxu1 }
 0x2f5   :  { %v8432_v57 = vadd.f32 %v8431_v56, %v8430_v53  ;;  %v8516_v1 = vpop.f32.mrb[52].mxu0 }
 0x2f6   :  { %v8517_v61 = vpop.f32.mrb[53].mxu0 }
 0x2f7   :  { %v8433_v62 = vpop.f32.mrb[34].mxu1  ;;  %v8518_v3 = vadd.f32 %v8517_v61, %v8516_v1  ;;  %v1637_v4 = vadd.f32 %v8432_v57, %v12258_v0 }
 0x2f8   :  { %v8434_v5 = vpop.f32.mrb[35].mxu1 }
 0x2f9   :  { %v8435_v6 = vadd.f32 %v8434_v5, %v8433_v62  ;;  %v8519_v11 = vpop.f32.mrb[54].mxu0  ;;  %v12306_v12 = vadd.f32 %v8512_v44, %v1637_v4 }
 0x2fa   :  { %v8520_v10 = vpop.f32.mrb[55].mxu0 }
 0x2fb   :  { %v8436_v52 = vpop.f32.mrb[36].mxu1  ;;  %v8521_v18 = vadd.f32 %v8520_v10, %v8519_v11  ;;  %v1642_v19 = vadd.f32 %v8435_v6, %v12261_v58 }
 0x2fc   :  { %v8437_v20 = vpop.f32.mrb[37].mxu1 }
 0x2fd   :  { %v8438_v23 = vadd.f32 %v8437_v20, %v8436_v52  ;;  %v8522_v24 = vpop.f32.mrb[56].mxu0  ;;  %v12309_v25 = vadd.f32 %v8515_v54, %v1642_v19 }
 0x2fe   :  { %v8523_v31 = vpop.f32.mrb[57].mxu0 }
 0x2ff   :  { %v1647_v33 = vadd.f32 %v8438_v23, %v12264_v21  ;;  %v8439_v34 = vpop.f32.mrb[38].mxu1  ;;  %v8524_v0 = vadd.f32 %v8523_v31, %v8522_v24 }
 0x300   :  { %v8440_v36 = vpop.f32.mrb[39].mxu1 }
 0x301   :  { %v8441_v42 = vadd.f32 %v8440_v36, %v8439_v34  ;;  %v8525_v35 = vpop.f32.mrb[58].mxu0  ;;  %v12312_v44 = vadd.f32 %v8518_v3, %v1647_v33 }
 0x302   :  { %v8526_v45 = vpop.f32.mrb[59].mxu0 }
 0x303   :  { %v1652_v50 = vadd.f32 %v8441_v42, %v12267_v22  ;;  %v8442_v51 = vpop.f32.mrb[40].mxu1  ;;  %v8527_v58 = vadd.f32 %v8526_v45, %v8525_v35 }
 0x304   :  { %v8443_v9 = vpop.f32.mrb[41].mxu1 }
 0x305   :  { %v8444_v53 = vadd.f32 %v8443_v9, %v8442_v51  ;;  %v8528_v56 = vpop.f32.mrb[60].mxu0  ;;  %v12315_v54 = vadd.f32 %v8521_v18, %v1652_v50 }
 0x306   :  { %v8529_v57 = vpop.f32.mrb[61].mxu0 }
 0x307   :  { %v1657_v21 = vadd.f32 %v8444_v53, %v12270_v47  ;;  %v8445_v1 = vpop.f32.mrb[42].mxu1  ;;  %v8530_v61 = vadd.f32 %v8529_v57, %v8528_v56 }
 0x308   :  { %v8446_v62 = vpop.f32.mrb[43].mxu1 }
 0x309   :  { %v8447_v4 = vadd.f32 %v8446_v62, %v8445_v1  ;;  %v8531_v5 = vpop.f32.mrb[62].mxu0  ;;  %v12318_v3 = vadd.f32 %v8524_v0, %v1657_v21 }
 0x30a   :  { %v8532_v6 = vpop.f32.mrb[63].mxu0 }
 0x30b   :  { %v1662_v22 = vadd.f32 %v8447_v4, %v12273_v55  ;;  %v8448_v11 = vpop.f32.mrb[44].mxu1  ;;  %v8533_v10 = vadd.f32 %v8532_v6, %v8531_v5 }
 0x30c   :  { %v8449_v52 = vpop.f32.mrb[45].mxu1 }
 0x30d   :  { %v8450_v19 = vadd.f32 %v8449_v52, %v8448_v11  ;;  %v8534_v20 = vpop.f32.mrb[64].mxu0  ;;  %v12321_v18 = vadd.f32 %v8527_v58, %v1662_v22 }
 0x30e   :  { %v8535_v23 = vpop.f32.mrb[65].mxu0 }
 0x30f   :  { %v1667_v47 = vadd.f32 %v8450_v19, %v12276_v2  ;;  %v8451_v24 = vpop.f32.mrb[46].mxu1  ;;  %v8536_v31 = vadd.f32 %v8535_v23, %v8534_v20 }
 0x310   :  { %v8452_v33 = vpop.f32.mrb[47].mxu1 }
 0x311   :  { %v8453_v34 = vadd.f32 %v8452_v33, %v8451_v24  ;;  %v8537_v36 = vpop.f32.mrb[66].mxu0  ;;  %v12324_v0 = vadd.f32 %v8530_v61, %v1667_v47 }
 0x312   :  { %v8538_v42 = vpop.f32.mrb[67].mxu0 }
 0x313   :  { %v1672_v55 = vadd.f32 %v8453_v34, %v12279_v16  ;;  %v8454_v35 = vpop.f32.mrb[48].mxu1  ;;  %v8539_v45 = vadd.f32 %v8538_v42, %v8537_v36 }
 0x314   :  { %v8455_v50 = vpop.f32.mrb[49].mxu1 }
 0x315   :  { %v8456_v51 = vadd.f32 %v8455_v50, %v8454_v35  ;;  %v8540_v9 = vpop.f32.mrb[68].mxu0  ;;  %v12327_v58 = vadd.f32 %v8533_v10, %v1672_v55 }
 0x316   :  { %v8541_v53 = vpop.f32.mrb[69].mxu0 }
 0x317   :  { %v1677_v2 = vadd.f32 %v8456_v51, %v12282_v28  ;;  %v8457_v56 = vpop.f32.mrb[50].mxu1  ;;  %v8542_v57 = vadd.f32 %v8541_v53, %v8540_v9 }
 0x318   :  { %v8458_v21 = vpop.f32.mrb[51].mxu1 }
 0x319   :  { %v8459_v1 = vadd.f32 %v8458_v21, %v8457_v56  ;;  %v8543_v62 = vpop.f32.mrb[70].mxu0  ;;  %v12330_v61 = vadd.f32 %v8536_v31, %v1677_v2 }
 0x31a   :  { %v8544_v4 = vpop.f32.mrb[71].mxu0 }
 0x31b   :  { %v1682_v16 = vadd.f32 %v8459_v1, %v12285_v43  ;;  %v8460_v5 = vpop.f32.mrb[52].mxu1  ;;  %v8545_v6 = vadd.f32 %v8544_v4, %v8543_v62 }
 0x31c   :  { %v8461_v22 = vpop.f32.mrb[53].mxu1 }
 0x31d   :  { %v8462_v11 = vadd.f32 %v8461_v22, %v8460_v5  ;;  %v8546_v52 = vpop.f32.mrb[72].mxu0  ;;  %v1827_v10 = vadd.f32 %v8539_v45, %v1682_v16 }
 0x31e   :  { %v8547_v19 = vpop.f32.mrb[73].mxu0 }
 0x31f   :  { %v1687_v20 = vadd.f32 %v8462_v11, %v12288_v15  ;;  %v8463_v28 = vpop.f32.mrb[54].mxu1  ;;  %v8548_v23 = vadd.f32 %v8547_v19, %v8546_v52 }
 0x320   :  { %v8464_v47 = vpop.f32.mrb[55].mxu1 }
 0x321   :  { %v8465_v24 = vadd.f32 %v8464_v47, %v8463_v28  ;;  %v8549_v33 = vpop.f32.mrb[74].mxu0  ;;  %v1832_v34 = vadd.f32 %v8542_v57, %v1687_v20 }
 0x322   :  { %v8550_v31 = vpop.f32.mrb[75].mxu0 }
 0x323   :  { %v1692_v36 = vadd.f32 %v8465_v24, %v12291_v63  ;;  %v8466_v42 = vpop.f32.mrb[56].mxu1  ;;  %v8551_v43 = vadd.f32 %v8550_v31, %v8549_v33 }
 0x324   :  { %v8467_v55 = vpop.f32.mrb[57].mxu1 }
 0x325   :  { %v8468_v35 = vadd.f32 %v8467_v55, %v8466_v42  ;;  %v8552_v50 = vpop.f32.mrb[76].mxu0  ;;  %v1837_v51 = vadd.f32 %v8545_v6, %v1692_v36 }
 0x326   :  { %v8553_v9 = vpop.f32.mrb[77].mxu0 }
 0x327   :  { %v1697_v45 = vadd.f32 %v8468_v35, %v12294_v17  ;;  %v8554_v53 = vadd.f32 %v8553_v9, %v8552_v50 }
 0x328   :  { %v8469_v15 = vpop.f32.mrb[58].mxu1 }
 0x329   :  { %v8470_v2 = vpop.f32.mrb[59].mxu1  ;;  %v1842_v56 = vadd.f32 %v8548_v23, %v1697_v45 }
 0x32a   :  { %v8471_v21 = vadd.f32 %v8470_v2, %v8469_v15 }
 0x32b   :  { %v8555_v1 = vpop.f32.mrb[78].mxu0 }
 0x32c   :  { %v1702_v57 = vadd.f32 %v8471_v21, %v12297_v32  ;;  %v8472_v62 = vpop.f32.mrb[60].mxu1  ;;  %v8556_v4 = vpop.f32.mrb[79].mxu0 }
 0x32d   :  { %v8473_v63 = vpop.f32.mrb[61].mxu1  ;;  %v8557_v16 = vadd.f32 %v8556_v4, %v8555_v1 }
 0x32e   :  { %v8474_v5 = vadd.f32 %v8473_v63, %v8472_v62  ;;  %v1847_v22 = vadd.f32 %v8551_v43, %v1702_v57 }
 0x330   :  { %v1707_v11 = vadd.f32 %v8474_v5, %v12300_v48  ;;  %v8475_v6 = vpop.f32.mrb[62].mxu1 }
 0x331   :  { %v8476_v52 = vpop.f32.mrb[63].mxu1 }
 0x332   :  { %v8477_v19 = vadd.f32 %v8476_v52, %v8475_v6  ;;  %v1852_v17 = vadd.f32 %v8554_v53, %v1707_v11 }
 0x334   :  { %v1712_v20 = vadd.f32 %v8477_v19, %v12303_v40 }
 0x336   :  { %v1857_v28 = vadd.f32 %v8557_v16, %v1712_v20 }
 0x347   :  { %v9388_v23 = vpop.f32.mrb[80].mxu0 }
 0x348   :  { %v12340_v47 = vadd.f32 %v9388_v23, %v12309_v25  ;;  %v9394_v32 = vpop.f32.mrb[64].mxu1  ;;  %v1926_v24 = vpop.f32.mrb[81].mxu0 }
 0x349   :  { %v12343_v33 = vadd.f32 %v9394_v32, %v12321_v18  ;;  %v12346_v31 = vadd.f32 %v1926_v24, %v12306_v12  ;;  %v1946_v48 = vpop.f32.mrb[65].mxu1 }
 0x34a   :  { %v12349_v36 = vadd.f32 %v1946_v48, %v12318_v3  ;;  %2023 = vrot.lane.b32.xlu0 %v12340_v47, %s11680_s9 }
 0x34b   :  { %v9391_v40 = vpop.f32.mrb[82].mxu0  ;;  %2021 = vrot.lane.b32.xlu1 %v12346_v31, %s11680_s9  ;;  %v2671_v1 = vsel %vm2670_vm1, %v12346_v31, 0.0  ;;  %v2680_v24 = vsel %vm2670_vm1, %v12343_v33, 0.0 }
 0x34c   :  { %v12356_v25 = vadd.f32 %v9391_v40, %v12315_v54  ;;  %v9397_v42 = vpop.f32.mrb[66].mxu1  ;;  %v1936_v18 = vpop.f32.mrb[83].mxu0  ;;  %v2678_v20 = vsel %vm2670_vm1, %v12349_v36, 0.0 }
 0x34d   :  { %v12359_v43 = vadd.f32 %v9397_v42, %v12327_v58  ;;  %v12362_v12 = vadd.f32 %v1936_v18, %v12312_v44  ;;  %v1956_v3 = vpop.f32.mrb[67].mxu1 }
 0x34e   :  { %v12365_v55 = vadd.f32 %v1956_v3, %v12324_v0  ;;  %2027 = vrot.lane.b32.xlu0 %v12356_v25, %s11680_s9  ;;  %v2676_v6 = vsel %vm2670_vm1, %v12356_v25, 0.0 }
 0x34f   :  { %2025 = vrot.lane.b32.xlu1 %v12362_v12, %s11680_s9  ;;  %v2674_v57 = vsel %vm2670_vm1, %v12362_v12, 0.0 }
 0x350   :  { %v9400_v54 = vpop.f32.mrb[68].mxu1  ;;  %v2682_v18 = vsel %vm2670_vm1, %v12365_v55, 0.0 }
 0x351   :  { %v12371_v35 = vadd.f32 %v9400_v54, %v1827_v10  ;;  %v1966_v50 = vpop.f32.mrb[69].mxu1 }
 0x352   :  { %v12374_v58 = vadd.f32 %v1966_v50, %v12330_v61  ;;  %2031 = vrot.lane.b32.xlu0 %v12343_v33, %s11680_s9  ;;  %v2085_v50 = vld [vmem:[#allocation7 + $0x70] sm:$0x3] }
 0x353   :  { %2029 = vrot.lane.b32.xlu1 %v12349_v36, %s11680_s9  ;;  %v2718_v62 = vsel %vm2670_vm1, %v12371_v35, 0.0  ;;  %9410 = vmatprep.subr.msk.mxu0 %vm2172_vm2, %v2085_v50 }
 0x354   :  { %v9403_v44 = vpop.f32.mrb[70].mxu1  ;;  %v2717_v4 = vsel %vm2670_vm1, %v12374_v58, 0.0  ;;  %9411 = vmatpush3.msk.msra.mxu0 %vm2172_vm2, %v2085_v50 }
 0x355   :  { %v12380_v0 = vadd.f32 %v9403_v44, %v1837_v51  ;;  %v1976_v9 = vpop.f32.mrb[71].mxu1 }
 0x356   :  { %v12382_v45 = vadd.f32 %v1976_v9, %v1832_v34  ;;  %2035 = vrot.lane.b32.xlu0 %v12359_v43, %s11680_s9  ;;  %v2684_v9 = vsel %vm2670_vm1, %v12359_v43, 0.0 }
 0x357   :  { %2033 = vrot.lane.b32.xlu1 %v12365_v55, %s11680_s9  ;;  %v2722_v19 = vsel %vm2670_vm1, %v12380_v0, 0.0 }
 0x358   :  { %v9406_v61 = vpop.f32.mrb[72].mxu1  ;;  %v2720_v16 = vsel %vm2670_vm1, %v12382_v45, 0.0 }
 0x359   :  { %v12388_v10 = vadd.f32 %v9406_v61, %v1847_v22  ;;  %v1986_v53 = vpop.f32.mrb[73].mxu1  ;;  %v2719_v22 = vadd.f32 %v2718_v62, %v2717_v4 }
 0x35a   :  { %v12390_v15 = vadd.f32 %v1986_v53, %v1842_v56  ;;  %2039 = vrot.lane.b32.xlu0 %v12371_v35, %s11680_s9  ;;  %v2672_v56 = vsel %vm2670_vm1, %v12340_v47, 0.0 }
 0x35b   :  { %2037 = vrot.lane.b32.xlu1 %v12374_v58, %s11680_s9  ;;  %v2673_v63 = vadd.f32 %v2672_v56, %v2671_v1  ;;  %v2721_v11 = vadd.f32 %v2720_v16, %v2719_v22  ;;  %v2726_v40 = vsel %vm2670_vm1, %v12388_v10, 0.0 }
 0x35c   :  { %v9409_v34 = vpop.f32.mrb[74].mxu1 }
 0x35d   :  { %v12396_v51 = vadd.f32 %v9409_v34, %v1857_v28  ;;  %v1996_v2 = vpop.f32.mrb[75].mxu1  ;;  %v2675_v5 = vadd.f32 %v2674_v57, %v2673_v63  ;;  %v2724_v28 = vsel %vm2670_vm1, %v12390_v15, 0.0 }
 0x35e   :  { %v12398_v21 = vadd.f32 %v1996_v2, %v1852_v17  ;;  %2043 = vrot.lane.b32.xlu0 %v12380_v0, %s11680_s9  ;;  %v2723_v17 = vadd.f32 %v2722_v19, %v2721_v11 }
 0x35f   :  { %2041 = vrot.lane.b32.xlu1 %v12382_v45, %s11680_s9  ;;  %v2677_v52 = vadd.f32 %v2676_v6, %v2675_v5  ;;  %v2730_v53 = vsel %vm2670_vm1, %v12396_v51, 0.0 }
 0x360   :  { %v2725_v32 = vadd.f32 %v2724_v28, %v2723_v17  ;;  %v2728_v3 = vsel %vm2670_vm1, %v12398_v21, 0.0 }
 0x361   :  { %v2679_v23 = vadd.f32 %v2678_v20, %v2677_v52 }
 0x362   :  { %2047 = vrot.lane.b32.xlu0 %v12388_v10, %s11680_s9  ;;  %v2727_v42 = vadd.f32 %v2726_v40, %v2725_v32 }
 0x363   :  { %2045 = vrot.lane.b32.xlu1 %v12390_v15, %s11680_s9  ;;  %v2681_v48 = vadd.f32 %v2680_v24, %v2679_v23 }
 0x364   :  { %v2729_v44 = vadd.f32 %v2728_v3, %v2727_v42 }
 0x365   :  { %v2683_v54 = vadd.f32 %v2682_v18, %v2681_v48 }
 0x366   :  { %2051 = vrot.lane.b32.xlu0 %v12396_v51, %s11680_s9  ;;  %v2731_v34 = vadd.f32 %v2730_v53, %v2729_v44 }
 0x367   :  { %2049 = vrot.lane.b32.xlu1 %v12398_v21, %s11680_s9  ;;  %v2685_v61 = vadd.f32 %v2684_v9, %v2683_v54 }
 0x368   :  { %v2732_v56 = vrot.slane %v2731_v34, 4 }
 0x369   :  { %v2686_v2 = vrot.slane %v2685_v61, 4 }
 0x36a   :  { %v2733_v16 = vadd.f32 %v2732_v56, %v2731_v34 }
 0x36b   :  { %v2687_v4 = vadd.f32 %v2686_v2, %v2685_v61 }
 0x36c   :  { %v2734_v19 = vrot.slane %v2733_v16, 2 }
 0x36d   :  { %v2688_v6 = vrot.slane %v2687_v4, 2 }
 0x36e   :  { %v2735_v24 = vadd.f32 %v2734_v19, %v2733_v16 }
 0x36f   :  { %v2689_v23 = vadd.f32 %v2688_v6, %v2687_v4 }
 0x370   :  { %v2736_v54 = vrot.slane %v2735_v24, 1 }
 0x371   :  { %v2690_v18 = vrot.slane %v2689_v23, 1 }
 0x372   :  { %v2737_v34 = vadd.f32 %v2736_v54, %v2735_v24 }
 0x373   :  { %v2691_v61 = vadd.f32 %v2690_v18, %v2689_v23 }
 0x374   :  { %v2738_v4 = vmul.f32 0.015625, %v2737_v34 }
 0x376   :  { %v2739_v6 = vsub.f32 0.0, %v2738_v4 }
 0x378   :  { %v2740_v23 = vmul.f32 1.442695, %v2739_v6 }
 0x3bc   :  { %v2024_v1 = vpop.permute.xlu0 %2023 }
 0x3bd   :  { %v2070_v57 = vmul.f32 %v2024_v1, %v11831_v37  ;;  %v2022_v62 = vpop.permute.xlu1 %2021 }
 0x3be   :  { %v2069_v63 = vmul.f32 %v2022_v62, %v11836_v39 }
 0x3bf   :  { %2109 = vrot.lane.b32.xlu0 %v2070_v57, %s11684_s24  ;;  %v2693_v57 = vmul.f32 0.015625, %v2691_v61 }
 0x3c0   :  { %v2028_v5 = vpop.permute.xlu0 %2027  ;;  %2107 = vrot.lane.b32.xlu1 %v2069_v63, %s11684_s24 }
 0x3c1   :  { %v2072_v22 = vmul.f32 %v2028_v5, %v11849_v46  ;;  %v2026_v11 = vpop.permute.xlu1 %2025 }
 0x3c2   :  { %v2071_v52 = vmul.f32 %v2026_v11, %v11854_v49 }
 0x3c3   :  { %2113 = vrot.lane.b32.xlu0 %v2072_v22, %s11684_s24  ;;  %v2694_v22 = vsub.f32 0.0, %v2693_v57 }
 0x3c4   :  { %v2032_v17 = vpop.permute.xlu0 %2031  ;;  %2111 = vrot.lane.b32.xlu1 %v2071_v52, %s11684_s24 }
 0x3c5   :  { %v2074_v20 = vmul.f32 %v2032_v17, %v11885_v7  ;;  %v2030_v28 = vpop.permute.xlu1 %2029 }
 0x3c6   :  { %v2073_v32 = vmul.f32 %v2030_v28, %v11888_v8 }
 0x3c7   :  { %2117 = vrot.lane.b32.xlu0 %v2074_v20, %s11684_s24  ;;  %v2695_v20 = vmul.f32 1.442695, %v2694_v22 }
 0x3c8   :  { %v2036_v48 = vpop.permute.xlu0 %2035  ;;  %2115 = vrot.lane.b32.xlu1 %v2073_v32, %s11684_s24 }
 0x3c9   :  { %v2076_v40 = vmul.f32 %v2036_v48, %v11911_v26  ;;  %v2034_v42 = vpop.permute.xlu1 %2033  ;;  %11133 = vpow2.f32 %v2695_v20 }
 0x3ca   :  { %v2075_v3 = vmul.f32 %v2034_v42, %v11914_v27  ;;  %11135 = vpow2.f32 %v2740_v23  ;;  %v2385_v23 = vld [vmem:[#allocation7 + $0x80] sm:$0xf] }
 0x3cb   :  { %2121 = vrot.lane.b32.xlu0 %v2076_v40, %s11684_s24  ;;  %9436 = vmatprep.subr.msk.mxu1 %vm2440_vm4, %v2385_v23 }
 0x3cc   :  { %v2040_v50 = vpop.permute.xlu0 %2039  ;;  %2119 = vrot.lane.b32.xlu1 %v2075_v3, %s11684_s24  ;;  %9437 = vmatpush3.msk.msra.mxu1 %vm2440_vm4, %v2385_v23 }
 0x3cd   :  { %v2078_v44 = vmul.f32 %v2040_v50, %v11923_v38  ;;  %v2038_v9 = vpop.permute.xlu1 %2037 }
 0x3ce   :  { %v2077_v53 = vmul.f32 %v2038_v9, %v11926_v41 }
 0x3cf   :  { %2125 = vrot.lane.b32.xlu0 %v2078_v44, %s11684_s24 }
 0x3d0   :  { %v2044_v2 = vpop.permute.xlu0 %2043  ;;  %2123 = vrot.lane.b32.xlu1 %v2077_v53, %s11684_s24 }
 0x3d1   :  { %v2080_v56 = vmul.f32 %v2044_v2, %v11951_v59  ;;  %v2042_v1 = vpop.permute.xlu1 %2041 }
 0x3d2   :  { %v2079_v62 = vmul.f32 %v2042_v1, %v11954_v60 }
 0x3d3   :  { %2129 = vrot.lane.b32.xlu0 %v2080_v56, %s11684_s24  ;;  %v11134_v32 = vpop.eup %11133 }
 0x3d4   :  { %v2048_v63 = vpop.permute.xlu0 %2047  ;;  %2127 = vrot.lane.b32.xlu1 %v2079_v62, %s11684_s24  ;;  %v11136_v24 = vpop.eup %11135  ;;  %v2697_v48 = vadd.f32 1.0, %v11134_v32 }
 0x3d5   :  { %v2082_v16 = vmul.f32 %v2048_v63, %v11977_v13  ;;  %v2046_v5 = vpop.permute.xlu1 %2045  ;;  %v2742_v40 = vadd.f32 1.0, %v11136_v24 }
 0x3d6   :  { %v2081_v11 = vmul.f32 %v2046_v5, %v11980_v14  ;;  %11137 = vrcp.f32 %v2697_v48 }
 0x3d7   :  { %2133 = vrot.lane.b32.xlu0 %v2082_v16, %s11684_s24  ;;  %11139 = vrcp.f32 %v2742_v40 }
 0x3d8   :  { %v2052_v52 = vpop.permute.xlu0 %2051  ;;  %2131 = vrot.lane.b32.xlu1 %v2081_v11, %s11684_s24 }
 0x3d9   :  { %v2084_v19 = vmul.f32 %v2052_v52, %v12003_v29  ;;  %v2050_v17 = vpop.permute.xlu1 %2049 }
 0x3da   :  { %v2083_v28 = vmul.f32 %v2050_v17, %v12006_v30 }
 0x3db   :  { %2137 = vrot.lane.b32.xlu0 %v2084_v19, %s11684_s24 }
 0x3dc   :  { %2135 = vrot.lane.b32.xlu1 %v2083_v28, %s11684_s24 }
 0x3df   :  { %2321 = vrot.lane.b32.xlu0 %v12346_v31, %s11685_s25 }
 0x3e0   :  { %v11138_v42 = vpop.eup %11137 }
 0x3e1   :  { %v11140_v18 = vpop.eup %11139  ;;  %v2700_v3 = vmul.f32 %v11138_v42, %v2693_v57 }
 0x3e2   :  { %v12480_v54 = vmul.f32 %v11140_v18, %v2738_v4 }
 0x3e3   :  { %2323 = vrot.lane.b32.xlu0 %v12340_v47, %s11685_s25  ;;  %v2701_v50 = vsel %vm2670_vm1, %v2700_v3, -inf }
 0x3e4   :  { %v2746_v44 = vsel %vm2670_vm1, %v12480_v54, -inf }
 0x400   :  { %2702 = vmax.xlane.f32.xlu1 %v2701_v50 }
 0x402   :  { %2747 = vmax.xlane.f32.xlu0 %v2746_v44 }
 0x411   :  { %2325 = vrot.lane.b32.xlu1 %v12362_v12, %s11685_s25 }
 0x415   :  { %2329 = vrot.lane.b32.xlu1 %v12349_v36, %s11685_s25 }
 0x418   :  { %2327 = vrot.lane.b32.xlu0 %v12356_v25, %s11685_s25 }
 0x419   :  { %2331 = vrot.lane.b32.xlu1 %v12343_v33, %s11685_s25 }
 0x41c   :  { %2335 = vrot.lane.b32.xlu0 %v12359_v43, %s11685_s25 }
 0x41d   :  { %2333 = vrot.lane.b32.xlu1 %v12365_v55, %s11685_s25 }
 0x420   :  { %2339 = vrot.lane.b32.xlu0 %v12371_v35, %s11685_s25 }
 0x421   :  { %2337 = vrot.lane.b32.xlu1 %v12374_v58, %s11685_s25 }
 0x424   :  { %2343 = vrot.lane.b32.xlu0 %v12380_v0, %s11685_s25 }
 0x425   :  { %2341 = vrot.lane.b32.xlu1 %v12382_v45, %s11685_s25 }
 0x428   :  { %2347 = vrot.lane.b32.xlu0 %v12388_v10, %s11685_s25 }
 0x429   :  { %2345 = vrot.lane.b32.xlu1 %v12390_v15, %s11685_s25 }
 0x42c   :  { %2351 = vrot.lane.b32.xlu0 %v12396_v51, %s11685_s25 }
 0x42d   :  { %2349 = vrot.lane.b32.xlu1 %v12398_v21, %s11685_s25 }
 0x431   :  { %v2110_v9 = vpop.permute.xlu0 %2109 }
 0x432   :  { %v2108_v61 = vpop.permute.xlu1 %2107 }
 0x433   :  { %9412 = vmatprep.mubr.msk.f32.mxu0 %vm2139_vm3, %v2108_v61 }
 0x434   :  { %9413 = vmatmul.mubr.msk.f32.vlgmr.msra.gmra.mrb[84].mxu0 %vm2139_vm3, %v2110_v9 }
 0x435   :  { %v2114_v53 = vpop.permute.xlu0 %2113 }
 0x436   :  { %v2112_v34 = vpop.permute.xlu1 %2111 }
 0x437   :  { %9415 = vmatprep.mubr.msk.f32.mxu0 %vm2139_vm3, %v2112_v34 }
 0x438   :  { %9416 = vmatmul.mubr.msk.f32.gmra.mrb[86].mxu0 %vm2139_vm3, %v2114_v53 }
 0x439   :  { %v2118_v2 = vpop.permute.xlu0 %2117 }
 0x43a   :  { %v2116_v56 = vpop.permute.xlu1 %2115 }
 0x43b   :  { %9418 = vmatprep.mubr.msk.f32.mxu0 %vm2139_vm3, %v2116_v56 }
 0x43c   :  { %9419 = vmatmul.mubr.msk.f32.gmra.mrb[88].mxu0 %vm2139_vm3, %v2118_v2 }
 0x43d   :  { %v2122_v1 = vpop.permute.xlu0 %2121 }
 0x43e   :  { %v2120_v57 = vpop.permute.xlu1 %2119 }
 0x43f   :  { %9421 = vmatprep.mubr.msk.f32.mxu0 %vm2139_vm3, %v2120_v57 }
 0x440   :  { %9422 = vmatmul.mubr.msk.f32.gmra.mrb[90].mxu0 %vm2139_vm3, %v2122_v1  ;;  %v12540_v1 = vld [vmem:[#allocation7 + $0x78] ss:$0 sm:$0xff] }
 0x441   :  { %v2126_v62 = vpop.permute.xlu0 %2125 }
 0x442   :  { %v2124_v4 = vpop.permute.xlu1 %2123 }
 0x443   :  { %9424 = vmatprep.mubr.msk.f32.mxu0 %vm2139_vm3, %v2124_v4 }
 0x444   :  { %9425 = vmatmul.mubr.msk.f32.gmra.mrb[92].mxu0 %vm2139_vm3, %v2126_v62 }
 0x445   :  { %v2130_v63 = vpop.permute.xlu0 %2129 }
 0x446   :  { %v2128_v16 = vpop.permute.xlu1 %2127 }
 0x447   :  { %9427 = vmatprep.mubr.msk.f32.mxu0 %vm2139_vm3, %v2128_v16 }
 0x448   :  { %9428 = vmatmul.mubr.msk.f32.gmra.mrb[94].mxu0 %vm2139_vm3, %v2130_v63 }
 0x449   :  { %v2134_v5 = vpop.permute.xlu0 %2133 }
 0x44a   :  { %v2132_v22 = vpop.permute.xlu1 %2131 }
 0x44b   :  { %9430 = vmatprep.mubr.msk.f32.mxu0 %vm2139_vm3, %v2132_v22 }
 0x44c   :  { %9431 = vmatmul.mubr.msk.f32.gmra.mrb[96].mxu0 %vm2139_vm3, %v2134_v5 }
 0x44d   :  { %v2138_v6 = vpop.permute.xlu0 %2137 }
 0x44e   :  { %v2136_v11 = vpop.permute.xlu1 %2135 }
 0x44f   :  { %9433 = vmatprep.mubr.msk.f32.mxu0 %vm2139_vm3, %v2136_v11 }
 0x450   :  { %9434 = vmatmul.mubr.msk.f32.gmra.mrb[98].mxu0 %vm2139_vm3, %v2138_v6 }
 0x451   :  { %v2322_v52 = vpop.permute.xlu0 %2321 }
 0x455   :  { %v2324_v19 = vpop.permute.xlu0 %2323 }
 0x48d   :  { %v2703_v17 = vpop.xlane.xlu1 %2702 }
 0x48e   :  { %v2704_v20 = vsub.f32 %v2700_v3, %v2703_v17 }
 0x48f   :  { %v2748_v28 = vpop.xlane.xlu0 %2747 }
 0x490   :  { %v2705_v32 = vmul.f32 1.442695, %v2704_v20  ;;  %v2749_v24 = vsub.f32 %v12480_v54, %v2748_v28 }
 0x491   :  { %v2326_v18 = vpop.permute.xlu1 %2325 }
 0x492   :  { %11141 = vpow2.f32 %v2705_v32  ;;  %v2750_v48 = vmul.f32 1.442695, %v2749_v24 }
 0x493   :  { %v2328_v54 = vpop.permute.xlu0 %2327 }
 0x494   :  { %11143 = vpow2.f32 %v2750_v48 }
 0x495   :  { %v2330_v3 = vpop.permute.xlu1 %2329 }
 0x497   :  { %v2336_v9 = vpop.permute.xlu0 %2335 }
 0x499   :  { %v2332_v50 = vpop.permute.xlu1 %2331 }
 0x49b   :  { %v2340_v53 = vpop.permute.xlu0 %2339 }
 0x49c   :  { %v12530_v40 = vpop.eup %11141 }
 0x49d   :  { %2708 = vrot.lane.b32.xlu1 %v12530_v40, %s11686_s26  ;;  %v2334_v44 = vpop.permute.xlu1 %2333 }
 0x49e   :  { %v12534_v42 = vpop.eup %11143 }
 0x49f   :  { %2753 = vrot.lane.b32.xlu0 %v12534_v42, %s11686_s26  ;;  %v2344_v2 = vpop.permute.xlu0 %2343 }
 0x4a1   :  { %v2338_v61 = vpop.permute.xlu1 %2337 }
 0x4a3   :  { %v12542_v57 = vpop.permute.xlu0 %2347 }
 0x4a5   :  { %v2342_v34 = vpop.permute.xlu1 %2341 }
 0x4a7   :  { %v2352_v28 = vpop.permute.xlu0 %2351 }
 0x4a9   :  { %v12538_v56 = vpop.permute.xlu1 %2345 }
 0x4ad   :  { %v12546_v5 = vpop.permute.xlu1 %2349 }
 0x507   :  { %v9414_v62 = vpop.f32.mrb[84].mxu0 }
 0x508   :  { %v2248_v4 = vadd.f32 %v9414_v62, %v12540_v1  ;;  %v2242_v63 = vpop.f32.mrb[85].mxu0 }
 0x509   :  { %v2243_v16 = vadd.f32 %v12540_v1, %v2242_v63 }
 0x50a   :  { %v2370_v6 = vmul.f32 %v2324_v19, %v2248_v4 }
 0x50b   :  { %v2369_v22 = vmul.f32 %v2322_v52, %v2243_v16  ;;  %v9417_v11 = vpop.f32.mrb[86].mxu0 }
 0x50c   :  { %v2258_v17 = vadd.f32 %v9417_v11, %v12540_v1  ;;  %v2252_v20 = vpop.f32.mrb[87].mxu0 }
 0x50d   :  { %v2253_v23 = vadd.f32 %v12540_v1, %v2252_v20  ;;  %9438 = vmatprep.mubr.msk.f32.mxu1 %vm2391_vm5, %v2369_v22 }
 0x50e   :  { %9439 = vmatmul.mubr.msk.f32.vlgmr.msra.gmra.mrb[76].mxu1 %vm2391_vm5, %v2370_v6  ;;  %v2372_v62 = vmul.f32 %v2328_v54, %v2258_v17 }
 0x50f   :  { %v2371_v32 = vmul.f32 %v2326_v18, %v2253_v23  ;;  %v9420_v24 = vpop.f32.mrb[88].mxu0  ;;  %v2709_v48 = vpop.permute.xlu1 %2708 }
 0x510   :  { %v2268_v63 = vadd.f32 %v9420_v24, %v12540_v1  ;;  %v2262_v52 = vpop.f32.mrb[89].mxu0  ;;  %v2712_v19 = vsel %vm2711_vm6, %v2709_v48, 0.0 }
 0x511   :  { %v2263_v4 = vadd.f32 %v12540_v1, %v2262_v52  ;;  %v2754_v16 = vpop.permute.xlu0 %2753  ;;  %9441 = vmatprep.mubr.msk.f32.mxu1 %vm2391_vm5, %v2371_v32  ;;  %2713 = vadd.xlane.f32.xlu1 %v2712_v19 }
 0x512   :  { %9442 = vmatmul.mubr.msk.f32.gmra.mrb[78].mxu1 %vm2391_vm5, %v2372_v62  ;;  %v2756_v22 = vsel %vm2711_vm6, %v2754_v16, 0.0  ;;  %v2374_v6 = vmul.f32 %v2332_v50, %v2268_v63 }
 0x513   :  { %v2373_v11 = vmul.f32 %v2330_v3, %v2263_v4  ;;  %2757 = vadd.xlane.f32.xlu0 %v2756_v22  ;;  %v9423_v18 = vpop.f32.mrb[90].mxu0 }
 0x514   :  { %v2278_v54 = vadd.f32 %v9423_v18, %v12540_v1  ;;  %v2272_v17 = vpop.f32.mrb[91].mxu0 }
 0x515   :  { %v2273_v20 = vadd.f32 %v12540_v1, %v2272_v17  ;;  %9444 = vmatprep.mubr.msk.f32.mxu1 %vm2391_vm5, %v2373_v11 }
 0x516   :  { %9445 = vmatmul.mubr.msk.f32.gmra.mrb[80].mxu1 %vm2391_vm5, %v2374_v6  ;;  %v2376_v24 = vmul.f32 %v2336_v9, %v2278_v54 }
 0x517   :  { %v2375_v23 = vmul.f32 %v2334_v44, %v2273_v20  ;;  %v9426_v32 = vpop.f32.mrb[92].mxu0 }
 0x518   :  { %v2288_v48 = vadd.f32 %v9426_v32, %v12540_v1  ;;  %v2282_v62 = vpop.f32.mrb[93].mxu0 }
 0x519   :  { %v2283_v3 = vadd.f32 %v12540_v1, %v2282_v62  ;;  %9447 = vmatprep.mubr.msk.f32.mxu1 %vm2391_vm5, %v2375_v23 }
 0x51a   :  { %9448 = vmatmul.mubr.msk.f32.gmra.mrb[82].mxu1 %vm2391_vm5, %v2376_v24  ;;  %v2378_v52 = vmul.f32 %v2340_v53, %v2288_v48 }
 0x51b   :  { %v2377_v50 = vmul.f32 %v2338_v61, %v2283_v3  ;;  %v9429_v63 = vpop.f32.mrb[94].mxu0 }
 0x51c   :  { %v2298_v19 = vadd.f32 %v9429_v63, %v12540_v1  ;;  %v2292_v4 = vpop.f32.mrb[95].mxu0  ;;  %v12651_v63 = vld [vmem:[#allocation7 + $0xa8] sm:$0xff] }
 0x51d   :  { %v2293_v16 = vadd.f32 %v12540_v1, %v2292_v4  ;;  %9450 = vmatprep.mubr.msk.f32.mxu1 %vm2391_vm5, %v2377_v50 }
 0x51e   :  { %9451 = vmatmul.mubr.msk.f32.gmra.mrb[84].mxu1 %vm2391_vm5, %v2378_v52  ;;  %v2380_v22 = vmul.f32 %v2344_v2, %v2298_v19 }
 0x51f   :  { %v2379_v44 = vmul.f32 %v2342_v34, %v2293_v16  ;;  %v9432_v9 = vpop.f32.mrb[96].mxu0 }
 0x520   :  { %v2308_v11 = vadd.f32 %v9432_v9, %v12540_v1  ;;  %v2302_v18 = vpop.f32.mrb[97].mxu0 }
 0x521   :  { %v2303_v6 = vadd.f32 %v12540_v1, %v2302_v18  ;;  %9453 = vmatprep.mubr.msk.f32.mxu1 %vm2391_vm5, %v2379_v44 }
 0x522   :  { %9454 = vmatmul.mubr.msk.f32.gmra.mrb[86].mxu1 %vm2391_vm5, %v2380_v22  ;;  %2591 = vrot.lane.b32.xlu1 %v12340_v47, %s11686_s26  ;;  %v2382_v54 = vmul.f32 %v12542_v57, %v2308_v11 }
 0x523   :  { %v2381_v61 = vmul.f32 %v12538_v56, %v2303_v6  ;;  %v9435_v53 = vpop.f32.mrb[98].mxu0 }
 0x524   :  { %v2318_v34 = vadd.f32 %v9435_v53, %v12540_v1  ;;  %v2312_v2 = vpop.f32.mrb[99].mxu0 }
 0x525   :  { %v2313_v17 = vadd.f32 %v12540_v1, %v2312_v2  ;;  %9456 = vmatprep.mubr.msk.f32.mxu1 %vm2391_vm5, %v2381_v61 }
 0x526   :  { %9457 = vmatmul.mubr.msk.f32.gmra.mrb[88].mxu1 %vm2391_vm5, %v2382_v54  ;;  %2593 = vrot.lane.b32.xlu1 %v12362_v12, %s11686_s26  ;;  %v2384_v23 = vmul.f32 %v2352_v28, %v2318_v34 }
 0x527   :  { %v2383_v20 = vmul.f32 %v12546_v5, %v2313_v17 }
 0x529   :  { %2589 = vrot.lane.b32.xlu0 %v12346_v31, %s11686_s26  ;;  %9459 = vmatprep.mubr.msk.f32.mxu1 %vm2391_vm5, %v2383_v20 }
 0x52a   :  { %9460 = vmatmul.mubr.msk.f32.gmra.mrb[90].mxu1 %vm2391_vm5, %v2384_v23  ;;  %2597 = vrot.lane.b32.xlu1 %v12349_v36, %s11686_s26 }
 0x52d   :  { %2595 = vrot.lane.b32.xlu0 %v12356_v25, %s11686_s26 }
 0x52e   :  { %2601 = vrot.lane.b32.xlu1 %v12365_v55, %s11686_s26 }
 0x531   :  { %2599 = vrot.lane.b32.xlu0 %v12343_v33, %s11686_s26 }
 0x532   :  { %2605 = vrot.lane.b32.xlu1 %v12374_v58, %s11686_s26 }
 0x535   :  { %2603 = vrot.lane.b32.xlu0 %v12359_v43, %s11686_s26 }
 0x536   :  { %2609 = vrot.lane.b32.xlu1 %v12382_v45, %s11686_s26 }
 0x539   :  { %2607 = vrot.lane.b32.xlu0 %v12371_v35, %s11686_s26 }
 0x53a   :  { %2613 = vrot.lane.b32.xlu1 %v12390_v15, %s11686_s26 }
 0x53d   :  { %2611 = vrot.lane.b32.xlu0 %v12380_v0, %s11686_s26 }
 0x53e   :  { %2617 = vrot.lane.b32.xlu1 %v12398_v21, %s11686_s26 }
 0x541   :  { %2615 = vrot.lane.b32.xlu0 %v12388_v10, %s11686_s26 }
 0x545   :  { %2619 = vrot.lane.b32.xlu0 %v12396_v51, %s11686_s26 }
 0x59e   :  { %v2714_v56 = vpop.xlane.xlu1 %2713 }
 0x59f   :  { %11145 = vrcp.f32 %v2714_v56 }
 0x5a0   :  { %v2758_v1 = vpop.xlane.xlu0 %2757 }
 0x5a1   :  { %11147 = vrcp.f32 %v2758_v1 }
 0x5a2   :  { %v2592_v44 = vpop.permute.xlu1 %2591 }
 0x5a4   :  { %v2590_v22 = vpop.permute.xlu0 %2589 }
 0x5a6   :  { %v2594_v61 = vpop.permute.xlu1 %2593 }
 0x5a8   :  { %v2596_v53 = vpop.permute.xlu0 %2595 }
 0x5a9   :  { %v11146_v57 = vpop.eup %11145 }
 0x5aa   :  { %v2716_v5 = vmul.f32 %v11146_v57, %v12530_v40  ;;  %v2598_v2 = vpop.permute.xlu1 %2597 }
 0x5ab   :  { %v11148_v3 = vpop.eup %11147 }
 0x5ac   :  { %v2826_v28 = vmul.f32 %v2716_v5, %v12340_v47  ;;  %v2825_v32 = vmul.f32 %v2716_v5, %v12346_v31  ;;  %v2828_v24 = vmul.f32 %v2716_v5, %v12356_v25  ;;  %v2827_v48 = vmul.f32 %v2716_v5, %v12362_v12  ;;  %v2600_v20 = vpop.permute.xlu0 %2599 }
 0x5ad   :  { %v2830_v62 = vmul.f32 %v2716_v5, %v12343_v33  ;;  %v2829_v40 = vmul.f32 %v2716_v5, %v12349_v36  ;;  %v2760_v47 = vmul.f32 %v11148_v3, %v12534_v42  ;;  %v2832_v31 = vmul.f32 %v2716_v5, %v12359_v43 }
 0x5ae   :  { %2859 = vrot.lane.b32.xlu0 %v2826_v28, %s11686_s26  ;;  %2857 = vrot.lane.b32.xlu1 %v2825_v32, %s11686_s26  ;;  %v2831_v25 = vmul.f32 %v2716_v5, %v12365_v55  ;;  %v2602_v56 = vpop.permute.xlu1 %2601 }
 0x5af   :  { %v2834_v12 = vmul.f32 %v2760_v47, %v12371_v35  ;;  %v2833_v33 = vmul.f32 %v2760_v47, %v12374_v58  ;;  %v2836_v36 = vmul.f32 %v2760_v47, %v12380_v0  ;;  %v2835_v42 = vmul.f32 %v2760_v47, %v12382_v45  ;;  %v3049_v0 = vld [vmem:[#allocation7 + $0x90] sm:$0xff]  ;;  %v3050_v45 = vld [vmem:[#allocation7 + $0x98] sm:$0xff] }
 0x5b0   :  { %v2838_v43 = vmul.f32 %v2760_v47, %v12388_v10  ;;  %v2837_v55 = vmul.f32 %v2760_v47, %v12390_v15  ;;  %v2840_v35 = vmul.f32 %v2760_v47, %v12396_v51  ;;  %v2839_v58 = vmul.f32 %v2760_v47, %v12398_v21  ;;  %9462 = vmatprep.subr.mxu0 %v3049_v0  ;;  %v12649_v15 = vld [vmem:[#allocation7 + $0xa0] sm:$0xff]  ;;  %v2604_v1 = vpop.permute.xlu0 %2603 }
 0x5b1   :  { %9488 = vmatprep.subr.mxu1 %v3050_v45  ;;  %9463 = vmatpush3.msra.mxu0 %v3049_v0 }
 0x5b2   :  { %2863 = vrot.lane.b32.xlu0 %v2828_v24, %s11686_s26  ;;  %2861 = vrot.lane.b32.xlu1 %v2827_v48, %s11686_s26  ;;  %v2606_v57 = vpop.permute.xlu1 %2605 }
 0x5b3   :  { %9489 = vmatpush3.msra.mxu1 %v3050_v45  ;;  %9514 = vmatprep.subr.mxu0 %v12649_v15 }
 0x5b4   :  { %9540 = vmatprep.subr.mxu1 %v12651_v63  ;;  %v2608_v5 = vpop.permute.xlu0 %2607 }
 0x5b6   :  { %2867 = vrot.lane.b32.xlu0 %v2830_v62, %s11686_s26  ;;  %2865 = vrot.lane.b32.xlu1 %v2829_v40, %s11686_s26  ;;  %v12667_v28 = vpop.permute.xlu1 %2609  ;;  %v12675_v62 = vld [vmem:[#allocation7 + $0x88] ss:$0 sm:$0xff] }
 0x5b8   :  { %v12669_v32 = vpop.permute.xlu0 %2611 }
 0x5ba   :  { %2871 = vrot.lane.b32.xlu0 %v2832_v31, %s11686_s26  ;;  %2869 = vrot.lane.b32.xlu1 %v2831_v25, %s11686_s26  ;;  %v12671_v24 = vpop.permute.xlu1 %2613 }
 0x5bc   :  { %v12673_v48 = vpop.permute.xlu0 %2615 }
 0x5be   :  { %2875 = vrot.lane.b32.xlu0 %v2834_v12, %s11686_s26  ;;  %2873 = vrot.lane.b32.xlu1 %v2833_v33, %s11686_s26  ;;  %v12679_v47 = vpop.permute.xlu1 %2617 }
 0x5c0   :  { %v12681_v31 = vpop.permute.xlu0 %2619 }
 0x5c2   :  { %2879 = vrot.lane.b32.xlu0 %v2836_v36, %s11686_s26  ;;  %2877 = vrot.lane.b32.xlu1 %v2835_v42, %s11686_s26 }
 0x5c6   :  { %2883 = vrot.lane.b32.xlu0 %v2838_v43, %s11686_s26  ;;  %2881 = vrot.lane.b32.xlu1 %v2837_v55, %s11686_s26 }
 0x5ca   :  { %2887 = vrot.lane.b32.xlu0 %v2840_v35, %s11686_s26  ;;  %2885 = vrot.lane.b32.xlu1 %v2839_v58, %s11686_s26 }
 0x5e1   :  { %v9440_v50 = vpop.f32.mrb[76].mxu1 }
 0x5e2   :  { %v2510_v10 = vpop.f32.mrb[77].mxu1  ;;  %v2516_v40 = vadd.f32 %v9440_v50, %v12675_v62 }
 0x5e3   :  { %v2511_v3 = vadd.f32 %v12675_v62, %v2510_v10 }
 0x5e4   :  { %v2638_v12 = vmul.f32 %v2592_v44, %v2516_v40 }
 0x5e5   :  { %v9443_v52 = vpop.f32.mrb[78].mxu1  ;;  %v2637_v33 = vmul.f32 %v2590_v22, %v2511_v3 }
 0x5e6   :  { %v2520_v51 = vpop.f32.mrb[79].mxu1  ;;  %v2526_v25 = vadd.f32 %v9443_v52, %v12675_v62 }
 0x5e7   :  { %v2521_v36 = vadd.f32 %v12675_v62, %v2520_v51 }
 0x5e8   :  { %v2640_v58 = vmul.f32 %v2596_v53, %v2526_v25 }
 0x5e9   :  { %v9446_v21 = vpop.f32.mrb[80].mxu1  ;;  %v2639_v45 = vmul.f32 %v2594_v61, %v2521_v36 }
 0x5ea   :  { %v2530_v19 = vpop.f32.mrb[81].mxu1  ;;  %v2536_v0 = vadd.f32 %v9446_v21, %v12675_v62 }
 0x5eb   :  { %v2531_v50 = vadd.f32 %v12675_v62, %v2530_v19 }
 0x5ed   :  { %v9449_v4 = vpop.f32.mrb[82].mxu1  ;;  %v2641_v61 = vmul.f32 %v2598_v2, %v2531_v50 }
 0x5ee   :  { %v2540_v16 = vpop.f32.mrb[83].mxu1  ;;  %v2546_v53 = vadd.f32 %v9449_v4, %v12675_v62 }
 0x5ef   :  { %v2541_v21 = vadd.f32 %v12675_v62, %v2540_v16 }
 0x5f1   :  { %v9452_v9 = vpop.f32.mrb[84].mxu1 }
 0x5f2   :  { %v2550_v11 = vpop.f32.mrb[85].mxu1  ;;  %v2556_v4 = vadd.f32 %v9452_v9, %v12675_v62 }
 0x5f3   :  { %v2551_v16 = vadd.f32 %v12675_v62, %v2550_v11 }
 0x5f5   :  { %v12655_v18 = vpop.f32.mrb[86].mxu1 }
 0x5f6   :  { %v12657_v6 = vpop.f32.mrb[87].mxu1  ;;  %v2566_v9 = vadd.f32 %v12655_v18, %v12675_v62 }
 0x5f9   :  { %v12659_v54 = vpop.f32.mrb[88].mxu1 }
 0x5fa   :  { %v12661_v34 = vpop.f32.mrb[89].mxu1 }
 0x5fd   :  { %v12663_v17 = vpop.f32.mrb[90].mxu1 }
 0x5fe   :  { %v12665_v23 = vpop.f32.mrb[91].mxu1 }
 0x620   :  { %v2860_v42 = vpop.permute.xlu0 %2859  ;;  %v2858_v43 = vpop.permute.xlu1 %2857 }
 0x621   :  { %v12685_v55 = vmul.f32 %v2860_v42, %v2638_v12  ;;  %v12687_v35 = vmul.f32 %v2858_v43, %v2637_v33  ;;  %v2642_v33 = vmul.f32 %v2600_v20, %v2536_v0  ;;  %v2644_v20 = vmul.f32 %v2604_v1, %v2546_v53 }
 0x622   :  { %v2643_v0 = vmul.f32 %v2602_v56, %v2541_v21  ;;  %v2646_v1 = vmul.f32 %v2608_v5, %v2556_v4  ;;  %v2645_v56 = vmul.f32 %v2606_v57, %v2551_v16  ;;  %v2561_v21 = vadd.f32 %v12675_v62, %v12657_v6 }
 0x623   :  { %v2922_v10 = vsub.f32 0.0, %v12685_v55  ;;  %v2921_v52 = vsub.f32 0.0, %v12687_v35 }
 0x624   :  { %v2864_v44 = vpop.permute.xlu0 %2863  ;;  %v2862_v22 = vpop.permute.xlu1 %2861  ;;  %v2647_v16 = vmul.f32 %v12667_v28, %v2561_v21 }
 0x625   :  { %v2939_v40 = vmul.f32 1.442695, %v2922_v10  ;;  %v2937_v51 = vmul.f32 1.442695, %v2921_v52  ;;  %v12693_v3 = vmul.f32 %v2864_v44, %v2640_v58  ;;  %v12695_v12 = vmul.f32 %v2862_v22, %v2639_v45 }
 0x627   :  { %11149 = vpow2.f32 %v2939_v40  ;;  %v2924_v19 = vsub.f32 0.0, %v12693_v3  ;;  %v2923_v25 = vsub.f32 0.0, %v12695_v12 }
 0x628   :  { %11151 = vpow2.f32 %v2937_v51  ;;  %v2868_v36 = vpop.permute.xlu0 %2867  ;;  %v2866_v42 = vpop.permute.xlu1 %2865 }
 0x629   :  { %v2943_v43 = vmul.f32 1.442695, %v2924_v19  ;;  %v2941_v10 = vmul.f32 1.442695, %v2923_v25  ;;  %v12701_v58 = vmul.f32 %v2868_v36, %v2642_v33  ;;  %v12703_v45 = vmul.f32 %v2866_v42, %v2641_v61 }
 0x62a   :  { %v2576_v61 = vadd.f32 %v12659_v54, %v12675_v62 }
 0x62b   :  { %11153 = vpow2.f32 %v2943_v43  ;;  %v2926_v2 = vsub.f32 0.0, %v12701_v58  ;;  %v2925_v50 = vsub.f32 0.0, %v12703_v45  ;;  %v2648_v43 = vmul.f32 %v12669_v32, %v2566_v9 }
 0x62c   :  { %11155 = vpow2.f32 %v2941_v10  ;;  %v2872_v52 = vpop.permute.xlu0 %2871  ;;  %v2870_v44 = vpop.permute.xlu1 %2869  ;;  %v2571_v10 = vadd.f32 %v12675_v62, %v12661_v34  ;;  %v2586_v32 = vadd.f32 %v12663_v17, %v12675_v62 }
 0x62d   :  { %v2947_v22 = vmul.f32 1.442695, %v2926_v2  ;;  %v2945_v40 = vmul.f32 1.442695, %v2925_v50  ;;  %v12709_v51 = vmul.f32 %v2872_v52, %v2644_v20  ;;  %v12711_v33 = vmul.f32 %v2870_v44, %v2643_v0 }
 0x62e   :  { %v2650_v2 = vmul.f32 %v12673_v48, %v2576_v61  ;;  %v2649_v28 = vmul.f32 %v12671_v24, %v2571_v10 }
 0x62f   :  { %11157 = vpow2.f32 %v2947_v22  ;;  %v2928_v11 = vsub.f32 0.0, %v12709_v51  ;;  %v2927_v53 = vsub.f32 0.0, %v12711_v33 }
 0x630   :  { %11159 = vpow2.f32 %v2945_v40  ;;  %v2876_v19 = vpop.permute.xlu0 %2875  ;;  %v2874_v25 = vpop.permute.xlu1 %2873 }
 0x631   :  { %v11150_v36 = vpop.eup %11149  ;;  %v2951_v5 = vmul.f32 1.442695, %v2928_v11  ;;  %v12721_v42 = vmul.f32 %v2876_v19, %v2646_v1  ;;  %v12723_v18 = vmul.f32 %v2874_v25, %v2645_v56  ;;  %v2949_v6 = vmul.f32 1.442695, %v2927_v53 }
 0x632   :  { %v11152_v57 = vpop.eup %11151  ;;  %v2970_v20 = vadd.f32 1.0, %v11150_v36  ;;  %v2581_v53 = vadd.f32 %v12675_v62, %v12665_v23 }
 0x633   :  { %v2969_v0 = vadd.f32 1.0, %v11152_v57  ;;  %11161 = vpow2.f32 %v2951_v5  ;;  %v2930_v54 = vsub.f32 0.0, %v12721_v42  ;;  %v2929_v4 = vsub.f32 0.0, %v12723_v18 }
 0x634   :  { %11163 = vrcp.f32 %v2970_v20  ;;  %v2880_v50 = vpop.permute.xlu0 %2879  ;;  %v2878_v52 = vpop.permute.xlu1 %2877  ;;  %v2652_v57 = vmul.f32 %v12681_v31, %v2586_v32 }
 0x635   :  { %v11154_v44 = vpop.eup %11153  ;;  %11165 = vrcp.f32 %v2969_v0  ;;  %v2955_v34 = vmul.f32 1.442695, %v2930_v54  ;;  %v12734_v22 = vmul.f32 %v2880_v50, %v2648_v43  ;;  %v2953_v9 = vmul.f32 1.442695, %v2929_v4 }
 0x636   :  { %v11156_v40 = vpop.eup %11155  ;;  %v2972_v1 = vadd.f32 1.0, %v11154_v44  ;;  %11167 = vpow2.f32 %v2949_v6  ;;  %v12736_v56 = vmul.f32 %v2878_v52, %v2647_v16  ;;  %v2651_v6 = vmul.f32 %v12679_v47, %v2581_v53 }
 0x637   :  { %v2971_v48 = vadd.f32 1.0, %v11156_v40  ;;  %11169 = vpow2.f32 %v2955_v34  ;;  %v2932_v11 = vsub.f32 0.0, %v12734_v22 }
 0x638   :  { %11171 = vrcp.f32 %v2972_v1  ;;  %v2931_v17 = vsub.f32 0.0, %v12736_v56  ;;  %v2884_v21 = vpop.permute.xlu0 %2883  ;;  %v2882_v61 = vpop.permute.xlu1 %2881 }
 0x639   :  { %v11158_v19 = vpop.eup %11157  ;;  %11173 = vrcp.f32 %v2971_v48  ;;  %v2959_v25 = vmul.f32 1.442695, %v2932_v11  ;;  %v12743_v36 = vmul.f32 %v2884_v21, %v2650_v2  ;;  %v12745_v5 = vmul.f32 %v2882_v61, %v2649_v28 }
 0x63a   :  { %v11160_v24 = vpop.eup %11159  ;;  %v2974_v43 = vadd.f32 1.0, %v11158_v19  ;;  %11175 = vpow2.f32 %v2953_v9  ;;  %v2957_v10 = vmul.f32 1.442695, %v2931_v17 }
 0x63b   :  { %v2973_v20 = vadd.f32 1.0, %v11160_v24  ;;  %11177 = vpow2.f32 %v2959_v25  ;;  %v2934_v23 = vsub.f32 0.0, %v12743_v36  ;;  %v2933_v62 = vsub.f32 0.0, %v12745_v5 }
 0x63c   :  { %11179 = vrcp.f32 %v2974_v43  ;;  %v2888_v0 = vpop.permute.xlu0 %2887  ;;  %v2886_v54 = vpop.permute.xlu1 %2885 }
 0x63d   :  { %v11162_v4 = vpop.eup %11161  ;;  %11181 = vrcp.f32 %v2973_v20  ;;  %v2963_v16 = vmul.f32 1.442695, %v2934_v23  ;;  %v2961_v2 = vmul.f32 1.442695, %v2933_v62  ;;  %v12751_v50 = vmul.f32 %v2888_v0, %v2652_v57 }
 0x63e   :  { %v11164_v31 = vpop.eup %11163  ;;  %v2976_v52 = vadd.f32 1.0, %v11162_v4  ;;  %11183 = vpow2.f32 %v2957_v10  ;;  %v12753_v44 = vmul.f32 %v2886_v54, %v2651_v6 }
 0x63f   :  { %v11166_v32 = vpop.eup %11165  ;;  %v3018_v34 = vmul.f32 %v11164_v31, %v12685_v55  ;;  %11185 = vpow2.f32 %v2963_v16  ;;  %v2936_v47 = vsub.f32 0.0, %v12751_v50 }
 0x640   :  { %v11168_v40 = vpop.eup %11167  ;;  %v3017_v1 = vmul.f32 %v11166_v32, %v12687_v35  ;;  %11187 = vrcp.f32 %v2976_v52  ;;  %v2935_v9 = vsub.f32 0.0, %v12753_v44 }
 0x641   :  { %v11170_v28 = vpop.eup %11169  ;;  %v12760_v48 = vadd.f32 %v3018_v34, %v11831_v37  ;;  %v2975_v11 = vadd.f32 1.0, %v11168_v40  ;;  %11189 = vpow2.f32 %v2961_v2  ;;  %v2967_v53 = vmul.f32 1.442695, %v2936_v47  ;;  %v12771_v37 = vld [vmem:[#allocation7 + $0xb0] sm:$0xff] }
 0x642   :  { %v11172_v17 = vpop.eup %11171  ;;  %v12763_v21 = vadd.f32 %v3017_v1, %v11836_v39  ;;  %v2978_v55 = vadd.f32 1.0, %v11170_v28  ;;  %v2965_v61 = vmul.f32 1.442695, %v2935_v9  ;;  %v12773_v39 = vld [vmem:[#allocation7 + $0xb8] sm:$0xff] }
 0x643   :  { %v11174_v19 = vpop.eup %11173  ;;  %v3020_v25 = vmul.f32 %v11172_v17, %v12693_v3  ;;  %11191 = vrcp.f32 %v2975_v11 }
 0x644   :  { %v11176_v35 = vpop.eup %11175  ;;  %v3019_v24 = vmul.f32 %v11174_v19, %v12695_v12  ;;  %11193 = vrcp.f32 %v2978_v55  ;;  %9464 = vmatprep.mubr.msk.f32.mxu0 %vm2711_vm6, %v12763_v21  ;;  %9490 = vmatprep.mubr.msk.f32.mxu1 %vm2711_vm6, %v12763_v21 }
 0x645   :  { %v11178_v57 = vpop.eup %11177  ;;  %v12776_v43 = vadd.f32 %v3020_v25, %v11849_v46  ;;  %v2977_v3 = vadd.f32 1.0, %v11176_v35  ;;  %11195 = vpow2.f32 %v2967_v53  ;;  %9465 = vmatmul.mubr.msk.f32.vlgmr.msra.gmra.mrb[100].mxu0 %vm2711_vm6, %v12760_v48  ;;  %9491 = vmatmul.mubr.msk.f32.vlgmr.msra.gmra.mrb[92].mxu1 %vm2711_vm6, %v12760_v48 }
 0x646   :  { %v11180_v12 = vpop.eup %11179  ;;  %v12783_v10 = vadd.f32 %v3019_v24, %v11854_v49  ;;  %v2980_v20 = vadd.f32 1.0, %v11178_v57  ;;  %11197 = vpow2.f32 %v2965_v61  ;;  %9515 = vmatpush3.msra.mxu0 %v12649_v15  ;;  %9541 = vmatpush3.msra.mxu1 %v12651_v63 }
 0x647   :  { %v11182_v46 = vpop.eup %11181  ;;  %v3022_v23 = vmul.f32 %v11180_v12, %v12701_v58  ;;  %11199 = vrcp.f32 %v2977_v3  ;;  %9566 = vmatprep.subr.mxu0 %v12771_v37  ;;  %9592 = vmatprep.subr.mxu1 %v12773_v39 }
 0x648   :  { %v11184_v62 = vpop.eup %11183  ;;  %v3021_v6 = vmul.f32 %v11182_v46, %v12703_v45  ;;  %11201 = vrcp.f32 %v2980_v20  ;;  %9467 = vmatprep.mubr.msk.f32.mxu0 %vm2711_vm6, %v12783_v10  ;;  %9493 = vmatprep.mubr.msk.f32.mxu1 %vm2711_vm6, %v12783_v10 }
 0x649   :  { %v11186_v49 = vpop.eup %11185  ;;  %v12796_v15 = vadd.f32 %v3022_v23, %v11885_v7  ;;  %v2979_v63 = vadd.f32 1.0, %v11184_v62  ;;  %9468 = vmatmul.mubr.msk.f32.gmra.mrb[102].mxu0 %vm2711_vm6, %v12776_v43  ;;  %9494 = vmatmul.mubr.msk.f32.gmra.mrb[94].mxu1 %vm2711_vm6, %v12776_v43 }
 0x64a   :  { %v11188_v58 = vpop.eup %11187  ;;  %v12803_v45 = vadd.f32 %v3021_v6, %v11888_v8  ;;  %v2982_v0 = vadd.f32 1.0, %v11186_v49 }
 0x64b   :  { %v11190_v54 = vpop.eup %11189  ;;  %v3024_v4 = vmul.f32 %v11188_v58, %v12709_v51  ;;  %11203 = vrcp.f32 %v2979_v63 }
 0x64c   :  { %11205 = vrcp.f32 %v2982_v0  ;;  %v2981_v16 = vadd.f32 1.0, %v11190_v54  ;;  %9470 = vmatprep.mubr.msk.f32.mxu0 %vm2711_vm6, %v12803_v45  ;;  %9496 = vmatprep.mubr.msk.f32.mxu1 %vm2711_vm6, %v12803_v45 }
 0x64d   :  { %v11192_v7 = vpop.eup %11191  ;;  %9471 = vmatmul.mubr.msk.f32.gmra.mrb[104].mxu0 %vm2711_vm6, %v12796_v15  ;;  %9497 = vmatmul.mubr.msk.f32.gmra.mrb[96].mxu1 %vm2711_vm6, %v12796_v15  ;;  %v12816_v31 = vadd.f32 %v3024_v4, %v11911_v26 }
 0x64e   :  { %v11194_v8 = vpop.eup %11193  ;;  %v3023_v2 = vmul.f32 %v11192_v7, %v12711_v33  ;;  %11207 = vrcp.f32 %v2981_v16 }
 0x64f   :  { %v11196_v51 = vpop.eup %11195  ;;  %v3026_v52 = vmul.f32 %v11194_v8, %v12721_v42 }
 0x650   :  { %v11198_v32 = vpop.eup %11197  ;;  %v12820_v34 = vadd.f32 %v3023_v2, %v11914_v27  ;;  %v2984_v47 = vadd.f32 1.0, %v11196_v51 }
 0x651   :  { %v11200_v40 = vpop.eup %11199  ;;  %v2983_v1 = vadd.f32 1.0, %v11198_v32  ;;  %v12828_v26 = vadd.f32 %v3026_v52, %v11923_v38 }
 0x652   :  { %v11202_v9 = vpop.eup %11201  ;;  %v3025_v28 = vmul.f32 %v11200_v40, %v12723_v18  ;;  %11209 = vrcp.f32 %v2984_v47  ;;  %9473 = vmatprep.mubr.msk.f32.mxu0 %vm2711_vm6, %v12820_v34  ;;  %9499 = vmatprep.mubr.msk.f32.mxu1 %vm2711_vm6, %v12820_v34 }
 0x653   :  { %v3028_v33 = vmul.f32 %v11202_v9, %v12734_v22  ;;  %11211 = vrcp.f32 %v2983_v1  ;;  %9474 = vmatmul.mubr.msk.f32.gmra.mrb[106].mxu0 %vm2711_vm6, %v12816_v31  ;;  %9500 = vmatmul.mubr.msk.f32.gmra.mrb[98].mxu1 %vm2711_vm6, %v12816_v31 }
 0x654   :  { %v12836_v27 = vadd.f32 %v3025_v28, %v11926_v41 }
 0x655   :  { %v11204_v42 = vpop.eup %11203  ;;  %v12844_v38 = vadd.f32 %v3028_v33, %v11951_v59 }
 0x656   :  { %v11206_v18 = vpop.eup %11205  ;;  %v3027_v11 = vmul.f32 %v11204_v42, %v12736_v56  ;;  %9476 = vmatprep.mubr.msk.f32.mxu0 %vm2711_vm6, %v12836_v27  ;;  %9502 = vmatprep.mubr.msk.f32.mxu1 %vm2711_vm6, %v12836_v27 }
 0x657   :  { %v3030_v22 = vmul.f32 %v11206_v18, %v12743_v36  ;;  %9477 = vmatmul.mubr.msk.f32.gmra.mrb[108].mxu0 %vm2711_vm6, %v12828_v26  ;;  %9503 = vmatmul.mubr.msk.f32.gmra.mrb[100].mxu1 %vm2711_vm6, %v12828_v26 }
 0x658   :  { %v11208_v41 = vpop.eup %11207  ;;  %v12852_v56 = vadd.f32 %v3027_v11, %v11954_v60 }
 0x659   :  { %v3029_v53 = vmul.f32 %v11208_v41, %v12745_v5  ;;  %v12860_v59 = vadd.f32 %v3030_v22, %v11977_v13 }
 0x65a   :  { %9479 = vmatprep.mubr.msk.f32.mxu0 %vm2711_vm6, %v12852_v56  ;;  %9505 = vmatprep.mubr.msk.f32.mxu1 %vm2711_vm6, %v12852_v56 }
 0x65b   :  { %v12863_v36 = vadd.f32 %v3029_v53, %v11980_v14  ;;  %9480 = vmatmul.mubr.msk.f32.gmra.mrb[110].mxu0 %vm2711_vm6, %v12844_v38  ;;  %9506 = vmatmul.mubr.msk.f32.gmra.mrb[102].mxu1 %vm2711_vm6, %v12844_v38 }
 0x65c   :  { %v11210_v60 = vpop.eup %11209 }
 0x65d   :  { %v11212_v5 = vpop.eup %11211  ;;  %v3032_v17 = vmul.f32 %v11210_v60, %v12751_v50  ;;  %9482 = vmatprep.mubr.msk.f32.mxu0 %vm2711_vm6, %v12863_v36  ;;  %9508 = vmatprep.mubr.msk.f32.mxu1 %vm2711_vm6, %v12863_v36  ;;  %v3057_v50 = vld [vmem:[#allocation7 + $0xd0] sm:$0xff] }
 0x65e   :  { %v3031_v13 = vmul.f32 %v11212_v5, %v12753_v44  ;;  %v11437_v44 = vld [vmem:[#allocation5 + $0x8] sm:$0xff] }
 0x65f   :  { %v12876_v14 = vadd.f32 %v3032_v17, %v12003_v29  ;;  %9483 = vmatmul.mubr.msk.f32.gmra.mrb[112].mxu0 %vm2711_vm6, %v12860_v59  ;;  %9509 = vmatmul.mubr.msk.f32.gmra.mrb[104].mxu1 %vm2711_vm6, %v12860_v59  ;;  %v3055_v29 = vld [vmem:[#allocation7 + $0xc0] sm:$0xff] }
 0x660   :  { %v12883_v55 = vadd.f32 %v3031_v13, %v12006_v30  ;;  %v3056_v30 = vld [vmem:[#allocation7 + $0xc8] sm:$0xff]  ;;  %v11439_v13 = vld [vmem:[#allocation5] sm:$0xff] }
 0x662   :  { %9485 = vmatprep.mubr.msk.f32.mxu0 %vm2711_vm6, %v12883_v55  ;;  %9511 = vmatprep.mubr.msk.f32.mxu1 %vm2711_vm6, %v12883_v55 }
 0x663   :  { %9486 = vmatmul.mubr.msk.f32.gmra.mrb[114].mxu0 %vm2711_vm6, %v12876_v14  ;;  %9512 = vmatmul.mubr.msk.f32.gmra.mrb[106].mxu1 %vm2711_vm6, %v12876_v14 }
 0x664   :  { %9516 = vmatprep.mubr.msk.f32.mxu0 %vm2711_vm6, %v12763_v21  ;;  %9542 = vmatprep.mubr.msk.f32.mxu1 %vm2711_vm6, %v12763_v21 }
 0x667   :  { %9517 = vmatmul.mubr.msk.f32.vlgmr.msra.gmra.mrb[116].mxu0 %vm2711_vm6, %v12760_v48  ;;  %9543 = vmatmul.mubr.msk.f32.vlgmr.msra.gmra.mrb[108].mxu1 %vm2711_vm6, %v12760_v48 }
 0x668   :  { %9519 = vmatprep.mubr.msk.f32.mxu0 %vm2711_vm6, %v12783_v10  ;;  %9545 = vmatprep.mubr.msk.f32.mxu1 %vm2711_vm6, %v12783_v10 }
 0x669   :  { %9567 = vmatpush3.msra.mxu0 %v12771_v37  ;;  %9593 = vmatpush3.msra.mxu1 %v12773_v39 }
 0x66a   :  { %9618 = vmatprep.subr.mxu0 %v3055_v29  ;;  %9644 = vmatprep.subr.mxu1 %v3056_v30 }
 0x66b   :  { %9520 = vmatmul.mubr.msk.f32.gmra.mrb[118].mxu0 %vm2711_vm6, %v12776_v43  ;;  %9546 = vmatmul.mubr.msk.f32.gmra.mrb[110].mxu1 %vm2711_vm6, %v12776_v43 }
 0x66c   :  { %9522 = vmatprep.mubr.msk.f32.mxu0 %vm2711_vm6, %v12803_v45  ;;  %9548 = vmatprep.mubr.msk.f32.mxu1 %vm2711_vm6, %v12803_v45 }
 0x66f   :  { %9523 = vmatmul.mubr.msk.f32.gmra.mrb[120].mxu0 %vm2711_vm6, %v12796_v15  ;;  %9549 = vmatmul.mubr.msk.f32.gmra.mrb[112].mxu1 %vm2711_vm6, %v12796_v15 }
 0x670   :  { %9525 = vmatprep.mubr.msk.f32.mxu0 %vm2711_vm6, %v12820_v34  ;;  %9551 = vmatprep.mubr.msk.f32.mxu1 %vm2711_vm6, %v12820_v34 }
 0x673   :  { %9526 = vmatmul.mubr.msk.f32.gmra.mrb[122].mxu0 %vm2711_vm6, %v12816_v31  ;;  %9552 = vmatmul.mubr.msk.f32.gmra.mrb[114].mxu1 %vm2711_vm6, %v12816_v31 }
 0x674   :  { %9528 = vmatprep.mubr.msk.f32.mxu0 %vm2711_vm6, %v12836_v27  ;;  %9554 = vmatprep.mubr.msk.f32.mxu1 %vm2711_vm6, %v12836_v27 }
 0x677   :  { %9529 = vmatmul.mubr.msk.f32.gmra.mrb[124].mxu0 %vm2711_vm6, %v12828_v26  ;;  %9555 = vmatmul.mubr.msk.f32.gmra.mrb[116].mxu1 %vm2711_vm6, %v12828_v26 }
 0x678   :  { %9531 = vmatprep.mubr.msk.f32.mxu0 %vm2711_vm6, %v12852_v56  ;;  %9557 = vmatprep.mubr.msk.f32.mxu1 %vm2711_vm6, %v12852_v56 }
 0x67b   :  { %9532 = vmatmul.mubr.msk.f32.gmra.mrb[126].mxu0 %vm2711_vm6, %v12844_v38  ;;  %9558 = vmatmul.mubr.msk.f32.gmra.mrb[118].mxu1 %vm2711_vm6, %v12844_v38 }
 0x67c   :  { %9534 = vmatprep.mubr.msk.f32.mxu0 %vm2711_vm6, %v12863_v36  ;;  %9560 = vmatprep.mubr.msk.f32.mxu1 %vm2711_vm6, %v12863_v36 }
 0x67f   :  { %9535 = vmatmul.mubr.msk.f32.gmra.mrb[128].mxu0 %vm2711_vm6, %v12860_v59  ;;  %9561 = vmatmul.mubr.msk.f32.gmra.mrb[120].mxu1 %vm2711_vm6, %v12860_v59 }
 0x680   :  { %9537 = vmatprep.mubr.msk.f32.mxu0 %vm2711_vm6, %v12883_v55  ;;  %9563 = vmatprep.mubr.msk.f32.mxu1 %vm2711_vm6, %v12883_v55 }
 0x683   :  { %9538 = vmatmul.mubr.msk.f32.gmra.mrb[130].mxu0 %vm2711_vm6, %v12876_v14  ;;  %9564 = vmatmul.mubr.msk.f32.gmra.mrb[122].mxu1 %vm2711_vm6, %v12876_v14 }
 0x684   :  { %9568 = vmatprep.mubr.msk.f32.mxu0 %vm2711_vm6, %v12763_v21  ;;  %9594 = vmatprep.mubr.msk.f32.mxu1 %vm2711_vm6, %v12763_v21 }
 0x687   :  { %9569 = vmatmul.mubr.msk.f32.vlgmr.msra.gmra.mrb[132].mxu0 %vm2711_vm6, %v12760_v48  ;;  %9595 = vmatmul.mubr.msk.f32.vlgmr.msra.gmra.mrb[124].mxu1 %vm2711_vm6, %v12760_v48 }
 0x688   :  { %9571 = vmatprep.mubr.msk.f32.mxu0 %vm2711_vm6, %v12783_v10  ;;  %9597 = vmatprep.mubr.msk.f32.mxu1 %vm2711_vm6, %v12783_v10 }
 0x689   :  { %9619 = vmatpush3.msra.mxu0 %v3055_v29  ;;  %9645 = vmatpush3.msra.mxu1 %v3056_v30  ;;  %v11440_v29 = vld [vmem:[#allocation5 + $0x50] sm:$0xff] }
 0x68a   :  { %9670 = vmatprep.subr.mxu0 %v3057_v50 }
 0x68b   :  { %9572 = vmatmul.mubr.msk.f32.gmra.mrb[134].mxu0 %vm2711_vm6, %v12776_v43  ;;  %9598 = vmatmul.mubr.msk.f32.gmra.mrb[126].mxu1 %vm2711_vm6, %v12776_v43 }
 0x68c   :  { %9574 = vmatprep.mubr.msk.f32.mxu0 %vm2711_vm6, %v12803_v45  ;;  %9600 = vmatprep.mubr.msk.f32.mxu1 %vm2711_vm6, %v12803_v45 }
 0x68f   :  { %9575 = vmatmul.mubr.msk.f32.gmra.mrb[136].mxu0 %vm2711_vm6, %v12796_v15  ;;  %9601 = vmatmul.mubr.msk.f32.gmra.mrb[128].mxu1 %vm2711_vm6, %v12796_v15 }
 0x690   :  { %9577 = vmatprep.mubr.msk.f32.mxu0 %vm2711_vm6, %v12820_v34  ;;  %9603 = vmatprep.mubr.msk.f32.mxu1 %vm2711_vm6, %v12820_v34 }
 0x693   :  { %9578 = vmatmul.mubr.msk.f32.gmra.mrb[138].mxu0 %vm2711_vm6, %v12816_v31  ;;  %9604 = vmatmul.mubr.msk.f32.gmra.mrb[130].mxu1 %vm2711_vm6, %v12816_v31 }
 0x694   :  { %9580 = vmatprep.mubr.msk.f32.mxu0 %vm2711_vm6, %v12836_v27  ;;  %9606 = vmatprep.mubr.msk.f32.mxu1 %vm2711_vm6, %v12836_v27 }
 0x697   :  { %9581 = vmatmul.mubr.msk.f32.gmra.mrb[140].mxu0 %vm2711_vm6, %v12828_v26  ;;  %9607 = vmatmul.mubr.msk.f32.gmra.mrb[132].mxu1 %vm2711_vm6, %v12828_v26 }
 0x698   :  { %9583 = vmatprep.mubr.msk.f32.mxu0 %vm2711_vm6, %v12852_v56  ;;  %9609 = vmatprep.mubr.msk.f32.mxu1 %vm2711_vm6, %v12852_v56 }
 0x69b   :  { %9584 = vmatmul.mubr.msk.f32.gmra.mrb[142].mxu0 %vm2711_vm6, %v12844_v38  ;;  %9610 = vmatmul.mubr.msk.f32.gmra.mrb[134].mxu1 %vm2711_vm6, %v12844_v38 }
 0x69c   :  { %9586 = vmatprep.mubr.msk.f32.mxu0 %vm2711_vm6, %v12863_v36  ;;  %9612 = vmatprep.mubr.msk.f32.mxu1 %vm2711_vm6, %v12863_v36 }
 0x69f   :  { %9587 = vmatmul.mubr.msk.f32.gmra.mrb[144].mxu0 %vm2711_vm6, %v12860_v59  ;;  %9613 = vmatmul.mubr.msk.f32.gmra.mrb[136].mxu1 %vm2711_vm6, %v12860_v59 }
 0x6a0   :  { %9589 = vmatprep.mubr.msk.f32.mxu0 %vm2711_vm6, %v12883_v55  ;;  %9615 = vmatprep.mubr.msk.f32.mxu1 %vm2711_vm6, %v12883_v55 }
 0x6a3   :  { %9590 = vmatmul.mubr.msk.f32.gmra.mrb[146].mxu0 %vm2711_vm6, %v12876_v14  ;;  %9616 = vmatmul.mubr.msk.f32.gmra.mrb[138].mxu1 %vm2711_vm6, %v12876_v14 }
 0x6a4   :  { %9620 = vmatprep.mubr.msk.f32.mxu0 %vm2711_vm6, %v12763_v21  ;;  %9646 = vmatprep.mubr.msk.f32.mxu1 %vm2711_vm6, %v12763_v21 }
 0x6a7   :  { %9621 = vmatmul.mubr.msk.f32.vlgmr.msra.gmra.mrb[148].mxu0 %vm2711_vm6, %v12760_v48  ;;  %9647 = vmatmul.mubr.msk.f32.vlgmr.msra.gmra.mrb[140].mxu1 %vm2711_vm6, %v12760_v48 }
 0x6a8   :  { %9623 = vmatprep.mubr.msk.f32.mxu0 %vm2711_vm6, %v12783_v10  ;;  %9649 = vmatprep.mubr.msk.f32.mxu1 %vm2711_vm6, %v12783_v10 }
 0x6a9   :  { %9671 = vmatpush3.msra.mxu0 %v3057_v50 }
 0x6ab   :  { %9624 = vmatmul.mubr.msk.f32.gmra.mrb[150].mxu0 %vm2711_vm6, %v12776_v43  ;;  %9650 = vmatmul.mubr.msk.f32.gmra.mrb[142].mxu1 %vm2711_vm6, %v12776_v43 }
 0x6ac   :  { %9626 = vmatprep.mubr.msk.f32.mxu0 %vm2711_vm6, %v12803_v45  ;;  %9652 = vmatprep.mubr.msk.f32.mxu1 %vm2711_vm6, %v12803_v45 }
 0x6af   :  { %9627 = vmatmul.mubr.msk.f32.gmra.mrb[152].mxu0 %vm2711_vm6, %v12796_v15  ;;  %9653 = vmatmul.mubr.msk.f32.gmra.mrb[144].mxu1 %vm2711_vm6, %v12796_v15 }
 0x6b0   :  { %9629 = vmatprep.mubr.msk.f32.mxu0 %vm2711_vm6, %v12820_v34  ;;  %9655 = vmatprep.mubr.msk.f32.mxu1 %vm2711_vm6, %v12820_v34 }
 0x6b3   :  { %9630 = vmatmul.mubr.msk.f32.gmra.mrb[154].mxu0 %vm2711_vm6, %v12816_v31  ;;  %9656 = vmatmul.mubr.msk.f32.gmra.mrb[146].mxu1 %vm2711_vm6, %v12816_v31 }
 0x6b4   :  { %9632 = vmatprep.mubr.msk.f32.mxu0 %vm2711_vm6, %v12836_v27  ;;  %9658 = vmatprep.mubr.msk.f32.mxu1 %vm2711_vm6, %v12836_v27 }
 0x6b7   :  { %9633 = vmatmul.mubr.msk.f32.gmra.mrb[156].mxu0 %vm2711_vm6, %v12828_v26  ;;  %9659 = vmatmul.mubr.msk.f32.gmra.mrb[148].mxu1 %vm2711_vm6, %v12828_v26 }
 0x6b8   :  { %9635 = vmatprep.mubr.msk.f32.mxu0 %vm2711_vm6, %v12852_v56  ;;  %9661 = vmatprep.mubr.msk.f32.mxu1 %vm2711_vm6, %v12852_v56 }
 0x6bb   :  { %9636 = vmatmul.mubr.msk.f32.gmra.mrb[158].mxu0 %vm2711_vm6, %v12844_v38  ;;  %9662 = vmatmul.mubr.msk.f32.gmra.mrb[150].mxu1 %vm2711_vm6, %v12844_v38 }
 0x6bc   :  { %9638 = vmatprep.mubr.msk.f32.mxu0 %vm2711_vm6, %v12863_v36  ;;  %9664 = vmatprep.mubr.msk.f32.mxu1 %vm2711_vm6, %v12863_v36 }
 0x6bf   :  { %9639 = vmatmul.mubr.msk.f32.gmra.mrb[160].mxu0 %vm2711_vm6, %v12860_v59  ;;  %9665 = vmatmul.mubr.msk.f32.gmra.mrb[152].mxu1 %vm2711_vm6, %v12860_v59 }
 0x6c0   :  { %9641 = vmatprep.mubr.msk.f32.mxu0 %vm2711_vm6, %v12883_v55  ;;  %9667 = vmatprep.mubr.msk.f32.mxu1 %vm2711_vm6, %v12883_v55 }
 0x6c3   :  { %9642 = vmatmul.mubr.msk.f32.gmra.mrb[162].mxu0 %vm2711_vm6, %v12876_v14  ;;  %9668 = vmatmul.mubr.msk.f32.gmra.mrb[154].mxu1 %vm2711_vm6, %v12876_v14 }
 0x6c4   :  { %9672 = vmatprep.mubr.msk.f32.mxu0 %vm2711_vm6, %v12763_v21  ;;  %4480 = vmatprep.mubr.f32.mxu1 %v11437_v44 }
 0x6c7   :  { %9673 = vmatmul.mubr.msk.f32.vlgmr.msra.gmra.mrb[164].mxu0 %vm2711_vm6, %v12760_v48  ;;  %v11438_v48 = vld [vmem:[#allocation5 + $0x18] sm:$0xff] }
 0x6c8   :  { %9675 = vmatprep.mubr.msk.f32.mxu0 %vm2711_vm6, %v12783_v10 }
 0x6cb   :  { %9676 = vmatmul.mubr.msk.f32.gmra.mrb[166].mxu0 %vm2711_vm6, %v12776_v43 }
 0x6cc   :  { %9678 = vmatprep.mubr.msk.f32.mxu0 %vm2711_vm6, %v12803_v45 }
 0x6cf   :  { %9679 = vmatmul.mubr.msk.f32.gmra.mrb[168].mxu0 %vm2711_vm6, %v12796_v15 }
 0x6d0   :  { %9681 = vmatprep.mubr.msk.f32.mxu0 %vm2711_vm6, %v12820_v34 }
 0x6d3   :  { %9682 = vmatmul.mubr.msk.f32.gmra.mrb[170].mxu0 %vm2711_vm6, %v12816_v31 }
 0x6d4   :  { %9684 = vmatprep.mubr.msk.f32.mxu0 %vm2711_vm6, %v12836_v27 }
 0x6d7   :  { %9685 = vmatmul.mubr.msk.f32.gmra.mrb[172].mxu0 %vm2711_vm6, %v12828_v26 }
 0x6d8   :  { %9687 = vmatprep.mubr.msk.f32.mxu0 %vm2711_vm6, %v12852_v56 }
 0x6db   :  { %9688 = vmatmul.mubr.msk.f32.gmra.mrb[174].mxu0 %vm2711_vm6, %v12844_v38 }
 0x6dc   :  { %9690 = vmatprep.mubr.msk.f32.mxu0 %vm2711_vm6, %v12863_v36 }
 0x6df   :  { %9691 = vmatmul.mubr.msk.f32.gmra.mrb[176].mxu0 %vm2711_vm6, %v12860_v59 }
 0x6e0   :  { %9693 = vmatprep.mubr.msk.f32.mxu0 %vm2711_vm6, %v12883_v55 }
 0x6e3   :  { %9694 = vmatmul.mubr.msk.f32.gmra.mrb[178].mxu0 %vm2711_vm6, %v12876_v14 }
 0x6e4   :  { %4625 = vmatprep.mubr.f32.mxu0 %v11438_v48 }
 0x718   :  { %v9466_v21 = vpop.f32.mrb[100].mxu0  ;;  %v9492_v61 = vpop.f32.mrb[92].mxu1 }
 0x719   :  { %v3172_v19 = vpop.f32.mrb[101].mxu0  ;;  %v3317_v25 = vpop.f32.mrb[93].mxu1 }
 0x71a   :  { %v10244_v35 = vpack.c.bf16 %v9466_v21, %v3172_v19  ;;  %v10242_v24 = vpack.c.bf16 %v9492_v61, %v3317_v25  ;;  %v11441_v21 = vld [vmem:[#allocation5 + $0x48] sm:$0xff]  ;;  %v11442_v25 = vld [vmem:[#allocation5 + $0x98] sm:$0xff] }
 0x71c   :  { %v9469_v37 = vpop.f32.mrb[102].mxu0  ;;  %v9495_v39 = vpop.f32.mrb[94].mxu1  ;;  %10243 = vmatprep.subr.bf16.mxu1 %v10242_v24 }
 0x71d   :  { %v3182_v57 = vpop.f32.mrb[103].mxu0  ;;  %v3327_v43 = vpop.f32.mrb[95].mxu1  ;;  %10245 = vmatpush3.bf16.msra.mxu1 %v10244_v35 }
 0x71e   :  { %v10248_v3 = vpack.c.bf16 %v9469_v37, %v3182_v57  ;;  %v10246_v12 = vpack.c.bf16 %v9495_v39, %v3327_v43  ;;  %v11443_v57 = vld [vmem:[#allocation5 + $0x90] sm:$0xff] }
 0x720   :  { %v9472_v10 = vpop.f32.mrb[104].mxu0  ;;  %v9498_v20 = vpop.f32.mrb[96].mxu1  ;;  %10247 = vmatprep.subr.bf16.mxu1 %v10246_v12  ;;  %v11444_v12 = vld [vmem:[#allocation5 + $0xe0] sm:$0xff] }
 0x721   :  { %v3192_v46 = vpop.f32.mrb[105].mxu0  ;;  %v3337_v23 = vpop.f32.mrb[97].mxu1  ;;  %10249 = vmatpush3.bf16.msra.mxu1 %v10248_v3 }
 0x722   :  { %v10252_v62 = vpack.c.bf16 %v9472_v10, %v3192_v46  ;;  %v10250_v6 = vpack.c.bf16 %v9498_v20, %v3337_v23 }
 0x724   :  { %10251 = vmatprep.subr.bf16.mxu1 %v10250_v6 }
 0x725   :  { %10253 = vmatpush3.bf16.msra.mxu1 %v10252_v62  ;;  %v11445_v62 = vld [vmem:[#allocation5 + $0xd8] sm:$0xff] }
 0x726   :  { %v9475_v49 = vpop.f32.mrb[106].mxu0  ;;  %v9501_v15 = vpop.f32.mrb[98].mxu1 }
 0x727   :  { %v3202_v63 = vpop.f32.mrb[107].mxu0  ;;  %v3347_v58 = vpop.f32.mrb[99].mxu1 }
 0x728   :  { %v10256_v45 = vpack.c.bf16 %v9475_v49, %v3202_v63  ;;  %v10254_v0 = vpack.c.bf16 %v9501_v15, %v3347_v58  ;;  %v11446_v15 = vld [vmem:[#allocation5 + $0x128] sm:$0xff] }
 0x72a   :  { %v9478_v54 = vpop.f32.mrb[108].mxu0  ;;  %v9504_v4 = vpop.f32.mrb[100].mxu1  ;;  %10255 = vmatprep.subr.bf16.mxu1 %v10254_v0 }
 0x72b   :  { %v3212_v16 = vpop.f32.mrb[109].mxu0  ;;  %v3357_v7 = vpop.f32.mrb[101].mxu1  ;;  %10257 = vmatpush3.bf16.msra.mxu1 %v10256_v45 }
 0x72c   :  { %v10260_v8 = vpack.c.bf16 %v9478_v54, %v3212_v16  ;;  %v10258_v2 = vpack.c.bf16 %v9504_v4, %v3357_v7  ;;  %v11447_v54 = vld [vmem:[#allocation5 + $0x120] sm:$0xff]  ;;  %v11448_v7 = vld [vmem:[#allocation5 + $0x170] sm:$0xff] }
 0x72e   :  { %v9481_v51 = vpop.f32.mrb[110].mxu0  ;;  %v9507_v31 = vpop.f32.mrb[102].mxu1  ;;  %10259 = vmatprep.subr.bf16.mxu1 %v10258_v2 }
 0x72f   :  { %v3222_v52 = vpop.f32.mrb[111].mxu0  ;;  %v3367_v32 = vpop.f32.mrb[103].mxu1  ;;  %10261 = vmatpush3.bf16.msra.mxu1 %v10260_v8 }
 0x730   :  { %v10264_v34 = vpack.c.bf16 %v9481_v51, %v3222_v52  ;;  %v10262_v47 = vpack.c.bf16 %v9507_v31, %v3367_v32  ;;  %v11449_v52 = vld [vmem:[#allocation5 + $0x168] sm:$0xff] }
 0x732   :  { %v9484_v40 = vpop.f32.mrb[112].mxu0  ;;  %v9510_v1 = vpop.f32.mrb[104].mxu1  ;;  %10263 = vmatprep.subr.bf16.mxu1 %v10262_v47  ;;  %v11450_v47 = vld [vmem:[#allocation5 + $0x1b8] sm:$0xff] }
 0x733   :  { %v3232_v9 = vpop.f32.mrb[113].mxu0  ;;  %v3377_v28 = vpop.f32.mrb[105].mxu1  ;;  %10265 = vmatpush3.bf16.msra.mxu1 %v10264_v34 }
 0x734   :  { %v10268_v26 = vpack.c.bf16 %v9484_v40, %v3232_v9  ;;  %v10266_v33 = vpack.c.bf16 %v9510_v1, %v3377_v28 }
 0x736   :  { %v9487_v27 = vpop.f32.mrb[114].mxu0  ;;  %v9513_v42 = vpop.f32.mrb[106].mxu1  ;;  %10267 = vmatprep.subr.bf16.mxu1 %v10266_v33 }
 0x737   :  { %v3242_v18 = vpop.f32.mrb[115].mxu0  ;;  %v3387_v11 = vpop.f32.mrb[107].mxu1  ;;  %10269 = vmatpush3.bf16.msra.mxu1 %v10268_v26  ;;  %v11451_v26 = vld [vmem:[#allocation5 + $0x1b0] sm:$0xff] }
 0x738   :  { %v10272_v38 = vpack.c.bf16 %v9487_v27, %v3242_v18  ;;  %v10270_v22 = vpack.c.bf16 %v9513_v42, %v3387_v11  ;;  %v11452_v42 = vld [vmem:[#allocation5 + $0x200] sm:$0xff] }
 0x73a   :  { %v9518_v41 = vpop.f32.mrb[116].mxu0  ;;  %v9544_v56 = vpop.f32.mrb[108].mxu1  ;;  %10271 = vmatprep.subr.bf16.mxu1 %v10270_v22 }
 0x73b   :  { %v3462_v53 = vpop.f32.mrb[117].mxu0  ;;  %v3607_v59 = vpop.f32.mrb[109].mxu1  ;;  %10273 = vmatpush3.bf16.msra.mxu1 %v10272_v38 }
 0x73c   :  { %v10276_v36 = vpack.c.bf16 %v9518_v41, %v3462_v53  ;;  %v10274_v60 = vpack.c.bf16 %v9544_v56, %v3607_v59  ;;  %v11453_v41 = vld [vmem:[#allocation5 + $0x1f8] sm:$0xff]  ;;  %v11454_v59 = vld [vmem:[#allocation5 + $0x248] sm:$0xff] }
 0x73e   :  { %v9521_v5 = vpop.f32.mrb[118].mxu0  ;;  %v9547_v17 = vpop.f32.mrb[110].mxu1  ;;  %4481 = vmatmul.mubr.f32.vlgmr.msra.gmra.mrb[156].mxu1 %v11439_v13  ;;  %10275 = vmatprep.subr.bf16.mxu0 %v10274_v60  ;;  %v11455_v13 = vld [vmem:[#allocation5 + $0x240] sm:$0xff] }
 0x73f   :  { %v3472_v14 = vpop.f32.mrb[119].mxu0  ;;  %v3617_v55 = vpop.f32.mrb[111].mxu1  ;;  %10277 = vmatpush3.bf16.msra.mxu0 %v10276_v36  ;;  %4485 = vmatprep.mubr.f32.mxu1 %v11440_v29 }
 0x740   :  { %v10280_v30 = vpack.c.bf16 %v9521_v5, %v3472_v14  ;;  %v10278_v50 = vpack.c.bf16 %v9547_v17, %v3617_v55  ;;  %v11456_v14 = vld [vmem:[#allocation5 + $0x10] sm:$0xff] }
 0x742   :  { %v9524_v44 = vpop.f32.mrb[120].mxu0  ;;  %v9550_v48 = vpop.f32.mrb[112].mxu1  ;;  %4486 = vmatmul.mubr.f32.gmra.mrb[158].mxu1 %v11441_v21  ;;  %10279 = vmatprep.subr.bf16.mxu0 %v10278_v50 }
 0x743   :  { %v3482_v61 = vpop.f32.mrb[121].mxu0  ;;  %v3627_v19 = vpop.f32.mrb[113].mxu1  ;;  %10281 = vmatpush3.bf16.msra.mxu0 %v10280_v30  ;;  %4490 = vmatprep.mubr.f32.mxu1 %v11442_v25  ;;  %v11457_v30 = vld [vmem:[#allocation5 + $0x290] sm:$0xff]  ;;  %v11460_v25 = vld [vmem:[#allocation5 + $0x58] sm:$0xff] }
 0x744   :  { %v10284_v35 = vpack.c.bf16 %v9524_v44, %v3482_v61  ;;  %v10282_v24 = vpack.c.bf16 %v9550_v48, %v3627_v19  ;;  %v11458_v48 = vld [vmem:[#allocation5 + $0x60] sm:$0xff]  ;;  %v11459_v19 = vld [vmem:[#allocation5 + $0x288] sm:$0xff] }
 0x746   :  { %v9527_v37 = vpop.f32.mrb[122].mxu0  ;;  %v9553_v39 = vpop.f32.mrb[114].mxu1  ;;  %4491 = vmatmul.mubr.f32.gmra.mrb[160].mxu1 %v11443_v57  ;;  %10283 = vmatprep.subr.bf16.mxu0 %v10282_v24 }
 0x747   :  { %v3492_v43 = vpop.f32.mrb[123].mxu0  ;;  %v3637_v3 = vpop.f32.mrb[115].mxu1  ;;  %10285 = vmatpush3.bf16.msra.mxu0 %v10284_v35  ;;  %4495 = vmatprep.mubr.f32.mxu1 %v11444_v12 }
 0x748   :  { %v10288_v10 = vpack.c.bf16 %v9527_v37, %v3492_v43  ;;  %v10286_v20 = vpack.c.bf16 %v9553_v39, %v3637_v3  ;;  %v11461_v37 = vld [vmem:[#allocation5 + $0x2d8] sm:$0xff]  ;;  %v11462_v43 = vld [vmem:[#allocation5 + $0xa8] sm:$0xff] }
 0x74a   :  { %v9530_v46 = vpop.f32.mrb[124].mxu0  ;;  %v9556_v23 = vpop.f32.mrb[116].mxu1  ;;  %4496 = vmatmul.mubr.f32.gmra.mrb[162].mxu1 %v11445_v62  ;;  %10287 = vmatprep.subr.bf16.mxu0 %v10286_v20  ;;  %v11464_v20 = vld [vmem:[#allocation5 + $0xa0] sm:$0xff] }
 0x74b   :  { %v3502_v6 = vpop.f32.mrb[125].mxu0  ;;  %v3647_v49 = vpop.f32.mrb[117].mxu1  ;;  %10289 = vmatpush3.bf16.msra.mxu0 %v10288_v10  ;;  %4500 = vmatprep.mubr.f32.mxu1 %v11446_v15  ;;  %v11463_v10 = vld [vmem:[#allocation5 + $0x2d0] sm:$0xff]  ;;  %v11465_v62 = vld [vmem:[#allocation5 + $0x320] sm:$0xff] }
 0x74c   :  { %v10292_v63 = vpack.c.bf16 %v9530_v46, %v3502_v6  ;;  %v10290_v58 = vpack.c.bf16 %v9556_v23, %v3647_v49  ;;  %v11466_v15 = vld [vmem:[#allocation5 + $0xf0] sm:$0xff] }
 0x74e   :  { %v9533_v45 = vpop.f32.mrb[126].mxu0  ;;  %v9559_v0 = vpop.f32.mrb[118].mxu1  ;;  %4501 = vmatmul.mubr.f32.gmra.mrb[164].mxu1 %v11447_v54  ;;  %10291 = vmatprep.subr.bf16.mxu0 %v10290_v58 }
 0x74f   :  { %v3512_v4 = vpop.f32.mrb[127].mxu0  ;;  %v3657_v16 = vpop.f32.mrb[119].mxu1  ;;  %10293 = vmatpush3.bf16.msra.mxu0 %v10292_v63  ;;  %4505 = vmatprep.mubr.f32.mxu1 %v11448_v7 }
 0x750   :  { %v10296_v8 = vpack.c.bf16 %v9533_v45, %v3512_v4  ;;  %v10294_v2 = vpack.c.bf16 %v9559_v0, %v3657_v16  ;;  %v11467_v45 = vld [vmem:[#allocation5 + $0x318] sm:$0xff]  ;;  %v11468_v0 = vld [vmem:[#allocation5 + $0xe8] sm:$0xff] }
 0x751   :  { %v11469_v16 = vld [vmem:[#allocation5 + $0x368] sm:$0xff] }
 0x752   :  { %v9536_v51 = vpop.f32.mrb[128].mxu0  ;;  %v9562_v31 = vpop.f32.mrb[120].mxu1  ;;  %4506 = vmatmul.mubr.f32.gmra.mrb[166].mxu1 %v11449_v52  ;;  %10295 = vmatprep.subr.bf16.mxu0 %v10294_v2  ;;  %v11470_v2 = vld [vmem:[#allocation5 + $0x138] sm:$0xff]  ;;  %v11471_v52 = vld [vmem:[#allocation5 + $0x360] sm:$0xff] }
 0x753   :  { %v3522_v32 = vpop.f32.mrb[129].mxu0  ;;  %v3667_v34 = vpop.f32.mrb[121].mxu1  ;;  %10297 = vmatpush3.bf16.msra.mxu0 %v10296_v8  ;;  %4510 = vmatprep.mubr.f32.mxu1 %v11450_v47 }
 0x754   :  { %v10300_v40 = vpack.c.bf16 %v9536_v51, %v3522_v32  ;;  %v10298_v1 = vpack.c.bf16 %v9562_v31, %v3667_v34  ;;  %v11472_v32 = vld [vmem:[#allocation5 + $0x130] sm:$0xff] }
 0x756   :  { %v9539_v9 = vpop.f32.mrb[130].mxu0  ;;  %v9565_v28 = vpop.f32.mrb[122].mxu1  ;;  %4511 = vmatmul.mubr.f32.gmra.mrb[168].mxu1 %v11451_v26  ;;  %10299 = vmatprep.subr.bf16.mxu0 %v10298_v1 }
 0x757   :  { %v3532_v33 = vpop.f32.mrb[131].mxu0  ;;  %v3677_v27 = vpop.f32.mrb[123].mxu1  ;;  %10301 = vmatpush3.bf16.msra.mxu0 %v10300_v40  ;;  %4515 = vmatprep.mubr.f32.mxu1 %v11452_v42  ;;  %v11473_v40 = vld [vmem:[#allocation5 + $0x3b0] sm:$0xff]  ;;  %v11476_v42 = vld [vmem:[#allocation5 + $0x178] sm:$0xff] }
 0x758   :  { %v10304_v18 = vpack.c.bf16 %v9539_v9, %v3532_v33  ;;  %v10302_v11 = vpack.c.bf16 %v9565_v28, %v3677_v27  ;;  %v11474_v28 = vld [vmem:[#allocation5 + $0x180] sm:$0xff]  ;;  %v11475_v27 = vld [vmem:[#allocation5 + $0x3a8] sm:$0xff] }
 0x75a   :  { %v9570_v38 = vpop.f32.mrb[132].mxu0  ;;  %v9596_v22 = vpop.f32.mrb[124].mxu1  ;;  %4516 = vmatmul.mubr.f32.gmra.mrb[170].mxu1 %v11453_v41  ;;  %10303 = vmatprep.subr.bf16.mxu0 %v10302_v11 }
 0x75b   :  { %v3752_v56 = vpop.f32.mrb[133].mxu0  ;;  %v3897_v53 = vpop.f32.mrb[125].mxu1  ;;  %10305 = vmatpush3.bf16.msra.mxu0 %v10304_v18  ;;  %4520 = vmatprep.mubr.f32.mxu1 %v11454_v59 }
 0x75c   :  { %v10308_v36 = vpack.c.bf16 %v9570_v38, %v3752_v56  ;;  %v10306_v60 = vpack.c.bf16 %v9596_v22, %v3897_v53  ;;  %v11477_v38 = vld [vmem:[#allocation5 + $0x3f8] sm:$0xff]  ;;  %v11478_v56 = vld [vmem:[#allocation5 + $0x1c8] sm:$0xff] }
 0x75e   :  { %v9573_v5 = vpop.f32.mrb[134].mxu0  ;;  %v9599_v17 = vpop.f32.mrb[126].mxu1  ;;  %4521 = vmatmul.mubr.f32.gmra.mrb[172].mxu1 %v11455_v13  ;;  %4626 = vmatmul.mubr.f32.vlgmr.msra.gmra.mrb[180].mxu0 %v11456_v14  ;;  %v11481_v13 = vld [vmem:[#allocation5 + $0x440] sm:$0xff] }
 0x75f   :  { %10307 = vmatprep.subr.bf16.mxu1 %v10306_v60  ;;  %v3762_v55 = vpop.f32.mrb[135].mxu0  ;;  %v3907_v29 = vpop.f32.mrb[127].mxu1  ;;  %4525 = vmatprep.mubr.f32.mxu1 %v11457_v30  ;;  %v11480_v60 = vld [vmem:[#allocation5 + $0x1c0] sm:$0xff] }
 0x760   :  { %v10312_v50 = vpack.c.bf16 %v9573_v5, %v3762_v55  ;;  %v10310_v44 = vpack.c.bf16 %v9599_v17, %v3907_v29  ;;  %10309 = vmatpush3.bf16.msra.mxu1 %v10308_v36  ;;  %4630 = vmatprep.mubr.f32.mxu0 %v11458_v48  ;;  %v11479_v36 = vld [vmem:[#allocation5 + $0x3f0] sm:$0xff]  ;;  %v11484_v48 = vld [vmem:[#allocation5 + $0x208] sm:$0xff] }
 0x761   :  { %v11482_v29 = vld [vmem:[#allocation5 + $0x210] sm:$0xff] }
 0x762   :  { %v9576_v21 = vpop.f32.mrb[136].mxu0  ;;  %v9602_v61 = vpop.f32.mrb[128].mxu1  ;;  %4526 = vmatmul.mubr.f32.gmra.mrb[174].mxu1 %v11459_v19  ;;  %4631 = vmatmul.mubr.f32.gmra.mrb[182].mxu0 %v11460_v25  ;;  %v11485_v19 = vld [vmem:[#allocation5 + $0x258] sm:$0xff] }
 0x763   :  { %10311 = vmatprep.subr.bf16.mxu1 %v10310_v44  ;;  %v3772_v35 = vpop.f32.mrb[137].mxu0  ;;  %v3917_v24 = vpop.f32.mrb[129].mxu1  ;;  %4530 = vmatprep.mubr.f32.mxu1 %v11461_v37  ;;  %v11483_v44 = vld [vmem:[#allocation5 + $0x438] sm:$0xff] }
 0x764   :  { %v10316_v39 = vpack.c.bf16 %v9576_v21, %v3772_v35  ;;  %v10314_v57 = vpack.c.bf16 %v9602_v61, %v3917_v24  ;;  %10313 = vmatpush3.bf16.msra.mxu1 %v10312_v50  ;;  %4635 = vmatprep.mubr.f32.mxu0 %v11462_v43  ;;  %v11486_v24 = vld [vmem:[#allocation5 + $0x28] sm:$0xff]  ;;  %v11488_v43 = vld [vmem:[#allocation5 + $0x20] sm:$0xff] }
 0x766   :  { %v9579_v3 = vpop.f32.mrb[138].mxu0  ;;  %v9605_v12 = vpop.f32.mrb[130].mxu1  ;;  %4531 = vmatmul.mubr.f32.gmra.mrb[176].mxu1 %v11463_v10  ;;  %4636 = vmatmul.mubr.f32.gmra.mrb[184].mxu0 %v11464_v20 }
 0x767   :  { %10315 = vmatprep.subr.bf16.mxu1 %v10314_v57  ;;  %v3782_v46 = vpop.f32.mrb[139].mxu0  ;;  %v3927_v23 = vpop.f32.mrb[131].mxu1  ;;  %4535 = vmatprep.mubr.f32.mxu1 %v11465_v62  ;;  %v11487_v57 = vld [vmem:[#allocation5 + $0x250] sm:$0xff] }
 0x768   :  { %v10320_v6 = vpack.c.bf16 %v9579_v3, %v3782_v46  ;;  %v10318_v49 = vpack.c.bf16 %v9605_v12, %v3927_v23  ;;  %10317 = vmatpush3.bf16.msra.mxu1 %v10316_v39  ;;  %4640 = vmatprep.mubr.f32.mxu0 %v11466_v15  ;;  %v11489_v46 = vld [vmem:[#allocation5 + $0x2a0] sm:$0xff]  ;;  %v11490_v23 = vld [vmem:[#allocation5 + $0x70] sm:$0xff]  ;;  %v11492_v15 = vld [vmem:[#allocation5 + $0x68] sm:$0xff] }
 0x76a   :  { %v9582_v63 = vpop.f32.mrb[140].mxu0  ;;  %v9608_v58 = vpop.f32.mrb[132].mxu1  ;;  %4536 = vmatmul.mubr.f32.gmra.mrb[178].mxu1 %v11467_v45  ;;  %4641 = vmatmul.mubr.f32.gmra.mrb[186].mxu0 %v11468_v0 }
 0x76b   :  { %10319 = vmatprep.subr.bf16.mxu1 %v10318_v49  ;;  %v3792_v54 = vpop.f32.mrb[141].mxu0  ;;  %v3937_v4 = vpop.f32.mrb[133].mxu1  ;;  %4540 = vmatprep.mubr.f32.mxu1 %v11469_v16  ;;  %v11491_v49 = vld [vmem:[#allocation5 + $0x298] sm:$0xff] }
 0x76c   :  { %v10324_v7 = vpack.c.bf16 %v9582_v63, %v3792_v54  ;;  %v10322_v8 = vpack.c.bf16 %v9608_v58, %v3937_v4  ;;  %10321 = vmatpush3.bf16.msra.mxu1 %v10320_v6  ;;  %4645 = vmatprep.mubr.f32.mxu0 %v11470_v2  ;;  %v11493_v54 = vld [vmem:[#allocation5 + $0x2e8] sm:$0xff]  ;;  %v11494_v4 = vld [vmem:[#allocation5 + $0xb8] sm:$0xff]  ;;  %v11496_v2 = vld [vmem:[#allocation5 + $0xb0] sm:$0xff] }
 0x76e   :  { %v9585_v51 = vpop.f32.mrb[142].mxu0  ;;  %v9611_v31 = vpop.f32.mrb[134].mxu1  ;;  %4541 = vmatmul.mubr.f32.gmra.mrb[180].mxu1 %v11471_v52  ;;  %4646 = vmatmul.mubr.f32.gmra.mrb[188].mxu0 %v11472_v32 }
 0x76f   :  { %10323 = vmatprep.subr.bf16.mxu1 %v10322_v8  ;;  %v3802_v34 = vpop.f32.mrb[143].mxu0  ;;  %v3947_v47 = vpop.f32.mrb[135].mxu1  ;;  %4545 = vmatprep.mubr.f32.mxu1 %v11473_v40  ;;  %v11495_v8 = vld [vmem:[#allocation5 + $0x2e0] sm:$0xff] }
 0x770   :  { %v10328_v1 = vpack.c.bf16 %v9585_v51, %v3802_v34  ;;  %v10326_v9 = vpack.c.bf16 %v9611_v31, %v3947_v47  ;;  %10325 = vmatpush3.bf16.msra.mxu1 %v10324_v7  ;;  %4650 = vmatprep.mubr.f32.mxu0 %v11474_v28  ;;  %v11497_v34 = vld [vmem:[#allocation5 + $0x330] sm:$0xff]  ;;  %v11498_v47 = vld [vmem:[#allocation5 + $0x100] sm:$0xff]  ;;  %v11500_v28 = vld [vmem:[#allocation5 + $0xf8] sm:$0xff] }
 0x772   :  { %v9588_v26 = vpop.f32.mrb[144].mxu0  ;;  %v9614_v33 = vpop.f32.mrb[136].mxu1  ;;  %4546 = vmatmul.mubr.f32.gmra.mrb[182].mxu1 %v11475_v27  ;;  %4651 = vmatmul.mubr.f32.gmra.mrb[190].mxu0 %v11476_v42 }
 0x773   :  { %10327 = vmatprep.subr.bf16.mxu1 %v10326_v9  ;;  %v3812_v18 = vpop.f32.mrb[145].mxu0  ;;  %v3957_v11 = vpop.f32.mrb[137].mxu1  ;;  %4550 = vmatprep.mubr.f32.mxu1 %v11477_v38  ;;  %v11499_v9 = vld [vmem:[#allocation5 + $0x328] sm:$0xff] }
 0x774   :  { %v10332_v22 = vpack.c.bf16 %v9588_v26, %v3812_v18  ;;  %v10330_v41 = vpack.c.bf16 %v9614_v33, %v3957_v11  ;;  %10329 = vmatpush3.bf16.msra.mxu1 %v10328_v1  ;;  %4655 = vmatprep.mubr.f32.mxu0 %v11478_v56  ;;  %v11501_v18 = vld [vmem:[#allocation5 + $0x378] sm:$0xff]  ;;  %v11502_v11 = vld [vmem:[#allocation5 + $0x148] sm:$0xff]  ;;  %v11504_v56 = vld [vmem:[#allocation5 + $0x140] sm:$0xff] }
 0x776   :  { %v9591_v53 = vpop.f32.mrb[146].mxu0  ;;  %v9617_v59 = vpop.f32.mrb[138].mxu1  ;;  %4551 = vmatmul.mubr.f32.gmra.mrb[184].mxu1 %v11479_v36  ;;  %4656 = vmatmul.mubr.f32.gmra.mrb[192].mxu0 %v11480_v60 }
 0x777   :  { %10331 = vmatprep.subr.bf16.mxu1 %v10330_v41  ;;  %v3822_v5 = vpop.f32.mrb[147].mxu0  ;;  %v3967_v17 = vpop.f32.mrb[139].mxu1  ;;  %4555 = vmatprep.mubr.f32.mxu1 %v11481_v13  ;;  %v11503_v41 = vld [vmem:[#allocation5 + $0x370] sm:$0xff] }
 0x778   :  { %v10336_v14 = vpack.c.bf16 %v9591_v53, %v3822_v5  ;;  %v10334_v55 = vpack.c.bf16 %v9617_v59, %v3967_v17  ;;  %10333 = vmatpush3.bf16.msra.mxu1 %v10332_v22  ;;  %4660 = vmatprep.mubr.f32.mxu0 %v11482_v29  ;;  %v11505_v5 = vld [vmem:[#allocation5 + $0x3c0] sm:$0xff]  ;;  %v11506_v17 = vld [vmem:[#allocation5 + $0x190] sm:$0xff]  ;;  %v11508_v29 = vld [vmem:[#allocation5 + $0x188] sm:$0xff] }
 0x77a   :  { %v9622_v30 = vpop.f32.mrb[148].mxu0  ;;  %v9648_v50 = vpop.f32.mrb[140].mxu1  ;;  %4556 = vmatmul.mubr.f32.gmra.mrb[186].mxu1 %v11483_v44  ;;  %4661 = vmatmul.mubr.f32.gmra.mrb[194].mxu0 %v11484_v48 }
 0x77b   :  { %10335 = vmatprep.subr.bf16.mxu1 %v10334_v55  ;;  %v4042_v21 = vpop.f32.mrb[149].mxu0  ;;  %v4187_v61 = vpop.f32.mrb[141].mxu1  ;;  %4665 = vmatprep.mubr.f32.mxu0 %v11485_v19  ;;  %v11507_v55 = vld [vmem:[#allocation5 + $0x3b8] sm:$0xff] }
 0x77c   :  { %v10340_v25 = vpack.c.bf16 %v9622_v30, %v4042_v21  ;;  %v10338_v35 = vpack.c.bf16 %v9648_v50, %v4187_v61  ;;  %10337 = vmatpush3.bf16.msra.mxu1 %v10336_v14  ;;  %4770 = vmatprep.mubr.f32.mxu1 %v11486_v24  ;;  %v11509_v21 = vld [vmem:[#allocation5 + $0x408] sm:$0xff]  ;;  %v11510_v61 = vld [vmem:[#allocation5 + $0x1d8] sm:$0xff]  ;;  %v11512_v24 = vld [vmem:[#allocation5 + $0x1d0] sm:$0xff] }
 0x77e   :  { %v9625_v37 = vpop.f32.mrb[150].mxu0  ;;  %v9651_v39 = vpop.f32.mrb[142].mxu1  ;;  %4666 = vmatmul.mubr.f32.gmra.mrb[196].mxu0 %v11487_v57  ;;  %10339 = vmatprep.subr.bf16.mxu0 %v10338_v35  ;;  %v11511_v35 = vld [vmem:[#allocation5 + $0x400] sm:$0xff] }
 0x77f   :  { %4771 = vmatmul.mubr.f32.vlgmr.msra.gmra.mrb[188].mxu1 %v11488_v43  ;;  %v4052_v3 = vpop.f32.mrb[151].mxu0  ;;  %v4197_v12 = vpop.f32.mrb[143].mxu1  ;;  %10341 = vmatpush3.bf16.msra.mxu0 %v10340_v25 }
 0x780   :  { %v10344_v10 = vpack.c.bf16 %v9625_v37, %v4052_v3  ;;  %v10342_v20 = vpack.c.bf16 %v9651_v39, %v4197_v12  ;;  %4670 = vmatprep.mubr.f32.mxu0 %v11489_v46  ;;  %4775 = vmatprep.mubr.f32.mxu1 %v11490_v23  ;;  %v11513_v3 = vld [vmem:[#allocation5 + $0x450] sm:$0xff]  ;;  %v11514_v12 = vld [vmem:[#allocation5 + $0x220] sm:$0xff]  ;;  %v11516_v46 = vld [vmem:[#allocation5 + $0x218] sm:$0xff] }
 0x782   :  { %v9628_v62 = vpop.f32.mrb[152].mxu0  ;;  %v9654_v6 = vpop.f32.mrb[144].mxu1  ;;  %4671 = vmatmul.mubr.f32.gmra.mrb[198].mxu0 %v11491_v49  ;;  %10343 = vmatprep.subr.bf16.mxu0 %v10342_v20  ;;  %v11515_v20 = vld [vmem:[#allocation5 + $0x448] sm:$0xff]  ;;  %v11518_v49 = vld [vmem:[#allocation5 + $0x38] sm:$0xff] }
 0x783   :  { %4776 = vmatmul.mubr.f32.gmra.mrb[190].mxu1 %v11492_v15  ;;  %v4062_v63 = vpop.f32.mrb[153].mxu0  ;;  %v4207_v58 = vpop.f32.mrb[145].mxu1  ;;  %10345 = vmatpush3.bf16.msra.mxu0 %v10344_v10 }
 0x784   :  { %v10348_v45 = vpack.c.bf16 %v9628_v62, %v4062_v63  ;;  %v10346_v0 = vpack.c.bf16 %v9654_v6, %v4207_v58  ;;  %4675 = vmatprep.mubr.f32.mxu0 %v11493_v54  ;;  %4780 = vmatprep.mubr.f32.mxu1 %v11494_v4  ;;  %v11517_v6 = vld [vmem:[#allocation5 + $0x268] sm:$0xff]  ;;  %v11519_v63 = vld [vmem:[#allocation5 + $0x30] sm:$0xff]  ;;  %v11520_v58 = vld [vmem:[#allocation5 + $0x260] sm:$0xff] }
 0x785   :  { %v11522_v4 = vld [vmem:[#allocation5 + $0x2b0] sm:$0xff] }
 0x786   :  { %v9631_v16 = vpop.f32.mrb[154].mxu0  ;;  %v9657_v7 = vpop.f32.mrb[146].mxu1  ;;  %4676 = vmatmul.mubr.f32.gmra.mrb[200].mxu0 %v11495_v8  ;;  %10347 = vmatprep.subr.bf16.mxu0 %v10346_v0  ;;  %v11521_v0 = vld [vmem:[#allocation5 + $0x80] sm:$0xff]  ;;  %v11524_v8 = vld [vmem:[#allocation5 + $0x2a8] sm:$0xff] }
 0x787   :  { %4781 = vmatmul.mubr.f32.gmra.mrb[192].mxu1 %v11496_v2  ;;  %v4072_v51 = vpop.f32.mrb[155].mxu0  ;;  %v4217_v31 = vpop.f32.mrb[147].mxu1  ;;  %10349 = vmatpush3.bf16.msra.mxu0 %v10348_v45 }
 0x788   :  { %v10352_v52 = vpack.c.bf16 %v9631_v16, %v4072_v51  ;;  %v10350_v32 = vpack.c.bf16 %v9657_v7, %v4217_v31  ;;  %4680 = vmatprep.mubr.f32.mxu0 %v11497_v34  ;;  %4785 = vmatprep.mubr.f32.mxu1 %v11498_v47  ;;  %v11523_v7 = vld [vmem:[#allocation5 + $0x78] sm:$0xff]  ;;  %v11525_v51 = vld [vmem:[#allocation5 + $0xc8] sm:$0xff]  ;;  %v11527_v34 = vld [vmem:[#allocation5 + $0xc0] sm:$0xff] }
 0x789   :  { %v11528_v47 = vld [vmem:[#allocation5 + $0x2f0] sm:$0xff] }
 0x78a   :  { %v9634_v40 = vpop.f32.mrb[156].mxu0  ;;  %v9660_v1 = vpop.f32.mrb[148].mxu1  ;;  %4681 = vmatmul.mubr.f32.gmra.mrb[202].mxu0 %v11499_v9  ;;  %10351 = vmatprep.subr.bf16.mxu0 %v10350_v32 }
 0x78b   :  { %4786 = vmatmul.mubr.f32.gmra.mrb[194].mxu1 %v11500_v28  ;;  %v4082_v26 = vpop.f32.mrb[157].mxu0  ;;  %v4227_v33 = vpop.f32.mrb[149].mxu1  ;;  %10353 = vmatpush3.bf16.msra.mxu0 %v10352_v52  ;;  %v11526_v52 = vld [vmem:[#allocation5 + $0x2f8] sm:$0xff]  ;;  %v11530_v28 = vld [vmem:[#allocation5 + $0x340] sm:$0xff] }
 0x78c   :  { %v10356_v27 = vpack.c.bf16 %v9634_v40, %v4082_v26  ;;  %v10354_v42 = vpack.c.bf16 %v9660_v1, %v4227_v33  ;;  %4685 = vmatprep.mubr.f32.mxu0 %v11501_v18  ;;  %4790 = vmatprep.mubr.f32.mxu1 %v11502_v11  ;;  %v11529_v1 = vld [vmem:[#allocation5 + $0x110] sm:$0xff]  ;;  %v11531_v33 = vld [vmem:[#allocation5 + $0x108] sm:$0xff]  ;;  %v11533_v18 = vld [vmem:[#allocation5 + $0x158] sm:$0xff] }
 0x78e   :  { %v9637_v38 = vpop.f32.mrb[158].mxu0  ;;  %v9663_v22 = vpop.f32.mrb[150].mxu1  ;;  %4686 = vmatmul.mubr.f32.gmra.mrb[204].mxu0 %v11503_v41  ;;  %10355 = vmatprep.subr.bf16.mxu0 %v10354_v42  ;;  %v11535_v41 = vld [vmem:[#allocation5 + $0x150] sm:$0xff] }
 0x78f   :  { %4791 = vmatmul.mubr.f32.gmra.mrb[196].mxu1 %v11504_v56  ;;  %v4092_v53 = vpop.f32.mrb[159].mxu0  ;;  %v4237_v59 = vpop.f32.mrb[151].mxu1  ;;  %10357 = vmatpush3.bf16.msra.mxu0 %v10356_v27  ;;  %v11532_v27 = vld [vmem:[#allocation5 + $0x338] sm:$0xff]  ;;  %v11536_v56 = vld [vmem:[#allocation5 + $0x380] sm:$0xff] }
 0x790   :  { %v10360_v36 = vpack.c.bf16 %v9637_v38, %v4092_v53  ;;  %v10358_v60 = vpack.c.bf16 %v9663_v22, %v4237_v59  ;;  %4690 = vmatprep.mubr.f32.mxu0 %v11505_v5  ;;  %4795 = vmatprep.mubr.f32.mxu1 %v11506_v17  ;;  %v11534_v38 = vld [vmem:[#allocation5 + $0x388] sm:$0xff]  ;;  %v11537_v59 = vld [vmem:[#allocation5 + $0x1a0] sm:$0xff]  ;;  %v11539_v17 = vld [vmem:[#allocation5 + $0x198] sm:$0xff] }
 0x792   :  { %v9640_v13 = vpop.f32.mrb[160].mxu0  ;;  %v9666_v14 = vpop.f32.mrb[152].mxu1  ;;  %4691 = vmatmul.mubr.f32.gmra.mrb[206].mxu0 %v11507_v55  ;;  %10359 = vmatprep.subr.bf16.mxu0 %v10358_v60  ;;  %v11538_v60 = vld [vmem:[#allocation5 + $0x3d0] sm:$0xff]  ;;  %v11541_v55 = vld [vmem:[#allocation5 + $0x1e8] sm:$0xff] }
 0x793   :  { %4796 = vmatmul.mubr.f32.gmra.mrb[198].mxu1 %v11508_v29  ;;  %v4102_v30 = vpop.f32.mrb[161].mxu0  ;;  %v4247_v50 = vpop.f32.mrb[153].mxu1  ;;  %10361 = vmatpush3.bf16.msra.mxu0 %v10360_v36 }
 0x794   :  { %v10364_v44 = vpack.c.bf16 %v9640_v13, %v4102_v30  ;;  %v10362_v48 = vpack.c.bf16 %v9666_v14, %v4247_v50  ;;  %4695 = vmatprep.mubr.f32.mxu0 %v11509_v21  ;;  %4800 = vmatprep.mubr.f32.mxu1 %v11510_v61  ;;  %v11540_v13 = vld [vmem:[#allocation5 + $0x3c8] sm:$0xff]  ;;  %v11542_v30 = vld [vmem:[#allocation5 + $0x418] sm:$0xff]  ;;  %v11545_v61 = vld [vmem:[#allocation5 + $0x230] sm:$0xff] }
 0x796   :  { %v9643_v19 = vpop.f32.mrb[162].mxu0  ;;  %v9669_v25 = vpop.f32.mrb[154].mxu1  ;;  %4696 = vmatmul.mubr.f32.gmra.mrb[208].mxu0 %v11511_v35  ;;  %10363 = vmatprep.subr.bf16.mxu0 %v10362_v48  ;;  %v11544_v48 = vld [vmem:[#allocation5 + $0x410] sm:$0xff]  ;;  %v11547_v35 = vld [vmem:[#allocation5 + $0x228] sm:$0xff] }
 0x797   :  { %4801 = vmatmul.mubr.f32.gmra.mrb[200].mxu1 %v11512_v24  ;;  %v4112_v37 = vpop.f32.mrb[163].mxu0  ;;  %v4257_v39 = vpop.f32.mrb[155].mxu1  ;;  %10365 = vmatpush3.bf16.msra.mxu0 %v10364_v44  ;;  %v11543_v44 = vld [vmem:[#allocation5 + $0x1e0] sm:$0xff]  ;;  %v11548_v24 = vld [vmem:[#allocation5 + $0x458] sm:$0xff] }
 0x798   :  { %v10368_v57 = vpack.c.bf16 %v9643_v19, %v4112_v37  ;;  %v10366_v43 = vpack.c.bf16 %v9669_v25, %v4257_v39  ;;  %4700 = vmatprep.mubr.f32.mxu0 %v11513_v3  ;;  %4805 = vmatprep.mubr.f32.mxu1 %v11514_v12  ;;  %v11546_v25 = vld [vmem:[#allocation5 + $0x460] sm:$0xff]  ;;  %v11549_v37 = vld [vmem:[#allocation5 + $0x278] sm:$0xff]  ;;  %v11554_v12 = vld [vmem:[#allocation5 + $0xd0] sm:$0xff] }
 0x799   :  { %v11550_v39 = vld [vmem:[#allocation5 + $0x40] sm:$0xff] }
 0x79a   :  { %v9674_v10 = vpop.f32.mrb[164].mxu0  ;;  %4701 = vmatmul.mubr.f32.gmra.mrb[210].mxu0 %v11515_v20  ;;  %10367 = vmatprep.subr.bf16.mxu0 %v10366_v43  ;;  %v11552_v43 = vld [vmem:[#allocation5 + $0x88] sm:$0xff]  ;;  %v11553_v3 = vld [vmem:[#allocation5 + $0x2c0] sm:$0xff]  ;;  %v11556_v20 = vld [vmem:[#allocation5 + $0x118] sm:$0xff] }
 0x79b   :  { %4806 = vmatmul.mubr.f32.gmra.mrb[202].mxu1 %v11516_v46  ;;  %v4332_v23 = vpop.f32.mrb[165].mxu0  ;;  %10369 = vmatpush3.bf16.msra.mxu0 %v10368_v57  ;;  %v11551_v57 = vld [vmem:[#allocation5 + $0x270] sm:$0xff]  ;;  %v11557_v46 = vld [vmem:[#allocation5 + $0x308] sm:$0xff] }
 0x79c   :  { %v10370_v62 = vpack.c.bf16 %v9674_v10, %v4332_v23  ;;  %4810 = vmatprep.mubr.f32.mxu1 %v11517_v6  ;;  %4915 = vmatprep.mubr.f32.mxu0 %v11518_v49  ;;  %v11555_v10 = vld [vmem:[#allocation5 + $0x2b8] sm:$0xff]  ;;  %v11558_v23 = vld [vmem:[#allocation5 + $0x160] sm:$0xff]  ;;  %v11560_v6 = vld [vmem:[#allocation5 + $0x1a8] sm:$0xff] }
 0x79d   :  { %v11561_v49 = vld [vmem:[#allocation5 + $0x350] sm:$0xff] }
 0x79e   :  { %v9677_v15 = vpop.f32.mrb[166].mxu0  ;;  %4916 = vmatmul.mubr.f32.vlgmr.msra.gmra.mrb[212].mxu0 %v11519_v63  ;;  %10371 = vmatprep.subr.bf16.mxu1 %v10370_v62  ;;  %v11563_v63 = vld [vmem:[#allocation5 + $0x348] sm:$0xff] }
 0x79f   :  { %4811 = vmatmul.mubr.f32.gmra.mrb[204].mxu1 %v11520_v58  ;;  %v4342_v45 = vpop.f32.mrb[167].mxu0  ;;  %4920 = vmatprep.mubr.f32.mxu0 %v11521_v0  ;;  %v11564_v58 = vld [vmem:[#allocation5 + $0x238] sm:$0xff]  ;;  %v11566_v0 = vld [vmem:[#allocation5 + $0x280] sm:$0xff] }
 0x7a0   :  { %v10374_v54 = vpack.c.bf16 %v9677_v15, %v4342_v45  ;;  %10373 = vmatpush3.bf16.msra.mxu1 %v10370_v62  ;;  %4815 = vmatprep.mubr.f32.mxu1 %v11522_v4  ;;  %v11559_v62 = vld [vmem:[#allocation5 + $0x300] sm:$0xff]  ;;  %v11562_v15 = vld [vmem:[#allocation5 + $0x1f0] sm:$0xff]  ;;  %v11565_v45 = vld [vmem:[#allocation5 + $0x398] sm:$0xff] }
 0x7a1   :  { %v11568_v4 = vld [vmem:[#allocation5 + $0x2c8] sm:$0xff] }
 0x7a2   :  { %v9680_v16 = vpop.f32.mrb[168].mxu0  ;;  %4921 = vmatmul.mubr.f32.gmra.mrb[214].mxu0 %v11523_v7  ;;  %10375 = vmatprep.subr.bf16.mxu1 %v10374_v54  ;;  %v11570_v7 = vld [vmem:[#allocation5 + $0x310] sm:$0xff] }
 0x7a3   :  { %4816 = vmatmul.mubr.f32.gmra.mrb[206].mxu1 %v11524_v8  ;;  %v4352_v2 = vpop.f32.mrb[169].mxu0  ;;  %4925 = vmatprep.mubr.f32.mxu0 %v11525_v51  ;;  %v11571_v8 = vld [vmem:[#allocation5 + $0x3d8] sm:$0xff]  ;;  %v11573_v51 = vld [vmem:[#allocation5 + $0x428] sm:$0xff] }
 0x7a4   :  { %v10378_v31 = vpack.c.bf16 %v9680_v16, %v4352_v2  ;;  %10377 = vmatpush3.bf16.msra.mxu1 %v10374_v54  ;;  %4820 = vmatprep.mubr.f32.mxu1 %v11526_v52  ;;  %v11567_v54 = vld [vmem:[#allocation5 + $0x390] sm:$0xff]  ;;  %v11569_v16 = vld [vmem:[#allocation5 + $0x3e0] sm:$0xff]  ;;  %v11572_v2 = vld [vmem:[#allocation5 + $0x358] sm:$0xff] }
 0x7a5   :  { %v11575_v52 = vld [vmem:[#allocation5 + $0x420] sm:$0xff] }
 0x7a6   :  { %v9683_v32 = vpop.f32.mrb[170].mxu0  ;;  %4926 = vmatmul.mubr.f32.gmra.mrb[216].mxu0 %v11527_v34  ;;  %10379 = vmatprep.subr.bf16.mxu1 %v10378_v31  ;;  %v11577_v34 = vld [vmem:[#allocation5 + $0x470] sm:$0xff] }
 0x7a7   :  { %4821 = vmatmul.mubr.f32.gmra.mrb[208].mxu1 %v11528_v47  ;;  %v4362_v40 = vpop.f32.mrb[171].mxu0  ;;  %4930 = vmatprep.mubr.f32.mxu0 %v11529_v1  ;;  %v11578_v47 = vld [vmem:[#allocation5 + $0x430] sm:$0xff]  ;;  %v11580_v1 = vld [vmem:[#allocation5 + $0x478] sm:$0xff] }
 0x7a8   :  { %v10382_v9 = vpack.c.bf16 %v9683_v32, %v4362_v40  ;;  %10381 = vmatpush3.bf16.msra.mxu1 %v10378_v31  ;;  %4825 = vmatprep.mubr.f32.mxu1 %v11530_v28  ;;  %v11574_v31 = vld [vmem:[#allocation5 + $0x3a0] sm:$0xff]  ;;  %v11576_v32 = vld [vmem:[#allocation5 + $0x3e8] sm:$0xff] }
 0x7a9   :  { %v11579_v40 = vld [vmem:[#allocation5 + $0x468] sm:$0xff] }
 0x7aa   :  { %v9686_v26 = vpop.f32.mrb[172].mxu0  ;;  %4931 = vmatmul.mubr.f32.gmra.mrb[218].mxu0 %v11531_v33  ;;  %10383 = vmatprep.subr.bf16.mxu1 %v10382_v9 }
 0x7ab   :  { %4826 = vmatmul.mubr.f32.gmra.mrb[210].mxu1 %v11532_v27  ;;  %v4372_v42 = vpop.f32.mrb[173].mxu0  ;;  %4935 = vmatprep.mubr.f32.mxu0 %v11533_v18 }
 0x7ac   :  { %v10386_v11 = vpack.c.bf16 %v9686_v26, %v4372_v42  ;;  %10385 = vmatpush3.bf16.msra.mxu1 %v10382_v9  ;;  %4830 = vmatprep.mubr.f32.mxu1 %v11534_v38 }
 0x7ae   :  { %v9689_v22 = vpop.f32.mrb[174].mxu0  ;;  %4936 = vmatmul.mubr.f32.gmra.mrb[220].mxu0 %v11535_v41  ;;  %10387 = vmatprep.subr.bf16.mxu1 %v10386_v11 }
 0x7af   :  { %4831 = vmatmul.mubr.f32.gmra.mrb[212].mxu1 %v11536_v56  ;;  %v4382_v53 = vpop.f32.mrb[175].mxu0  ;;  %4940 = vmatprep.mubr.f32.mxu0 %v11537_v59 }
 0x7b0   :  { %v10390_v36 = vpack.c.bf16 %v9689_v22, %v4382_v53  ;;  %10389 = vmatpush3.bf16.msra.mxu1 %v10386_v11  ;;  %4835 = vmatprep.mubr.f32.mxu1 %v11538_v60 }
 0x7b2   :  { %v9692_v5 = vpop.f32.mrb[176].mxu0  ;;  %4941 = vmatmul.mubr.f32.gmra.mrb[222].mxu0 %v11539_v17  ;;  %10391 = vmatprep.subr.bf16.mxu1 %v10390_v36 }
 0x7b3   :  { %4836 = vmatmul.mubr.f32.gmra.mrb[214].mxu1 %v11540_v13  ;;  %v4392_v14 = vpop.f32.mrb[177].mxu0  ;;  %4945 = vmatprep.mubr.f32.mxu0 %v11541_v55 }
 0x7b4   :  { %v10394_v29 = vpack.c.bf16 %v9692_v5, %v4392_v14  ;;  %10393 = vmatpush3.bf16.msra.mxu1 %v10390_v36  ;;  %4840 = vmatprep.mubr.f32.mxu1 %v11542_v30 }
 0x7b6   :  { %v9695_v50 = vpop.f32.mrb[178].mxu0  ;;  %4946 = vmatmul.mubr.f32.gmra.mrb[224].mxu0 %v11543_v44  ;;  %10395 = vmatprep.subr.bf16.mxu1 %v10394_v29  ;;  %v13121_v44 = vld [vmem:[#allocation7 + $0xd8] ss:$0 sm:$0xff] }
 0x7b7   :  { %4841 = vmatmul.mubr.f32.gmra.mrb[216].mxu1 %v11544_v48  ;;  %v4402_v21 = vpop.f32.mrb[179].mxu0  ;;  %4950 = vmatprep.mubr.f32.mxu0 %v11545_v61 }
 0x7b8   :  { %v10398_v19 = vpack.c.bf16 %v9695_v50, %v4402_v21  ;;  %10397 = vmatpush3.bf16.msra.mxu1 %v10394_v29  ;;  %4845 = vmatprep.mubr.f32.mxu1 %v11546_v25  ;;  %v5253_v25 = vld [vmem:[#allocation7 + $0xe0] sm:$0xff] }
 0x7b9   :  { %9752 = vmatprep.subr.mxu0 %v5253_v25 }
 0x7ba   :  { %4951 = vmatmul.mubr.f32.gmra.mrb[226].mxu0 %v11547_v35  ;;  %10399 = vmatprep.subr.bf16.mxu1 %v10398_v19 }
 0x7bb   :  { %4846 = vmatmul.mubr.f32.gmra.mrb[218].mxu1 %v11548_v24  ;;  %4955 = vmatprep.mubr.f32.mxu0 %v11549_v37 }
 0x7bc   :  { %10401 = vmatpush3.bf16.msra.mxu1 %v10398_v19  ;;  %9728 = vmatprep.mubr.f32.mxu1 %v11550_v39 }
 0x7bd   :  { %9753 = vmatpush3.msra.mxu0 %v5253_v25 }
 0x7be   :  { %4956 = vmatmul.mubr.f32.gmra.mrb[228].mxu0 %v11551_v57 }
 0x7bf   :  { %9729 = vmatmul.mubr.f32.vlgmr.msra.gmra.mrb[220].mxu1 %v11552_v43  ;;  %4960 = vmatprep.mubr.f32.mxu0 %v11553_v3 }
 0x7c0   :  { %9731 = vmatprep.mubr.f32.mxu1 %v11554_v12 }
 0x7c2   :  { %4961 = vmatmul.mubr.f32.gmra.mrb[230].mxu0 %v11555_v10 }
 0x7c3   :  { %9732 = vmatmul.mubr.f32.gmra.mrb[222].mxu1 %v11556_v20  ;;  %4965 = vmatprep.mubr.f32.mxu0 %v11557_v46 }
 0x7c4   :  { %9734 = vmatprep.mubr.f32.mxu1 %v11558_v23 }
 0x7c6   :  { %4966 = vmatmul.mubr.f32.gmra.mrb[232].mxu0 %v11559_v62 }
 0x7c7   :  { %9735 = vmatmul.mubr.f32.gmra.mrb[224].mxu1 %v11560_v6  ;;  %4970 = vmatprep.mubr.f32.mxu0 %v11561_v49 }
 0x7c8   :  { %9737 = vmatprep.mubr.f32.mxu1 %v11562_v15 }
 0x7ca   :  { %4971 = vmatmul.mubr.f32.gmra.mrb[234].mxu0 %v11563_v63 }
 0x7cb   :  { %9738 = vmatmul.mubr.f32.gmra.mrb[226].mxu1 %v11564_v58  ;;  %4975 = vmatprep.mubr.f32.mxu0 %v11565_v45 }
 0x7cc   :  { %9740 = vmatprep.mubr.f32.mxu1 %v11566_v0 }
 0x7ce   :  { %4976 = vmatmul.mubr.f32.gmra.mrb[236].mxu0 %v11567_v54 }
 0x7cf   :  { %9741 = vmatmul.mubr.f32.gmra.mrb[228].mxu1 %v11568_v4  ;;  %4980 = vmatprep.mubr.f32.mxu0 %v11569_v16 }
 0x7d0   :  { %9743 = vmatprep.mubr.f32.mxu1 %v11570_v7 }
 0x7d2   :  { %4981 = vmatmul.mubr.f32.gmra.mrb[238].mxu0 %v11571_v8 }
 0x7d3   :  { %9744 = vmatmul.mubr.f32.gmra.mrb[230].mxu1 %v11572_v2  ;;  %4985 = vmatprep.mubr.f32.mxu0 %v11573_v51 }
 0x7d4   :  { %9746 = vmatprep.mubr.f32.mxu1 %v11574_v31 }
 0x7d6   :  { %4986 = vmatmul.mubr.f32.gmra.mrb[240].mxu0 %v11575_v52 }
 0x7d7   :  { %9747 = vmatmul.mubr.f32.gmra.mrb[232].mxu1 %v11576_v32  ;;  %4990 = vmatprep.mubr.f32.mxu0 %v11577_v34 }
 0x7d8   :  { %9749 = vmatprep.mubr.f32.mxu1 %v11578_v47 }
 0x7da   :  { %4991 = vmatmul.mubr.f32.gmra.mrb[242].mxu0 %v11579_v40 }
 0x7db   :  { %9750 = vmatmul.mubr.f32.gmra.mrb[234].mxu1 %v11580_v1 }
 0x811   :  { %v8809_v9 = vpop.f32.mrb[156].mxu1 }
 0x812   :  { %v8810_v28 = vpop.f32.mrb[157].mxu1 }
 0x813   :  { %v8811_v26 = vadd.f32 %v8810_v28, %v8809_v9 }
 0x815   :  { %v8812_v33 = vpop.f32.mrb[158].mxu1  ;;  %v4483_v35 = vadd.f32 %v8811_v26, %v13121_v44 }
 0x816   :  { %v8813_v27 = vpop.f32.mrb[159].mxu1 }
 0x817   :  { %v8814_v42 = vadd.f32 %v8813_v27, %v8812_v33 }
 0x819   :  { %v8815_v18 = vpop.f32.mrb[160].mxu1  ;;  %v4488_v10 = vadd.f32 %v8814_v42, %v13121_v44 }
 0x81a   :  { %v8816_v11 = vpop.f32.mrb[161].mxu1 }
 0x81b   :  { %v8817_v38 = vadd.f32 %v8816_v11, %v8815_v18 }
 0x81d   :  { %v8818_v22 = vpop.f32.mrb[162].mxu1  ;;  %v4493_v63 = vadd.f32 %v8817_v38, %v13121_v44 }
 0x81e   :  { %v8819_v41 = vpop.f32.mrb[163].mxu1 }
 0x81f   :  { %v8820_v56 = vadd.f32 %v8819_v41, %v8818_v22 }
 0x821   :  { %v8821_v53 = vpop.f32.mrb[164].mxu1  ;;  %v4498_v8 = vadd.f32 %v8820_v56, %v13121_v44 }
 0x822   :  { %v8822_v59 = vpop.f32.mrb[165].mxu1 }
 0x823   :  { %v8823_v36 = vadd.f32 %v8822_v59, %v8821_v53 }
 0x825   :  { %v8824_v60 = vpop.f32.mrb[166].mxu1  ;;  %v4503_v40 = vadd.f32 %v8823_v36, %v13121_v44 }
 0x826   :  { %v8825_v5 = vpop.f32.mrb[167].mxu1 }
 0x827   :  { %v8826_v17 = vadd.f32 %v8825_v5, %v8824_v60 }
 0x829   :  { %v8827_v13 = vpop.f32.mrb[168].mxu1  ;;  %v4508_v18 = vadd.f32 %v8826_v17, %v13121_v44 }
 0x82a   :  { %v8828_v14 = vpop.f32.mrb[169].mxu1 }
 0x82b   :  { %v8829_v55 = vadd.f32 %v8828_v14, %v8827_v13 }
 0x82d   :  { %v8830_v29 = vpop.f32.mrb[170].mxu1  ;;  %v4513_v36 = vadd.f32 %v8829_v55, %v13121_v44 }
 0x82e   :  { %v8831_v30 = vpop.f32.mrb[171].mxu1 }
 0x82f   :  { %v13119_v50 = vadd.f32 %v8831_v30, %v8830_v29 }
 0x831   :  { %v8889_v48 = vpop.f32.mrb[180].mxu0  ;;  %v8833_v21 = vpop.f32.mrb[172].mxu1 }
 0x832   :  { %v8890_v61 = vpop.f32.mrb[181].mxu0  ;;  %v8834_v19 = vpop.f32.mrb[173].mxu1 }
 0x833   :  { %v8891_v24 = vadd.f32 %v8890_v61, %v8889_v48  ;;  %v13124_v37 = vadd.f32 %v8834_v19, %v8833_v21  ;;  %v4518_v48 = vadd.f32 %v13119_v50, %v13121_v44 }
 0x835   :  { %v13126_v39 = vadd.f32 %v8891_v24, %v4483_v35  ;;  %v8892_v57 = vpop.f32.mrb[182].mxu0  ;;  %v8836_v43 = vpop.f32.mrb[174].mxu1  ;;  %v4523_v24 = vadd.f32 %v13124_v37, %v13121_v44 }
 0x836   :  { %v8893_v3 = vpop.f32.mrb[183].mxu0  ;;  %v8837_v12 = vpop.f32.mrb[175].mxu1 }
 0x837   :  { %v8894_v20 = vadd.f32 %v8893_v3, %v8892_v57  ;;  %v8838_v46 = vadd.f32 %v8837_v12, %v8836_v43 }
 0x839   :  { %v13129_v23 = vadd.f32 %v8894_v20, %v4488_v10  ;;  %v8895_v62 = vpop.f32.mrb[184].mxu0  ;;  %v8839_v6 = vpop.f32.mrb[176].mxu1 }
 0x83a   :  { %v8896_v49 = vpop.f32.mrb[185].mxu0  ;;  %v8840_v15 = vpop.f32.mrb[177].mxu1 }
 0x83b   :  { %v8897_v58 = vadd.f32 %v8896_v49, %v8895_v62  ;;  %v13132_v45 = vadd.f32 %v8840_v15, %v8839_v6  ;;  %v4528_v6 = vadd.f32 %v8838_v46, %v13121_v44 }
 0x83d   :  { %v13134_v0 = vadd.f32 %v8897_v58, %v4493_v63  ;;  %v8898_v54 = vpop.f32.mrb[186].mxu0  ;;  %v8842_v4 = vpop.f32.mrb[178].mxu1 }
 0x83e   :  { %v8899_v16 = vpop.f32.mrb[187].mxu0  ;;  %v8843_v7 = vpop.f32.mrb[179].mxu1 }
 0x83f   :  { %v8900_v2 = vadd.f32 %v8899_v16, %v8898_v54  ;;  %v13137_v51 = vadd.f32 %v8843_v7, %v8842_v4  ;;  %v4533_v7 = vadd.f32 %v13132_v45, %v13121_v44 }
 0x841   :  { %v13139_v31 = vadd.f32 %v8900_v2, %v4498_v8  ;;  %v8901_v52 = vpop.f32.mrb[188].mxu0  ;;  %v8845_v32 = vpop.f32.mrb[180].mxu1 }
 0x842   :  { %v8902_v34 = vpop.f32.mrb[189].mxu0  ;;  %v8846_v47 = vpop.f32.mrb[181].mxu1 }
 0x843   :  { %v8903_v1 = vadd.f32 %v8902_v34, %v8901_v52  ;;  %v13142_v9 = vadd.f32 %v8846_v47, %v8845_v32 }
 0x845   :  { %v13144_v28 = vadd.f32 %v8903_v1, %v4503_v40  ;;  %v8904_v26 = vpop.f32.mrb[190].mxu0  ;;  %v8848_v33 = vpop.f32.mrb[182].mxu1 }
 0x846   :  { %v8905_v27 = vpop.f32.mrb[191].mxu0  ;;  %v8849_v42 = vpop.f32.mrb[183].mxu1 }
 0x847   :  { %v8906_v11 = vadd.f32 %v8905_v27, %v8904_v26  ;;  %v13147_v38 = vadd.f32 %v8849_v42, %v8848_v33 }
 0x849   :  { %v13149_v22 = vadd.f32 %v8906_v11, %v4508_v18  ;;  %v8907_v41 = vpop.f32.mrb[192].mxu0  ;;  %v8851_v56 = vpop.f32.mrb[184].mxu1 }
 0x84a   :  { %v8908_v53 = vpop.f32.mrb[193].mxu0  ;;  %v8852_v59 = vpop.f32.mrb[185].mxu1 }
 0x84b   :  { %v8909_v60 = vadd.f32 %v8908_v53, %v8907_v41  ;;  %v13152_v5 = vadd.f32 %v8852_v59, %v8851_v56 }
 0x84d   :  { %v13154_v13 = vadd.f32 %v8909_v60, %v4513_v36  ;;  %v8910_v14 = vpop.f32.mrb[194].mxu0  ;;  %v8854_v29 = vpop.f32.mrb[186].mxu1 }
 0x84e   :  { %v8911_v30 = vpop.f32.mrb[195].mxu0  ;;  %v8855_v17 = vpop.f32.mrb[187].mxu1 }
 0x84f   :  { %v8912_v21 = vadd.f32 %v8911_v30, %v8910_v14  ;;  %v13158_v61 = vadd.f32 %v8855_v17, %v8854_v29 }
 0x851   :  { %v13160_v19 = vadd.f32 %v8912_v21, %v4518_v48  ;;  %v8913_v25 = vpop.f32.mrb[196].mxu0 }
 0x852   :  { %v8969_v35 = vpop.f32.mrb[188].mxu1  ;;  %v8914_v55 = vpop.f32.mrb[197].mxu0 }
 0x853   :  { %v8970_v57 = vpop.f32.mrb[189].mxu1  ;;  %v8915_v43 = vadd.f32 %v8914_v55, %v8913_v25 }
 0x854   :  { %v8971_v3 = vadd.f32 %v8970_v57, %v8969_v35 }
 0x855   :  { %v13164_v12 = vadd.f32 %v8915_v43, %v4523_v24  ;;  %v8916_v10 = vpop.f32.mrb[198].mxu0 }
 0x856   :  { %v13167_v20 = vadd.f32 %v8971_v3, %v13126_v39  ;;  %v8972_v50 = vpop.f32.mrb[190].mxu1  ;;  %v8917_v62 = vpop.f32.mrb[199].mxu0 }
 0x857   :  { %v8973_v49 = vpop.f32.mrb[191].mxu1  ;;  %v8918_v15 = vadd.f32 %v8917_v62, %v8916_v10 }
 0x858   :  { %v8974_v63 = vadd.f32 %v8973_v49, %v8972_v50 }
 0x859   :  { %v13170_v58 = vadd.f32 %v8918_v15, %v4528_v6  ;;  %v8919_v54 = vpop.f32.mrb[200].mxu0 }
 0x85a   :  { %v13173_v37 = vadd.f32 %v8974_v63, %v13129_v23  ;;  %v8975_v4 = vpop.f32.mrb[192].mxu1  ;;  %v8920_v16 = vpop.f32.mrb[201].mxu0  ;;  %v4538_v23 = vadd.f32 %v13137_v51, %v13121_v44 }
 0x85b   :  { %v8976_v39 = vpop.f32.mrb[193].mxu1  ;;  %v8921_v8 = vadd.f32 %v8920_v16, %v8919_v54 }
 0x85c   :  { %v8977_v2 = vadd.f32 %v8976_v39, %v8975_v4 }
 0x85d   :  { %v13177_v52 = vadd.f32 %v8921_v8, %v4533_v7  ;;  %v8922_v46 = vpop.f32.mrb[202].mxu0 }
 0x85e   :  { %v13180_v32 = vadd.f32 %v8977_v2, %v13134_v0  ;;  %v8978_v34 = vpop.f32.mrb[194].mxu1  ;;  %v8923_v47 = vpop.f32.mrb[203].mxu0  ;;  %v4543_v0 = vadd.f32 %v13142_v9, %v13121_v44 }
 0x85f   :  { %v8979_v40 = vpop.f32.mrb[195].mxu1  ;;  %v8924_v1 = vadd.f32 %v8923_v47, %v8922_v46 }
 0x860   :  { %v8980_v26 = vadd.f32 %v8979_v40, %v8978_v34 }
 0x861   :  { %v13184_v33 = vadd.f32 %v8924_v1, %v4538_v23  ;;  %v8925_v45 = vpop.f32.mrb[204].mxu0 }
 0x862   :  { %v13187_v27 = vadd.f32 %v8980_v26, %v13139_v31  ;;  %v8981_v42 = vpop.f32.mrb[196].mxu1  ;;  %v8926_v18 = vpop.f32.mrb[205].mxu0  ;;  %v4548_v31 = vadd.f32 %v13147_v38, %v13121_v44 }
 0x863   :  { %v8982_v11 = vpop.f32.mrb[197].mxu1  ;;  %v8927_v41 = vadd.f32 %v8926_v18, %v8925_v45 }
 0x864   :  { %v8983_v56 = vadd.f32 %v8982_v11, %v8981_v42 }
 0x865   :  { %v13191_v53 = vadd.f32 %v8927_v41, %v4543_v0  ;;  %v8928_v51 = vpop.f32.mrb[206].mxu0 }
 0x866   :  { %v13194_v59 = vadd.f32 %v8983_v56, %v13144_v28  ;;  %v8984_v36 = vpop.f32.mrb[198].mxu1  ;;  %v8929_v60 = vpop.f32.mrb[207].mxu0  ;;  %v4553_v28 = vadd.f32 %v13152_v5, %v13121_v44 }
 0x867   :  { %v8985_v14 = vpop.f32.mrb[199].mxu1  ;;  %v8930_v29 = vadd.f32 %v8929_v60, %v8928_v51 }
 0x868   :  { %v8986_v30 = vadd.f32 %v8985_v14, %v8984_v36 }
 0x869   :  { %v13198_v17 = vadd.f32 %v8930_v29, %v4548_v31  ;;  %v8931_v9 = vpop.f32.mrb[208].mxu0 }
 0x86a   :  { %v13201_v48 = vadd.f32 %v8986_v30, %v13149_v22  ;;  %v8987_v21 = vpop.f32.mrb[200].mxu1  ;;  %v8932_v25 = vpop.f32.mrb[209].mxu0  ;;  %v4558_v22 = vadd.f32 %v13158_v61, %v13121_v44 }
 0x86b   :  { %v8988_v35 = vpop.f32.mrb[201].mxu1  ;;  %v8933_v55 = vadd.f32 %v8932_v25, %v8931_v9 }
 0x86c   :  { %v8989_v24 = vadd.f32 %v8988_v35, %v8987_v21 }
 0x86d   :  { %v13205_v57 = vadd.f32 %v8933_v55, %v4553_v28  ;;  %v8934_v38 = vpop.f32.mrb[210].mxu0 }
 0x86e   :  { %v13208_v43 = vadd.f32 %v8989_v24, %v13154_v13  ;;  %v8990_v3 = vpop.f32.mrb[202].mxu1  ;;  %v8935_v10 = vpop.f32.mrb[211].mxu0 }
 0x86f   :  { %v8991_v50 = vpop.f32.mrb[203].mxu1  ;;  %v8936_v62 = vadd.f32 %v8935_v10, %v8934_v38 }
 0x870   :  { %v8992_v6 = vadd.f32 %v8991_v50, %v8990_v3 }
 0x871   :  { %v13212_v49 = vadd.f32 %v8936_v62, %v4558_v22  ;;  %v9049_v5 = vpop.f32.mrb[212].mxu0 }
 0x872   :  { %v13215_v15 = vadd.f32 %v8992_v6, %v13160_v19  ;;  %v8993_v63 = vpop.f32.mrb[204].mxu1  ;;  %v9050_v54 = vpop.f32.mrb[213].mxu0 }
 0x873   :  { %v8994_v4 = vpop.f32.mrb[205].mxu1  ;;  %v9051_v16 = vadd.f32 %v9050_v54, %v9049_v5 }
 0x874   :  { %v8995_v13 = vadd.f32 %v8994_v4, %v8993_v63 }
 0x875   :  { %v9052_v7 = vpop.f32.mrb[214].mxu0  ;;  %v13218_v39 = vadd.f32 %v9051_v16, %v13167_v20 }
 0x876   :  { %v13221_v44 = vadd.f32 %v8995_v13, %v13164_v12  ;;  %v8996_v61 = vpop.f32.mrb[206].mxu1  ;;  %v9053_v8 = vpop.f32.mrb[215].mxu0 }
 0x877   :  { %v8997_v2 = vpop.f32.mrb[207].mxu1  ;;  %v9054_v46 = vadd.f32 %v9053_v8, %v9052_v7 }
 0x878   :  { %v8998_v34 = vadd.f32 %v8997_v2, %v8996_v61 }
 0x879   :  { %v9055_v47 = vpop.f32.mrb[216].mxu0  ;;  %v4923_v19 = vadd.f32 %v9054_v46, %v13173_v37 }
 0x87a   :  { %v13225_v23 = vadd.f32 %v8998_v34, %v13170_v58  ;;  %v8999_v40 = vpop.f32.mrb[208].mxu1  ;;  %v9056_v1 = vpop.f32.mrb[217].mxu0 }
 0x87b   :  { %v9000_v26 = vpop.f32.mrb[209].mxu1  ;;  %v9057_v45 = vadd.f32 %v9056_v1, %v9055_v47 }
 0x87c   :  { %v9001_v20 = vadd.f32 %v9000_v26, %v8999_v40 }
 0x87d   :  { %v9058_v42 = vpop.f32.mrb[218].mxu0  ;;  %v4928_v12 = vadd.f32 %v9057_v45, %v13180_v32 }
 0x87e   :  { %v13229_v18 = vadd.f32 %v9001_v20, %v13177_v52  ;;  %v9002_v0 = vpop.f32.mrb[210].mxu1  ;;  %v9059_v11 = vpop.f32.mrb[219].mxu0 }
 0x87f   :  { %v9003_v41 = vpop.f32.mrb[211].mxu1  ;;  %v9060_v56 = vadd.f32 %v9059_v11, %v9058_v42 }
 0x880   :  { %v9004_v51 = vadd.f32 %v9003_v41, %v9002_v0 }
 0x881   :  { %v9061_v37 = vpop.f32.mrb[220].mxu0  ;;  %v4933_v58 = vadd.f32 %v9060_v56, %v13187_v27 }
 0x882   :  { %v13233_v36 = vadd.f32 %v9004_v51, %v13184_v33  ;;  %v9005_v60 = vpop.f32.mrb[212].mxu1  ;;  %v9062_v31 = vpop.f32.mrb[221].mxu0 }
 0x883   :  { %v9006_v14 = vpop.f32.mrb[213].mxu1  ;;  %v9063_v29 = vadd.f32 %v9062_v31, %v9061_v37 }
 0x884   :  { %v9007_v30 = vadd.f32 %v9006_v14, %v9005_v60 }
 0x885   :  { %v9064_v32 = vpop.f32.mrb[222].mxu0  ;;  %v4938_v52 = vadd.f32 %v9063_v29, %v13194_v59 }
 0x886   :  { %v13237_v9 = vadd.f32 %v9007_v30, %v13191_v53  ;;  %v9008_v21 = vpop.f32.mrb[214].mxu1  ;;  %v9065_v25 = vpop.f32.mrb[223].mxu0 }
 0x887   :  { %v9009_v28 = vpop.f32.mrb[215].mxu1  ;;  %v9066_v35 = vadd.f32 %v9065_v25, %v9064_v32 }
 0x888   :  { %v9010_v55 = vadd.f32 %v9009_v28, %v9008_v21 }
 0x889   :  { %v9067_v27 = vpop.f32.mrb[224].mxu0  ;;  %v4943_v33 = vadd.f32 %v9066_v35, %v13201_v48 }
 0x88a   :  { %v13241_v24 = vadd.f32 %v9010_v55, %v13198_v17  ;;  %v9011_v38 = vpop.f32.mrb[216].mxu1  ;;  %v9068_v3 = vpop.f32.mrb[225].mxu0 }
 0x88b   :  { %v9012_v10 = vpop.f32.mrb[217].mxu1  ;;  %v9069_v22 = vadd.f32 %v9068_v3, %v9067_v27 }
 0x88c   :  { %v9013_v50 = vadd.f32 %v9012_v10, %v9011_v38 }
 0x88d   :  { %v9070_v59 = vpop.f32.mrb[226].mxu0  ;;  %v4948_v53 = vadd.f32 %v9069_v22, %v13208_v43 }
 0x88e   :  { %v13245_v62 = vadd.f32 %v9013_v50, %v13205_v57  ;;  %v9014_v6 = vpop.f32.mrb[218].mxu1  ;;  %v9071_v5 = vpop.f32.mrb[227].mxu0 }
 0x88f   :  { %v9015_v63 = vpop.f32.mrb[219].mxu1  ;;  %v9072_v54 = vadd.f32 %v9071_v5, %v9070_v59 }
 0x890   :  { %v9016_v4 = vadd.f32 %v9015_v63, %v9014_v6 }
 0x891   :  { %v9073_v48 = vpop.f32.mrb[228].mxu0  ;;  %v4953_v17 = vadd.f32 %v9072_v54, %v13215_v15 }
 0x892   :  { %v13249_v16 = vadd.f32 %v9016_v4, %v13212_v49  ;;  %v9730_v13 = vpop.f32.mrb[220].mxu1  ;;  %v9074_v7 = vpop.f32.mrb[229].mxu0 }
 0x893   :  { %v13251_v61 = vadd.f32 %v9730_v13, %v4923_v19  ;;  %v9075_v8 = vadd.f32 %v9074_v7, %v9073_v48  ;;  %v5062_v43 = vpop.f32.mrb[221].mxu1 }
 0x894   :  { %v13254_v57 = vadd.f32 %v5062_v43, %v13218_v39 }
 0x895   :  { %v5142_v2 = vsub.f32 0.0, %v13251_v61  ;;  %v9076_v46 = vpop.f32.mrb[230].mxu0  ;;  %v4958_v34 = vadd.f32 %v9075_v8, %v13221_v44 }
 0x896   :  { %v5141_v47 = vsub.f32 0.0, %v13254_v57  ;;  %v9733_v15 = vpop.f32.mrb[222].mxu1  ;;  %v9077_v40 = vpop.f32.mrb[231].mxu0 }
 0x897   :  { %v5159_v49 = vmul.f32 1.442695, %v5142_v2  ;;  %v13259_v1 = vadd.f32 %v9733_v15, %v4933_v58  ;;  %v9078_v26 = vadd.f32 %v9077_v40, %v9076_v46  ;;  %v5072_v19 = vpop.f32.mrb[223].mxu1 }
 0x898   :  { %v5157_v45 = vmul.f32 1.442695, %v5141_v47  ;;  %v13261_v20 = vadd.f32 %v5072_v19, %v4928_v12 }
 0x899   :  { %11213 = vpow2.f32 %v5159_v49  ;;  %v5144_v39 = vsub.f32 0.0, %v13259_v1  ;;  %v9079_v42 = vpop.f32.mrb[232].mxu0  ;;  %v4963_v0 = vadd.f32 %v9078_v26, %v13225_v23 }
 0x89a   :  { %11215 = vpow2.f32 %v5157_v45  ;;  %v5143_v44 = vsub.f32 0.0, %v13261_v20  ;;  %v9736_v11 = vpop.f32.mrb[224].mxu1  ;;  %v9080_v41 = vpop.f32.mrb[233].mxu0 }
 0x89b   :  { %v5163_v56 = vmul.f32 1.442695, %v5144_v39  ;;  %v13266_v51 = vadd.f32 %v9736_v11, %v4943_v33  ;;  %v9081_v37 = vadd.f32 %v9080_v41, %v9079_v42  ;;  %v5082_v58 = vpop.f32.mrb[225].mxu1 }
 0x89c   :  { %v5161_v60 = vmul.f32 1.442695, %v5143_v44  ;;  %v13268_v31 = vadd.f32 %v5082_v58, %v4938_v52 }
 0x89d   :  { %11217 = vpow2.f32 %v5163_v56  ;;  %v5146_v12 = vsub.f32 0.0, %v13266_v51  ;;  %v9082_v14 = vpop.f32.mrb[234].mxu0  ;;  %v4968_v29 = vadd.f32 %v9081_v37, %v13229_v18 }
 0x89e   :  { %11219 = vpow2.f32 %v5161_v60  ;;  %v5145_v23 = vsub.f32 0.0, %v13268_v31  ;;  %v9739_v30 = vpop.f32.mrb[226].mxu1  ;;  %v9083_v32 = vpop.f32.mrb[235].mxu0 }
 0x89f   :  { %v5167_v21 = vmul.f32 1.442695, %v5146_v12  ;;  %v13273_v25 = vadd.f32 %v9739_v30, %v4953_v17  ;;  %v9084_v28 = vadd.f32 %v9083_v32, %v9082_v14  ;;  %v5092_v35 = vpop.f32.mrb[227].mxu1 }
 0x8a0   :  { %v5165_v55 = vmul.f32 1.442695, %v5145_v23  ;;  %v13275_v27 = vadd.f32 %v5092_v35, %v4948_v53 }
 0x8a1   :  { %11221 = vpow2.f32 %v5167_v21  ;;  %v5148_v52 = vsub.f32 0.0, %v13273_v25  ;;  %v9085_v33 = vpop.f32.mrb[236].mxu0  ;;  %v4973_v38 = vadd.f32 %v9084_v28, %v13233_v36 }
 0x8a2   :  { %11223 = vpow2.f32 %v5165_v55  ;;  %v5147_v18 = vsub.f32 0.0, %v13275_v27  ;;  %v9742_v3 = vpop.f32.mrb[228].mxu1  ;;  %v9086_v10 = vpop.f32.mrb[237].mxu0 }
 0x8a3   :  { %v11214_v22 = vpop.eup %11213  ;;  %v5171_v50 = vmul.f32 1.442695, %v5148_v52  ;;  %v13280_v59 = vadd.f32 %v9742_v3, %v4963_v0  ;;  %v9087_v6 = vadd.f32 %v9086_v10, %v9085_v33  ;;  %v5102_v5 = vpop.f32.mrb[229].mxu1 }
 0x8a4   :  { %v11216_v63 = vpop.eup %11215  ;;  %v5190_v53 = vadd.f32 1.0, %v11214_v22  ;;  %v5169_v54 = vmul.f32 1.442695, %v5147_v18  ;;  %v13282_v4 = vadd.f32 %v5102_v5, %v4958_v34 }
 0x8a5   :  { %v5189_v48 = vadd.f32 1.0, %v11216_v63  ;;  %11225 = vpow2.f32 %v5171_v50  ;;  %v5150_v36 = vsub.f32 0.0, %v13280_v59  ;;  %v9088_v17 = vpop.f32.mrb[238].mxu0  ;;  %v4978_v13 = vadd.f32 %v9087_v6, %v13237_v9 }
 0x8a6   :  { %11227 = vrcp.f32 %v5190_v53  ;;  %v5149_v7 = vsub.f32 0.0, %v13282_v4  ;;  %v9745_v8 = vpop.f32.mrb[230].mxu1  ;;  %v9089_v43 = vpop.f32.mrb[239].mxu0 }
 0x8a7   :  { %v11218_v2 = vpop.eup %11217  ;;  %11229 = vrcp.f32 %v5189_v48  ;;  %v5175_v46 = vmul.f32 1.442695, %v5150_v36  ;;  %v13287_v47 = vadd.f32 %v9745_v8, %v4973_v38  ;;  %v9090_v15 = vadd.f32 %v9089_v43, %v9088_v17  ;;  %v5112_v34 = vpop.f32.mrb[231].mxu1 }
 0x8a8   :  { %v11220_v40 = vpop.eup %11219  ;;  %v5192_v49 = vadd.f32 1.0, %v11218_v2  ;;  %11231 = vpow2.f32 %v5169_v54  ;;  %v5173_v26 = vmul.f32 1.442695, %v5149_v7  ;;  %v13289_v19 = vadd.f32 %v5112_v34, %v4968_v29 }
 0x8a9   :  { %v5191_v45 = vadd.f32 1.0, %v11220_v40  ;;  %11233 = vpow2.f32 %v5175_v46  ;;  %v5152_v9 = vsub.f32 0.0, %v13287_v47  ;;  %v9091_v39 = vpop.f32.mrb[240].mxu0  ;;  %v4983_v42 = vadd.f32 %v9090_v15, %v13241_v24 }
 0x8aa   :  { %11235 = vrcp.f32 %v5192_v49  ;;  %v5151_v0 = vsub.f32 0.0, %v13289_v19  ;;  %v9748_v44 = vpop.f32.mrb[232].mxu1  ;;  %v9092_v11 = vpop.f32.mrb[241].mxu0 }
 0x8ab   :  { %v11222_v41 = vpop.eup %11221  ;;  %11237 = vrcp.f32 %v5191_v45  ;;  %v5179_v56 = vmul.f32 1.442695, %v5152_v9  ;;  %v13294_v37 = vadd.f32 %v9748_v44, %v4983_v42  ;;  %v9093_v58 = vadd.f32 %v9092_v11, %v9091_v39  ;;  %v5122_v60 = vpop.f32.mrb[233].mxu1 }
 0x8ac   :  { %v11224_v12 = vpop.eup %11223  ;;  %v5194_v14 = vadd.f32 1.0, %v11222_v41  ;;  %11239 = vpow2.f32 %v5173_v26  ;;  %v5177_v29 = vmul.f32 1.442695, %v5151_v0  ;;  %v13296_v23 = vadd.f32 %v5122_v60, %v4978_v13 }
 0x8ad   :  { %v5193_v30 = vadd.f32 1.0, %v11224_v12  ;;  %11241 = vpow2.f32 %v5179_v56  ;;  %v5154_v24 = vsub.f32 0.0, %v13294_v37  ;;  %v9094_v32 = vpop.f32.mrb[242].mxu0  ;;  %v4988_v21 = vadd.f32 %v9093_v58, %v13245_v62 }
 0x8ae   :  { %11243 = vrcp.f32 %v5194_v14  ;;  %v5153_v28 = vsub.f32 0.0, %v13296_v23  ;;  %v9751_v35 = vpop.f32.mrb[234].mxu1  ;;  %v9095_v55 = vpop.f32.mrb[243].mxu0 }
 0x8af   :  { %v11226_v52 = vpop.eup %11225  ;;  %11245 = vrcp.f32 %v5193_v30  ;;  %v5183_v33 = vmul.f32 1.442695, %v5154_v24  ;;  %v9096_v38 = vadd.f32 %v9095_v55, %v9094_v32  ;;  %v5132_v18 = vpop.f32.mrb[235].mxu1 }
 0x8b0   :  { %v11228_v3 = vpop.eup %11227  ;;  %v5196_v10 = vadd.f32 1.0, %v11226_v52  ;;  %11247 = vpow2.f32 %v5177_v29  ;;  %v5181_v22 = vmul.f32 1.442695, %v5153_v28  ;;  %v13301_v50 = vadd.f32 %v5132_v18, %v4988_v21 }
 0x8b1   :  { %v11230_v6 = vpop.eup %11229  ;;  %11249 = vpow2.f32 %v5183_v33  ;;  %v4993_v62 = vadd.f32 %v9096_v38, %v13249_v16  ;;  %v5238_v48 = vmul.f32 %v11228_v3, %v13251_v61  ;;  %v8065_v33 = vld [vmem:[#allocation7 + $0xe8] ss:$0 sm:$0xff] }
 0x8b2   :  { %v11232_v5 = vpop.eup %11231  ;;  %v5237_v63 = vmul.f32 %v11230_v6, %v13254_v57  ;;  %v5155_v53 = vsub.f32 0.0, %v13301_v50  ;;  %11251 = vpow2.f32 %v5181_v22 }
 0x8b3   :  { %v11234_v54 = vpop.eup %11233  ;;  %v5195_v36 = vadd.f32 1.0, %v11232_v5  ;;  %v13307_v17 = vadd.f32 %v9751_v35, %v4993_v62  ;;  %11253 = vrcp.f32 %v5196_v10 }
 0x8b4   :  { %v11236_v13 = vpop.eup %11235  ;;  %v5198_v7 = vadd.f32 1.0, %v11234_v54  ;;  %v5185_v8 = vmul.f32 1.442695, %v5155_v53  ;;  %9754 = vmatprep.mubr.msk.f32.mxu0 %vm2711_vm6, %v5237_v63 }
 0x8b5   :  { %v11238_v43 = vpop.eup %11237  ;;  %11255 = vrcp.f32 %v5195_v36  ;;  %v5156_v16 = vsub.f32 0.0, %v13307_v17  ;;  %9755 = vmatmul.mubr.msk.f32.vlgmr.msra.gmra.mrb[244].mxu0 %vm2711_vm6, %v5238_v48  ;;  %v5240_v46 = vmul.f32 %v11236_v13, %v13259_v1 }
 0x8b6   :  { %v11240_v57 = vpop.eup %11239  ;;  %v5239_v2 = vmul.f32 %v11238_v43, %v13261_v20  ;;  %11257 = vpow2.f32 %v5185_v8 }
 0x8b7   :  { %v11242_v61 = vpop.eup %11241  ;;  %v5197_v15 = vadd.f32 1.0, %v11240_v57  ;;  %v5187_v34 = vmul.f32 1.442695, %v5156_v16  ;;  %11259 = vrcp.f32 %v5198_v7 }
 0x8b8   :  { %v11244_v40 = vpop.eup %11243  ;;  %v5200_v49 = vadd.f32 1.0, %v11242_v61  ;;  %9757 = vmatprep.mubr.msk.f32.mxu0 %vm2711_vm6, %v5239_v2 }
 0x8b9   :  { %v11246_v26 = vpop.eup %11245  ;;  %11261 = vrcp.f32 %v5197_v15  ;;  %9758 = vmatmul.mubr.msk.f32.gmra.mrb[246].mxu0 %vm2711_vm6, %v5240_v46  ;;  %v5242_v20 = vmul.f32 %v11244_v40, %v13266_v51 }
 0x8ba   :  { %v11248_v45 = vpop.eup %11247  ;;  %v5241_v9 = vmul.f32 %v11246_v26, %v13268_v31  ;;  %11263 = vpow2.f32 %v5187_v34 }
 0x8bb   :  { %v11250_v39 = vpop.eup %11249  ;;  %v5199_v42 = vadd.f32 1.0, %v11248_v45  ;;  %11265 = vrcp.f32 %v5200_v49 }
 0x8bc   :  { %v5202_v1 = vadd.f32 1.0, %v11250_v39  ;;  %9760 = vmatprep.mubr.msk.f32.mxu0 %vm2711_vm6, %v5241_v9  ;;  %v11252_v0 = vpop.eup %11251 }
 0x8bd   :  { %11267 = vrcp.f32 %v5199_v42  ;;  %9761 = vmatmul.mubr.msk.f32.gmra.mrb[248].mxu0 %vm2711_vm6, %v5242_v20  ;;  %v11254_v44 = vpop.eup %11253  ;;  %v5201_v11 = vadd.f32 1.0, %v11252_v0 }
 0x8be   :  { %11269 = vrcp.f32 %v5202_v1  ;;  %v5244_v51 = vmul.f32 %v11254_v44, %v13273_v25 }
 0x8bf   :  { %v11256_v41 = vpop.eup %11255  ;;  %11271 = vrcp.f32 %v5201_v11 }
 0x8c0   :  { %v5243_v56 = vmul.f32 %v11256_v41, %v13275_v27  ;;  %v11258_v31 = vpop.eup %11257 }
 0x8c1   :  { %v11260_v58 = vpop.eup %11259  ;;  %v5203_v60 = vadd.f32 1.0, %v11258_v31 }
 0x8c2   :  { %9763 = vmatprep.mubr.msk.f32.mxu0 %vm2711_vm6, %v5243_v56  ;;  %v5246_v30 = vmul.f32 %v11260_v58, %v13280_v59 }
 0x8c3   :  { %v11262_v12 = vpop.eup %11261  ;;  %9764 = vmatmul.mubr.msk.f32.gmra.mrb[250].mxu0 %vm2711_vm6, %v5244_v51  ;;  %11273 = vrcp.f32 %v5203_v60 }
 0x8c4   :  { %v5245_v14 = vmul.f32 %v11262_v12, %v13282_v4  ;;  %v11264_v29 = vpop.eup %11263 }
 0x8c5   :  { %v11266_v24 = vpop.eup %11265  ;;  %v5204_v32 = vadd.f32 1.0, %v11264_v29 }
 0x8c6   :  { %9766 = vmatprep.mubr.msk.f32.mxu0 %vm2711_vm6, %v5245_v14  ;;  %v5248_v28 = vmul.f32 %v11266_v24, %v13287_v47 }
 0x8c7   :  { %v11268_v27 = vpop.eup %11267  ;;  %9767 = vmatmul.mubr.msk.f32.gmra.mrb[252].mxu0 %vm2711_vm6, %v5246_v30  ;;  %11275 = vrcp.f32 %v5204_v32 }
 0x8c8   :  { %v11270_v25 = vpop.eup %11269  ;;  %v5247_v21 = vmul.f32 %v11268_v27, %v13289_v19 }
 0x8c9   :  { %v11272_v35 = vpop.eup %11271  ;;  %v5250_v4 = vmul.f32 %v11270_v25, %v13294_v37 }
 0x8ca   :  { %9769 = vmatprep.mubr.msk.f32.mxu0 %vm2711_vm6, %v5247_v21  ;;  %v5249_v59 = vmul.f32 %v11272_v35, %v13296_v23 }
 0x8cb   :  { %9770 = vmatmul.mubr.msk.f32.gmra.mrb[254].mxu0 %vm2711_vm6, %v5248_v28 }
 0x8cc   :  { %9772 = vmatprep.mubr.msk.f32.mxu0 %vm2711_vm6, %v5249_v59 }
 0x8cd   :  { %v11274_v55 = vpop.eup %11273 }
 0x8ce   :  { %v5251_v52 = vmul.f32 %v11274_v55, %v13301_v50 }
 0x8cf   :  { %9773 = vmatmul.mubr.msk.f32.gmra.mrb[0].mxu0 %vm2711_vm6, %v5250_v4 }
 0x8d0   :  { %9775 = vmatprep.mubr.msk.f32.mxu0 %vm2711_vm6, %v5251_v52 }
 0x8d1   :  { %v11276_v19 = vpop.eup %11275 }
 0x8d2   :  { %v5252_v47 = vmul.f32 %v11276_v19, %v13307_v17 }
 0x8d4   :  { %9776 = vmatmul.mubr.msk.f32.gmra.mrb[2].mxu0 %vm2711_vm6, %v5252_v47 }
 0x988   :  { %v9756_v37 = vpop.f32.mrb[244].mxu0 }
 0x989   :  { %v13340_v23 = vadd.f32 %v9756_v37, %v8065_v33  ;;  %v5373_v38 = vpop.f32.mrb[245].mxu0 }
 0x98a   :  { %v13342_v18 = vadd.f32 %v8065_v33, %v5373_v38 }
 0x98b   :  { %v5456_v3 = vsel %vm5452_vm7, %v13340_v23, 0.0 }
 0x98c   :  { %5457 = vadd.xlane.f32.xlu0 %v5456_v3  ;;  %v9759_v10 = vpop.f32.mrb[246].mxu0  ;;  %v5453_v22 = vsel %vm5452_vm7, %v13342_v18, 0.0 }
 0x98d   :  { %v13348_v50 = vadd.f32 %v9759_v10, %v8065_v33  ;;  %v5383_v6 = vpop.f32.mrb[247].mxu0  ;;  %5454 = vadd.xlane.f32.xlu1 %v5453_v22 }
 0x98e   :  { %v13350_v62 = vadd.f32 %v8065_v33, %v5383_v6 }
 0x98f   :  { %v5462_v5 = vsel %vm5452_vm7, %v13348_v50, 0.0 }
 0x990   :  { %v9762_v63 = vpop.f32.mrb[248].mxu0  ;;  %v5459_v53 = vsel %vm5452_vm7, %v13350_v62, 0.0 }
 0x991   :  { %v13356_v54 = vadd.f32 %v9762_v63, %v8065_v33  ;;  %v5393_v48 = vpop.f32.mrb[249].mxu0  ;;  %5460 = vadd.xlane.f32.xlu0 %v5459_v53  ;;  %5463 = vadd.xlane.f32.xlu1 %v5462_v5 }
 0x992   :  { %v13358_v36 = vadd.f32 %v8065_v33, %v5393_v48 }
 0x993   :  { %14381 = vst [vmem:[#allocation12_spill] sm:$0xff] %v13356_v54  ;;  %v5468_v17 = vsel %vm5452_vm7, %v13356_v54, 0.0 }
 0x994   :  { %14382 = vst [vmem:[#allocation13_spill] sm:$0xff] %v13358_v36  ;;  %v5465_v13 = vsel %vm5452_vm7, %v13358_v36, 0.0 }
 0x995   :  { %5466 = vadd.xlane.f32.xlu0 %v5465_v13  ;;  %5469 = vadd.xlane.f32.xlu1 %v5468_v17 }
 0x996   :  { %v9765_v7 = vpop.f32.mrb[250].mxu0 }
 0x997   :  { %v13364_v8 = vadd.f32 %v9765_v7, %v8065_v33  ;;  %v5403_v43 = vpop.f32.mrb[251].mxu0 }
 0x998   :  { %v13366_v16 = vadd.f32 %v8065_v33, %v5403_v43 }
 0x999   :  { %14383 = vst [vmem:[#allocation14_spill] sm:$0xff] %v13364_v8  ;;  %v5474_v57 = vsel %vm5452_vm7, %v13364_v8, 0.0 }
 0x99a   :  { %14384 = vst [vmem:[#allocation15_spill] sm:$0xff] %v13366_v16  ;;  %v9768_v2 = vpop.f32.mrb[252].mxu0  ;;  %v5471_v61 = vsel %vm5452_vm7, %v13366_v16, 0.0  ;;  %5475 = vadd.xlane.f32.xlu1 %v5474_v57 }
 0x99b   :  { %v13372_v46 = vadd.f32 %v9768_v2, %v8065_v33  ;;  %v5413_v15 = vpop.f32.mrb[253].mxu0  ;;  %5472 = vadd.xlane.f32.xlu0 %v5471_v61 }
 0x99c   :  { %v13374_v34 = vadd.f32 %v8065_v33, %v5413_v15 }
 0x99d   :  { %14385 = vst [vmem:[#allocation16_spill] sm:$0xff] %v13372_v46  ;;  %v5480_v40 = vsel %vm5452_vm7, %v13372_v46, 0.0 }
 0x99e   :  { %14386 = vst [vmem:[#allocation17_spill] sm:$0xff] %v13374_v34  ;;  %v9771_v49 = vpop.f32.mrb[254].mxu0  ;;  %v5477_v26 = vsel %vm5452_vm7, %v13374_v34, 0.0  ;;  %5481 = vadd.xlane.f32.xlu1 %v5480_v40 }
 0x99f   :  { %v13380_v45 = vadd.f32 %v9771_v49, %v8065_v33  ;;  %v5423_v9 = vpop.f32.mrb[255].mxu0  ;;  %5478 = vadd.xlane.f32.xlu0 %v5477_v26 }
 0x9a0   :  { %v13382_v39 = vadd.f32 %v8065_v33, %v5423_v9 }
 0x9a1   :  { %14387 = vst [vmem:[#allocation18_spill] sm:$0xff] %v13380_v45  ;;  %v5486_v20 = vsel %vm5452_vm7, %v13380_v45, 0.0 }
 0x9a2   :  { %14388 = vst [vmem:[#allocation19_spill] sm:$0xff] %v13382_v39  ;;  %v9774_v42 = vpop.f32.mrb[0].mxu0  ;;  %v5483_v1 = vsel %vm5452_vm7, %v13382_v39, 0.0  ;;  %5487 = vadd.xlane.f32.xlu1 %v5486_v20 }
 0x9a3   :  { %v13388_v0 = vadd.f32 %v9774_v42, %v8065_v33  ;;  %v5433_v44 = vpop.f32.mrb[1].mxu0  ;;  %5484 = vadd.xlane.f32.xlu0 %v5483_v1 }
 0x9a4   :  { %v13390_v11 = vadd.f32 %v8065_v33, %v5433_v44 }
 0x9a5   :  { %14389 = vst [vmem:[#allocation20_spill] sm:$0xff] %v13388_v0  ;;  %v5492_v41 = vsel %vm5452_vm7, %v13388_v0, 0.0 }
 0x9a6   :  { %14390 = vst [vmem:[#allocation21_spill] sm:$0xff] %v13390_v11  ;;  %v5489_v56 = vsel %vm5452_vm7, %v13390_v11, 0.0  ;;  %5493 = vadd.xlane.f32.xlu1 %v5492_v41 }
 0x9a7   :  { %5490 = vadd.xlane.f32.xlu0 %v5489_v56  ;;  %v9777_v31 = vpop.f32.mrb[2].mxu0 }
 0x9a8   :  { %v13396_v51 = vadd.f32 %v9777_v31, %v8065_v33  ;;  %v5443_v58 = vpop.f32.mrb[3].mxu0 }
 0x9a9   :  { %v13398_v60 = vadd.f32 %v8065_v33, %v5443_v58 }
 0x9aa   :  { %14391 = vst [vmem:[#allocation22_spill] sm:$0xff] %v13396_v51  ;;  %v5498_v12 = vsel %vm5452_vm7, %v13396_v51, 0.0 }
 0x9ab   :  { %14392 = vst [vmem:[#allocation23_spill] sm:$0xff] %v13398_v60  ;;  %5499 = vadd.xlane.f32.xlu1 %v5498_v12  ;;  %v5495_v14 = vsel %vm5452_vm7, %v13398_v60, 0.0 }
 0x9ac   :  { %5496 = vadd.xlane.f32.xlu0 %v5495_v14 }
 0xa19   :  { %v5458_v29 = vpop.xlane.xlu0 %5457 }
 0xa1a   :  { %v5503_v30 = vmul.f32 0.03125, %v5458_v29  ;;  %v5455_v24 = vpop.xlane.xlu1 %5454 }
 0xa1b   :  { %v5502_v32 = vmul.f32 0.03125, %v5455_v24 }
 0xa1c   :  { %v13405_v27 = vsub.f32 %v13340_v23, %v5503_v30 }
 0xa1d   :  { %v13408_v25 = vsub.f32 %v13342_v18, %v5502_v32 }
 0xa1e   :  { %v5461_v21 = vpop.xlane.xlu0 %5460  ;;  %v5464_v28 = vpop.xlane.xlu1 %5463  ;;  %v5535_v35 = vmul.f32 %v13405_v27, %v13405_v27 }
 0xa1f   :  { %v5504_v4 = vmul.f32 0.03125, %v5461_v21  ;;  %v5505_v59 = vmul.f32 0.03125, %v5464_v28  ;;  %v5534_v55 = vmul.f32 %v13408_v25, %v13408_v25 }
 0xa20   :  { %v5553_v52 = vsel %vm5452_vm7, %v5535_v35, 0.0 }
 0xa21   :  { %v13416_v19 = vsub.f32 %v13350_v62, %v5504_v4  ;;  %v13419_v47 = vsub.f32 %v13348_v50, %v5505_v59  ;;  %5554 = vadd.xlane.f32.xlu1 %v5553_v52  ;;  %v5550_v33 = vsel %vm5452_vm7, %v5534_v55, 0.0 }
 0xa22   :  { %v5467_v37 = vpop.xlane.xlu0 %5466  ;;  %5551 = vadd.xlane.f32.xlu0 %v5550_v33  ;;  %v5470_v38 = vpop.xlane.xlu1 %5469 }
 0xa23   :  { %v5506_v3 = vmul.f32 0.03125, %v5467_v37  ;;  %v5507_v10 = vmul.f32 0.03125, %v5470_v38  ;;  %v5536_v22 = vmul.f32 %v13416_v19, %v13416_v19  ;;  %v5537_v6 = vmul.f32 %v13419_v47, %v13419_v47 }
 0xa25   :  { %v13427_v5 = vsub.f32 %v13358_v36, %v5506_v3  ;;  %v13430_v63 = vsub.f32 %v13356_v54, %v5507_v10  ;;  %v5556_v53 = vsel %vm5452_vm7, %v5536_v22, 0.0  ;;  %v5559_v48 = vsel %vm5452_vm7, %v5537_v6, 0.0 }
 0xa26   :  { %5557 = vadd.xlane.f32.xlu0 %v5556_v53  ;;  %5560 = vadd.xlane.f32.xlu1 %v5559_v48 }
 0xa27   :  { %v5476_v17 = vpop.xlane.xlu1 %5475  ;;  %v5538_v13 = vmul.f32 %v13427_v5, %v13427_v5  ;;  %v5539_v7 = vmul.f32 %v13430_v63, %v13430_v63 }
 0xa28   :  { %v5473_v43 = vpop.xlane.xlu0 %5472  ;;  %v5509_v57 = vmul.f32 0.03125, %v5476_v17 }
 0xa29   :  { %v5508_v2 = vmul.f32 0.03125, %v5473_v43  ;;  %v5562_v61 = vsel %vm5452_vm7, %v5538_v13, 0.0  ;;  %v5565_v15 = vsel %vm5452_vm7, %v5539_v7, 0.0 }
 0xa2a   :  { %v13441_v40 = vsub.f32 %v13364_v8, %v5509_v57  ;;  %5563 = vadd.xlane.f32.xlu0 %v5562_v61  ;;  %5566 = vadd.xlane.f32.xlu1 %v5565_v15 }
 0xa2b   :  { %v13444_v49 = vsub.f32 %v13366_v16, %v5508_v2  ;;  %v5482_v26 = vpop.xlane.xlu1 %5481 }
 0xa2c   :  { %v5479_v9 = vpop.xlane.xlu0 %5478  ;;  %v5511_v20 = vmul.f32 0.03125, %v5482_v26  ;;  %v5541_v42 = vmul.f32 %v13441_v40, %v13441_v40 }
 0xa2d   :  { %v5510_v1 = vmul.f32 0.03125, %v5479_v9  ;;  %v5540_v44 = vmul.f32 %v13444_v49, %v13444_v49 }
 0xa2e   :  { %v13451_v41 = vsub.f32 %v13372_v46, %v5511_v20  ;;  %v5571_v56 = vsel %vm5452_vm7, %v5541_v42, 0.0 }
 0xa2f   :  { %v13455_v31 = vsub.f32 %v13374_v34, %v5510_v1  ;;  %v5568_v58 = vsel %vm5452_vm7, %v5540_v44, 0.0  ;;  %5572 = vadd.xlane.f32.xlu1 %v5571_v56  ;;  %v5488_v12 = vpop.xlane.xlu1 %5487  ;;  %v5704_v1 = vld [vmem:[#allocation7 + $0x100] sm:$0xff]  ;;  %v5705_v44 = vld [vmem:[#allocation7 + $0x108] sm:$0xff] }
 0xa30   :  { %v5485_v14 = vpop.xlane.xlu0 %5484  ;;  %5569 = vadd.xlane.f32.xlu0 %v5568_v58  ;;  %v5513_v29 = vmul.f32 0.03125, %v5488_v12  ;;  %v5543_v30 = vmul.f32 %v13451_v41, %v13451_v41  ;;  %v10402_v56 = vpack.c.bf16 %v5705_v44, %v5704_v1  ;;  %v5706_v58 = vld [vmem:[#allocation7 + $0x110] sm:$0xff]  ;;  %v5707_v12 = vld [vmem:[#allocation7 + $0x118] sm:$0xff] }
 0xa31   :  { %v5512_v24 = vmul.f32 0.03125, %v5485_v14  ;;  %v5542_v32 = vmul.f32 %v13455_v31, %v13455_v31  ;;  %v10406_v14 = vpack.c.bf16 %v5707_v12, %v5706_v58 }
 0xa32   :  { %v13463_v21 = vsub.f32 %v13380_v45, %v5513_v29  ;;  %v5577_v28 = vsel %vm5452_vm7, %v5543_v30, 0.0  ;;  %10403 = vmatprep.subr.bf16.mxu1 %v10402_v56 }
 0xa33   :  { %v13467_v35 = vsub.f32 %v13382_v39, %v5512_v24  ;;  %v5574_v4 = vsel %vm5452_vm7, %v5542_v32, 0.0  ;;  %5578 = vadd.xlane.f32.xlu1 %v5577_v28  ;;  %v5494_v59 = vpop.xlane.xlu1 %5493  ;;  %10405 = vmatpush3.bf16.msra.mxu1 %v10402_v56 }
 0xa34   :  { %v5491_v55 = vpop.xlane.xlu0 %5490  ;;  %5575 = vadd.xlane.f32.xlu0 %v5574_v4  ;;  %v5515_v52 = vmul.f32 0.03125, %v5494_v59  ;;  %v5545_v33 = vmul.f32 %v13463_v21, %v13463_v21  ;;  %10407 = vmatprep.subr.bf16.mxu1 %v10406_v14 }
 0xa35   :  { %v5514_v37 = vmul.f32 0.03125, %v5491_v55  ;;  %v5544_v38 = vmul.f32 %v13467_v35, %v13467_v35 }
 0xa36   :  { %v13475_v3 = vsub.f32 %v13388_v0, %v5515_v52  ;;  %v5583_v10 = vsel %vm5452_vm7, %v5545_v33, 0.0 }
 0xa37   :  { %v13479_v22 = vsub.f32 %v13390_v11, %v5514_v37  ;;  %v5580_v6 = vsel %vm5452_vm7, %v5544_v38, 0.0  ;;  %5584 = vadd.xlane.f32.xlu1 %v5583_v10  ;;  %10409 = vmatpush3.bf16.msra.mxu1 %v10406_v14  ;;  %v13505_v14 = vld [vmem:[#allocation7 + $0xf8] ss:$0 sm:$0xff] }
 0xa38   :  { %5581 = vadd.xlane.f32.xlu0 %v5580_v6  ;;  %v5547_v53 = vmul.f32 %v13475_v3, %v13475_v3  ;;  %v5500_v48 = vpop.xlane.xlu1 %5499 }
 0xa39   :  { %v5546_v17 = vmul.f32 %v13479_v22, %v13479_v22  ;;  %v5517_v13 = vmul.f32 0.03125, %v5500_v48  ;;  %v5497_v7 = vpop.xlane.xlu0 %5496 }
 0xa3a   :  { %v5589_v43 = vsel %vm5452_vm7, %v5547_v53, 0.0  ;;  %v5516_v57 = vmul.f32 0.03125, %v5497_v7 }
 0xa3b   :  { %v5586_v2 = vsel %vm5452_vm7, %v5546_v17, 0.0  ;;  %5590 = vadd.xlane.f32.xlu1 %v5589_v43  ;;  %v13489_v61 = vsub.f32 %v13396_v51, %v5517_v13 }
 0xa3c   :  { %5587 = vadd.xlane.f32.xlu0 %v5586_v2  ;;  %v13492_v15 = vsub.f32 %v13398_v60, %v5516_v57  ;;  %v13500_v57 = vld [vmem:[#allocation7 + $0xf0] ss:$0 sm:$0xff] }
 0xa3d   :  { %v5549_v26 = vmul.f32 %v13489_v61, %v13489_v61 }
 0xa3e   :  { %v5548_v9 = vmul.f32 %v13492_v15, %v13492_v15 }
 0xa3f   :  { %v5595_v20 = vsel %vm5452_vm7, %v5549_v26, 0.0 }
 0xa40   :  { %5596 = vadd.xlane.f32.xlu1 %v5595_v20  ;;  %v5592_v42 = vsel %vm5452_vm7, %v5548_v9, 0.0 }
 0xa41   :  { %5593 = vadd.xlane.f32.xlu0 %v5592_v42 }
 0xaae   :  { %v5555_v29 = vpop.xlane.xlu1 %5554 }
 0xaaf   :  { %v5599_v30 = vmul.f32 0.03125, %v5555_v29  ;;  %v5552_v24 = vpop.xlane.xlu0 %5551 }
 0xab0   :  { %v5598_v32 = vmul.f32 0.03125, %v5552_v24 }
 0xab1   :  { %v5615_v28 = vadd.f32 1e-05, %v5599_v30 }
 0xab2   :  { %v5614_v4 = vadd.f32 1e-05, %v5598_v32 }
 0xab3   :  { %11277 = vrsqrt.f32 %v5615_v28  ;;  %v5558_v59 = vpop.xlane.xlu0 %5557  ;;  %v5561_v55 = vpop.xlane.xlu1 %5560 }
 0xab4   :  { %11279 = vrsqrt.f32 %v5614_v4  ;;  %v5600_v52 = vmul.f32 0.03125, %v5558_v59  ;;  %v5601_v33 = vmul.f32 0.03125, %v5561_v55 }
 0xab6   :  { %v5616_v37 = vadd.f32 1e-05, %v5600_v52  ;;  %v5617_v38 = vadd.f32 1e-05, %v5601_v33 }
 0xab7   :  { %v5564_v10 = vpop.xlane.xlu0 %5563  ;;  %v5567_v6 = vpop.xlane.xlu1 %5566 }
 0xab8   :  { %11281 = vrsqrt.f32 %v5616_v37  ;;  %v5602_v53 = vmul.f32 0.03125, %v5564_v10  ;;  %v5603_v48 = vmul.f32 0.03125, %v5567_v6 }
 0xab9   :  { %11283 = vrsqrt.f32 %v5617_v38 }
 0xaba   :  { %v5618_v17 = vadd.f32 1e-05, %v5602_v53  ;;  %v5619_v13 = vadd.f32 1e-05, %v5603_v48 }
 0xabc   :  { %11285 = vrsqrt.f32 %v5618_v17  ;;  %v5573_v7 = vpop.xlane.xlu1 %5572 }
 0xabd   :  { %v11278_v43 = vpop.eup %11277  ;;  %11287 = vrsqrt.f32 %v5619_v13  ;;  %v5570_v2 = vpop.xlane.xlu0 %5569  ;;  %v5605_v26 = vmul.f32 0.03125, %v5573_v7 }
 0xabe   :  { %v11280_v9 = vpop.eup %11279  ;;  %v5647_v20 = vmul.f32 %v11278_v43, %v13405_v27  ;;  %v5604_v42 = vmul.f32 0.03125, %v5570_v2 }
 0xabf   :  { %v5621_v1 = vadd.f32 1e-05, %v5605_v26  ;;  %v5646_v44 = vmul.f32 %v11280_v9, %v13408_v25 }
 0xac0   :  { %v5668_v56 = vmul.f32 %v13500_v57, %v5647_v20  ;;  %v5620_v58 = vadd.f32 1e-05, %v5604_v42  ;;  %v5579_v12 = vpop.xlane.xlu1 %5578 }
 0xac1   :  { %11289 = vrsqrt.f32 %v5621_v1  ;;  %v5576_v29 = vpop.xlane.xlu0 %5575  ;;  %v5607_v30 = vmul.f32 0.03125, %v5579_v12  ;;  %v5667_v24 = vmul.f32 %v13500_v57, %v5646_v44 }
 0xac2   :  { %v11282_v32 = vpop.eup %11281  ;;  %11291 = vrsqrt.f32 %v5620_v58  ;;  %v5606_v28 = vmul.f32 0.03125, %v5576_v29  ;;  %v5689_v33 = vadd.f32 %v13505_v14, %v5668_v56 }
 0xac3   :  { %v11284_v4 = vpop.eup %11283  ;;  %v5623_v27 = vadd.f32 1e-05, %v5607_v30  ;;  %v5688_v59 = vadd.f32 %v13505_v14, %v5667_v24  ;;  %v5648_v25 = vmul.f32 %v11282_v32, %v13416_v19 }
 0xac4   :  { %v5622_v55 = vadd.f32 1e-05, %v5606_v28  ;;  %v5585_v52 = vpop.xlane.xlu1 %5584  ;;  %v5649_v37 = vmul.f32 %v11284_v4, %v13419_v47 }
 0xac5   :  { %11293 = vrsqrt.f32 %v5623_v27  ;;  %v5582_v38 = vpop.xlane.xlu0 %5581  ;;  %v5609_v10 = vmul.f32 0.03125, %v5585_v52  ;;  %9786 = vmatprep.mubr.msk.f32.mxu1 %vm5452_vm7, %v5688_v59  ;;  %v5669_v6 = vmul.f32 %v13500_v57, %v5648_v25 }
 0xac6   :  { %v11286_v53 = vpop.eup %11285  ;;  %11295 = vrsqrt.f32 %v5622_v55  ;;  %v5608_v48 = vmul.f32 0.03125, %v5582_v38  ;;  %9787 = vmatmul.mubr.msk.f32.vlgmr.msra.gmra.mrb[236].mxu1 %vm5452_vm7, %v5689_v33  ;;  %v5670_v19 = vmul.f32 %v13500_v57, %v5649_v37 }
 0xac7   :  { %v11288_v17 = vpop.eup %11287  ;;  %v5625_v13 = vadd.f32 1e-05, %v5609_v10  ;;  %v5690_v7 = vadd.f32 %v13505_v14, %v5669_v6  ;;  %v5650_v47 = vmul.f32 %v11286_v53, %v13427_v5 }
 0xac8   :  { %v5624_v43 = vadd.f32 1e-05, %v5608_v48  ;;  %v5591_v2 = vpop.xlane.xlu1 %5590  ;;  %v5691_v26 = vadd.f32 %v13505_v14, %v5670_v19  ;;  %v5651_v9 = vmul.f32 %v11288_v17, %v13430_v63 }
 0xac9   :  { %11297 = vrsqrt.f32 %v5625_v13  ;;  %v5588_v20 = vpop.xlane.xlu0 %5587  ;;  %v5611_v42 = vmul.f32 0.03125, %v5591_v2  ;;  %9789 = vmatprep.mubr.msk.f32.mxu1 %vm5452_vm7, %v5690_v7  ;;  %v5671_v1 = vmul.f32 %v13500_v57, %v5650_v47 }
 0xaca   :  { %11299 = vrsqrt.f32 %v5624_v43  ;;  %v5610_v44 = vmul.f32 0.03125, %v5588_v20  ;;  %9790 = vmatmul.mubr.msk.f32.gmra.mrb[238].mxu1 %vm5452_vm7, %v5691_v26  ;;  %v5672_v56 = vmul.f32 %v13500_v57, %v5651_v9 }
 0xacb   :  { %v11290_v5 = vpop.eup %11289  ;;  %v5627_v58 = vadd.f32 1e-05, %v5611_v42  ;;  %v5692_v12 = vadd.f32 %v13505_v14, %v5671_v1 }
 0xacc   :  { %v11292_v29 = vpop.eup %11291  ;;  %v5626_v30 = vadd.f32 1e-05, %v5610_v44  ;;  %v5693_v63 = vadd.f32 %v13505_v14, %v5672_v56  ;;  %v5653_v24 = vmul.f32 %v11290_v5, %v13441_v40 }
 0xacd   :  { %11301 = vrsqrt.f32 %v5627_v58  ;;  %9792 = vmatprep.mubr.msk.f32.mxu1 %vm5452_vm7, %v5692_v12  ;;  %v5652_v32 = vmul.f32 %v11292_v29, %v13444_v49  ;;  %v5597_v28 = vpop.xlane.xlu1 %5596 }
 0xace   :  { %11303 = vrsqrt.f32 %v5626_v30  ;;  %9793 = vmatmul.mubr.msk.f32.gmra.mrb[240].mxu1 %vm5452_vm7, %v5693_v63  ;;  %v5674_v4 = vmul.f32 %v13500_v57, %v5653_v24  ;;  %v5613_v59 = vmul.f32 0.03125, %v5597_v28  ;;  %v5594_v25 = vpop.xlane.xlu0 %5593  ;;  %v8084_v24 = vld [vmem:[#allocation7 + $0x120] ss:$0 sm:$0xff] }
 0xacf   :  { %v11294_v27 = vpop.eup %11293  ;;  %v5673_v55 = vmul.f32 %v13500_v57, %v5652_v32  ;;  %v5612_v33 = vmul.f32 0.03125, %v5594_v25 }
 0xad0   :  { %v11296_v52 = vpop.eup %11295  ;;  %v5695_v40 = vadd.f32 %v13505_v14, %v5674_v4  ;;  %v5655_v37 = vmul.f32 %v11294_v27, %v13451_v41  ;;  %v5629_v38 = vadd.f32 1e-05, %v5613_v59 }
 0xad1   :  { %v5694_v49 = vadd.f32 %v13505_v14, %v5673_v55  ;;  %v5654_v10 = vmul.f32 %v11296_v52, %v13455_v31  ;;  %v5628_v6 = vadd.f32 1e-05, %v5612_v33 }
 0xad2   :  { %v5676_v53 = vmul.f32 %v13500_v57, %v5655_v37  ;;  %11305 = vrsqrt.f32 %v5629_v38 }
 0xad3   :  { %v11298_v48 = vpop.eup %11297  ;;  %9795 = vmatprep.mubr.msk.f32.mxu1 %vm5452_vm7, %v5694_v49  ;;  %v5675_v19 = vmul.f32 %v13500_v57, %v5654_v10  ;;  %11307 = vrsqrt.f32 %v5628_v6 }
 0xad4   :  { %v11300_v17 = vpop.eup %11299  ;;  %9796 = vmatmul.mubr.msk.f32.gmra.mrb[242].mxu1 %vm5452_vm7, %v5695_v40  ;;  %v5697_v41 = vadd.f32 %v13505_v14, %v5676_v53  ;;  %v5657_v13 = vmul.f32 %v11298_v48, %v13463_v21 }
 0xad5   :  { %v5696_v7 = vadd.f32 %v13505_v14, %v5675_v19  ;;  %v5656_v31 = vmul.f32 %v11300_v17, %v13467_v35 }
 0xad6   :  { %v5678_v47 = vmul.f32 %v13500_v57, %v5657_v13 }
 0xad7   :  { %v11302_v43 = vpop.eup %11301  ;;  %9798 = vmatprep.mubr.msk.f32.mxu1 %vm5452_vm7, %v5696_v7  ;;  %v5677_v2 = vmul.f32 %v13500_v57, %v5656_v31 }
 0xad8   :  { %v11304_v26 = vpop.eup %11303  ;;  %9799 = vmatmul.mubr.msk.f32.gmra.mrb[244].mxu1 %vm5452_vm7, %v5697_v41  ;;  %v5699_v9 = vadd.f32 %v13505_v14, %v5678_v47  ;;  %v5659_v20 = vmul.f32 %v11302_v43, %v13475_v3 }
 0xad9   :  { %v5698_v21 = vadd.f32 %v13505_v14, %v5677_v2  ;;  %v5658_v42 = vmul.f32 %v11304_v26, %v13479_v22 }
 0xada   :  { %v5680_v35 = vmul.f32 %v13500_v57, %v5659_v20 }
 0xadb   :  { %9801 = vmatprep.mubr.msk.f32.mxu1 %vm5452_vm7, %v5698_v21  ;;  %v5679_v1 = vmul.f32 %v13500_v57, %v5658_v42 }
 0xadc   :  { %9802 = vmatmul.mubr.msk.f32.gmra.mrb[246].mxu1 %vm5452_vm7, %v5699_v9  ;;  %v5701_v44 = vadd.f32 %v13505_v14, %v5680_v35  ;;  %v11306_v56 = vpop.eup %11305 }
 0xadd   :  { %v5700_v5 = vadd.f32 %v13505_v14, %v5679_v1  ;;  %v11308_v58 = vpop.eup %11307  ;;  %v5661_v3 = vmul.f32 %v11306_v56, %v13489_v61 }
 0xade   :  { %v5660_v22 = vmul.f32 %v11308_v58, %v13492_v15 }
 0xadf   :  { %9804 = vmatprep.mubr.msk.f32.mxu1 %vm5452_vm7, %v5700_v5  ;;  %v5682_v12 = vmul.f32 %v13500_v57, %v5661_v3 }
 0xae0   :  { %9805 = vmatmul.mubr.msk.f32.gmra.mrb[248].mxu1 %vm5452_vm7, %v5701_v44  ;;  %v5681_v29 = vmul.f32 %v13500_v57, %v5660_v22 }
 0xae1   :  { %v5703_v63 = vadd.f32 %v13505_v14, %v5682_v12 }
 0xae2   :  { %v5702_v30 = vadd.f32 %v13505_v14, %v5681_v29 }
 0xae4   :  { %9807 = vmatprep.mubr.msk.f32.mxu1 %vm5452_vm7, %v5702_v30 }
 0xae5   :  { %9808 = vmatmul.mubr.msk.f32.gmra.mrb[250].mxu1 %vm5452_vm7, %v5703_v63 }
 0xb99   :  { %v9788_v61 = vpop.f32.mrb[236].mxu1 }
 0xb9a   :  { %v13568_v32 = vadd.f32 %v9788_v61, %v8084_v24  ;;  %v5827_v28 = vpop.f32.mrb[237].mxu1 }
 0xb9b   :  { %v5828_v15 = vadd.f32 %v8084_v24, %v5827_v28 }
 0xb9d   :  { %v9791_v4 = vpop.f32.mrb[238].mxu1  ;;  %9826 = vmatprep.mubr.msk.f32.mxu0 %vm5930_vm8, %v5828_v15  ;;  %v13572_v57 = vpack.i.bf16 %v13568_v32, %v5828_v15 }
 0xb9e   :  { %v13574_v27 = vadd.f32 %v9791_v4, %v8084_v24  ;;  %v5837_v14 = vpop.f32.mrb[239].mxu1 }
 0xb9f   :  { %v13576_v59 = vadd.f32 %v8084_v24, %v5837_v14  ;;  %10979 = vrot.lane.b32.xlu1 %v13572_v57, %s11687_s27  ;;  %10974 = vrot.lane.b32.xlu0 %v13572_v57, %s11688_s28 }
 0xba1   :  { %v9794_v25 = vpop.f32.mrb[240].mxu1  ;;  %v10988_v55 = vpack.i.bf16 %v13574_v27, %v13576_v59 }
 0xba2   :  { %v13584_v52 = vadd.f32 %v9794_v25, %v8084_v24  ;;  %v5847_v33 = vpop.f32.mrb[241].mxu1 }
 0xba3   :  { %v13586_v40 = vadd.f32 %v8084_v24, %v5847_v33  ;;  %10989 = vrot.lane.b32.xlu0 %v10988_v55, %s11687_s27  ;;  %10984 = vrot.lane.b32.xlu1 %v10988_v55, %s11688_s28 }
 0xba5   :  { %v10998_v37 = vpack.i.bf16 %v13584_v52, %v13586_v40 }
 0xba7   :  { %v9797_v38 = vpop.f32.mrb[242].mxu1  ;;  %10999 = vrot.lane.b32.xlu0 %v10998_v37, %s11687_s27  ;;  %10994 = vrot.lane.b32.xlu1 %v10998_v37, %s11688_s28 }
 0xba8   :  { %v13594_v49 = vadd.f32 %v9797_v38, %v8084_v24  ;;  %v5857_v10 = vpop.f32.mrb[243].mxu1 }
 0xba9   :  { %v13596_v6 = vadd.f32 %v8084_v24, %v5857_v10 }
 0xbab   :  { %v9800_v53 = vpop.f32.mrb[244].mxu1  ;;  %v13600_v48 = vpack.i.bf16 %v13594_v49, %v13596_v6 }
 0xbac   :  { %v13602_v19 = vadd.f32 %v9800_v53, %v8084_v24  ;;  %v5867_v17 = vpop.f32.mrb[245].mxu1 }
 0xbad   :  { %v13604_v41 = vadd.f32 %v8084_v24, %v5867_v17  ;;  %11009 = vrot.lane.b32.xlu0 %v13600_v48, %s11687_s27  ;;  %11004 = vrot.lane.b32.xlu1 %v13600_v48, %s11688_s28 }
 0xbaf   :  { %v9803_v13 = vpop.f32.mrb[246].mxu1  ;;  %v13612_v7 = vpack.i.bf16 %v13602_v19, %v13604_v41 }
 0xbb0   :  { %v13614_v31 = vadd.f32 %v9803_v13, %v8084_v24  ;;  %v5877_v47 = vpop.f32.mrb[247].mxu1 }
 0xbb1   :  { %v13616_v43 = vadd.f32 %v8084_v24, %v5877_v47  ;;  %6309 = vrot.lane.b32.xlu0 %v5828_v15, %s11689_s29  ;;  %11014 = vrot.lane.b32.xlu1 %v13612_v7, %s11688_s28 }
 0xbb3   :  { %v9806_v2 = vpop.f32.mrb[248].mxu1  ;;  %v13623_v26 = vpack.i.bf16 %v13614_v31, %v13616_v43 }
 0xbb4   :  { %v13625_v9 = vadd.f32 %v9806_v2, %v8084_v24  ;;  %v5887_v20 = vpop.f32.mrb[249].mxu1 }
 0xbb5   :  { %v13627_v21 = vadd.f32 %v8084_v24, %v5887_v20  ;;  %6311 = vrot.lane.b32.xlu1 %v13568_v32, %s11689_s29  ;;  %11019 = vrot.lane.b32.xlu0 %v13623_v26, %s11688_s28 }
 0xbb7   :  { %v13635_v42 = vpack.i.bf16 %v13625_v9, %v13627_v21 }
 0xbb8   :  { %v9809_v35 = vpop.f32.mrb[250].mxu1 }
 0xbb9   :  { %6313 = vrot.lane.b32.xlu0 %v13576_v59, %s11689_s29  ;;  %11024 = vrot.lane.b32.xlu1 %v13635_v42, %s11688_s28  ;;  %v13641_v1 = vadd.f32 %v9809_v35, %v8084_v24  ;;  %v5897_v44 = vpop.f32.mrb[251].mxu1 }
 0xbba   :  { %v13643_v56 = vadd.f32 %v8084_v24, %v5897_v44 }
 0xbbc   :  { %v13649_v5 = vpack.i.bf16 %v13641_v1, %v13643_v56 }
 0xbbd   :  { %6315 = vrot.lane.b32.xlu1 %v13574_v27, %s11689_s29 }
 0xbbe   :  { %11029 = vrot.lane.b32.xlu0 %v13649_v5, %s11688_s28 }
 0xbc1   :  { %6317 = vrot.lane.b32.xlu1 %v13586_v40, %s11689_s29 }
 0xbc2   :  { %6319 = vrot.lane.b32.xlu0 %v13584_v52, %s11689_s29 }
 0xbc5   :  { %6321 = vrot.lane.b32.xlu1 %v13596_v6, %s11689_s29 }
 0xbc6   :  { %6323 = vrot.lane.b32.xlu0 %v13594_v49, %s11689_s29 }
 0xbc9   :  { %11039 = vrot.lane.b32.xlu1 %v10988_v55, %s11690_s30 }
 0xbca   :  { %11034 = vrot.lane.b32.xlu0 %v13572_v57, %s11690_s30 }
 0xbcd   :  { %11044 = vrot.lane.b32.xlu1 %v10998_v37, %s11690_s30 }
 0xbce   :  { %11049 = vrot.lane.b32.xlu0 %v13600_v48, %s11690_s30 }
 0xbd1   :  { %11054 = vrot.lane.b32.xlu1 %v13572_v57, %s11691_s4 }
 0xbd2   :  { %11059 = vrot.lane.b32.xlu0 %v10988_v55, %s11691_s4 }
 0xbd6   :  { %11064 = vrot.lane.b32.xlu0 %v10998_v37, %s11691_s4 }
 0xc11   :  { %v10975_v58 = vpop.permute.xlu0 %10974  ;;  %v10980_v3 = vpop.permute.xlu1 %10979 }
 0xc12   :  { %v10977_v22 = vunpack.i.h.bf16 %v10975_v58  ;;  %v10976_v12 = vunpack.i.l.bf16 %v10975_v58  ;;  %v10982_v29 = vunpack.i.h.bf16 %v10980_v3  ;;  %v10981_v30 = vunpack.i.l.bf16 %v10980_v3 }
 0xc14   :  { %v10410_v24 = vpack.c.bf16 %v10977_v22, %v10976_v12  ;;  %v10450_v61 = vpack.c.bf16 %v10982_v29, %v10981_v30 }
 0xc15   :  { %v10990_v28 = vpop.permute.xlu0 %10989  ;;  %v10985_v15 = vpop.permute.xlu1 %10984 }
 0xc16   :  { %v10992_v4 = vunpack.i.h.bf16 %v10990_v28  ;;  %v10991_v57 = vunpack.i.l.bf16 %v10990_v28  ;;  %v10987_v14 = vunpack.i.h.bf16 %v10985_v15  ;;  %v10986_v25 = vunpack.i.l.bf16 %v10985_v15  ;;  %10412 = vmatprep.subr.msk.bf16.mxu0 %vm13673_vm9, %v10410_v24  ;;  %10452 = vmatprep.subr.msk.bf16.mxu1 %vm13673_vm9, %v10450_v61 }
 0xc17   :  { %10415 = vmatpush3.bf16.xpose.msk.msra.mxu0 %vm13673_vm9, %v10410_v24  ;;  %10455 = vmatpush3.bf16.xpose.msk.msra.mxu1 %vm13673_vm9, %v10450_v61 }
 0xc18   :  { %v10456_v55 = vpack.c.bf16 %v10992_v4, %v10991_v57  ;;  %v10416_v33 = vpack.c.bf16 %v10987_v14, %v10986_v25 }
 0xc19   :  { %v11000_v37 = vpop.permute.xlu0 %10999  ;;  %v10995_v38 = vpop.permute.xlu1 %10994 }
 0xc1a   :  { %v11002_v10 = vunpack.i.h.bf16 %v11000_v37  ;;  %v11001_v53 = vunpack.i.l.bf16 %v11000_v37  ;;  %v10997_v17 = vunpack.i.h.bf16 %v10995_v38  ;;  %v10996_v13 = vunpack.i.l.bf16 %v10995_v38  ;;  %10418 = vmatprep.subr.msk.bf16.mxu0 %vm13673_vm9, %v10416_v33  ;;  %10458 = vmatprep.subr.msk.bf16.mxu1 %vm13673_vm9, %v10456_v55 }
 0xc1c   :  { %v10462_v47 = vpack.c.bf16 %v11002_v10, %v11001_v53  ;;  %v10422_v2 = vpack.c.bf16 %v10997_v17, %v10996_v13 }
 0xc1f   :  { %v11010_v20 = vpop.permute.xlu0 %11009  ;;  %v11005_v35 = vpop.permute.xlu1 %11004  ;;  %10421 = vmatpush3.bf16.xpose.msk.msra.mxu0 %vm13673_vm9, %v10416_v33  ;;  %10461 = vmatpush3.bf16.xpose.msk.msra.mxu1 %vm13673_vm9, %v10456_v55 }
 0xc20   :  { %10424 = vmatprep.subr.msk.bf16.mxu0 %vm13673_vm9, %v10422_v2  ;;  %10464 = vmatprep.subr.msk.bf16.mxu1 %vm13673_vm9, %v10462_v47  ;;  %v11012_v44 = vunpack.i.h.bf16 %v11010_v20  ;;  %v11011_v58 = vunpack.i.l.bf16 %v11010_v20  ;;  %v11007_v3 = vunpack.i.h.bf16 %v11005_v35  ;;  %v11006_v22 = vunpack.i.l.bf16 %v11005_v35 }
 0xc22   :  { %v10468_v30 = vpack.c.bf16 %v11012_v44, %v11011_v58  ;;  %v10428_v24 = vpack.c.bf16 %v11007_v3, %v11006_v22 }
 0xc23   :  { %v6310_v12 = vpop.permute.xlu0 %6309  ;;  %v11015_v29 = vpop.permute.xlu1 %11014 }
 0xc24   :  { %9882 = vmatprep.mubr.msk.f32.mxu1 %vm5930_vm8, %v6310_v12  ;;  %v11017_v15 = vunpack.i.h.bf16 %v11015_v29  ;;  %v11016_v4 = vunpack.i.l.bf16 %v11015_v29 }
 0xc26   :  { %v10490_v25 = vpack.c.bf16 %v11017_v15, %v11016_v4 }
 0xc27   :  { %v11020_v61 = vpop.permute.xlu0 %11019  ;;  %v6312_v28 = vpop.permute.xlu1 %6311  ;;  %10427 = vmatpush3.bf16.xpose.msk.msra.mxu0 %vm13673_vm9, %v10422_v2  ;;  %10467 = vmatpush3.bf16.xpose.msk.msra.mxu1 %vm13673_vm9, %v10462_v47 }
 0xc28   :  { %10430 = vmatprep.subr.msk.bf16.mxu0 %vm13673_vm9, %v10428_v24  ;;  %10470 = vmatprep.subr.msk.bf16.mxu1 %vm13673_vm9, %v10468_v30  ;;  %v11022_v37 = vunpack.i.h.bf16 %v11020_v61  ;;  %v11021_v38 = vunpack.i.l.bf16 %v11020_v61 }
 0xc2a   :  { %v10496_v17 = vpack.c.bf16 %v11022_v37, %v11021_v38 }
 0xc2b   :  { %v11025_v57 = vpop.permute.xlu1 %11024  ;;  %v6314_v14 = vpop.permute.xlu0 %6313 }
 0xc2c   :  { %v11026_v2 = vunpack.i.l.bf16 %v11025_v57 }
 0xc2f   :  { %v6316_v55 = vpop.permute.xlu1 %6315  ;;  %10433 = vmatpush3.bf16.xpose.msk.msra.mxu0 %vm13673_vm9, %v10428_v24  ;;  %10473 = vmatpush3.bf16.xpose.msk.msra.mxu1 %vm13673_vm9, %v10468_v30 }
 0xc30   :  { %10492 = vmatprep.subr.msk.bf16.mxu1 %vm13673_vm9, %v10490_v25  ;;  %v11030_v33 = vpop.permute.xlu0 %11029 }
 0xc31   :  { %v11032_v30 = vunpack.i.h.bf16 %v11030_v33  ;;  %v11031_v24 = vunpack.i.l.bf16 %v11030_v33 }
 0xc33   :  { %v6318_v10 = vpop.permute.xlu1 %6317  ;;  %v10508_v4 = vpack.c.bf16 %v11032_v30, %v11031_v24 }
 0xc34   :  { %v6320_v53 = vpop.permute.xlu0 %6319 }
 0xc36   :  { %9827 = vmatmul.mubr.msk.f32.vlgmr.msra.gmra.mrb[4].mxu0 %vm5930_vm8, %v13568_v32  ;;  %9883 = vmatmul.mubr.msk.f32.vlgmr.msra.gmra.mrb[252].mxu1 %vm5930_vm8, %v6312_v28  ;;  %v11027_v32 = vunpack.i.h.bf16 %v11025_v57 }
 0xc37   :  { %v6322_v13 = vpop.permute.xlu1 %6321  ;;  %9829 = vmatprep.mubr.msk.f32.mxu0 %vm5930_vm8, %v13576_v59  ;;  %9885 = vmatprep.mubr.msk.f32.mxu1 %vm5930_vm8, %v6314_v14 }
 0xc38   :  { %10495 = vmatpush3.bf16.xpose.msk.msra.mxu1 %vm13673_vm9, %v10490_v25  ;;  %v6324_v47 = vpop.permute.xlu0 %6323 }
 0xc39   :  { %10498 = vmatprep.subr.msk.bf16.mxu1 %vm13673_vm9, %v10496_v17 }
 0xc3a   :  { %9830 = vmatmul.mubr.msk.f32.gmra.mrb[6].mxu0 %vm5930_vm8, %v13574_v27  ;;  %9886 = vmatmul.mubr.msk.f32.gmra.mrb[254].mxu1 %vm5930_vm8, %v6316_v55  ;;  %v10502_v27 = vpack.c.bf16 %v11027_v32, %v11026_v2 }
 0xc3b   :  { %v11040_v20 = vpop.permute.xlu1 %11039  ;;  %9832 = vmatprep.mubr.msk.f32.mxu0 %vm5930_vm8, %v13586_v40  ;;  %9888 = vmatprep.mubr.msk.f32.mxu1 %vm5930_vm8, %v6318_v10 }
 0xc3c   :  { %v11035_v59 = vpop.permute.xlu0 %11034  ;;  %v11042_v35 = vunpack.i.h.bf16 %v11040_v20  ;;  %v11041_v44 = vunpack.i.l.bf16 %v11040_v20 }
 0xc3d   :  { %v11037_v58 = vunpack.i.h.bf16 %v11035_v59  ;;  %v11036_v3 = vunpack.i.l.bf16 %v11035_v59 }
 0xc3e   :  { %9833 = vmatmul.mubr.msk.f32.gmra.mrb[8].mxu0 %vm5930_vm8, %v13584_v52  ;;  %9889 = vmatmul.mubr.msk.f32.gmra.mrb[0].mxu1 %vm5930_vm8, %v6320_v53  ;;  %v10438_v52 = vpack.c.bf16 %v11042_v35, %v11041_v44 }
 0xc3f   :  { %v11045_v22 = vpop.permute.xlu1 %11044  ;;  %9835 = vmatprep.mubr.msk.f32.mxu0 %vm5930_vm8, %v13596_v6  ;;  %9891 = vmatprep.mubr.msk.f32.mxu1 %vm5930_vm8, %v6322_v13  ;;  %v10434_v40 = vpack.c.bf16 %v11037_v58, %v11036_v3 }
 0xc40   :  { %10501 = vmatpush3.bf16.xpose.msk.msra.mxu1 %vm13673_vm9, %v10496_v17  ;;  %v11047_v12 = vunpack.i.h.bf16 %v11045_v22  ;;  %v11046_v29 = vunpack.i.l.bf16 %v11045_v22  ;;  %v11050_v61 = vpop.permute.xlu0 %11049 }
 0xc41   :  { %10504 = vmatprep.subr.msk.bf16.mxu1 %vm13673_vm9, %v10502_v27  ;;  %10435 = vmatprep.subr.bf16.mxu0 %v10434_v40  ;;  %v11052_v6 = vunpack.i.h.bf16 %v11050_v61  ;;  %v11051_v28 = vunpack.i.l.bf16 %v11050_v61 }
 0xc42   :  { %9836 = vmatmul.mubr.msk.f32.gmra.mrb[10].mxu0 %vm5930_vm8, %v13594_v49  ;;  %9892 = vmatmul.mubr.msk.f32.gmra.mrb[2].mxu1 %vm5930_vm8, %v6324_v47  ;;  %v10442_v15 = vpack.c.bf16 %v11047_v12, %v11046_v29 }
 0xc43   :  { %10437 = vmatpush3.bf16.msra.mxu0 %v10434_v40  ;;  %9938 = vmatprep.mubr.msk.f32.mxu1 %vm5930_vm8, %v13604_v41  ;;  %v11055_v57 = vpop.permute.xlu1 %11054  ;;  %v10446_v49 = vpack.c.bf16 %v11052_v6, %v11051_v28 }
 0xc44   :  { %10439 = vmatprep.subr.bf16.mxu0 %v10438_v52  ;;  %v11057_v14 = vunpack.i.h.bf16 %v11055_v57  ;;  %v11056_v25 = vunpack.i.l.bf16 %v11055_v57 }
 0xc46   :  { %v13747_v55 = vpack.c.bf16 %v11057_v14, %v11056_v25 }
 0xc47   :  { %10441 = vmatpush3.bf16.msra.mxu0 %v10438_v52 }
 0xc48   :  { %10443 = vmatprep.subr.bf16.mxu0 %v10442_v15  ;;  %10507 = vmatpush3.bf16.xpose.msk.msra.mxu1 %vm13673_vm9, %v10502_v27 }
 0xc49   :  { %10510 = vmatprep.subr.msk.bf16.mxu1 %vm13673_vm9, %v10508_v4 }
 0xc4b   :  { %10445 = vmatpush3.bf16.msra.mxu0 %v10442_v15 }
 0xc4c   :  { %10447 = vmatprep.subr.bf16.mxu0 %v10446_v49 }
 0xc4f   :  { %10449 = vmatpush3.bf16.msra.mxu0 %v10446_v49 }
 0xc50   :  { %10475 = vmatprep.subr.bf16.mxu0 %v13747_v55  ;;  %10513 = vmatpush3.bf16.xpose.msk.msra.mxu1 %vm13673_vm9, %v10508_v4 }
 0xc57   :  { %9939 = vmatmul.mubr.msk.f32.vlgmr.msra.gmra.mrb[4].mxu1 %vm5930_vm8, %v13602_v19 }
 0xc58   :  { %9941 = vmatprep.mubr.msk.f32.mxu1 %vm5930_vm8, %v13616_v43 }
 0xc5b   :  { %9942 = vmatmul.mubr.msk.f32.gmra.mrb[6].mxu1 %vm5930_vm8, %v13614_v31 }
 0xc5c   :  { %9944 = vmatprep.mubr.msk.f32.mxu1 %vm5930_vm8, %v13627_v21 }
 0xc5f   :  { %9945 = vmatmul.mubr.msk.f32.gmra.mrb[8].mxu1 %vm5930_vm8, %v13625_v9 }
 0xc60   :  { %9947 = vmatprep.mubr.msk.f32.mxu1 %vm5930_vm8, %v13643_v56 }
 0xc63   :  { %9948 = vmatmul.mubr.msk.f32.gmra.mrb[10].mxu1 %vm5930_vm8, %v13641_v1 }
 0xd09   :  { %v13766_v33 = vpop.f32.mrb[4].mxu0  ;;  %v13768_v37 = vpop.f32.mrb[252].mxu1 }
 0xd0a   :  { %v13770_v38 = vpop.f32.mrb[5].mxu0  ;;  %v13772_v10 = vpop.f32.mrb[253].mxu1  ;;  %v6071_v53 = vsel %vm287_vm0, %v13766_v33, -inf  ;;  %v6481_v17 = vsel %vm287_vm0, %v13768_v37, -inf }
 0xd0b   :  { %6072 = vmax.xlane.f32.xlu0 %v6071_v53  ;;  %6482 = vmax.xlane.f32.xlu1 %v6481_v17  ;;  %v6068_v20 = vsel %vm287_vm0, %v13770_v38, -inf  ;;  %v6478_v59 = vsel %vm287_vm0, %v13772_v10, -inf }
 0xd0d   :  { %v13778_v13 = vpop.f32.mrb[6].mxu0  ;;  %v13780_v47 = vpop.f32.mrb[254].mxu1 }
 0xd0e   :  { %v13782_v32 = vpop.f32.mrb[7].mxu0  ;;  %v13784_v2 = vpop.f32.mrb[255].mxu1  ;;  %v6077_v27 = vsel %vm287_vm0, %v13778_v13, -inf  ;;  %v6487_v52 = vsel %vm287_vm0, %v13780_v47, -inf }
 0xd0f   :  { %6069 = vmax.xlane.f32.xlu1 %v6068_v20  ;;  %6479 = vmax.xlane.f32.xlu0 %v6478_v59  ;;  %v6074_v22 = vsel %vm287_vm0, %v13782_v32, -inf  ;;  %v6484_v30 = vsel %vm287_vm0, %v13784_v2, -inf }
 0xd11   :  { %v13790_v35 = vpop.f32.mrb[8].mxu0  ;;  %v13792_v44 = vpop.f32.mrb[0].mxu1 }
 0xd12   :  { %v13794_v58 = vpop.f32.mrb[9].mxu0  ;;  %v13796_v3 = vpop.f32.mrb[1].mxu1  ;;  %v6083_v61 = vsel %vm287_vm0, %v13790_v35, -inf  ;;  %v6493_v28 = vsel %vm287_vm0, %v13792_v44, -inf }
 0xd13   :  { %6078 = vmax.xlane.f32.xlu1 %v6077_v27  ;;  %6075 = vmax.xlane.f32.xlu0 %v6074_v22  ;;  %v6080_v6 = vsel %vm287_vm0, %v13794_v58, -inf  ;;  %v6490_v15 = vsel %vm287_vm0, %v13796_v3, -inf }
 0xd15   :  { %v13802_v40 = vpop.f32.mrb[10].mxu0  ;;  %v13804_v12 = vpop.f32.mrb[2].mxu1 }
 0xd16   :  { %v13806_v29 = vpop.f32.mrb[11].mxu0  ;;  %v13812_v24 = vpop.f32.mrb[3].mxu1  ;;  %v6089_v4 = vsel %vm287_vm0, %v13802_v40, -inf  ;;  %v6499_v49 = vsel %vm287_vm0, %v13804_v12, -inf }
 0xd17   :  { %6488 = vmax.xlane.f32.xlu1 %v6487_v52  ;;  %6485 = vmax.xlane.f32.xlu0 %v6484_v30  ;;  %v6086_v57 = vsel %vm287_vm0, %v13806_v29, -inf  ;;  %v6496_v14 = vsel %vm287_vm0, %v13812_v24, -inf }
 0xd1b   :  { %6084 = vmax.xlane.f32.xlu1 %v6083_v61  ;;  %6081 = vmax.xlane.f32.xlu0 %v6080_v6 }
 0xd1f   :  { %6494 = vmax.xlane.f32.xlu1 %v6493_v28  ;;  %6491 = vmax.xlane.f32.xlu0 %v6490_v15 }
 0xd23   :  { %6090 = vmax.xlane.f32.xlu1 %v6089_v4  ;;  %6087 = vmax.xlane.f32.xlu0 %v6086_v57 }
 0xd27   :  { %6500 = vmax.xlane.f32.xlu1 %v6499_v49  ;;  %6497 = vmax.xlane.f32.xlu0 %v6496_v14  ;;  %v13872_v49 = vpop.permute.xlu0 %11059 }
 0xd2a   :  { %v13830_v25 = vpop.f32.mrb[4].mxu1 }
 0xd2b   :  { %v13832_v53 = vpop.f32.mrb[5].mxu1  ;;  %v6923_v17 = vsel %vm287_vm0, %v13830_v25, -inf  ;;  %v13874_v14 = vpop.permute.xlu0 %11064 }
 0xd2c   :  { %6924 = vmax.xlane.f32.xlu1 %v6923_v17  ;;  %v6920_v20 = vsel %vm287_vm0, %v13832_v53, -inf  ;;  %v11067_v54 = vunpack.i.h.bf16 %v13874_v14 }
 0xd2d   :  { %6921 = vmax.xlane.f32.xlu0 %v6920_v20 }
 0xd2e   :  { %v13838_v59 = vpop.f32.mrb[6].mxu1 }
 0xd2f   :  { %v13840_v27 = vpop.f32.mrb[7].mxu1 }
 0xd30   :  { %v6926_v6 = vsel %vm287_vm0, %v13840_v27, -inf }
 0xd32   :  { %v13842_v22 = vpop.f32.mrb[8].mxu1 }
 0xd33   :  { %v13844_v52 = vpop.f32.mrb[9].mxu1  ;;  %v6935_v4 = vsel %vm287_vm0, %v13842_v22, -inf }
 0xd34   :  { %v6932_v28 = vsel %vm287_vm0, %v13844_v52, -inf }
 0xd36   :  { %v13846_v30 = vpop.f32.mrb[10].mxu1 }
 0xd37   :  { %v13848_v61 = vpop.f32.mrb[11].mxu1  ;;  %v6941_v57 = vsel %vm287_vm0, %v13846_v30, -inf }
 0xd38   :  { %v6938_v15 = vsel %vm287_vm0, %v13848_v61, -inf }
 0xd3d   :  { %11074 = vrot.lane.b32.xlu1 %v13612_v7, %s11690_s30 }
 0xd41   :  { %11079 = vrot.lane.b32.xlu1 %v13623_v26, %s11690_s30 }
 0xd43   :  { %11069 = vrot.lane.b32.xlu0 %v13600_v48, %s11691_s4  ;;  %v6929_v48 = vsel %vm287_vm0, %v13838_v59, -inf }
 0xd45   :  { %11084 = vrot.lane.b32.xlu1 %v13635_v42, %s11690_s30 }
 0xd49   :  { %11089 = vrot.lane.b32.xlu1 %v13649_v5, %s11690_s30 }
 0xd62   :  { %6927 = vmax.xlane.f32.xlu0 %v6926_v6 }
 0xd66   :  { %6933 = vmax.xlane.f32.xlu0 %v6932_v28 }
 0xd6a   :  { %6939 = vmax.xlane.f32.xlu0 %v6938_v15 }
 0xd6d   :  { %6930 = vmax.xlane.f32.xlu1 %v6929_v48 }
 0xd71   :  { %6936 = vmax.xlane.f32.xlu1 %v6935_v4 }
 0xd75   :  { %6942 = vmax.xlane.f32.xlu1 %v6941_v57 }
 0xd98   :  { %v6073_v17 = vpop.xlane.xlu0 %6072  ;;  %v6483_v20 = vpop.xlane.xlu1 %6482 }
 0xd99   :  { %v6093_v6 = vsub.f32 %v13766_v33, %v6073_v17  ;;  %v6503_v28 = vsub.f32 %v13768_v37, %v6483_v20 }
 0xd9b   :  { %v6102_v15 = vmul.f32 1.442695, %v6093_v6  ;;  %v6512_v48 = vmul.f32 1.442695, %v6503_v28 }
 0xd9c   :  { %v6070_v51 = vpop.xlane.xlu1 %6069  ;;  %v6480_v60 = vpop.xlane.xlu0 %6479 }
 0xd9d   :  { %11309 = vpow2.f32 %v6102_v15  ;;  %v6092_v4 = vsub.f32 %v13770_v38, %v6070_v51  ;;  %v6502_v0 = vsub.f32 %v13772_v10, %v6480_v60 }
 0xd9e   :  { %11311 = vpow2.f32 %v6512_v48 }
 0xd9f   :  { %v6100_v57 = vmul.f32 1.442695, %v6092_v4  ;;  %v6510_v11 = vmul.f32 1.442695, %v6502_v0 }
 0xda0   :  { %v6079_v45 = vpop.xlane.xlu1 %6078  ;;  %v6076_v39 = vpop.xlane.xlu0 %6075 }
 0xda1   :  { %11313 = vpow2.f32 %v6100_v57  ;;  %v6095_v46 = vsub.f32 %v13778_v13, %v6079_v45  ;;  %v6094_v37 = vsub.f32 %v13782_v32, %v6076_v39 }
 0xda2   :  { %11315 = vpow2.f32 %v6510_v11 }
 0xda3   :  { %v6106_v33 = vmul.f32 1.442695, %v6095_v46  ;;  %v6104_v38 = vmul.f32 1.442695, %v6094_v37 }
 0xda4   :  { %v6489_v17 = vpop.xlane.xlu1 %6488  ;;  %v6486_v20 = vpop.xlane.xlu0 %6485 }
 0xda5   :  { %11317 = vpow2.f32 %v6106_v33  ;;  %v6505_v6 = vsub.f32 %v13780_v47, %v6489_v17  ;;  %v6504_v51 = vsub.f32 %v13784_v2, %v6486_v20 }
 0xda7   :  { %v13884_v60 = vpop.eup %11309  ;;  %v6516_v0 = vmul.f32 1.442695, %v6505_v6  ;;  %v6514_v10 = vmul.f32 1.442695, %v6504_v51 }
 0xda8   :  { %v6085_v28 = vpop.xlane.xlu1 %6084  ;;  %v6082_v15 = vpop.xlane.xlu0 %6081  ;;  %v6119_v45 = vsel %vm287_vm0, %v13884_v60, 0.0 }
 0xda9   :  { %v13888_v46 = vpop.eup %11311  ;;  %11319 = vpow2.f32 %v6516_v0  ;;  %v6097_v39 = vsub.f32 %v13790_v35, %v6085_v28  ;;  %v6096_v11 = vsub.f32 %v13794_v58, %v6082_v15  ;;  %6120 = vadd.xlane.f32.xlu1 %v6119_v45 }
 0xdaa   :  { %11321 = vpow2.f32 %v6514_v10  ;;  %v6529_v4 = vsel %vm287_vm0, %v13888_v46, 0.0 }
 0xdab   :  { %v13892_v13 = vpop.eup %11313  ;;  %11323 = vpow2.f32 %v6104_v38  ;;  %v6110_v47 = vmul.f32 1.442695, %v6097_v39  ;;  %v6108_v32 = vmul.f32 1.442695, %v6096_v11 }
 0xdac   :  { %v6495_v2 = vpop.xlane.xlu1 %6494  ;;  %v6492_v48 = vpop.xlane.xlu0 %6491  ;;  %v6116_v57 = vsel %vm287_vm0, %v13892_v13, 0.0 }
 0xdad   :  { %v13898_v33 = vpop.eup %11315  ;;  %11325 = vpow2.f32 %v6110_v47  ;;  %v6507_v35 = vsub.f32 %v13792_v44, %v6495_v2  ;;  %v6506_v58 = vsub.f32 %v13796_v3, %v6492_v48  ;;  %6530 = vadd.xlane.f32.xlu1 %v6529_v4  ;;  %6117 = vadd.xlane.f32.xlu0 %v6116_v57 }
 0xdae   :  { %11327 = vpow2.f32 %v6108_v32  ;;  %v6526_v38 = vsel %vm287_vm0, %v13898_v33, 0.0 }
 0xdaf   :  { %v13902_v37 = vpop.eup %11317  ;;  %v6520_v17 = vmul.f32 1.442695, %v6507_v35  ;;  %v6518_v20 = vmul.f32 1.442695, %v6506_v58 }
 0xdb0   :  { %v6091_v6 = vpop.xlane.xlu1 %6090  ;;  %v6125_v51 = vsel %vm287_vm0, %v13902_v37, 0.0  ;;  %v6088_v44 = vpop.xlane.xlu0 %6087 }
 0xdb1   :  { %11329 = vpow2.f32 %v6520_v17  ;;  %v6099_v0 = vsub.f32 %v13802_v40, %v6091_v6  ;;  %6126 = vadd.xlane.f32.xlu1 %v6125_v51  ;;  %6527 = vadd.xlane.f32.xlu0 %v6526_v38  ;;  %v6098_v32 = vsub.f32 %v13806_v29, %v6088_v44 }
 0xdb2   :  { %11331 = vpow2.f32 %v6518_v20 }
 0xdb3   :  { %v13909_v3 = vpop.eup %11319  ;;  %v6114_v28 = vmul.f32 1.442695, %v6099_v0  ;;  %v6112_v20 = vmul.f32 1.442695, %v6098_v32 }
 0xdb4   :  { %v13911_v10 = vpop.eup %11321  ;;  %v6501_v15 = vpop.xlane.xlu1 %6500  ;;  %v6535_v45 = vsel %vm287_vm0, %v13909_v3, 0.0 }
 0xdb5   :  { %v13915_v39 = vpop.eup %11323  ;;  %v6509_v11 = vsub.f32 %v13804_v12, %v6501_v15  ;;  %v6532_v40 = vsel %vm287_vm0, %v13911_v10, 0.0  ;;  %6536 = vadd.xlane.f32.xlu0 %v6535_v45  ;;  %11333 = vpow2.f32 %v6114_v28  ;;  %v6498_v48 = vpop.xlane.xlu0 %6497 }
 0xdb6   :  { %6533 = vadd.xlane.f32.xlu1 %v6532_v40  ;;  %v6122_v57 = vsel %vm287_vm0, %v13915_v39, 0.0  ;;  %v6508_v29 = vsub.f32 %v13812_v24, %v6498_v48 }
 0xdb7   :  { %v13920_v47 = vpop.eup %11325  ;;  %v6524_v2 = vmul.f32 1.442695, %v6509_v11 }
 0xdb8   :  { %v6131_v4 = vsel %vm287_vm0, %v13920_v47, 0.0  ;;  %v13927_v35 = vpop.eup %11327 }
 0xdb9   :  { %v6925_v12 = vpop.xlane.xlu1 %6924  ;;  %6123 = vadd.xlane.f32.xlu0 %v6122_v57  ;;  %11335 = vpow2.f32 %v6524_v2  ;;  %v6128_v38 = vsel %vm287_vm0, %v13927_v35, 0.0 }
 0xdba   :  { %v6945_v58 = vsub.f32 %v13830_v25, %v6925_v12  ;;  %6132 = vadd.xlane.f32.xlu1 %v6131_v4  ;;  %v6522_v25 = vmul.f32 1.442695, %v6508_v29  ;;  %v6922_v12 = vpop.xlane.xlu0 %6921 }
 0xdbb   :  { %v13930_v17 = vpop.eup %11329 }
 0xdbc   :  { %v6954_v6 = vmul.f32 1.442695, %v6945_v58  ;;  %v6541_v51 = vsel %vm287_vm0, %v13930_v17, 0.0  ;;  %v13937_v0 = vpop.eup %11331 }
 0xdbd   :  { %6129 = vadd.xlane.f32.xlu0 %v6128_v38  ;;  %v6538_v44 = vsel %vm287_vm0, %v13937_v0, 0.0  ;;  %v13965_v57 = vpop.permute.xlu1 %11074 }
 0xdbe   :  { %11337 = vpow2.f32 %v6954_v6  ;;  %6542 = vadd.xlane.f32.xlu1 %v6541_v51 }
 0xdbf   :  { %11339 = vpow2.f32 %v6112_v20  ;;  %v13941_v28 = vpop.eup %11333  ;;  %v13971_v20 = vpop.permute.xlu0 %11069 }
 0xdc0   :  { %11341 = vpow2.f32 %v6522_v25  ;;  %v6137_v24 = vsel %vm287_vm0, %v13941_v28, 0.0  ;;  %v6944_v25 = vsub.f32 %v13832_v53, %v6922_v12 }
 0xdc1   :  { %v13969_v58 = vpop.permute.xlu1 %11079 }
 0xdc2   :  { %6539 = vadd.xlane.f32.xlu1 %v6538_v44 }
 0xdc3   :  { %v13945_v15 = vpop.eup %11335 }
 0xdc4   :  { %v6547_v11 = vsel %vm287_vm0, %v13945_v15, 0.0 }
 0xdc5   :  { %v13973_v6 = vpop.permute.xlu1 %11084 }
 0xdc6   :  { %6138 = vadd.xlane.f32.xlu1 %v6137_v24 }
 0xdc8   :  { %v13947_v45 = vpop.eup %11337 }
 0xdc9   :  { %v6971_v40 = vsel %vm287_vm0, %v13947_v45, 0.0  ;;  %v13953_v32 = vpop.eup %11339  ;;  %v13977_v44 = vpop.permute.xlu1 %11089 }
 0xdca   :  { %6548 = vadd.xlane.f32.xlu1 %v6547_v11  ;;  %6972 = vadd.xlane.f32.xlu0 %v6971_v40  ;;  %v6134_v2 = vsel %vm287_vm0, %v13953_v32, 0.0  ;;  %v13957_v48 = vpop.eup %11341  ;;  %v6952_v11 = vmul.f32 1.442695, %v6944_v25 }
 0xdcb   :  { %v6544_v4 = vsel %vm287_vm0, %v13957_v48, 0.0 }
 0xdce   :  { %6135 = vadd.xlane.f32.xlu1 %v6134_v2 }
 0xdd2   :  { %6545 = vadd.xlane.f32.xlu1 %v6544_v4 }
 0xde0   :  { %11094 = vrot.lane.b32.xlu0 %v13612_v7, %s11687_s27 }
 0xde3   :  { %11099 = vrot.lane.b32.xlu1 %v13623_v26, %s11687_s27 }
 0xde7   :  { %11104 = vrot.lane.b32.xlu1 %v13635_v42, %s11687_s27 }
 0xdef   :  { %v6928_v29 = vpop.xlane.xlu0 %6927 }
 0xdf0   :  { %v6946_v51 = vsub.f32 %v13840_v27, %v6928_v29 }
 0xdf2   :  { %v6956_v38 = vmul.f32 1.442695, %v6946_v51 }
 0xdf3   :  { %v6934_v24 = vpop.xlane.xlu0 %6933 }
 0xdf4   :  { %11343 = vpow2.f32 %v6956_v38  ;;  %v6948_v2 = vsub.f32 %v13844_v52, %v6934_v24 }
 0xdf5   :  { %11345 = vpow2.f32 %v6952_v11 }
 0xdf6   :  { %v6960_v29 = vmul.f32 1.442695, %v6948_v2 }
 0xdf7   :  { %v6940_v34 = vpop.xlane.xlu0 %6939 }
 0xdf8   :  { %v6950_v53 = vsub.f32 %v13848_v61, %v6940_v34 }
 0xdfa   :  { %v6931_v40 = vpop.xlane.xlu1 %6930  ;;  %v6964_v51 = vmul.f32 1.442695, %v6950_v53 }
 0xdfb   :  { %v6947_v24 = vsub.f32 %v13838_v59, %v6931_v40 }
 0xdfd   :  { %v6958_v2 = vmul.f32 1.442695, %v6947_v24 }
 0xdfe   :  { %v13980_v4 = vpop.eup %11343  ;;  %v6937_v8 = vpop.xlane.xlu1 %6936 }
 0xdff   :  { %v6949_v16 = vsub.f32 %v13842_v22, %v6937_v8  ;;  %v6974_v27 = vsel %vm287_vm0, %v13980_v4, 0.0  ;;  %v13986_v38 = vpop.eup %11345 }
 0xe00   :  { %6975 = vadd.xlane.f32.xlu0 %v6974_v27  ;;  %v6968_v52 = vsel %vm287_vm0, %v13986_v38, 0.0 }
 0xe01   :  { %v6962_v12 = vmul.f32 1.442695, %v6949_v16 }
 0xe02   :  { %v6943_v11 = vpop.xlane.xlu1 %6942 }
 0xe03   :  { %11347 = vpow2.f32 %v6962_v12  ;;  %v6951_v27 = vsub.f32 %v13846_v30, %v6943_v11  ;;  %v11062_v11 = vunpack.i.h.bf16 %v13872_v49 }
 0xe04   :  { %11349 = vpow2.f32 %v6960_v29 }
 0xe05   :  { %11351 = vpow2.f32 %v6964_v51  ;;  %v6966_v29 = vmul.f32 1.442695, %v6951_v27 }
 0xe06   :  { %11353 = vpow2.f32 %v6958_v2  ;;  %v11061_v2 = vunpack.i.l.bf16 %v13872_v49 }
 0xe07   :  { %11355 = vpow2.f32 %v6966_v29 }
 0xe0b   :  { %6969 = vadd.xlane.f32.xlu1 %v6968_v52 }
 0xe0d   :  { %v13990_v25 = vpop.eup %11347 }
 0xe0e   :  { %v6983_v8 = vsel %vm287_vm0, %v13990_v25, 0.0  ;;  %v13994_v22 = vpop.eup %11349 }
 0xe0f   :  { %6984 = vadd.xlane.f32.xlu0 %v6983_v8  ;;  %v6980_v16 = vsel %vm287_vm0, %v13994_v22, 0.0  ;;  %v13998_v34 = vpop.eup %11351 }
 0xe10   :  { %v6986_v61 = vsel %vm287_vm0, %v13998_v34, 0.0  ;;  %v14012_v52 = vpop.eup %11353 }
 0xe11   :  { %v14016_v30 = vpop.eup %11355 }
 0xe13   :  { %6981 = vadd.xlane.f32.xlu0 %v6980_v16  ;;  %v6989_v16 = vsel %vm287_vm0, %v14016_v30, 0.0 }
 0xe17   :  { %6987 = vadd.xlane.f32.xlu0 %v6986_v61 }
 0xe1c   :  { %11109 = vrot.lane.b32.xlu1 %v13649_v5, %s11687_s27 }
 0xe2d   :  { %7161 = vrot.lane.b32.xlu0 %v13604_v41, %s11689_s29  ;;  %v6977_v41 = vsel %vm287_vm0, %v14012_v52, 0.0 }
 0xe31   :  { %7175 = vrot.lane.b32.xlu0 %v13641_v1, %s11689_s29 }
 0xe36   :  { %v6121_v53 = vpop.xlane.xlu1 %6120 }
 0xe37   :  { %11357 = vrcp.f32 %v6121_v53 }
 0xe3a   :  { %v14010_v12 = vpop.xlane.xlu1 %6530  ;;  %v6118_v51 = vpop.xlane.xlu0 %6117 }
 0xe3b   :  { %11359 = vrcp.f32 %v6118_v51 }
 0xe3e   :  { %v6127_v59 = vpop.xlane.xlu1 %6126  ;;  %v6528_v40 = vpop.xlane.xlu0 %6527 }
 0xe3f   :  { %11361 = vrcp.f32 %v6127_v59 }
 0xe40   :  { %6978 = vadd.xlane.f32.xlu1 %v6977_v41  ;;  %v10478_v41 = vpack.c.bf16 %v11062_v11, %v11061_v2  ;;  %v11076_v2 = vunpack.i.l.bf16 %v13965_v57 }
 0xe41   :  { %v11358_v61 = vpop.eup %11357 }
 0xe42   :  { %v6537_v1 = vpop.xlane.xlu0 %6536  ;;  %v6143_v51 = vmul.f32 %v11358_v61, %v13884_v60  ;;  %v11071_v60 = vunpack.i.l.bf16 %v13971_v20 }
 0xe43   :  { %v6534_v8 = vpop.xlane.xlu1 %6533 }
 0xe44   :  { %6990 = vadd.xlane.f32.xlu1 %v6989_v16  ;;  %v11066_v16 = vunpack.i.l.bf16 %v13874_v14  ;;  %v11077_v14 = vunpack.i.h.bf16 %v13965_v57 }
 0xe45   :  { %v11360_v24 = vpop.eup %11359 }
 0xe46   :  { %v6124_v27 = vpop.xlane.xlu0 %6123  ;;  %v6141_v53 = vmul.f32 %v11360_v24, %v13892_v13  ;;  %v10482_v59 = vpack.c.bf16 %v11067_v54, %v11066_v16  ;;  %v11072_v13 = vunpack.i.h.bf16 %v13971_v20 }
 0xe47   :  { %v6133_v29 = vpop.xlane.xlu1 %6132  ;;  %11363 = vrcp.f32 %v6124_v27 }
 0xe48   :  { %9854 = vmatprep.mubr.msk.f32.mxu0 %vm287_vm0, %v6141_v53  ;;  %11365 = vrcp.f32 %v6133_v29  ;;  %v10486_v27 = vpack.c.bf16 %v11072_v13, %v11071_v60  ;;  %v10514_v53 = vpack.c.bf16 %v11077_v14, %v11076_v2 }
 0xe49   :  { %9855 = vmatmul.mubr.msk.f32.vlgmr.msra.gmra.mrb[12].mxu0 %vm287_vm0, %v6143_v51  ;;  %v11362_v24 = vpop.eup %11361 }
 0xe4a   :  { %v6130_v36 = vpop.xlane.xlu0 %6129  ;;  %10477 = vmatpush3.bf16.msra.mxu0 %v13747_v55 }
 0xe4b   :  { %v6543_v49 = vpop.xlane.xlu1 %6542  ;;  %11367 = vrcp.f32 %v6130_v36  ;;  %10479 = vmatprep.subr.bf16.mxu0 %v10478_v41  ;;  %v6147_v36 = vmul.f32 %v11362_v24, %v13902_v37  ;;  %v11091_v24 = vunpack.i.l.bf16 %v13977_v44 }
 0xe4c   :  { %11369 = vrcp.f32 %v6528_v40 }
 0xe4e   :  { %10481 = vmatpush3.bf16.msra.mxu0 %v10478_v41 }
 0xe4f   :  { %v6540_v61 = vpop.xlane.xlu1 %6539  ;;  %10483 = vmatprep.subr.bf16.mxu0 %v10482_v59 }
 0xe51   :  { %v11364_v11 = vpop.eup %11363 }
 0xe52   :  { %v6145_v55 = vmul.f32 %v11364_v11, %v13915_v39  ;;  %10485 = vmatpush3.bf16.msra.mxu0 %v10482_v59  ;;  %v11366_v29 = vpop.eup %11365  ;;  %v11086_v59 = vunpack.i.l.bf16 %v13973_v6 }
 0xe53   :  { %v6139_v54 = vpop.xlane.xlu1 %6138  ;;  %10487 = vmatprep.subr.bf16.mxu0 %v10486_v27  ;;  %v6151_v51 = vmul.f32 %v11366_v29, %v13920_v47 }
 0xe54   :  { %9857 = vmatprep.mubr.msk.f32.mxu0 %vm287_vm0, %v6145_v55  ;;  %11371 = vrcp.f32 %v6139_v54 }
 0xe55   :  { %v11368_v20 = vpop.eup %11367  ;;  %7163 = vrot.lane.b32.xlu1 %v13602_v19, %s11689_s29  ;;  %9858 = vmatmul.mubr.msk.f32.gmra.mrb[14].mxu0 %vm287_vm0, %v6147_v36 }
 0xe56   :  { %v6149_v57 = vmul.f32 %v11368_v20, %v13927_v35  ;;  %10489 = vmatpush3.bf16.msra.mxu0 %v10486_v27  ;;  %v11370_v37 = vpop.eup %11369 }
 0xe57   :  { %v6549_v39 = vpop.xlane.xlu1 %6548  ;;  %10515 = vmatprep.subr.bf16.mxu0 %v10514_v53  ;;  %v6973_v41 = vpop.xlane.xlu0 %6972 }
 0xe58   :  { %9860 = vmatprep.mubr.msk.f32.mxu0 %vm287_vm0, %v6149_v57 }
 0xe59   :  { %7165 = vrot.lane.b32.xlu1 %v13616_v43, %s11689_s29  ;;  %9861 = vmatmul.mubr.msk.f32.gmra.mrb[16].mxu0 %vm287_vm0, %v6151_v51 }
 0xe5b   :  { %v6136_v19 = vpop.xlane.xlu1 %6135 }
 0xe5c   :  { %11373 = vrcp.f32 %v6136_v19 }
 0xe5d   :  { %7167 = vrot.lane.b32.xlu1 %v13614_v31, %s11689_s29  ;;  %11375 = vrcp.f32 %v14010_v12 }
 0xe5e   :  { %11377 = vrcp.f32 %v6534_v8  ;;  %v11372_v47 = vpop.eup %11371  ;;  %v11082_v8 = vunpack.i.h.bf16 %v13969_v58 }
 0xe5f   :  { %11379 = vrcp.f32 %v6537_v1  ;;  %v6546_v43 = vpop.xlane.xlu1 %6545  ;;  %v6155_v31 = vmul.f32 %v11372_v47, %v13941_v28 }
 0xe60   :  { %11381 = vrcp.f32 %v6540_v61 }
 0xe61   :  { %7169 = vrot.lane.b32.xlu1 %v13627_v21, %s11689_s29  ;;  %11383 = vrcp.f32 %v6543_v49  ;;  %v6551_v21 = vmul.f32 %v11370_v37, %v13898_v33  ;;  %v11087_v33 = vunpack.i.h.bf16 %v13973_v6  ;;  %v11095_v6 = vpop.permute.xlu0 %11094 }
 0xe62   :  { %11385 = vrcp.f32 %v6546_v43  ;;  %v11096_v27 = vunpack.i.l.bf16 %v11095_v6 }
 0xe63   :  { %11387 = vrcp.f32 %v6549_v39  ;;  %v10522_v61 = vpack.c.bf16 %v11087_v33, %v11086_v59 }
 0xe64   :  { %11389 = vrcp.f32 %v6973_v41 }
 0xe65   :  { %7171 = vrot.lane.b32.xlu1 %v13625_v9, %s11689_s29  ;;  %v11081_v9 = vunpack.i.l.bf16 %v13969_v58 }
 0xe66   :  { %v11374_v35 = vpop.eup %11373 }
 0xe67   :  { %v6153_v40 = vmul.f32 %v11374_v35, %v13953_v32  ;;  %v11376_v12 = vpop.eup %11375  ;;  %v10518_v49 = vpack.c.bf16 %v11082_v8, %v11081_v9 }
 0xe68   :  { %v11378_v1 = vpop.eup %11377  ;;  %v6553_v28 = vmul.f32 %v11376_v12, %v13888_v46 }
 0xe69   :  { %7173 = vrot.lane.b32.xlu1 %v13643_v56, %s11689_s29  ;;  %9863 = vmatprep.mubr.msk.f32.mxu0 %vm287_vm0, %v6153_v40  ;;  %v11380_v32 = vpop.eup %11379  ;;  %v6555_v56 = vmul.f32 %v11378_v1, %v13911_v10  ;;  %v11092_v10 = vunpack.i.h.bf16 %v13977_v44 }
 0xe6a   :  { %9864 = vmatmul.mubr.msk.f32.gmra.mrb[18].mxu0 %vm287_vm0, %v6155_v31  ;;  %v11382_v16 = vpop.eup %11381  ;;  %v6557_v58 = vmul.f32 %v11380_v32, %v13909_v3 }
 0xe6b   :  { %9910 = vmatprep.mubr.msk.f32.mxu0 %vm287_vm0, %v6551_v21  ;;  %v11384_v13 = vpop.eup %11383  ;;  %v6559_v46 = vmul.f32 %v11382_v16, %v13937_v0  ;;  %v10526_v2 = vpack.c.bf16 %v11092_v10, %v11091_v24  ;;  %v11097_v0 = vunpack.i.h.bf16 %v11095_v6 }
 0xe6c   :  { %v11386_v60 = vpop.eup %11385  ;;  %v6561_v11 = vmul.f32 %v11384_v13, %v13930_v17  ;;  %v11100_v17 = vpop.permute.xlu1 %11099 }
 0xe6d   :  { %v11388_v3 = vpop.eup %11387  ;;  %v6563_v14 = vmul.f32 %v11386_v60, %v13957_v48  ;;  %v10530_v55 = vpack.c.bf16 %v11097_v0, %v11096_v27  ;;  %v11102_v57 = vunpack.i.h.bf16 %v11100_v17 }
 0xe6e   :  { %9911 = vmatmul.mubr.msk.f32.vlgmr.msra.gmra.mrb[20].mxu0 %vm287_vm0, %v6553_v28  ;;  %v6565_v44 = vmul.f32 %v11388_v3, %v13945_v15  ;;  %v11390_v29 = vpop.eup %11389  ;;  %v11101_v15 = vunpack.i.l.bf16 %v11100_v17 }
 0xe6f   :  { %10517 = vmatpush3.bf16.msra.mxu0 %v10514_v53  ;;  %9913 = vmatprep.mubr.msk.f32.mxu0 %vm287_vm0, %v6555_v56  ;;  %v6995_v39 = vmul.f32 %v11390_v29, %v13947_v45 }
 0xe70   :  { %10519 = vmatprep.subr.bf16.mxu0 %v10518_v49  ;;  %v11105_v48 = vpop.permute.xlu1 %11104  ;;  %v10536_v37 = vpack.c.bf16 %v11102_v57, %v11101_v15 }
 0xe71   :  { %v11107_v47 = vunpack.i.h.bf16 %v11105_v48  ;;  %v11106_v43 = vunpack.i.l.bf16 %v11105_v48 }
 0xe72   :  { %9914 = vmatmul.mubr.msk.f32.gmra.mrb[22].mxu0 %vm287_vm0, %v6557_v58 }
 0xe73   :  { %10521 = vmatpush3.bf16.msra.mxu0 %v10518_v49  ;;  %9916 = vmatprep.mubr.msk.f32.mxu0 %vm287_vm0, %v6559_v46 }
 0xe74   :  { %10523 = vmatprep.subr.bf16.mxu0 %v10522_v61 }
 0xe76   :  { %9917 = vmatmul.mubr.msk.f32.gmra.mrb[24].mxu0 %vm287_vm0, %v6561_v11 }
 0xe77   :  { %10525 = vmatpush3.bf16.msra.mxu0 %v10522_v61  ;;  %9919 = vmatprep.mubr.msk.f32.mxu0 %vm287_vm0, %v6563_v14 }
 0xe78   :  { %10527 = vmatprep.subr.bf16.mxu0 %v10526_v2 }
 0xe7a   :  { %9920 = vmatmul.mubr.msk.f32.gmra.mrb[26].mxu0 %vm287_vm0, %v6565_v44 }
 0xe7b   :  { %10529 = vmatpush3.bf16.msra.mxu0 %v10526_v2 }
 0xe7c   :  { %10532 = vmatprep.subr.msk.bf16.mxu0 %vm13673_vm9, %v10530_v55 }
 0xe8d   :  { %v6976_v36 = vpop.xlane.xlu0 %6975 }
 0xe8e   :  { %11391 = vrcp.f32 %v6976_v36 }
 0xe98   :  { %v6970_v54 = vpop.xlane.xlu1 %6969  ;;  %v11392_v20 = vpop.eup %11391 }
 0xe99   :  { %11393 = vrcp.f32 %v6970_v54  ;;  %v6997_v19 = vmul.f32 %v11392_v20, %v13980_v4 }
 0xe9c   :  { %v11110_v35 = vpop.permute.xlu1 %11109  ;;  %v6985_v31 = vpop.xlane.xlu0 %6984 }
 0xe9d   :  { %v11112_v45 = vunpack.i.h.bf16 %v11110_v35  ;;  %v11111_v4 = vunpack.i.l.bf16 %v11110_v35 }
 0xe9f   :  { %v10548_v40 = vpack.c.bf16 %v11112_v45, %v11111_v4 }
 0xea0   :  { %v6982_v12 = vpop.xlane.xlu0 %6981 }
 0xea1   :  { %11395 = vrcp.f32 %v6982_v12 }
 0xea3   :  { %v11394_v53 = vpop.eup %11393 }
 0xea4   :  { %v6993_v51 = vmul.f32 %v11394_v53, %v13986_v38  ;;  %v10542_v38 = vpack.c.bf16 %v11107_v47, %v11106_v43  ;;  %v6988_v1 = vpop.xlane.xlu0 %6987 }
 0xea6   :  { %9966 = vmatprep.mubr.msk.f32.mxu0 %vm287_vm0, %v6993_v51 }
 0xea7   :  { %9967 = vmatmul.mubr.msk.f32.vlgmr.msra.gmra.mrb[28].mxu0 %vm287_vm0, %v6995_v39 }
 0xea8   :  { %10535 = vmatpush3.bf16.xpose.msk.msra.mxu0 %vm13673_vm9, %v10530_v55  ;;  %9969 = vmatprep.mubr.msk.f32.mxu0 %vm287_vm0, %v6997_v19  ;;  %v7162_v46 = vpop.permute.xlu0 %7161 }
 0xea9   :  { %10538 = vmatprep.subr.msk.bf16.mxu0 %vm13673_vm9, %v10536_v37 }
 0xeab   :  { %v11396_v28 = vpop.eup %11395 }
 0xeac   :  { %v7001_v63 = vmul.f32 %v11396_v28, %v13994_v22 }
 0xeb0   :  { %10541 = vmatpush3.bf16.xpose.msk.msra.mxu0 %vm13673_vm9, %v10536_v37 }
 0xeb1   :  { %10544 = vmatprep.subr.msk.bf16.mxu0 %vm13673_vm9, %v10542_v38 }
 0xeb8   :  { %10547 = vmatpush3.bf16.xpose.msk.msra.mxu0 %vm13673_vm9, %v10542_v38 }
 0xeb9   :  { %10550 = vmatprep.subr.msk.bf16.mxu0 %vm13673_vm9, %v10548_v40 }
 0xec0   :  { %10553 = vmatpush3.bf16.xpose.msk.msra.mxu0 %vm13673_vm9, %v10548_v40 }
 0xecd   :  { %v6979_v21 = vpop.xlane.xlu1 %6978 }
 0xece   :  { %11397 = vrcp.f32 %v6979_v21 }
 0xecf   :  { %11399 = vrcp.f32 %v6985_v31 }
 0xed0   :  { %11401 = vrcp.f32 %v6988_v1 }
 0xed1   :  { %v6991_v8 = vpop.xlane.xlu1 %6990 }
 0xed2   :  { %11403 = vrcp.f32 %v6991_v8 }
 0xed5   :  { %v7164_v9 = vpop.permute.xlu1 %7163 }
 0xed8   :  { %v11398_v32 = vpop.eup %11397 }
 0xed9   :  { %v6999_v41 = vmul.f32 %v11398_v32, %v14012_v52  ;;  %v7166_v56 = vpop.permute.xlu1 %7165  ;;  %v11400_v16 = vpop.eup %11399 }
 0xeda   :  { %v11402_v49 = vpop.eup %11401  ;;  %v7003_v33 = vmul.f32 %v11400_v16, %v13990_v25 }
 0xedb   :  { %9970 = vmatmul.mubr.msk.f32.gmra.mrb[30].mxu0 %vm287_vm0, %v6999_v41  ;;  %v7005_v13 = vmul.f32 %v11402_v49, %v13998_v34  ;;  %v7176_v34 = vpop.permute.xlu0 %7175 }
 0xedc   :  { %9972 = vmatprep.mubr.msk.f32.mxu0 %vm287_vm0, %v7001_v63  ;;  %v11404_v58 = vpop.eup %11403 }
 0xedd   :  { %v7168_v59 = vpop.permute.xlu1 %7167  ;;  %v7007_v52 = vmul.f32 %v11404_v58, %v14016_v30 }
 0xedf   :  { %9973 = vmatmul.mubr.msk.f32.gmra.mrb[32].mxu0 %vm287_vm0, %v7003_v33 }
 0xee0   :  { %9975 = vmatprep.mubr.msk.f32.mxu0 %vm287_vm0, %v7005_v13 }
 0xee1   :  { %v7170_v60 = vpop.permute.xlu1 %7169 }
 0xee3   :  { %9976 = vmatmul.mubr.msk.f32.gmra.mrb[34].mxu0 %vm287_vm0, %v7007_v52 }
 0xee4   :  { %9994 = vmatprep.mubr.msk.f32.mxu0 %vm5930_vm8, %v7162_v46 }
 0xee5   :  { %v7172_v25 = vpop.permute.xlu1 %7171 }
 0xee7   :  { %9995 = vmatmul.mubr.msk.f32.vlgmr.msra.gmra.mrb[36].mxu0 %vm5930_vm8, %v7164_v9 }
 0xee8   :  { %9997 = vmatprep.mubr.msk.f32.mxu0 %vm5930_vm8, %v7166_v56 }
 0xee9   :  { %v7174_v22 = vpop.permute.xlu1 %7173 }
 0xeeb   :  { %9998 = vmatmul.mubr.msk.f32.gmra.mrb[38].mxu0 %vm5930_vm8, %v7168_v59 }
 0xeec   :  { %10000 = vmatprep.mubr.msk.f32.mxu0 %vm5930_vm8, %v7170_v60 }
 0xeef   :  { %10001 = vmatmul.mubr.msk.f32.gmra.mrb[40].mxu0 %vm5930_vm8, %v7172_v25 }
 0xef0   :  { %10003 = vmatprep.mubr.msk.f32.mxu0 %vm5930_vm8, %v7174_v22 }
 0xef3   :  { %10004 = vmatmul.mubr.msk.f32.gmra.mrb[42].mxu0 %vm5930_vm8, %v7176_v34 }
 0xf1c   :  { %v14120_v30 = vpop.f32.mrb[12].mxu0 }
 0xf1d   :  { %v14122_v61 = vpop.f32.mrb[13].mxu0 }
 0xf28   :  { %v14124_v10 = vpop.f32.mrb[14].mxu0 }
 0xf29   :  { %v14126_v24 = vpop.f32.mrb[15].mxu0 }
 0xf2c   :  { %v14128_v6 = vpop.f32.mrb[16].mxu0 }
 0xf2d   :  { %v14130_v11 = vpop.f32.mrb[17].mxu0 }
 0xf3d   :  { %v14132_v3 = vpop.f32.mrb[18].mxu0 }
 0xf3e   :  { %v14134_v14 = vpop.f32.mrb[19].mxu0 }
 0xf41   :  { %v14136_v2 = vpop.f32.mrb[20].mxu0 }
 0xf42   :  { %v14138_v0 = vpop.f32.mrb[21].mxu0 }
 0xf45   :  { %v14140_v27 = vpop.f32.mrb[22].mxu0 }
 0xf46   :  { %v14142_v44 = vpop.f32.mrb[23].mxu0 }
 0xf49   :  { %v14144_v55 = vpop.f32.mrb[24].mxu0 }
 0xf4a   :  { %v14146_v17 = vpop.f32.mrb[25].mxu0 }
 0xf4d   :  { %v14148_v48 = vpop.f32.mrb[26].mxu0 }
 0xf4e   :  { %v14150_v36 = vpop.f32.mrb[27].mxu0 }
 0xf7a   :  { %v14152_v54 = vpop.f32.mrb[28].mxu0 }
 0xf7b   :  { %v14154_v29 = vpop.f32.mrb[29].mxu0 }
 0xfae   :  { %v14156_v20 = vpop.f32.mrb[30].mxu0 }
 0xfaf   :  { %v14158_v53 = vpop.f32.mrb[31].mxu0 }
 0xfb2   :  { %v14160_v57 = vpop.f32.mrb[32].mxu0 }
 0xfb3   :  { %v14162_v15 = vpop.f32.mrb[33].mxu0 }
 0xfb6   :  { %v14164_v51 = vpop.f32.mrb[34].mxu0 }
 0xfb7   :  { %v14166_v39 = vpop.f32.mrb[35].mxu0 }
 0xfba   :  { %v9996_v19 = vpop.f32.mrb[36].mxu0 }
 0xfbb   :  { %v7291_v37 = vpop.f32.mrb[37].mxu0  ;;  %v7333_v47 = vsel %vm287_vm0, %v9996_v19, -inf }
 0xfbc   :  { %7334 = vmax.xlane.f32.xlu0 %v7333_v47  ;;  %v7330_v43 = vsel %vm287_vm0, %v7291_v37, -inf }
 0xfbd   :  { %7331 = vmax.xlane.f32.xlu1 %v7330_v43 }
 0xfbe   :  { %v9999_v38 = vpop.f32.mrb[38].mxu0 }
 0xfbf   :  { %v7301_v35 = vpop.f32.mrb[39].mxu0  ;;  %v7339_v31 = vsel %vm287_vm0, %v9999_v38, -inf }
 0xfc0   :  { %v7336_v45 = vsel %vm287_vm0, %v7301_v35, -inf }
 0xfc1   :  { %7337 = vmax.xlane.f32.xlu0 %v7336_v45 }
 0xfc2   :  { %v10002_v4 = vpop.f32.mrb[40].mxu0 }
 0xfc3   :  { %v7311_v40 = vpop.f32.mrb[41].mxu0  ;;  %v7345_v9 = vsel %vm287_vm0, %v10002_v4, -inf }
 0xfc4   :  { %v7342_v12 = vsel %vm287_vm0, %v7311_v40, -inf }
 0xfc5   :  { %7340 = vmax.xlane.f32.xlu0 %v7339_v31  ;;  %7343 = vmax.xlane.f32.xlu1 %v7342_v12 }
 0xfc6   :  { %v10005_v21 = vpop.f32.mrb[42].mxu0 }
 0xfc7   :  { %v7321_v1 = vpop.f32.mrb[43].mxu0  ;;  %v7351_v28 = vsel %vm287_vm0, %v10005_v21, -inf }
 0xfc8   :  { %v7348_v8 = vsel %vm287_vm0, %v7321_v1, -inf }
 0xfc9   :  { %7346 = vmax.xlane.f32.xlu0 %v7345_v9  ;;  %7349 = vmax.xlane.f32.xlu1 %v7348_v8 }
 0xfcd   :  { %7352 = vmax.xlane.f32.xlu0 %v7351_v28 }
 0xfda   :  { %11114 = vrot.lane.b32.xlu1 %v13612_v7, %s11691_s4 }
0x1049   :  { %v7335_v32 = vpop.xlane.xlu0 %7334 }
0x104a   :  { %v7355_v41 = vsub.f32 %v9996_v19, %v7335_v32  ;;  %v7332_v56 = vpop.xlane.xlu1 %7331 }
0x104b   :  { %v7354_v16 = vsub.f32 %v7291_v37, %v7332_v56 }
0x104c   :  { %v7364_v63 = vmul.f32 1.442695, %v7355_v41 }
0x104d   :  { %v7362_v49 = vmul.f32 1.442695, %v7354_v16 }
0x104e   :  { %11405 = vpow2.f32 %v7364_v63  ;;  %v7338_v33 = vpop.xlane.xlu0 %7337 }
0x104f   :  { %11407 = vpow2.f32 %v7362_v49  ;;  %v7356_v59 = vsub.f32 %v7301_v35, %v7338_v33 }
0x1051   :  { %v7366_v58 = vmul.f32 1.442695, %v7356_v59 }
0x1052   :  { %v7341_v13 = vpop.xlane.xlu0 %7340  ;;  %v7344_v52 = vpop.xlane.xlu1 %7343 }
0x1053   :  { %11409 = vpow2.f32 %v7366_v58  ;;  %v7357_v46 = vsub.f32 %v9999_v38, %v7341_v13  ;;  %v7358_v60 = vsub.f32 %v7311_v40, %v7344_v52 }
0x1055   :  { %v7368_v25 = vmul.f32 1.442695, %v7357_v46  ;;  %v7370_v22 = vmul.f32 1.442695, %v7358_v60 }
0x1056   :  { %v7347_v34 = vpop.xlane.xlu0 %7346  ;;  %v7350_v7 = vpop.xlane.xlu1 %7349 }
0x1057   :  { %11411 = vpow2.f32 %v7368_v25  ;;  %v7359_v19 = vsub.f32 %v10002_v4, %v7347_v34  ;;  %v7360_v45 = vsub.f32 %v7321_v1, %v7350_v7 }
0x1058   :  { %v14178_v47 = vpop.eup %11405  ;;  %11413 = vpow2.f32 %v7370_v22 }
0x1059   :  { %v11408_v37 = vpop.eup %11407  ;;  %v7372_v43 = vmul.f32 1.442695, %v7359_v19  ;;  %v7381_v35 = vsel %vm287_vm0, %v14178_v47, 0.0  ;;  %v7374_v28 = vmul.f32 1.442695, %v7360_v45 }
0x105a   :  { %7382 = vadd.xlane.f32.xlu0 %v7381_v35  ;;  %v7353_v31 = vpop.xlane.xlu0 %7352  ;;  %v11115_v12 = vpop.permute.xlu1 %11114  ;;  %v7378_v38 = vsel %vm287_vm0, %v11408_v37, 0.0 }
0x105b   :  { %11415 = vpow2.f32 %v7372_v43  ;;  %v7361_v40 = vsub.f32 %v10005_v21, %v7353_v31  ;;  %v11117_v8 = vunpack.i.h.bf16 %v11115_v12  ;;  %v11116_v9 = vunpack.i.l.bf16 %v11115_v12  ;;  %7379 = vadd.xlane.f32.xlu1 %v7378_v38  ;;  %v7628_v31 = vld [vmem:[#allocation7 + $0x130] sm:$0xff] }
0x105d   :  { %v14183_v4 = vpop.eup %11409  ;;  %v7376_v32 = vmul.f32 1.442695, %v7361_v40  ;;  %v10554_v41 = vpack.c.bf16 %v11117_v8, %v11116_v9  ;;  %v7629_v9 = vld [vmem:[#allocation7 + $0x138] sm:$0xff] }
0x105e   :  { %v7384_v1 = vsel %vm287_vm0, %v14183_v4, 0.0 }
0x105f   :  { %11417 = vpow2.f32 %v7376_v32  ;;  %7385 = vadd.xlane.f32.xlu1 %v7384_v1  ;;  %10555 = vmatprep.subr.bf16.mxu1 %v10554_v41 }
0x1060   :  { %10557 = vmatpush3.bf16.msra.mxu1 %v10554_v41  ;;  %11419 = vpow2.f32 %v7374_v28  ;;  %v7630_v28 = vld [vmem:[#allocation7 + $0x140] sm:$0xff] }
0x1061   :  { %v14187_v56 = vpop.eup %11411  ;;  %v10574_v1 = vpack.c.bf16 %v7630_v28, %v7629_v9 }
0x1062   :  { %v14189_v16 = vpop.eup %11413  ;;  %v7387_v21 = vsel %vm287_vm0, %v14187_v56, 0.0 }
0x1063   :  { %7388 = vadd.xlane.f32.xlu0 %v7387_v21  ;;  %v7390_v63 = vsel %vm287_vm0, %v14189_v16, 0.0 }
0x1064   :  { %7391 = vadd.xlane.f32.xlu1 %v7390_v63 }
0x1065   :  { %v14195_v49 = vpop.eup %11415 }
0x1066   :  { %v7393_v33 = vsel %vm287_vm0, %v14195_v49, 0.0 }
0x1067   :  { %7394 = vadd.xlane.f32.xlu0 %v7393_v33 }
0x1069   :  { %v14199_v59 = vpop.eup %11417 }
0x106a   :  { %v7399_v58 = vsel %vm287_vm0, %v14199_v59, 0.0  ;;  %v14203_v13 = vpop.eup %11419 }
0x106b   :  { %7400 = vadd.xlane.f32.xlu0 %v7399_v58  ;;  %v7396_v52 = vsel %vm287_vm0, %v14203_v13, 0.0 }
0x106f   :  { %7397 = vadd.xlane.f32.xlu0 %v7396_v52 }
0x1075   :  { %11124 = vrot.lane.b32.xlu1 %v13635_v42, %s11691_s4 }
0x1079   :  { %11129 = vrot.lane.b32.xlu1 %v13649_v5, %s11691_s4 }
0x107d   :  { %6727 = vrot.lane.b32.xlu1 %v14138_v0, %s11692_s5 }
0x1081   :  { %6729 = vrot.lane.b32.xlu1 %v14136_v2, %s11692_s5 }
0x1085   :  { %6731 = vrot.lane.b32.xlu1 %v14142_v44, %s11692_s5  ;;  %11119 = vrot.lane.b32.xlu0 %v13623_v26, %s11691_s4 }
0x1089   :  { %6735 = vrot.lane.b32.xlu1 %v14146_v17, %s11692_s5  ;;  %6733 = vrot.lane.b32.xlu0 %v14140_v27, %s11692_s5 }
0x108d   :  { %6739 = vrot.lane.b32.xlu1 %v14150_v36, %s11692_s5  ;;  %6737 = vrot.lane.b32.xlu0 %v14144_v55, %s11692_s5 }
0x1091   :  { %6741 = vrot.lane.b32.xlu0 %v14148_v48, %s11692_s5 }
0x10e7   :  { %v7383_v5 = vpop.xlane.xlu0 %7382 }
0x10e8   :  { %v7380_v42 = vpop.xlane.xlu1 %7379 }
0x10e9   :  { %11421 = vrcp.f32 %v7380_v42 }
0x10ea   :  { %11423 = vrcp.f32 %v7383_v5 }
0x10ec   :  { %v7386_v2 = vpop.xlane.xlu1 %7385 }
0x10ed   :  { %11425 = vrcp.f32 %v7386_v2 }
0x10f0   :  { %v7389_v26 = vpop.xlane.xlu0 %7388 }
0x10f1   :  { %v7392_v46 = vpop.xlane.xlu1 %7391  ;;  %11427 = vrcp.f32 %v7389_v26 }
0x10f2   :  { %11429 = vrcp.f32 %v7392_v46 }
0x10f3   :  { %v11422_v0 = vpop.eup %11421 }
0x10f4   :  { %v7395_v44 = vpop.xlane.xlu0 %7394  ;;  %v7403_v17 = vmul.f32 %v11422_v0, %v11408_v37  ;;  %v7627_v37 = vld [vmem:[#allocation7 + $0x128] sm:$0xff]  ;;  %v11424_v8 = vpop.eup %11423 }
0x10f5   :  { %v11125_v60 = vpop.permute.xlu1 %11124  ;;  %11431 = vrcp.f32 %v7395_v44  ;;  %v10570_v40 = vpack.c.bf16 %v7628_v31, %v7627_v37  ;;  %v7405_v41 = vmul.f32 %v11424_v8, %v14178_v47  ;;  %v14284_v31 = vld [vmem:[#allocation7 + $0x148] ss:$0 sm:$0xff] }
0x10f6   :  { %10022 = vmatprep.mubr.msk.f32.mxu1 %vm287_vm0, %v7403_v17  ;;  %v11127_v22 = vunpack.i.h.bf16 %v11125_v60  ;;  %v11126_v55 = vunpack.i.l.bf16 %v11125_v60 }
0x10f7   :  { %v11426_v32 = vpop.eup %11425 }
0x10f8   :  { %v7401_v27 = vpop.xlane.xlu0 %7400  ;;  %v10562_v43 = vpack.c.bf16 %v11127_v22, %v11126_v55  ;;  %v7407_v33 = vmul.f32 %v11426_v32, %v14183_v4 }
0x10f9   :  { %v11130_v48 = vpop.permute.xlu1 %11129 }
0x10fa   :  { %v11132_v45 = vunpack.i.h.bf16 %v11130_v48  ;;  %v11131_v35 = vunpack.i.l.bf16 %v11130_v48 }
0x10fb   :  { %v11428_v21 = vpop.eup %11427 }
0x10fc   :  { %v7398_v36 = vpop.xlane.xlu0 %7397  ;;  %v10566_v12 = vpack.c.bf16 %v11132_v45, %v11131_v35  ;;  %v11430_v58 = vpop.eup %11429  ;;  %v7409_v52 = vmul.f32 %v11428_v21, %v14187_v56 }
0x10fd   :  { %v6728_v38 = vpop.permute.xlu1 %6727  ;;  %11433 = vrcp.f32 %v7398_v36  ;;  %v7411_v5 = vmul.f32 %v11430_v58, %v14189_v16 }
0x10fe   :  { %11435 = vrcp.f32 %v7401_v27  ;;  %v6751_v44 = vsel %vm5930_vm8, %v14122_v61, %v6728_v38 }
0x10ff   :  { %v11432_v42 = vpop.eup %11431  ;;  %v7611_v17 = vadd.f32 %v6751_v44, %v13342_v18 }
0x1100   :  { %v11120_v25 = vpop.permute.xlu0 %11119  ;;  %v7413_v4 = vmul.f32 %v11432_v42, %v14195_v49 }
0x1101   :  { %v11122_v34 = vunpack.i.h.bf16 %v11120_v25  ;;  %v11121_v7 = vunpack.i.l.bf16 %v11120_v25  ;;  %v6730_v63 = vpop.permute.xlu1 %6729 }
0x1102   :  { %v6752_v46 = vsel %vm5930_vm8, %v14120_v30, %v6730_v63 }
0x1103   :  { %v10558_v19 = vpack.c.bf16 %v11122_v34, %v11121_v7  ;;  %v7612_v61 = vadd.f32 %v6752_v46, %v13340_v23  ;;  %v14395_v23 = vld [vmem:[#allocation13_spill] sm:$0xff]  ;;  %v14397_v34 = vld [vmem:[#allocation15_spill] sm:$0xff] }
0x1104   :  { %v6734_v56 = vpop.permute.xlu0 %6733 }
0x1105   :  { %10559 = vmatprep.subr.bf16.mxu1 %v10558_v19  ;;  %v6732_v47 = vpop.permute.xlu1 %6731  ;;  %v6754_v60 = vsel %vm5930_vm8, %v14124_v10, %v6734_v56  ;;  %v14400_v56 = vld [vmem:[#allocation16_spill] sm:$0xff] }
0x1106   :  { %10561 = vmatpush3.bf16.msra.mxu1 %v10558_v19  ;;  %v6753_v49 = vsel %vm5930_vm8, %v14126_v24, %v6732_v47  ;;  %v7614_v24 = vadd.f32 %v6754_v60, %v13348_v50 }
0x1107   :  { %10563 = vmatprep.subr.bf16.mxu1 %v10562_v43  ;;  %v11434_v2 = vpop.eup %11433 }
0x1108   :  { %v11436_v26 = vpop.eup %11435  ;;  %v7415_v0 = vmul.f32 %v11434_v2, %v14203_v13  ;;  %v6738_v13 = vpop.permute.xlu0 %6737 }
0x1109   :  { %v7417_v16 = vmul.f32 %v11436_v26, %v14199_v59  ;;  %v6736_v27 = vpop.permute.xlu1 %6735  ;;  %v7613_v59 = vadd.f32 %v6753_v49, %v13350_v62  ;;  %v6756_v36 = vsel %vm5930_vm8, %v14128_v6, %v6738_v13  ;;  %v14396_v62 = vld [vmem:[#allocation12_spill] sm:$0xff]  ;;  %v14398_v6 = vld [vmem:[#allocation14_spill] sm:$0xff] }
0x110a   :  { %10565 = vmatpush3.bf16.msra.mxu1 %v10562_v43  ;;  %v6755_v18 = vsel %vm5930_vm8, %v14130_v11, %v6736_v27  ;;  %v7616_v11 = vadd.f32 %v6756_v36, %v14396_v62  ;;  %v14402_v13 = vld [vmem:[#allocation18_spill] sm:$0xff] }
0x110b   :  { %10567 = vmatprep.subr.bf16.mxu1 %v10566_v12  ;;  %v7615_v25 = vadd.f32 %v6755_v18, %v14395_v23  ;;  %v14406_v62 = vld [vmem:[#allocation22_spill] sm:$0xff] }
0x110c   :  { %v6742_v22 = vpop.permute.xlu0 %6741 }
0x110d   :  { %v6740_v30 = vpop.permute.xlu1 %6739  ;;  %v6758_v55 = vsel %vm5930_vm8, %v14132_v3, %v6742_v22 }
0x110e   :  { %10569 = vmatpush3.bf16.msra.mxu1 %v10566_v12  ;;  %v6757_v10 = vsel %vm5930_vm8, %v14134_v14, %v6740_v30  ;;  %v7618_v7 = vadd.f32 %v6758_v55, %v14398_v6  ;;  %v14403_v30 = vld [vmem:[#allocation21_spill] sm:$0xff] }
0x110f   :  { %10571 = vmatprep.subr.bf16.mxu1 %v10570_v40  ;;  %v7617_v50 = vadd.f32 %v6757_v10, %v14397_v34  ;;  %v14405_v10 = vld [vmem:[#allocation23_spill] sm:$0xff] }
0x1111   :  { %10023 = vmatmul.mubr.msk.f32.vlgmr.msra.gmra.mrb[12].mxu1 %vm287_vm0, %v7405_v41 }
0x1112   :  { %10025 = vmatprep.mubr.msk.f32.mxu1 %vm287_vm0, %v7407_v33  ;;  %10573 = vmatpush3.bf16.msra.mxu1 %v10570_v40 }
0x1113   :  { %10575 = vmatprep.subr.bf16.mxu1 %v10574_v1 }
0x1115   :  { %10026 = vmatmul.mubr.msk.f32.gmra.mrb[14].mxu1 %vm287_vm0, %v7409_v52 }
0x1116   :  { %10028 = vmatprep.mubr.msk.f32.mxu1 %vm287_vm0, %v7411_v5  ;;  %10577 = vmatpush3.bf16.msra.mxu1 %v10574_v1 }
0x1119   :  { %10029 = vmatmul.mubr.msk.f32.gmra.mrb[16].mxu1 %vm287_vm0, %v7413_v4 }
0x111a   :  { %10031 = vmatprep.mubr.msk.f32.mxu1 %vm287_vm0, %v7415_v0  ;;  %v14399_v0 = vld [vmem:[#allocation17_spill] sm:$0xff] }
0x111d   :  { %10032 = vmatmul.mubr.msk.f32.gmra.mrb[18].mxu1 %vm287_vm0, %v7417_v16 }
0x111e   :  { %10042 = vmatprep.mubr.msk.f32.mxu1 %vm5452_vm7, %v7611_v17 }
0x1121   :  { %10043 = vmatmul.mubr.msk.f32.vlgmr.msra.gmra.mrb[20].mxu1 %vm5452_vm7, %v7612_v61 }
0x1122   :  { %10045 = vmatprep.mubr.msk.f32.mxu1 %vm5452_vm7, %v7613_v59 }
0x1125   :  { %10046 = vmatmul.mubr.msk.f32.gmra.mrb[22].mxu1 %vm5452_vm7, %v7614_v24  ;;  %v14404_v24 = vld [vmem:[#allocation20_spill] sm:$0xff] }
0x1126   :  { %10048 = vmatprep.mubr.msk.f32.mxu1 %vm5452_vm7, %v7615_v25 }
0x1129   :  { %10049 = vmatmul.mubr.msk.f32.gmra.mrb[24].mxu1 %vm5452_vm7, %v7616_v11 }
0x112a   :  { %10051 = vmatprep.mubr.msk.f32.mxu1 %vm5452_vm7, %v7617_v50 }
0x112d   :  { %10052 = vmatmul.mubr.msk.f32.gmra.mrb[26].mxu1 %vm5452_vm7, %v7618_v7 }
0x11e4   :  { %v10024_v14 = vpop.f32.mrb[12].mxu1 }
0x11e5   :  { %7581 = vrot.lane.b32.xlu0 %v10024_v14, %s11692_s5  ;;  %v7532_v48 = vpop.f32.mrb[13].mxu1 }
0x11e6   :  { %7579 = vrot.lane.b32.xlu1 %v7532_v48, %s11692_s5 }
0x11e8   :  { %v10027_v19 = vpop.f32.mrb[14].mxu1 }
0x11e9   :  { %7585 = vrot.lane.b32.xlu0 %v10027_v19, %s11692_s5  ;;  %v7542_v3 = vpop.f32.mrb[15].mxu1 }
0x11ea   :  { %7583 = vrot.lane.b32.xlu1 %v7542_v3, %s11692_s5 }
0x11ec   :  { %v10030_v43 = vpop.f32.mrb[16].mxu1 }
0x11ed   :  { %7589 = vrot.lane.b32.xlu0 %v10030_v43, %s11692_s5  ;;  %v7552_v45 = vpop.f32.mrb[17].mxu1 }
0x11ee   :  { %7587 = vrot.lane.b32.xlu1 %v7552_v45, %s11692_s5 }
0x11f0   :  { %v10033_v35 = vpop.f32.mrb[18].mxu1 }
0x11f1   :  { %7593 = vrot.lane.b32.xlu0 %v10033_v35, %s11692_s5  ;;  %v7562_v37 = vpop.f32.mrb[19].mxu1 }
0x11f2   :  { %7591 = vrot.lane.b32.xlu1 %v7562_v37, %s11692_s5 }
0x11f4   :  { %v10044_v12 = vpop.f32.mrb[20].mxu1 }
0x11f5   :  { %v7756_v38 = vadd.f32 %v10044_v12, %v14284_v31  ;;  %v7750_v40 = vpop.f32.mrb[21].mxu1 }
0x11f6   :  { %v7751_v8 = vadd.f32 %v14284_v31, %v7750_v40 }
0x11f7   :  { %7830 = vst.msk [vmem:[#allocation8 + $0x8] sm:$0xff] %vm287_vm0, %v7756_v38 }
0x11f8   :  { %7829 = vst.msk [vmem:[#allocation8] sm:$0xff] %vm287_vm0, %v7751_v8  ;;  %v10047_v9 = vpop.f32.mrb[22].mxu1 }
0x11f9   :  { %v7766_v28 = vadd.f32 %v10047_v9, %v14284_v31  ;;  %v7760_v32 = vpop.f32.mrb[23].mxu1 }
0x11fa   :  { %v7761_v41 = vadd.f32 %v14284_v31, %v7760_v32 }
0x11fb   :  { %7832 = vst.msk [vmem:[#allocation8 + $0x18] sm:$0xff] %vm287_vm0, %v7766_v28 }
0x11fc   :  { %7831 = vst.msk [vmem:[#allocation8 + $0x10] sm:$0xff] %vm287_vm0, %v7761_v41  ;;  %v10050_v1 = vpop.f32.mrb[24].mxu1 }
0x11fd   :  { %v7776_v21 = vadd.f32 %v10050_v1, %v14284_v31  ;;  %v7770_v63 = vpop.f32.mrb[25].mxu1 }
0x11fe   :  { %v7771_v33 = vadd.f32 %v14284_v31, %v7770_v63 }
0x11ff   :  { %7834 = vst.msk [vmem:[#allocation8 + $0x28] sm:$0xff] %vm287_vm0, %v7776_v21 }
0x1200   :  { %7833 = vst.msk [vmem:[#allocation8 + $0x20] sm:$0xff] %vm287_vm0, %v7771_v33  ;;  %v10053_v58 = vpop.f32.mrb[26].mxu1 }
0x1201   :  { %v7786_v52 = vadd.f32 %v10053_v58, %v14284_v31  ;;  %v7780_v42 = vpop.f32.mrb[27].mxu1 }
0x1202   :  { %v7781_v5 = vadd.f32 %v14284_v31, %v7780_v42 }
0x1203   :  { %7836 = vst.msk [vmem:[#allocation8 + $0x38] sm:$0xff] %vm287_vm0, %v7786_v52 }
0x1204   :  { %7835 = vst.msk [vmem:[#allocation8 + $0x30] sm:$0xff] %vm287_vm0, %v7781_v5 }
0x1257   :  { %v7582_v2 = vpop.permute.xlu0 %7581 }
0x1258   :  { %v7604_v47 = vsel %vm5930_vm8, %v14152_v54, %v7582_v2  ;;  %v7580_v4 = vpop.permute.xlu1 %7579  ;;  %v14401_v54 = vld [vmem:[#allocation19_spill] sm:$0xff] }
0x1259   :  { %v7603_v26 = vsel %vm5930_vm8, %v14154_v29, %v7580_v4  ;;  %v7620_v16 = vadd.f32 %v7604_v47, %v14400_v56 }
0x125a   :  { %v7619_v44 = vadd.f32 %v7603_v26, %v14399_v0 }
0x125b   :  { %v7586_v17 = vpop.permute.xlu0 %7585 }
0x125c   :  { %v7606_v46 = vsel %vm5930_vm8, %v14156_v20, %v7586_v17  ;;  %10054 = vmatprep.mubr.msk.f32.mxu1 %vm5452_vm7, %v7619_v44  ;;  %v7584_v27 = vpop.permute.xlu1 %7583 }
0x125d   :  { %v7605_v49 = vsel %vm5930_vm8, %v14158_v53, %v7584_v27  ;;  %10055 = vmatmul.mubr.msk.f32.gmra.mrb[28].mxu1 %vm5452_vm7, %v7620_v16  ;;  %v7622_v29 = vadd.f32 %v7606_v46, %v14402_v13 }
0x125e   :  { %v7621_v61 = vadd.f32 %v7605_v49, %v14401_v54 }
0x125f   :  { %v7590_v60 = vpop.permute.xlu0 %7589 }
0x1260   :  { %v7608_v59 = vsel %vm5930_vm8, %v14160_v57, %v7590_v60  ;;  %10057 = vmatprep.mubr.msk.f32.mxu1 %vm5452_vm7, %v7621_v61  ;;  %v7588_v18 = vpop.permute.xlu1 %7587 }
0x1261   :  { %v7607_v20 = vsel %vm5930_vm8, %v14162_v15, %v7588_v18  ;;  %10058 = vmatmul.mubr.msk.f32.gmra.mrb[30].mxu1 %vm5452_vm7, %v7622_v29  ;;  %v7624_v36 = vadd.f32 %v7608_v59, %v14404_v24 }
0x1262   :  { %v7623_v53 = vadd.f32 %v7607_v20, %v14403_v30 }
0x1263   :  { %v7594_v23 = vpop.permute.xlu0 %7593 }
0x1264   :  { %v7610_v25 = vsel %vm5930_vm8, %v14164_v51, %v7594_v23  ;;  %10060 = vmatprep.mubr.msk.f32.mxu1 %vm5452_vm7, %v7623_v53  ;;  %v7592_v22 = vpop.permute.xlu1 %7591 }
0x1265   :  { %v7609_v57 = vsel %vm5930_vm8, %v14166_v39, %v7592_v22  ;;  %10061 = vmatmul.mubr.msk.f32.gmra.mrb[32].mxu1 %vm5452_vm7, %v7624_v36  ;;  %v7626_v11 = vadd.f32 %v7610_v25, %v14406_v62 }
0x1266   :  { %v7625_v15 = vadd.f32 %v7609_v57, %v14405_v10 }
0x1268   :  { %10063 = vmatprep.mubr.msk.f32.mxu1 %vm5452_vm7, %v7625_v15 }
0x1269   :  { %10064 = vmatmul.mubr.msk.f32.gmra.mrb[34].mxu1 %vm5452_vm7, %v7626_v11 }
0x1330   :  { %v10056_v55 = vpop.f32.mrb[28].mxu1 }
0x1331   :  { %v7796_v34 = vadd.f32 %v10056_v55, %v14284_v31  ;;  %v7790_v51 = vpop.f32.mrb[29].mxu1 }
0x1332   :  { %v7791_v50 = vadd.f32 %v14284_v31, %v7790_v51 }
0x1333   :  { %7838 = vst.msk [vmem:[#allocation8 + $0x48] sm:$0xff] %vm287_vm0, %v7796_v34 }
0x1334   :  { %7837 = vst.msk [vmem:[#allocation8 + $0x40] sm:$0xff] %vm287_vm0, %v7791_v50  ;;  %v10059_v39 = vpop.f32.mrb[30].mxu1 }
0x1335   :  { %v7806_v6 = vadd.f32 %v10059_v39, %v14284_v31  ;;  %v7800_v7 = vpop.f32.mrb[31].mxu1 }
0x1336   :  { %v7801_v14 = vadd.f32 %v14284_v31, %v7800_v7 }
0x1337   :  { %7840 = vst.msk [vmem:[#allocation8 + $0x58] sm:$0xff] %vm287_vm0, %v7806_v6 }
0x1338   :  { %7839 = vst.msk [vmem:[#allocation8 + $0x50] sm:$0xff] %vm287_vm0, %v7801_v14  ;;  %v10062_v48 = vpop.f32.mrb[32].mxu1 }
0x1339   :  { %v7816_v19 = vadd.f32 %v10062_v48, %v14284_v31  ;;  %v7810_v3 = vpop.f32.mrb[33].mxu1 }
0x133a   :  { %v7811_v43 = vadd.f32 %v14284_v31, %v7810_v3 }
0x133b   :  { %7842 = vst.msk [vmem:[#allocation8 + $0x68] sm:$0xff] %vm287_vm0, %v7816_v19 }
0x133c   :  { %7841 = vst.msk [vmem:[#allocation8 + $0x60] sm:$0xff] %vm287_vm0, %v7811_v43  ;;  %v10065_v45 = vpop.f32.mrb[34].mxu1 }
0x133d   :  { %v7826_v35 = vadd.f32 %v10065_v45, %v14284_v31  ;;  %v7820_v37 = vpop.f32.mrb[35].mxu1 }
0x133e   :  { %v7821_v12 = vadd.f32 %v14284_v31, %v7820_v37 }
0x133f   :  { %7844 = vst.msk [vmem:[#allocation8 + $0x78] sm:$0xff] %vm287_vm0, %v7826_v35 }
0x1340   :  { %7843 = vst.msk [vmem:[#allocation8 + $0x70] sm:$0xff] %vm287_vm0, %v7821_v12 }
0x1341   :  { %11658 = shalt.err (!%p11655_p0)
}
0x1342   :  { %s11659_s12 = scalar_lea.hbm %s14368_s3, 2048 }
0x1343   :  { %p11660_p1 = scmp.ne.s32.totalorder %s14368_s3, %s11659_s12  ;;  %p11663_p2 = scmp.lt.u32.totalorder %s11659_s12, %s14368_s3 }
0x1345   :  { %p11665_p3 = pnand %p11663_p2, %p11660_p1 }
0x1347   :  { %11668 = shalt.err (!%p11665_p3)
}
0x1348   :  { %7856 = dma.vmem_to_hbm [thread:$0]  %s7851_s7, 2048, %s14368_s3, [#allocation4], %s11679_s1, %s11679_s1, %s11680_s9  }
0x1349   :  { %11673 = dma.done.wait [#allocation4], 2048  }
0x134a   :  { %11674 = vsyncadd [#allocation4], 4294965248 }
0x134b   :  { %7860 = vsyncpa [#allocation3], 1 }
0x134c   :  { %7861 = vsyncpa [#allocation6], 1 }
0x134d   :  { %7862 = vsyncpa [#allocation4], 1 }

</bundles_post_ra>
